<compile_context>
chip_gen: v6e
topology: v6e:2x2x1
jax: 0.10.0
libtpu: 0.0.40
codegen_flags: <defaults>
</compile_context>

<pallas_src>
import jax
import jax.numpy as jnp
import numpy as np
from jax.experimental import pallas as pl
from jax.experimental.pallas import tpu as pltpu

EPS = 1e-5


def recurrent_block_kernel(xpad_ref, w1_ref, b1_ref, g1_ref, be1_ref,
                           w2_ref, b2_ref, g2_ref, be2_ref, a_ref,
                           out_ref, patch_ref, halo_ref):
    N, Hp, Wp, Cp = xpad_ref.shape
    H, W = Hp - 2, Wp - 2
    M = N * H * W
    inv_m = 1.0 / float(M)

    a = a_ref[0]                                  # shared PReLU scalar (SMEM)

    def build_patches(src_ref):
        # im2col: pack the 9 shifted taps into one lane-dense patch buffer.
        # Lane offsets are multiples of Cp (=128k), so stores are aligned.
        for ky in range(3):
            for kx in range(3):
                k = ky * 3 + kx
                patch_ref[:, :, :, k * Cp:(k + 1) * Cp] = \
                    src_ref[:, ky:ky + H, kx:kx + W, :]

    def conv_bn_prelu(w_ref, b_ref, g_ref, be_ref):
        # single fused matmul: (N*H*W, 9*Cp) @ (9*Cp, Cp)
        patches = patch_ref[...].reshape(M, 9 * Cp)
        s = jnp.dot(patches, w_ref[...], preferred_element_type=jnp.float32)
        s = s + b_ref[...]                        # (M, Cp) + (1, Cp)

        # single-pass batch-norm statistics over the N*H*W rows
        ssum = jnp.sum(s, axis=0, keepdims=True)
        ssq = jnp.sum(s * s, axis=0, keepdims=True)
        mean = ssum * inv_m
        var = jnp.maximum(ssq * inv_m - mean * mean, 0.0)
        sn = (s - mean) * jax.lax.rsqrt(var + EPS) * g_ref[...] + be_ref[...]

        # PReLU with the shared scalar parameter
        return jnp.where(sn >= 0.0, sn, a * sn)

    # ---- conv1 -> BN1 -> PReLU ----------------------------------------------
    build_patches(xpad_ref)
    t = conv_bn_prelu(w1_ref, b1_ref, g1_ref, be1_ref)

    # ---- re-pad intermediate for conv2: zero only the 1-element halo --------
    zrow = jnp.zeros((N, 1, Wp, Cp), jnp.float32)
    zcol = jnp.zeros((N, H, 1, Cp), jnp.float32)
    halo_ref[:, 0:1, :, :] = zrow
    halo_ref[:, Hp - 1:Hp, :, :] = zrow
    halo_ref[:, 1:H + 1, 0:1, :] = zcol
    halo_ref[:, 1:H + 1, Wp - 1:Wp, :] = zcol
    halo_ref[:, 1:H + 1, 1:W + 1, :] = t.reshape(N, H, W, Cp)

    # ---- conv2 -> BN2 -> PReLU ----------------------------------------------
    build_patches(halo_ref)
    y = conv_bn_prelu(w2_ref, b2_ref, g2_ref, be2_ref)

    # ---- residual connection -------------------------------------------------
    out_ref[...] = y.reshape(N, H, W, Cp) + xpad_ref[:, 1:H + 1, 1:W + 1, :]


def recurrent_block_pallas(x_nchw, params):
    """x_nchw: (N, C, H, W) float32. Returns (N, C, H, W) float32."""
    N, C, H, W = x_nchw.shape
    Cp = ((C + 127) // 128) * 128                 # lane-dense channel padding

    # NCHW -> NHWC, spatial halo of 1 and channel pad to Cp in one fused pad.
    x = jnp.transpose(x_nchw.astype(jnp.float32), (0, 2, 3, 1))
    xpad = jnp.pad(x, ((0, 0), (1, 1), (1, 1), (0, Cp - C)))

    def pack_w(w):
        # (Cout, Cin, 3, 3) -> im2col weight (9*Cp, Cp), tap-major / ci-minor.
        wt = jnp.transpose(w, (2, 3, 1, 0))                     # (3,3,Cin,Cout)
        wt = jnp.pad(wt, ((0, 0), (0, 0), (0, Cp - C), (0, Cp - C)))
        return wt.reshape(9 * Cp, Cp)

    def pack_v(v):
        return jnp.pad(v, (0, Cp - C)).reshape(1, Cp)

    w1 = pack_w(params["w1"]);  w2 = pack_w(params["w2"])
    b1 = pack_v(params["b1"]);  b2 = pack_v(params["b2"])
    g1 = pack_v(params["g1"]);  g2 = pack_v(params["g2"])
    be1 = pack_v(params["be1"]); be2 = pack_v(params["be2"])
    a = params["a"].reshape(1).astype(jnp.float32)

    # Size the scoped VMEM limit from the actual buffers (with 2x headroom),
    # capped at 64 MiB so it stays valid on v7x as well.
    f32b = 4
    vmem_need = f32b * (
        2 * N * (H + 2) * (W + 2) * Cp            # padded input + halo scratch
        + N * H * W * 9 * Cp                      # im2col patch scratch
        + 2 * 9 * Cp * Cp + 8 * Cp                # weights + per-channel params
        + 6 * N * H * W * Cp                      # live f32 intermediates + out
    )
    vmem_limit = int(min(64 * 2**20, max(16 * 2**20, 2 * vmem_need)))

    vmem_spec = pl.BlockSpec(memory_space=pltpu.MemorySpace.VMEM)
    smem_spec = pl.BlockSpec(memory_space=pltpu.MemorySpace.SMEM)

    out_nhwc = pl.pallas_call(
        recurrent_block_kernel,
        out_shape=jax.ShapeDtypeStruct((N, H, W, Cp), jnp.float32),
        in_specs=[vmem_spec] * 9 + [smem_spec],
        out_specs=vmem_spec,
        scratch_shapes=[
            pltpu.VMEM((N, H, W, 9 * Cp), jnp.float32),        # im2col patches
            pltpu.VMEM((N, H + 2, W + 2, Cp), jnp.float32),    # conv2 halo buf
        ],
        compiler_params=pltpu.CompilerParams(vmem_limit_bytes=vmem_limit),
    )(xpad, w1, b1, g1, be1, w2, b2, g2, be2, a)

    # Boundary layout conversion back to the PyTorch NCHW interface.
    return jnp.transpose(out_nhwc[:, :, :, :C], (0, 3, 1, 2))


def recurrent_block_ref(x_nchw, params):
    """Pure-JAX reference matching the PyTorch module's forward."""
    x = x_nchw.astype(jnp.float32)

    def conv(t, w, b):
        y = jax.lax.conv_general_dilated(
            t, w, window_strides=(1, 1), padding=((1, 1), (1, 1)),
            dimension_numbers=("NCHW", "OIHW", "NCHW"))
        return y + b[None, :, None, None]

    def bn(t, g, be):
        mean = jnp.mean(t, axis=(0, 2, 3), keepdims=True)
        var = jnp.mean((t - mean) ** 2, axis=(0, 2, 3), keepdims=True)
        return (t - mean) * jax.lax.rsqrt(var + EPS) * g[None, :, None, None] \
               + be[None, :, None, None]

    def prelu(t, a):
        return jnp.where(t >= 0, t, a * t)

    a = params["a"][0]
    t = prelu(bn(conv(x, params["w1"], params["b1"]), params["g1"], params["be1"]), a)
    y = prelu(bn(conv(t, params["w2"], params["b2"]), params["g2"], params["be2"]), a)
    return y + x


def init_params(key, ch_out):
    k1, k2, k3, k4 = jax.random.split(key, 4)
    fan_in = ch_out * 3 * 3
    scale = 1.0 / np.sqrt(fan_in)
    return {
        "w1": scale * jax.random.normal(k1, (ch_out, ch_out, 3, 3), jnp.float32),
        "b1": scale * jax.random.normal(k2, (ch_out,), jnp.float32),
        "w2": scale * jax.random.normal(k3, (ch_out, ch_out, 3, 3), jnp.float32),
        "b2": scale * jax.random.normal(k4, (ch_out,), jnp.float32),
        # BatchNorm2d defaults: weight=1, bias=0
        "g1": jnp.ones((ch_out,), jnp.float32),
        "be1": jnp.zeros((ch_out,), jnp.float32),
        "g2": jnp.ones((ch_out,), jnp.float32),
        "be2": jnp.zeros((ch_out,), jnp.float32),
        # shared nn.PReLU() default init 0.25
        "a": jnp.full((1,), 0.25, jnp.float32),
    }


if __name__ == "__main__":
    key = jax.random.PRNGKey(0)
    kx, kp = jax.random.split(key)

    N, C, H, W = 2, 4, 16, 16
    x = jax.random.normal(kx, (N, C, H, W), jnp.float32)
    params = init_params(kp, C)

    out = recurrent_block_pallas(x, params)
    out = jax.block_until_ready(out)

    ref = jax.block_until_ready(recurrent_block_ref(x, params))
    max_err = float(jnp.max(jnp.abs(out - ref)))
    assert out.shape == (N, C, H, W)
    assert max_err < 1e-3, f"mismatch vs reference: max_err={max_err}"

    print("KERNEL_OK")
</pallas_src>

<mosaic_0001>
module attributes {stable_mosaic.version = 11 : i64} {
  func.func @recurrent_block_kernel(%arg0: memref<2x18x18x128xf32, #tpu.memory_space<vmem>>, %arg1: memref<1152x128xf32, #tpu.memory_space<vmem>>, %arg2: memref<1x128xf32, #tpu.memory_space<vmem>>, %arg3: memref<1x128xf32, #tpu.memory_space<vmem>>, %arg4: memref<1x128xf32, #tpu.memory_space<vmem>>, %arg5: memref<1152x128xf32, #tpu.memory_space<vmem>>, %arg6: memref<1x128xf32, #tpu.memory_space<vmem>>, %arg7: memref<1x128xf32, #tpu.memory_space<vmem>>, %arg8: memref<1x128xf32, #tpu.memory_space<vmem>>, %arg9: memref<1xf32, #tpu.memory_space<smem>>, %arg10: memref<2x16x16x128xf32, #tpu.memory_space<vmem>>, %arg11: memref<2x16x16x1152xf32, #tpu.memory_space<vmem>>, %arg12: memref<2x18x18x128xf32, #tpu.memory_space<vmem>>) attributes {dimension_semantics = [], scalar_prefetch = 0 : i64, scratch_operands = 2 : i64, tpu.core_type = #tpu.core_type<tc>} {
    %c0 = arith.constant 0 : index
    %0 = memref.load %arg9[%c0] : memref<1xf32, #tpu.memory_space<smem>>
    %c0_0 = arith.constant 0 : index
    %c0_1 = arith.constant 0 : index
    %c0_2 = arith.constant 0 : index
    %c0_3 = arith.constant 0 : index
    %1 = vector.load %arg0[%c0_0, %c0_1, %c0_2, %c0_3] : memref<2x18x18x128xf32, #tpu.memory_space<vmem>>, vector<2x16x16x128xf32>
    %c0_4 = arith.constant 0 : index
    %c0_5 = arith.constant 0 : index
    %c0_6 = arith.constant 0 : index
    %c0_7 = arith.constant 0 : index
    %2 = vector.load %arg11[%c0_4, %c0_5, %c0_6, %c0_7] : memref<2x16x16x1152xf32, #tpu.memory_space<vmem>>, vector<2x16x16x128xf32>
    tpu.vector_store %arg11[%c0_4, %c0_5, %c0_6, %c0_7], %1 {strides = array<i32>} : memref<2x16x16x1152xf32, #tpu.memory_space<vmem>>, vector<2x16x16x128xf32>,
    %c0_8 = arith.constant 0 : index
    %c0_9 = arith.constant 0 : index
    %c1 = arith.constant 1 : index
    %c0_10 = arith.constant 0 : index
    %3 = vector.load %arg0[%c0_8, %c0_9, %c1, %c0_10] : memref<2x18x18x128xf32, #tpu.memory_space<vmem>>, vector<2x16x16x128xf32>
    %c0_11 = arith.constant 0 : index
    %c0_12 = arith.constant 0 : index
    %c0_13 = arith.constant 0 : index
    %c128 = arith.constant 128 : index
    %4 = vector.load %arg11[%c0_11, %c0_12, %c0_13, %c128] : memref<2x16x16x1152xf32, #tpu.memory_space<vmem>>, vector<2x16x16x128xf32>
    tpu.vector_store %arg11[%c0_11, %c0_12, %c0_13, %c128], %3 {strides = array<i32>} : memref<2x16x16x1152xf32, #tpu.memory_space<vmem>>, vector<2x16x16x128xf32>,
    %c0_14 = arith.constant 0 : index
    %c0_15 = arith.constant 0 : index
    %c2 = arith.constant 2 : index
    %c0_16 = arith.constant 0 : index
    %5 = vector.load %arg0[%c0_14, %c0_15, %c2, %c0_16] : memref<2x18x18x128xf32, #tpu.memory_space<vmem>>, vector<2x16x16x128xf32>
    %c0_17 = arith.constant 0 : index
    %c0_18 = arith.constant 0 : index
    %c0_19 = arith.constant 0 : index
    %c256 = arith.constant 256 : index
    %6 = vector.load %arg11[%c0_17, %c0_18, %c0_19, %c256] : memref<2x16x16x1152xf32, #tpu.memory_space<vmem>>, vector<2x16x16x128xf32>
    tpu.vector_store %arg11[%c0_17, %c0_18, %c0_19, %c256], %5 {strides = array<i32>} : memref<2x16x16x1152xf32, #tpu.memory_space<vmem>>, vector<2x16x16x128xf32>,
    %c0_20 = arith.constant 0 : index
    %c1_21 = arith.constant 1 : index
    %c0_22 = arith.constant 0 : index
    %c0_23 = arith.constant 0 : index
    %7 = vector.load %arg0[%c0_20, %c1_21, %c0_22, %c0_23] : memref<2x18x18x128xf32, #tpu.memory_space<vmem>>, vector<2x16x16x128xf32>
    %c0_24 = arith.constant 0 : index
    %c0_25 = arith.constant 0 : index
    %c0_26 = arith.constant 0 : index
    %c384 = arith.constant 384 : index
    %8 = vector.load %arg11[%c0_24, %c0_25, %c0_26, %c384] : memref<2x16x16x1152xf32, #tpu.memory_space<vmem>>, vector<2x16x16x128xf32>
    tpu.vector_store %arg11[%c0_24, %c0_25, %c0_26, %c384], %7 {strides = array<i32>} : memref<2x16x16x1152xf32, #tpu.memory_space<vmem>>, vector<2x16x16x128xf32>,
    %c0_27 = arith.constant 0 : index
    %c1_28 = arith.constant 1 : index
    %c1_29 = arith.constant 1 : index
    %c0_30 = arith.constant 0 : index
    %9 = vector.load %arg0[%c0_27, %c1_28, %c1_29, %c0_30] : memref<2x18x18x128xf32, #tpu.memory_space<vmem>>, vector<2x16x16x128xf32>
    %c0_31 = arith.constant 0 : index
    %c0_32 = arith.constant 0 : index
    %c0_33 = arith.constant 0 : index
    %c512 = arith.constant 512 : index
    %10 = vector.load %arg11[%c0_31, %c0_32, %c0_33, %c512] : memref<2x16x16x1152xf32, #tpu.memory_space<vmem>>, vector<2x16x16x128xf32>
    tpu.vector_store %arg11[%c0_31, %c0_32, %c0_33, %c512], %9 {strides = array<i32>} : memref<2x16x16x1152xf32, #tpu.memory_space<vmem>>, vector<2x16x16x128xf32>,
    %c0_34 = arith.constant 0 : index
    %c1_35 = arith.constant 1 : index
    %c2_36 = arith.constant 2 : index
    %c0_37 = arith.constant 0 : index
    %11 = vector.load %arg0[%c0_34, %c1_35, %c2_36, %c0_37] : memref<2x18x18x128xf32, #tpu.memory_space<vmem>>, vector<2x16x16x128xf32>
    %c0_38 = arith.constant 0 : index
    %c0_39 = arith.constant 0 : index
    %c0_40 = arith.constant 0 : index
    %c640 = arith.constant 640 : index
    %12 = vector.load %arg11[%c0_38, %c0_39, %c0_40, %c640] : memref<2x16x16x1152xf32, #tpu.memory_space<vmem>>, vector<2x16x16x128xf32>
    tpu.vector_store %arg11[%c0_38, %c0_39, %c0_40, %c640], %11 {strides = array<i32>} : memref<2x16x16x1152xf32, #tpu.memory_space<vmem>>, vector<2x16x16x128xf32>,
    %c0_41 = arith.constant 0 : index
    %c2_42 = arith.constant 2 : index
    %c0_43 = arith.constant 0 : index
    %c0_44 = arith.constant 0 : index
    %13 = vector.load %arg0[%c0_41, %c2_42, %c0_43, %c0_44] : memref<2x18x18x128xf32, #tpu.memory_space<vmem>>, vector<2x16x16x128xf32>
    %c0_45 = arith.constant 0 : index
    %c0_46 = arith.constant 0 : index
    %c0_47 = arith.constant 0 : index
    %c768 = arith.constant 768 : index
    %14 = vector.load %arg11[%c0_45, %c0_46, %c0_47, %c768] : memref<2x16x16x1152xf32, #tpu.memory_space<vmem>>, vector<2x16x16x128xf32>
    tpu.vector_store %arg11[%c0_45, %c0_46, %c0_47, %c768], %13 {strides = array<i32>} : memref<2x16x16x1152xf32, #tpu.memory_space<vmem>>, vector<2x16x16x128xf32>,
    %c0_48 = arith.constant 0 : index
    %c2_49 = arith.constant 2 : index
    %c1_50 = arith.constant 1 : index
    %c0_51 = arith.constant 0 : index
    %15 = vector.load %arg0[%c0_48, %c2_49, %c1_50, %c0_51] : memref<2x18x18x128xf32, #tpu.memory_space<vmem>>, vector<2x16x16x128xf32>
    %c0_52 = arith.constant 0 : index
    %c0_53 = arith.constant 0 : index
    %c0_54 = arith.constant 0 : index
    %c896 = arith.constant 896 : index
    %16 = vector.load %arg11[%c0_52, %c0_53, %c0_54, %c896] : memref<2x16x16x1152xf32, #tpu.memory_space<vmem>>, vector<2x16x16x128xf32>
    tpu.vector_store %arg11[%c0_52, %c0_53, %c0_54, %c896], %15 {strides = array<i32>} : memref<2x16x16x1152xf32, #tpu.memory_space<vmem>>, vector<2x16x16x128xf32>,
    %c0_55 = arith.constant 0 : index
    %c2_56 = arith.constant 2 : index
    %c2_57 = arith.constant 2 : index
    %c0_58 = arith.constant 0 : index
    %17 = vector.load %arg0[%c0_55, %c2_56, %c2_57, %c0_58] : memref<2x18x18x128xf32, #tpu.memory_space<vmem>>, vector<2x16x16x128xf32>
    %c0_59 = arith.constant 0 : index
    %c0_60 = arith.constant 0 : index
    %c0_61 = arith.constant 0 : index
    %c1024 = arith.constant 1024 : index
    %18 = vector.load %arg11[%c0_59, %c0_60, %c0_61, %c1024] : memref<2x16x16x1152xf32, #tpu.memory_space<vmem>>, vector<2x16x16x128xf32>
    tpu.vector_store %arg11[%c0_59, %c0_60, %c0_61, %c1024], %17 {strides = array<i32>} : memref<2x16x16x1152xf32, #tpu.memory_space<vmem>>, vector<2x16x16x128xf32>,
    %c0_62 = arith.constant 0 : index
    %c0_63 = arith.constant 0 : index
    %c0_64 = arith.constant 0 : index
    %c0_65 = arith.constant 0 : index
    %19 = vector.load %arg11[%c0_62, %c0_63, %c0_64, %c0_65] : memref<2x16x16x1152xf32, #tpu.memory_space<vmem>>, vector<2x16x16x1152xf32>
    %20 = vector.shape_cast %19 : vector<2x16x16x1152xf32> to vector<512x1152xf32>
    %c0_66 = arith.constant 0 : index
    %c0_67 = arith.constant 0 : index
    %21 = vector.load %arg1[%c0_66, %c0_67] : memref<1152x128xf32, #tpu.memory_space<vmem>>, vector<1152x128xf32>
    %cst = arith.constant dense<0.000000e+00> : vector<512x128xf32>
    %22 = tpu.matmul %20, %21, %cst {dimension_numbers = #tpu.dot_dimension_numbers<[1], [0], [0], [1], [0, 0, 1, 1], [], []>} : vector<512x1152xf32>, vector<1152x128xf32>, vector<512x128xf32> -> vector<512x128xf32>
    %c0_68 = arith.constant 0 : index
    %c0_69 = arith.constant 0 : index
    %23 = vector.load %arg2[%c0_68, %c0_69] : memref<1x128xf32, #tpu.memory_space<vmem>>, vector<1x128xf32>
    %24 = vector.broadcast %23 : vector<1x128xf32> to vector<512x128xf32>
    %25 = arith.addf %22, %24 : vector<512x128xf32>
    %cst_70 = arith.constant dense<0.000000e+00> : vector<128xf32>
    %26 = vector.multi_reduction <add>, %25, %cst_70 [0] : vector<512x128xf32> to vector<128xf32>
    %27 = vector.shape_cast %26 : vector<128xf32> to vector<1x128xf32>
    %28 = arith.mulf %25, %25 : vector<512x128xf32>
    %cst_71 = arith.constant dense<0.000000e+00> : vector<128xf32>
    %29 = vector.multi_reduction <add>, %28, %cst_71 [0] : vector<512x128xf32> to vector<128xf32>
    %30 = vector.shape_cast %29 : vector<128xf32> to vector<1x128xf32>
    %cst_72 = arith.constant 0.001953125 : f32
    %31 = vector.broadcast %cst_72 : f32 to vector<1x128xf32>
    %32 = arith.mulf %27, %31 : vector<1x128xf32>
    %cst_73 = arith.constant 0.001953125 : f32
    %33 = vector.broadcast %cst_73 : f32 to vector<1x128xf32>
    %34 = arith.mulf %30, %33 : vector<1x128xf32>
    %35 = arith.mulf %32, %32 : vector<1x128xf32>
    %36 = arith.subf %34, %35 : vector<1x128xf32>
    %cst_74 = arith.constant 0.000000e+00 : f32
    %37 = vector.broadcast %cst_74 : f32 to vector<1x128xf32>
    %38 = arith.maximumf %36, %37 : vector<1x128xf32>
    %39 = vector.broadcast %32 : vector<1x128xf32> to vector<512x128xf32>
    %40 = arith.subf %25, %39 : vector<512x128xf32>
    %cst_75 = arith.constant 9.99999974E-6 : f32
    %41 = vector.broadcast %cst_75 : f32 to vector<1x128xf32>
    %42 = arith.addf %38, %41 : vector<1x128xf32>
    %43 = math.rsqrt %42 : vector<1x128xf32>
    %44 = vector.broadcast %43 : vector<1x128xf32> to vector<512x128xf32>
    %45 = arith.mulf %40, %44 : vector<512x128xf32>
    %c0_76 = arith.constant 0 : index
    %c0_77 = arith.constant 0 : index
    %46 = vector.load %arg3[%c0_76, %c0_77] : memref<1x128xf32, #tpu.memory_space<vmem>>, vector<1x128xf32>
    %47 = vector.broadcast %46 : vector<1x128xf32> to vector<512x128xf32>
    %48 = arith.mulf %45, %47 : vector<512x128xf32>
    %c0_78 = arith.constant 0 : index
    %c0_79 = arith.constant 0 : index
    %49 = vector.load %arg4[%c0_78, %c0_79] : memref<1x128xf32, #tpu.memory_space<vmem>>, vector<1x128xf32>
    %50 = vector.broadcast %49 : vector<1x128xf32> to vector<512x128xf32>
    %51 = arith.addf %48, %50 : vector<512x128xf32>
    %cst_80 = arith.constant 0.000000e+00 : f32
    %52 = vector.broadcast %cst_80 : f32 to vector<512x128xf32>
    %53 = arith.cmpf oge, %51, %52 : vector<512x128xf32>
    %54 = vector.broadcast %0 : f32 to vector<512x128xf32>
    %55 = arith.mulf %54, %51 : vector<512x128xf32>
    %56 = arith.select %53, %51, %55 : vector<512x128xi1>, vector<512x128xf32>
    %cst_81 = arith.constant 0.000000e+00 : f32
    %57 = vector.broadcast %cst_81 : f32 to vector<2x1x18x128xf32>
    %cst_82 = arith.constant 0.000000e+00 : f32
    %58 = vector.broadcast %cst_82 : f32 to vector<2x16x1x128xf32>
    %c0_83 = arith.constant 0 : index
    %c0_84 = arith.constant 0 : index
    %c0_85 = arith.constant 0 : index
    %c0_86 = arith.constant 0 : index
    %59 = vector.load %arg12[%c0_83, %c0_84, %c0_85, %c0_86] : memref<2x18x18x128xf32, #tpu.memory_space<vmem>>, vector<2x1x18x128xf32>
    tpu.vector_store %arg12[%c0_83, %c0_84, %c0_85, %c0_86], %57 {strides = array<i32>} : memref<2x18x18x128xf32, #tpu.memory_space<vmem>>, vector<2x1x18x128xf32>,
    %c0_87 = arith.constant 0 : index
    %c17 = arith.constant 17 : index
    %c0_88 = arith.constant 0 : index
    %c0_89 = arith.constant 0 : index
    %60 = vector.load %arg12[%c0_87, %c17, %c0_88, %c0_89] : memref<2x18x18x128xf32, #tpu.memory_space<vmem>>, vector<2x1x18x128xf32>
    tpu.vector_store %arg12[%c0_87, %c17, %c0_88, %c0_89], %57 {strides = array<i32>} : memref<2x18x18x128xf32, #tpu.memory_space<vmem>>, vector<2x1x18x128xf32>,
    %c0_90 = arith.constant 0 : index
    %c1_91 = arith.constant 1 : index
    %c0_92 = arith.constant 0 : index
    %c0_93 = arith.constant 0 : index
    %61 = vector.load %arg12[%c0_90, %c1_91, %c0_92, %c0_93] : memref<2x18x18x128xf32, #tpu.memory_space<vmem>>, vector<2x16x1x128xf32>
    tpu.vector_store %arg12[%c0_90, %c1_91, %c0_92, %c0_93], %58 {strides = array<i32>} : memref<2x18x18x128xf32, #tpu.memory_space<vmem>>, vector<2x16x1x128xf32>,
    %c0_94 = arith.constant 0 : index
    %c1_95 = arith.constant 1 : index
    %c17_96 = arith.constant 17 : index
    %c0_97 = arith.constant 0 : index
    %62 = vector.load %arg12[%c0_94, %c1_95, %c17_96, %c0_97] : memref<2x18x18x128xf32, #tpu.memory_space<vmem>>, vector<2x16x1x128xf32>
    tpu.vector_store %arg12[%c0_94, %c1_95, %c17_96, %c0_97], %58 {strides = array<i32>} : memref<2x18x18x128xf32, #tpu.memory_space<vmem>>, vector<2x16x1x128xf32>,
    %63 = vector.shape_cast %56 : vector<512x128xf32> to vector<2x16x16x128xf32>
    %c0_98 = arith.constant 0 : index
    %c1_99 = arith.constant 1 : index
    %c1_100 = arith.constant 1 : index
    %c0_101 = arith.constant 0 : index
    %64 = vector.load %arg12[%c0_98, %c1_99, %c1_100, %c0_101] : memref<2x18x18x128xf32, #tpu.memory_space<vmem>>, vector<2x16x16x128xf32>
    tpu.vector_store %arg12[%c0_98, %c1_99, %c1_100, %c0_101], %63 {strides = array<i32>} : memref<2x18x18x128xf32, #tpu.memory_space<vmem>>, vector<2x16x16x128xf32>,
    %c0_102 = arith.constant 0 : index
    %c0_103 = arith.constant 0 : index
    %c0_104 = arith.constant 0 : index
    %c0_105 = arith.constant 0 : index
    %65 = vector.load %arg12[%c0_102, %c0_103, %c0_104, %c0_105] : memref<2x18x18x128xf32, #tpu.memory_space<vmem>>, vector<2x16x16x128xf32>
    %c0_106 = arith.constant 0 : index
    %c0_107 = arith.constant 0 : index
    %c0_108 = arith.constant 0 : index
    %c0_109 = arith.constant 0 : index
    %66 = vector.load %arg11[%c0_106, %c0_107, %c0_108, %c0_109] : memref<2x16x16x1152xf32, #tpu.memory_space<vmem>>, vector<2x16x16x128xf32>
    tpu.vector_store %arg11[%c0_106, %c0_107, %c0_108, %c0_109], %65 {strides = array<i32>} : memref<2x16x16x1152xf32, #tpu.memory_space<vmem>>, vector<2x16x16x128xf32>,
    %c0_110 = arith.constant 0 : index
    %c0_111 = arith.constant 0 : index
    %c1_112 = arith.constant 1 : index
    %c0_113 = arith.constant 0 : index
    %67 = vector.load %arg12[%c0_110, %c0_111, %c1_112, %c0_113] : memref<2x18x18x128xf32, #tpu.memory_space<vmem>>, vector<2x16x16x128xf32>
    %c0_114 = arith.constant 0 : index
    %c0_115 = arith.constant 0 : index
    %c0_116 = arith.constant 0 : index
    %c128_117 = arith.constant 128 : index
    %68 = vector.load %arg11[%c0_114, %c0_115, %c0_116, %c128_117] : memref<2x16x16x1152xf32, #tpu.memory_space<vmem>>, vector<2x16x16x128xf32>
    tpu.vector_store %arg11[%c0_114, %c0_115, %c0_116, %c128_117], %67 {strides = array<i32>} : memref<2x16x16x1152xf32, #tpu.memory_space<vmem>>, vector<2x16x16x128xf32>,
    %c0_118 = arith.constant 0 : index
    %c0_119 = arith.constant 0 : index
    %c2_120 = arith.constant 2 : index
    %c0_121 = arith.constant 0 : index
    %69 = vector.load %arg12[%c0_118, %c0_119, %c2_120, %c0_121] : memref<2x18x18x128xf32, #tpu.memory_space<vmem>>, vector<2x16x16x128xf32>
    %c0_122 = arith.constant 0 : index
    %c0_123 = arith.constant 0 : index
    %c0_124 = arith.constant 0 : index
    %c256_125 = arith.constant 256 : index
    %70 = vector.load %arg11[%c0_122, %c0_123, %c0_124, %c256_125] : memref<2x16x16x1152xf32, #tpu.memory_space<vmem>>, vector<2x16x16x128xf32>
    tpu.vector_store %arg11[%c0_122, %c0_123, %c0_124, %c256_125], %69 {strides = array<i32>} : memref<2x16x16x1152xf32, #tpu.memory_space<vmem>>, vector<2x16x16x128xf32>,
    %c0_126 = arith.constant 0 : index
    %c1_127 = arith.constant 1 : index
    %c0_128 = arith.constant 0 : index
    %c0_129 = arith.constant 0 : index
    %71 = vector.load %arg12[%c0_126, %c1_127, %c0_128, %c0_129] : memref<2x18x18x128xf32, #tpu.memory_space<vmem>>, vector<2x16x16x128xf32>
    %c0_130 = arith.constant 0 : index
    %c0_131 = arith.constant 0 : index
    %c0_132 = arith.constant 0 : index
    %c384_133 = arith.constant 384 : index
    %72 = vector.load %arg11[%c0_130, %c0_131, %c0_132, %c384_133] : memref<2x16x16x1152xf32, #tpu.memory_space<vmem>>, vector<2x16x16x128xf32>
    tpu.vector_store %arg11[%c0_130, %c0_131, %c0_132, %c384_133], %71 {strides = array<i32>} : memref<2x16x16x1152xf32, #tpu.memory_space<vmem>>, vector<2x16x16x128xf32>,
    %c0_134 = arith.constant 0 : index
    %c1_135 = arith.constant 1 : index
    %c1_136 = arith.constant 1 : index
    %c0_137 = arith.constant 0 : index
    %73 = vector.load %arg12[%c0_134, %c1_135, %c1_136, %c0_137] : memref<2x18x18x128xf32, #tpu.memory_space<vmem>>, vector<2x16x16x128xf32>
    %c0_138 = arith.constant 0 : index
    %c0_139 = arith.constant 0 : index
    %c0_140 = arith.constant 0 : index
    %c512_141 = arith.constant 512 : index
    %74 = vector.load %arg11[%c0_138, %c0_139, %c0_140, %c512_141] : memref<2x16x16x1152xf32, #tpu.memory_space<vmem>>, vector<2x16x16x128xf32>
    tpu.vector_store %arg11[%c0_138, %c0_139, %c0_140, %c512_141], %73 {strides = array<i32>} : memref<2x16x16x1152xf32, #tpu.memory_space<vmem>>, vector<2x16x16x128xf32>,
    %c0_142 = arith.constant 0 : index
    %c1_143 = arith.constant 1 : index
    %c2_144 = arith.constant 2 : index
    %c0_145 = arith.constant 0 : index
    %75 = vector.load %arg12[%c0_142, %c1_143, %c2_144, %c0_145] : memref<2x18x18x128xf32, #tpu.memory_space<vmem>>, vector<2x16x16x128xf32>
    %c0_146 = arith.constant 0 : index
    %c0_147 = arith.constant 0 : index
    %c0_148 = arith.constant 0 : index
    %c640_149 = arith.constant 640 : index
    %76 = vector.load %arg11[%c0_146, %c0_147, %c0_148, %c640_149] : memref<2x16x16x1152xf32, #tpu.memory_space<vmem>>, vector<2x16x16x128xf32>
    tpu.vector_store %arg11[%c0_146, %c0_147, %c0_148, %c640_149], %75 {strides = array<i32>} : memref<2x16x16x1152xf32, #tpu.memory_space<vmem>>, vector<2x16x16x128xf32>,
    %c0_150 = arith.constant 0 : index
    %c2_151 = arith.constant 2 : index
    %c0_152 = arith.constant 0 : index
    %c0_153 = arith.constant 0 : index
    %77 = vector.load %arg12[%c0_150, %c2_151, %c0_152, %c0_153] : memref<2x18x18x128xf32, #tpu.memory_space<vmem>>, vector<2x16x16x128xf32>
    %c0_154 = arith.constant 0 : index
    %c0_155 = arith.constant 0 : index
    %c0_156 = arith.constant 0 : index
    %c768_157 = arith.constant 768 : index
    %78 = vector.load %arg11[%c0_154, %c0_155, %c0_156, %c768_157] : memref<2x16x16x1152xf32, #tpu.memory_space<vmem>>, vector<2x16x16x128xf32>
    tpu.vector_store %arg11[%c0_154, %c0_155, %c0_156, %c768_157], %77 {strides = array<i32>} : memref<2x16x16x1152xf32, #tpu.memory_space<vmem>>, vector<2x16x16x128xf32>,
    %c0_158 = arith.constant 0 : index
    %c2_159 = arith.constant 2 : index
    %c1_160 = arith.constant 1 : index
    %c0_161 = arith.constant 0 : index
    %79 = vector.load %arg12[%c0_158, %c2_159, %c1_160, %c0_161] : memref<2x18x18x128xf32, #tpu.memory_space<vmem>>, vector<2x16x16x128xf32>
    %c0_162 = arith.constant 0 : index
    %c0_163 = arith.constant 0 : index
    %c0_164 = arith.constant 0 : index
    %c896_165 = arith.constant 896 : index
    %80 = vector.load %arg11[%c0_162, %c0_163, %c0_164, %c896_165] : memref<2x16x16x1152xf32, #tpu.memory_space<vmem>>, vector<2x16x16x128xf32>
    tpu.vector_store %arg11[%c0_162, %c0_163, %c0_164, %c896_165], %79 {strides = array<i32>} : memref<2x16x16x1152xf32, #tpu.memory_space<vmem>>, vector<2x16x16x128xf32>,
    %c0_166 = arith.constant 0 : index
    %c2_167 = arith.constant 2 : index
    %c2_168 = arith.constant 2 : index
    %c0_169 = arith.constant 0 : index
    %81 = vector.load %arg12[%c0_166, %c2_167, %c2_168, %c0_169] : memref<2x18x18x128xf32, #tpu.memory_space<vmem>>, vector<2x16x16x128xf32>
    %c0_170 = arith.constant 0 : index
    %c0_171 = arith.constant 0 : index
    %c0_172 = arith.constant 0 : index
    %c1024_173 = arith.constant 1024 : index
    %82 = vector.load %arg11[%c0_170, %c0_171, %c0_172, %c1024_173] : memref<2x16x16x1152xf32, #tpu.memory_space<vmem>>, vector<2x16x16x128xf32>
    tpu.vector_store %arg11[%c0_170, %c0_171, %c0_172, %c1024_173], %81 {strides = array<i32>} : memref<2x16x16x1152xf32, #tpu.memory_space<vmem>>, vector<2x16x16x128xf32>,
    %c0_174 = arith.constant 0 : index
    %c0_175 = arith.constant 0 : index
    %c0_176 = arith.constant 0 : index
    %c0_177 = arith.constant 0 : index
    %83 = vector.load %arg11[%c0_174, %c0_175, %c0_176, %c0_177] : memref<2x16x16x1152xf32, #tpu.memory_space<vmem>>, vector<2x16x16x1152xf32>
    %84 = vector.shape_cast %83 : vector<2x16x16x1152xf32> to vector<512x1152xf32>
    %c0_178 = arith.constant 0 : index
    %c0_179 = arith.constant 0 : index
    %85 = vector.load %arg5[%c0_178, %c0_179] : memref<1152x128xf32, #tpu.memory_space<vmem>>, vector<1152x128xf32>
    %cst_180 = arith.constant dense<0.000000e+00> : vector<512x128xf32>
    %86 = tpu.matmul %84, %85, %cst_180 {dimension_numbers = #tpu.dot_dimension_numbers<[1], [0], [0], [1], [0, 0, 1, 1], [], []>} : vector<512x1152xf32>, vector<1152x128xf32>, vector<512x128xf32> -> vector<512x128xf32>
    %c0_181 = arith.constant 0 : index
    %c0_182 = arith.constant 0 : index
    %87 = vector.load %arg6[%c0_181, %c0_182] : memref<1x128xf32, #tpu.memory_space<vmem>>, vector<1x128xf32>
    %88 = vector.broadcast %87 : vector<1x128xf32> to vector<512x128xf32>
    %89 = arith.addf %86, %88 : vector<512x128xf32>
    %cst_183 = arith.constant dense<0.000000e+00> : vector<128xf32>
    %90 = vector.multi_reduction <add>, %89, %cst_183 [0] : vector<512x128xf32> to vector<128xf32>
    %91 = vector.shape_cast %90 : vector<128xf32> to vector<1x128xf32>
    %92 = arith.mulf %89, %89 : vector<512x128xf32>
    %cst_184 = arith.constant dense<0.000000e+00> : vector<128xf32>
    %93 = vector.multi_reduction <add>, %92, %cst_184 [0] : vector<512x128xf32> to vector<128xf32>
    %94 = vector.shape_cast %93 : vector<128xf32> to vector<1x128xf32>
    %cst_185 = arith.constant 0.001953125 : f32
    %95 = vector.broadcast %cst_185 : f32 to vector<1x128xf32>
    %96 = arith.mulf %91, %95 : vector<1x128xf32>
    %cst_186 = arith.constant 0.001953125 : f32
    %97 = vector.broadcast %cst_186 : f32 to vector<1x128xf32>
    %98 = arith.mulf %94, %97 : vector<1x128xf32>
    %99 = arith.mulf %96, %96 : vector<1x128xf32>
    %100 = arith.subf %98, %99 : vector<1x128xf32>
    %cst_187 = arith.constant 0.000000e+00 : f32
    %101 = vector.broadcast %cst_187 : f32 to vector<1x128xf32>
    %102 = arith.maximumf %100, %101 : vector<1x128xf32>
    %103 = vector.broadcast %96 : vector<1x128xf32> to vector<512x128xf32>
    %104 = arith.subf %89, %103 : vector<512x128xf32>
    %cst_188 = arith.constant 9.99999974E-6 : f32
    %105 = vector.broadcast %cst_188 : f32 to vector<1x128xf32>
    %106 = arith.addf %102, %105 : vector<1x128xf32>
    %107 = math.rsqrt %106 : vector<1x128xf32>
    %108 = vector.broadcast %107 : vector<1x128xf32> to vector<512x128xf32>
    %109 = arith.mulf %104, %108 : vector<512x128xf32>
    %c0_189 = arith.constant 0 : index
    %c0_190 = arith.constant 0 : index
    %110 = vector.load %arg7[%c0_189, %c0_190] : memref<1x128xf32, #tpu.memory_space<vmem>>, vector<1x128xf32>
    %111 = vector.broadcast %110 : vector<1x128xf32> to vector<512x128xf32>
    %112 = arith.mulf %109, %111 : vector<512x128xf32>
    %c0_191 = arith.constant 0 : index
    %c0_192 = arith.constant 0 : index
    %113 = vector.load %arg8[%c0_191, %c0_192] : memref<1x128xf32, #tpu.memory_space<vmem>>, vector<1x128xf32>
    %114 = vector.broadcast %113 : vector<1x128xf32> to vector<512x128xf32>
    %115 = arith.addf %112, %114 : vector<512x128xf32>
    %cst_193 = arith.constant 0.000000e+00 : f32
    %116 = vector.broadcast %cst_193 : f32 to vector<512x128xf32>
    %117 = arith.cmpf oge, %115, %116 : vector<512x128xf32>
    %118 = vector.broadcast %0 : f32 to vector<512x128xf32>
    %119 = arith.mulf %118, %115 : vector<512x128xf32>
    %120 = arith.select %117, %115, %119 : vector<512x128xi1>, vector<512x128xf32>
    %121 = vector.shape_cast %120 : vector<512x128xf32> to vector<2x16x16x128xf32>
    %c0_194 = arith.constant 0 : index
    %c1_195 = arith.constant 1 : index
    %c1_196 = arith.constant 1 : index
    %c0_197 = arith.constant 0 : index
    %122 = vector.load %arg0[%c0_194, %c1_195, %c1_196, %c0_197] : memref<2x18x18x128xf32, #tpu.memory_space<vmem>>, vector<2x16x16x128xf32>
    %123 = arith.addf %121, %122 : vector<2x16x16x128xf32>
    %c0_198 = arith.constant 0 : index
    %c0_199 = arith.constant 0 : index
    %c0_200 = arith.constant 0 : index
    %c0_201 = arith.constant 0 : index
    %124 = vector.load %arg10[%c0_198, %c0_199, %c0_200, %c0_201] : memref<2x16x16x128xf32, #tpu.memory_space<vmem>>, vector<2x16x16x128xf32>
    tpu.vector_store %arg10[%c0_198, %c0_199, %c0_200, %c0_201], %123 {strides = array<i32>} : memref<2x16x16x128xf32, #tpu.memory_space<vmem>>, vector<2x16x16x128xf32>,
    return
  }
}

</mosaic_0001>

<bundles_post_ra>
// kernel: tpu_custom_call.1
= control target key start
LH: loop header
LB: loop body
LE: loop exit
PB: predicated region body
PF: predicated region fallthrough
CT: control target
= control target key end

     0   :  { %16 = vsyncpa [#allocation6], 0  ;;  %s17821_s0 = inlined_call_operand.vmem [shape: f32[2,18,18,128], index: 0, kind: input, shape index: {}]   ;;  %s17822_s1 = inlined_call_operand.vmem [shape: f32[1152,128], index: 1, kind: input, shape index: {}]   ;;  %s17823_s2 = inlined_call_operand.vmem [shape: f32[1,128], index: 2, kind: input, shape index: {}]   ;;  %s17824_s3 = inlined_call_operand.vmem [shape: f32[1,128], index: 3, kind: input, shape index: {}]   ;;  %s17825_s4 = inlined_call_operand.vmem [shape: f32[1,128], index: 4, kind: input, shape index: {}]   ;;  %s17826_s5 = inlined_call_operand.hbm [shape: f32[1152,128], index: 5, kind: input, shape index: {}]   ;;  %s17827_s6 = inlined_call_operand.vmem [shape: f32[1,128], index: 6, kind: input, shape index: {}]   ;;  %s17828_s7 = inlined_call_operand.vmem [shape: f32[1,128], index: 7, kind: input, shape index: {}]   ;;  %s17829_s8 = inlined_call_operand.vmem [shape: f32[1,128], index: 8, kind: input, shape index: {}]   ;;  %s17830_s9 = inlined_call_operand.<no memory space> [shape: f32[1], index: 9, kind: input, shape index: {}]   ;;  %s17831_s10 = inlined_call_operand.hbm [shape: f32[2,16,16,128], index: 10, kind: output, shape index: {}]  }
   0x1   :  { %17 = vsyncpa [#allocation7], 0  ;;  %s10290_s13 = smov [#allocation5]  }
   0x2   :  { %s33_s14 = sshll.u32 %s10290_s13, 4  ;;  %s34_s14 = int_to_ptr.vmem [resolvable:$true] %s33_s14 }
   0x3   :  { %s10254_s15 = scalar_lea.vmem %s34_s14, 18432  ;;  %p10259_p1 = scmp.lt.s32.totalorder %s34_s14, %s34_s14 }
   0x4   :  { %p10255_p0 = scmp.ne.s32.totalorder %s34_s14, %s10254_s15  ;;  %p10260_p2 = scmp.lt.s32.totalorder %s10254_s15, %s10254_s15 }
   0x6   :  { %p10261_p3 = por %p10260_p2, %p10259_p1 }
   0x8   :  { %p10262_p4 = pnand %p10261_p3, %p10255_p0 }
   0xa   :  { %10265 = shalt.err (!%p10262_p4)
}
   0xb   :  { %s10291_s16 = smov 128   ;;  %s10292_s17 = smov 8  }
   0xc   :  { %39 = dma.hbm_to_vmem [thread:$0]  %s17826_s5, 18432, %s34_s14, [#allocation6], %s10291_s16, %s10291_s16, %s10292_s17  }
   0xd   :  { %10286 = dma.done.wait [#allocation6], 18432  }
   0xe   :  { %10287 = vsyncadd [#allocation6], 4294948864  ;;  %v10293_v0 = vmov 0.0   ;;  %v1797_v1 = vld [vmem:[%s17822_s1 + $0x78] sm:$0xff]  ;;  %v1796_v2 = vld [vmem:[%s17822_s1 + $0x70] sm:$0xff]  ;;  %s10294_s18 = smov [#allocation8]  }
   0xf   :  { %1933 = vmatprep.subr.mxu0 %v10293_v0  ;;  %4530 = vst [vmem:[#allocation3] sm:$0xff] %v10293_v0  ;;  %4531 = vst [vmem:[#allocation3 + $0x8] sm:$0xff] %v10293_v0  ;;  %2318 = vmatprep.subr.mxu1 %v10293_v0  ;;  %v1829_v3 = vld [vmem:[%s17822_s1 + $0x178] sm:$0xff]  ;;  %v1828_v4 = vld [vmem:[%s17822_s1 + $0x170] sm:$0xff] }
  0x10   :  { %4532 = vst [vmem:[#allocation3 + $0x10] sm:$0x3] %v10293_v0  ;;  %4533 = vst [vmem:[#allocation3 + $0x1b0] sm:$0xff] %v10293_v0  ;;  %1934 = vmatpush1.msra.mxu0 %v1797_v1  ;;  %2319 = vmatpush1.msra.mxu1 %v1829_v3  ;;  %v1795_v5 = vld [vmem:[%s17822_s1 + $0x68] sm:$0xff]  ;;  %v1794_v7 = vld [vmem:[%s17822_s1 + $0x60] sm:$0xff] }
  0x11   :  { %4534 = vst [vmem:[#allocation3 + $0x1b8] sm:$0xff] %v10293_v0  ;;  %4535 = vst [vmem:[#allocation3 + $0x1c0] sm:$0x3] %v10293_v0  ;;  %1935 = vmatprep.subr.mxu0 %v10293_v0  ;;  %2320 = vmatprep.subr.mxu1 %v10293_v0  ;;  %v1827_v6 = vld [vmem:[%s17822_s1 + $0x168] sm:$0xff]  ;;  %v1826_v8 = vld [vmem:[%s17822_s1 + $0x160] sm:$0xff] }
  0x12   :  { %4537 = vst [vmem:[#allocation3 + $0x198] sm:$0xff] %v10293_v0  ;;  %4538 = vst [vmem:[#allocation3 + $0x1a0] sm:$0xff] %v10293_v0  ;;  %1936 = vmatpush1.msra.mxu0 %v1796_v2  ;;  %2321 = vmatpush1.msra.mxu1 %v1828_v4  ;;  %v1793_v9 = vld [vmem:[%s17822_s1 + $0x58] sm:$0xff]  ;;  %v1792_v11 = vld [vmem:[%s17822_s1 + $0x50] sm:$0xff] }
  0x13   :  { %4539 = vst [vmem:[#allocation3 + $0x1a8] sm:$0x3] %v10293_v0  ;;  %4540 = vst [vmem:[#allocation3 + $0x348] sm:$0xff] %v10293_v0  ;;  %1937 = vmatprep.subr.mxu0 %v10293_v0  ;;  %2322 = vmatprep.subr.mxu1 %v10293_v0  ;;  %v1825_v10 = vld [vmem:[%s17822_s1 + $0x158] sm:$0xff]  ;;  %v1824_v12 = vld [vmem:[%s17822_s1 + $0x150] sm:$0xff] }
  0x14   :  { %4541 = vst [vmem:[#allocation3 + $0x350] sm:$0xff] %v10293_v0  ;;  %4542 = vst [vmem:[#allocation3 + $0x358] sm:$0x3] %v10293_v0  ;;  %1938 = vmatpush1.msra.mxu0 %v1795_v5  ;;  %2323 = vmatpush1.msra.mxu1 %v1827_v6  ;;  %v1791_v13 = vld [vmem:[%s17822_s1 + $0x48] sm:$0xff]  ;;  %v1790_v15 = vld [vmem:[%s17822_s1 + $0x40] sm:$0xff] }
  0x15   :  { %4544 = vst [vmem:[#allocation3 + $0x18] sm:$0x1] %v10293_v0  ;;  %4545 = vst [vmem:[#allocation3 + $0x30] sm:$0x1] %v10293_v0  ;;  %1939 = vmatprep.subr.mxu0 %v10293_v0  ;;  %2324 = vmatprep.subr.mxu1 %v10293_v0  ;;  %v1823_v14 = vld [vmem:[%s17822_s1 + $0x148] sm:$0xff]  ;;  %v1822_v16 = vld [vmem:[%s17822_s1 + $0x140] sm:$0xff] }
  0x16   :  { %4546 = vst [vmem:[#allocation3 + $0x48] sm:$0x1] %v10293_v0  ;;  %4547 = vst [vmem:[#allocation3 + $0x60] sm:$0x1] %v10293_v0  ;;  %1940 = vmatpush1.msra.mxu0 %v1794_v7  ;;  %2325 = vmatpush1.msra.mxu1 %v1826_v8  ;;  %v1789_v17 = vld [vmem:[%s17822_s1 + $0x38] sm:$0xff]  ;;  %v1788_v19 = vld [vmem:[%s17822_s1 + $0x30] sm:$0xff] }
  0x17   :  { %4548 = vst [vmem:[#allocation3 + $0x78] sm:$0x1] %v10293_v0  ;;  %4549 = vst [vmem:[#allocation3 + $0x90] sm:$0x1] %v10293_v0  ;;  %1941 = vmatprep.subr.mxu0 %v10293_v0  ;;  %2326 = vmatprep.subr.mxu1 %v10293_v0  ;;  %v1821_v18 = vld [vmem:[%s17822_s1 + $0x138] sm:$0xff]  ;;  %v1820_v20 = vld [vmem:[%s17822_s1 + $0x130] sm:$0xff] }
  0x18   :  { %4550 = vst [vmem:[#allocation3 + $0xa8] sm:$0x1] %v10293_v0  ;;  %4551 = vst [vmem:[#allocation3 + $0xc0] sm:$0x1] %v10293_v0  ;;  %1942 = vmatpush1.msra.mxu0 %v1793_v9  ;;  %2327 = vmatpush1.msra.mxu1 %v1825_v10  ;;  %v1787_v21 = vld [vmem:[%s17822_s1 + $0x28] sm:$0xff]  ;;  %v1786_v23 = vld [vmem:[%s17822_s1 + $0x20] sm:$0xff] }
  0x19   :  { %4552 = vst [vmem:[#allocation3 + $0xd8] sm:$0x1] %v10293_v0  ;;  %4553 = vst [vmem:[#allocation3 + $0xf0] sm:$0x1] %v10293_v0  ;;  %1943 = vmatprep.subr.mxu0 %v10293_v0  ;;  %2328 = vmatprep.subr.mxu1 %v10293_v0  ;;  %v1819_v22 = vld [vmem:[%s17822_s1 + $0x128] sm:$0xff]  ;;  %v1818_v24 = vld [vmem:[%s17822_s1 + $0x120] sm:$0xff] }
  0x1a   :  { %4554 = vst [vmem:[#allocation3 + $0x108] sm:$0x1] %v10293_v0  ;;  %4555 = vst [vmem:[#allocation3 + $0x120] sm:$0x1] %v10293_v0  ;;  %1944 = vmatpush1.msra.mxu0 %v1792_v11  ;;  %2329 = vmatpush1.msra.mxu1 %v1824_v12  ;;  %v1785_v25 = vld [vmem:[%s17822_s1 + $0x18] sm:$0xff]  ;;  %v1784_v27 = vld [vmem:[%s17822_s1 + $0x10] sm:$0xff] }
  0x1b   :  { %4556 = vst [vmem:[#allocation3 + $0x138] sm:$0x1] %v10293_v0  ;;  %4557 = vst [vmem:[#allocation3 + $0x150] sm:$0x1] %v10293_v0  ;;  %1945 = vmatprep.subr.mxu0 %v10293_v0  ;;  %2330 = vmatprep.subr.mxu1 %v10293_v0  ;;  %v1817_v26 = vld [vmem:[%s17822_s1 + $0x118] sm:$0xff]  ;;  %v1816_v28 = vld [vmem:[%s17822_s1 + $0x110] sm:$0xff] }
  0x1c   :  { %4558 = vst [vmem:[#allocation3 + $0x168] sm:$0x1] %v10293_v0  ;;  %4559 = vst [vmem:[#allocation3 + $0x180] sm:$0x1] %v10293_v0  ;;  %1946 = vmatpush1.msra.mxu0 %v1791_v13  ;;  %2331 = vmatpush1.msra.mxu1 %v1823_v14  ;;  %v1783_v29 = vld [vmem:[%s17822_s1 + $0x8] sm:$0xff]  ;;  %v1782_v31 = vld [vmem:[%s17822_s1] sm:$0xff] }
  0x1d   :  { %4560 = vst [vmem:[#allocation3 + $0x1c8] sm:$0x1] %v10293_v0  ;;  %4561 = vst [vmem:[#allocation3 + $0x1e0] sm:$0x1] %v10293_v0  ;;  %1947 = vmatprep.subr.mxu0 %v10293_v0  ;;  %2332 = vmatprep.subr.mxu1 %v10293_v0  ;;  %v1815_v30 = vld [vmem:[%s17822_s1 + $0x108] sm:$0xff]  ;;  %v1814_v32 = vld [vmem:[%s17822_s1 + $0x100] sm:$0xff] }
  0x1e   :  { %4562 = vst [vmem:[#allocation3 + $0x1f8] sm:$0x1] %v10293_v0  ;;  %4563 = vst [vmem:[#allocation3 + $0x210] sm:$0x1] %v10293_v0  ;;  %1948 = vmatpush1.msra.mxu0 %v1790_v15  ;;  %2333 = vmatpush1.msra.mxu1 %v1822_v16  ;;  %v1813_v33 = vld [vmem:[%s17822_s1 + $0xf8] sm:$0xff]  ;;  %v1812_v35 = vld [vmem:[%s17822_s1 + $0xf0] sm:$0xff] }
  0x1f   :  { %4564 = vst [vmem:[#allocation3 + $0x228] sm:$0x1] %v10293_v0  ;;  %4565 = vst [vmem:[#allocation3 + $0x240] sm:$0x1] %v10293_v0  ;;  %1949 = vmatprep.subr.mxu0 %v10293_v0  ;;  %2334 = vmatprep.subr.mxu1 %v10293_v0  ;;  %v1845_v34 = vld [vmem:[%s17822_s1 + $0x1f8] sm:$0xff]  ;;  %v1844_v36 = vld [vmem:[%s17822_s1 + $0x1f0] sm:$0xff] }
  0x20   :  { %4566 = vst [vmem:[#allocation3 + $0x258] sm:$0x1] %v10293_v0  ;;  %4567 = vst [vmem:[#allocation3 + $0x270] sm:$0x1] %v10293_v0  ;;  %1950 = vmatpush1.msra.mxu0 %v1789_v17  ;;  %2335 = vmatpush1.msra.mxu1 %v1821_v18  ;;  %v1811_v37 = vld [vmem:[%s17822_s1 + $0xe8] sm:$0xff]  ;;  %v1810_v39 = vld [vmem:[%s17822_s1 + $0xe0] sm:$0xff] }
  0x21   :  { %4568 = vst [vmem:[#allocation3 + $0x288] sm:$0x1] %v10293_v0  ;;  %4569 = vst [vmem:[#allocation3 + $0x2a0] sm:$0x1] %v10293_v0  ;;  %1951 = vmatprep.subr.mxu0 %v10293_v0  ;;  %2336 = vmatprep.subr.mxu1 %v10293_v0  ;;  %v1843_v38 = vld [vmem:[%s17822_s1 + $0x1e8] sm:$0xff]  ;;  %v1842_v40 = vld [vmem:[%s17822_s1 + $0x1e0] sm:$0xff] }
  0x22   :  { %4570 = vst [vmem:[#allocation3 + $0x2b8] sm:$0x1] %v10293_v0  ;;  %4571 = vst [vmem:[#allocation3 + $0x2d0] sm:$0x1] %v10293_v0  ;;  %1952 = vmatpush1.msra.mxu0 %v1788_v19  ;;  %2337 = vmatpush1.msra.mxu1 %v1820_v20  ;;  %v1809_v41 = vld [vmem:[%s17822_s1 + $0xd8] sm:$0xff]  ;;  %v1808_v43 = vld [vmem:[%s17822_s1 + $0xd0] sm:$0xff] }
  0x23   :  { %4572 = vst [vmem:[#allocation3 + $0x2e8] sm:$0x1] %v10293_v0  ;;  %4573 = vst [vmem:[#allocation3 + $0x300] sm:$0x1] %v10293_v0  ;;  %1953 = vmatprep.subr.mxu0 %v10293_v0  ;;  %2338 = vmatprep.subr.mxu1 %v10293_v0  ;;  %v1841_v42 = vld [vmem:[%s17822_s1 + $0x1d8] sm:$0xff]  ;;  %v1840_v44 = vld [vmem:[%s17822_s1 + $0x1d0] sm:$0xff] }
  0x24   :  { %4574 = vst [vmem:[#allocation3 + $0x318] sm:$0x1] %v10293_v0  ;;  %4575 = vst [vmem:[#allocation3 + $0x330] sm:$0x1] %v10293_v0  ;;  %1954 = vmatpush1.msra.mxu0 %v1787_v21  ;;  %2339 = vmatpush1.msra.mxu1 %v1819_v22  ;;  %v1807_v45 = vld [vmem:[%s17822_s1 + $0xc8] sm:$0xff]  ;;  %v1806_v47 = vld [vmem:[%s17822_s1 + $0xc0] sm:$0xff] }
  0x25   :  { %4576 = vst [vmem:[#allocation3 + $0x29] sm:$0x1] %v10293_v0  ;;  %4577 = vst [vmem:[#allocation3 + $0x41] sm:$0x1] %v10293_v0  ;;  %1955 = vmatprep.subr.mxu0 %v10293_v0  ;;  %2340 = vmatprep.subr.mxu1 %v10293_v0  ;;  %v1839_v46 = vld [vmem:[%s17822_s1 + $0x1c8] sm:$0xff]  ;;  %v1838_v48 = vld [vmem:[%s17822_s1 + $0x1c0] sm:$0xff] }
  0x26   :  { %4578 = vst [vmem:[#allocation3 + $0x59] sm:$0x1] %v10293_v0  ;;  %4579 = vst [vmem:[#allocation3 + $0x71] sm:$0x1] %v10293_v0  ;;  %1956 = vmatpush1.msra.mxu0 %v1786_v23  ;;  %2341 = vmatpush1.msra.mxu1 %v1818_v24  ;;  %v1805_v49 = vld [vmem:[%s17822_s1 + $0xb8] sm:$0xff]  ;;  %v1804_v51 = vld [vmem:[%s17822_s1 + $0xb0] sm:$0xff] }
  0x27   :  { %4580 = vst [vmem:[#allocation3 + $0x89] sm:$0x1] %v10293_v0  ;;  %4581 = vst [vmem:[#allocation3 + $0xa1] sm:$0x1] %v10293_v0  ;;  %1957 = vmatprep.subr.mxu0 %v10293_v0  ;;  %2342 = vmatprep.subr.mxu1 %v10293_v0  ;;  %v1837_v50 = vld [vmem:[%s17822_s1 + $0x1b8] sm:$0xff]  ;;  %v1836_v52 = vld [vmem:[%s17822_s1 + $0x1b0] sm:$0xff] }
  0x28   :  { %4582 = vst [vmem:[#allocation3 + $0xb9] sm:$0x1] %v10293_v0  ;;  %4583 = vst [vmem:[#allocation3 + $0xd1] sm:$0x1] %v10293_v0  ;;  %1958 = vmatpush1.msra.mxu0 %v1785_v25  ;;  %2343 = vmatpush1.msra.mxu1 %v1817_v26  ;;  %v1803_v53 = vld [vmem:[%s17822_s1 + $0xa8] sm:$0xff]  ;;  %v1802_v55 = vld [vmem:[%s17822_s1 + $0xa0] sm:$0xff] }
  0x29   :  { %4584 = vst [vmem:[#allocation3 + $0xe9] sm:$0x1] %v10293_v0  ;;  %4585 = vst [vmem:[#allocation3 + $0x101] sm:$0x1] %v10293_v0  ;;  %1959 = vmatprep.subr.mxu0 %v10293_v0  ;;  %2344 = vmatprep.subr.mxu1 %v10293_v0  ;;  %v1835_v54 = vld [vmem:[%s17822_s1 + $0x1a8] sm:$0xff]  ;;  %v1834_v56 = vld [vmem:[%s17822_s1 + $0x1a0] sm:$0xff] }
  0x2a   :  { %4586 = vst [vmem:[#allocation3 + $0x119] sm:$0x1] %v10293_v0  ;;  %4587 = vst [vmem:[#allocation3 + $0x131] sm:$0x1] %v10293_v0  ;;  %1960 = vmatpush1.msra.mxu0 %v1784_v27  ;;  %2345 = vmatpush1.msra.mxu1 %v1816_v28  ;;  %v1801_v57 = vld [vmem:[%s17822_s1 + $0x98] sm:$0xff]  ;;  %v1800_v59 = vld [vmem:[%s17822_s1 + $0x90] sm:$0xff] }
  0x2b   :  { %4588 = vst [vmem:[#allocation3 + $0x149] sm:$0x1] %v10293_v0  ;;  %4589 = vst [vmem:[#allocation3 + $0x161] sm:$0x1] %v10293_v0  ;;  %1961 = vmatprep.subr.mxu0 %v10293_v0  ;;  %2346 = vmatprep.subr.mxu1 %v10293_v0  ;;  %v1833_v58 = vld [vmem:[%s17822_s1 + $0x198] sm:$0xff]  ;;  %v1832_v60 = vld [vmem:[%s17822_s1 + $0x190] sm:$0xff] }
  0x2c   :  { %4590 = vst [vmem:[#allocation3 + $0x179] sm:$0x1] %v10293_v0  ;;  %4591 = vst [vmem:[#allocation3 + $0x191] sm:$0x1] %v10293_v0  ;;  %1962 = vmatpush1.msra.mxu0 %v1783_v29  ;;  %2347 = vmatpush1.msra.mxu1 %v1815_v30  ;;  %v1799_v61 = vld [vmem:[%s17822_s1 + $0x88] sm:$0xff]  ;;  %v1798_v1 = vld [vmem:[%s17822_s1 + $0x80] sm:$0xff] }
  0x2d   :  { %4592 = vst [vmem:[#allocation3 + $0x1d9] sm:$0x1] %v10293_v0  ;;  %4593 = vst [vmem:[#allocation3 + $0x1f1] sm:$0x1] %v10293_v0  ;;  %1963 = vmatprep.subr.mxu0 %v10293_v0  ;;  %2348 = vmatprep.subr.mxu1 %v10293_v0  ;;  %v180_v62 = vld [vmem:[%s17821_s0 + $0x1] sm:$0xff]  ;;  %v9357_v4 = vld [vmem:[%s17821_s0 + $0x18] sm:$0xff] }
  0x2e   :  { %4594 = vst [vmem:[#allocation3 + $0x209] sm:$0x1] %v10293_v0  ;;  %4595 = vst [vmem:[#allocation3 + $0x221] sm:$0x1] %v10293_v0  ;;  %1964 = vmatpush1.msra.mxu0 %v1782_v31  ;;  %2349 = vmatpush1.msra.mxu1 %v1814_v32  ;;  %v1831_v63 = vld [vmem:[%s17822_s1 + $0x188] sm:$0xff]  ;;  %v52_v2 = vld [vmem:[%s17821_s0] sm:$0xff] }
  0x2f   :  { %4596 = vst [vmem:[#allocation3 + $0x239] sm:$0x1] %v10293_v0  ;;  %4597 = vst [vmem:[#allocation3 + $0x251] sm:$0x1] %v10293_v0  ;;  %1965 = vmatprep.subr.mxu0 %v10293_v0  ;;  %2350 = vmatprep.subr.mxu1 %v10293_v0  ;;  %v1830_v3 = vld [vmem:[%s17822_s1 + $0x180] sm:$0xff]  ;;  %v1861_v5 = vld [vmem:[%s17822_s1 + $0x278] sm:$0xff] }
  0x30   :  { %4598 = vst [vmem:[#allocation3 + $0x269] sm:$0x1] %v10293_v0  ;;  %4599 = vst [vmem:[#allocation3 + $0x281] sm:$0x1] %v10293_v0  ;;  %1966 = vmatpush2.msra.mxu0 %v1813_v33  ;;  %2351 = vmatpush2.msra.mxu1 %v1845_v34  ;;  %v308_v6 = vld [vmem:[%s17821_s0 + $0x2] sm:$0xff]  ;;  %v182_v10 = vld [vmem:[%s17821_s0 + $0x19] sm:$0xff] }
  0x31   :  { %4600 = vst [vmem:[#allocation3 + $0x299] sm:$0x1] %v10293_v0  ;;  %4601 = vst [vmem:[#allocation3 + $0x2b1] sm:$0x1] %v10293_v0  ;;  %1967 = vmatprep.subr.mxu0 %v10293_v0  ;;  %2352 = vmatprep.subr.mxu1 %v10293_v0  ;;  %v181_v7 = vld [vmem:[%s17821_s0 + $0x9] sm:$0xff]  ;;  %v9358_v8 = vld [vmem:[%s17821_s0 + $0x20] sm:$0xff] }
  0x32   :  { %4602 = vst [vmem:[#allocation3 + $0x2c9] sm:$0x1] %v10293_v0  ;;  %4603 = vst [vmem:[#allocation3 + $0x2e1] sm:$0x1] %v10293_v0  ;;  %1968 = vmatpush2.msra.mxu0 %v1812_v35  ;;  %2353 = vmatpush2.msra.mxu1 %v1844_v36  ;;  %v53_v9 = vld [vmem:[%s17821_s0 + $0x8] sm:$0xff]  ;;  %v1860_v11 = vld [vmem:[%s17822_s1 + $0x270] sm:$0xff] }
  0x33   :  { %4604 = vst [vmem:[#allocation3 + $0x2f9] sm:$0x1] %v10293_v0  ;;  %4605 = vst [vmem:[#allocation3 + $0x311] sm:$0x1] %v10293_v0  ;;  %1969 = vmatprep.subr.mxu0 %v10293_v0  ;;  %2354 = vmatprep.subr.mxu1 %v10293_v0  ;;  %v309_v12 = vld [vmem:[%s17821_s0 + $0xa] sm:$0xff]  ;;  %v183_v15 = vld [vmem:[%s17821_s0 + $0x21] sm:$0xff] }
  0x34   :  { %4606 = vst [vmem:[#allocation3 + $0x329] sm:$0x1] %v10293_v0  ;;  %4607 = vst [vmem:[#allocation3 + $0x341] sm:$0x1] %v10293_v0  ;;  %1970 = vmatpush2.msra.mxu0 %v1811_v37  ;;  %2355 = vmatpush2.msra.mxu1 %v1843_v38  ;;  %v9359_v13 = vld [vmem:[%s17821_s0 + $0x30] sm:$0xff]  ;;  %v1859_v14 = vld [vmem:[%s17822_s1 + $0x268] sm:$0xff] }
  0x35   :  { %1971 = vmatprep.subr.mxu0 %v10293_v0  ;;  %2356 = vmatprep.subr.mxu1 %v10293_v0  ;;  %v1858_v16 = vld [vmem:[%s17822_s1 + $0x260] sm:$0xff]  ;;  %v9360_v18 = vld [vmem:[%s17821_s0 + $0x38] sm:$0xff]  ;;  %v1856_v21 = vld [vmem:[%s17822_s1 + $0x250] sm:$0xff] }
  0x36   :  { %1972 = vmatpush2.msra.mxu0 %v1810_v39  ;;  %2357 = vmatpush2.msra.mxu1 %v1842_v40  ;;  %v310_v17 = vld [vmem:[%s17821_s0 + $0x1a] sm:$0xff]  ;;  %v184_v20 = vld [vmem:[%s17821_s0 + $0x31] sm:$0xff]  ;;  %v311_v22 = vld [vmem:[%s17821_s0 + $0x22] sm:$0xff] }
  0x37   :  { %1973 = vmatprep.subr.mxu0 %v10293_v0  ;;  %2358 = vmatprep.subr.mxu1 %v10293_v0  ;;  %v1857_v19 = vld [vmem:[%s17822_s1 + $0x258] sm:$0xff]  ;;  %v9361_v23 = vld [vmem:[%s17821_s0 + $0x48] sm:$0xff]  ;;  %v1854_v26 = vld [vmem:[%s17822_s1 + $0x240] sm:$0xff] }
  0x38   :  { %1974 = vmatpush2.msra.mxu0 %v1809_v41  ;;  %2359 = vmatpush2.msra.mxu1 %v1841_v42  ;;  %v1855_v24 = vld [vmem:[%s17822_s1 + $0x248] sm:$0xff]  ;;  %v185_v25 = vld [vmem:[%s17821_s0 + $0x39] sm:$0xff]  ;;  %v9362_v28 = vld [vmem:[%s17821_s0 + $0x50] sm:$0xff] }
  0x39   :  { %1975 = vmatprep.subr.mxu0 %v10293_v0  ;;  %2360 = vmatprep.subr.mxu1 %v10293_v0  ;;  %v312_v27 = vld [vmem:[%s17821_s0 + $0x32] sm:$0xff]  ;;  %v186_v30 = vld [vmem:[%s17821_s0 + $0x49] sm:$0xff]  ;;  %v313_v32 = vld [vmem:[%s17821_s0 + $0x3a] sm:$0xff] }
  0x3a   :  { %1976 = vmatpush2.msra.mxu0 %v1808_v43  ;;  %2361 = vmatpush2.msra.mxu1 %v1840_v44  ;;  %v1853_v29 = vld [vmem:[%s17822_s1 + $0x238] sm:$0xff]  ;;  %v1852_v31 = vld [vmem:[%s17822_s1 + $0x230] sm:$0xff]  ;;  %v9363_v33 = vld [vmem:[%s17821_s0 + $0x60] sm:$0xff] }
  0x3b   :  { %1977 = vmatprep.subr.mxu0 %v10293_v0  ;;  %2362 = vmatprep.subr.mxu1 %v10293_v0  ;;  %v1851_v34 = vld [vmem:[%s17822_s1 + $0x228] sm:$0xff]  ;;  %v187_v35 = vld [vmem:[%s17821_s0 + $0x51] sm:$0xff]  ;;  %v1850_v36 = vld [vmem:[%s17822_s1 + $0x220] sm:$0xff] }
  0x3c   :  { %1978 = vmatpush2.msra.mxu0 %v1807_v45  ;;  %2363 = vmatpush2.msra.mxu1 %v1839_v46  ;;  %v314_v37 = vld [vmem:[%s17821_s0 + $0x4a] sm:$0xff]  ;;  %v1849_v39 = vld [vmem:[%s17822_s1 + $0x218] sm:$0xff]  ;;  %v188_v40 = vld [vmem:[%s17821_s0 + $0x61] sm:$0xff] }
  0x3d   :  { %1979 = vmatprep.subr.mxu0 %v10293_v0  ;;  %2364 = vmatprep.subr.mxu1 %v10293_v0  ;;  %v9364_v38 = vld [vmem:[%s17821_s0 + $0x68] sm:$0xff]  ;;  %v1848_v41 = vld [vmem:[%s17822_s1 + $0x210] sm:$0xff]  ;;  %v9365_v43 = vld [vmem:[%s17821_s0 + $0x78] sm:$0xff] }
  0x3e   :  { %1980 = vmatpush2.msra.mxu0 %v1806_v47  ;;  %2365 = vmatpush2.msra.mxu1 %v1838_v48  ;;  %v315_v42 = vld [vmem:[%s17821_s0 + $0x52] sm:$0xff]  ;;  %v1847_v44 = vld [vmem:[%s17822_s1 + $0x208] sm:$0xff]  ;;  %v1846_v46 = vld [vmem:[%s17822_s1 + $0x200] sm:$0xff] }
  0x3f   :  { %1981 = vmatprep.subr.mxu0 %v10293_v0  ;;  %2366 = vmatprep.subr.mxu1 %v10293_v0  ;;  %v189_v45 = vld [vmem:[%s17821_s0 + $0x69] sm:$0xff]  ;;  %v9366_v48 = vld [vmem:[%s17821_s0 + $0x80] sm:$0xff] }
  0x40   :  { %1982 = vmatpush2.msra.mxu0 %v1805_v49  ;;  %2367 = vmatpush2.msra.mxu1 %v1837_v50  ;;  %v316_v47 = vld [vmem:[%s17821_s0 + $0x62] sm:$0xff]  ;;  %v1877_v49 = vld [vmem:[%s17822_s1 + $0x2f8] sm:$0xff] }
  0x41   :  { %1983 = vmatprep.subr.mxu0 %v10293_v0  ;;  %2368 = vmatprep.subr.mxu1 %v10293_v0  ;;  %v190_v50 = vld [vmem:[%s17821_s0 + $0x79] sm:$0xff] }
  0x42   :  { %1984 = vmatpush2.msra.mxu0 %v1804_v51  ;;  %2369 = vmatpush2.msra.mxu1 %v1836_v52  ;;  %v1893_v51 = vld [vmem:[%s17822_s1 + $0x378] sm:$0xff]  ;;  %v317_v52 = vld [vmem:[%s17821_s0 + $0x6a] sm:$0xff] }
  0x43   :  { %1985 = vmatprep.subr.mxu0 %v10293_v0  ;;  %2370 = vmatprep.subr.mxu1 %v10293_v0 }
  0x44   :  { %1986 = vmatpush2.msra.mxu0 %v1803_v53  ;;  %2371 = vmatpush2.msra.mxu1 %v1835_v54  ;;  %v9367_v53 = vld [vmem:[%s17821_s0 + $0x90] sm:$0xff] }
  0x45   :  { %1987 = vmatprep.subr.mxu0 %v10293_v0  ;;  %2372 = vmatprep.subr.mxu1 %v10293_v0  ;;  %v1876_v54 = vld [vmem:[%s17822_s1 + $0x2f0] sm:$0xff] }
  0x46   :  { %1988 = vmatpush2.msra.mxu0 %v1802_v55  ;;  %2373 = vmatpush2.msra.mxu1 %v1834_v56  ;;  %v191_v55 = vld [vmem:[%s17821_s0 + $0x81] sm:$0xff]  ;;  %v1892_v56 = vld [vmem:[%s17822_s1 + $0x370] sm:$0xff] }
  0x47   :  { %1989 = vmatprep.subr.mxu0 %v10293_v0  ;;  %2374 = vmatprep.subr.mxu1 %v10293_v0 }
  0x48   :  { %1990 = vmatpush2.msra.mxu0 %v1801_v57  ;;  %2375 = vmatpush2.msra.mxu1 %v1833_v58  ;;  %v318_v57 = vld [vmem:[%s17821_s0 + $0x7a] sm:$0xff] }
  0x49   :  { %1991 = vmatprep.subr.mxu0 %v10293_v0  ;;  %2376 = vmatprep.subr.mxu1 %v10293_v0  ;;  %v9368_v58 = vld [vmem:[%s17821_s0 + $0x98] sm:$0xff] }
  0x4a   :  { %1992 = vmatpush2.msra.mxu0 %v1800_v59  ;;  %2377 = vmatpush2.msra.mxu1 %v1832_v60  ;;  %v1875_v59 = vld [vmem:[%s17822_s1 + $0x2e8] sm:$0xff]  ;;  %v192_v60 = vld [vmem:[%s17821_s0 + $0x91] sm:$0xff] }
  0x4b   :  { %1993 = vmatprep.subr.mxu0 %v10293_v0  ;;  %2378 = vmatprep.subr.mxu1 %v10293_v0 }
  0x4c   :  { %1994 = vmatpush2.msra.mxu0 %v1799_v61  ;;  %1997 = vmatprep.mubr.f32.mxu0 %v180_v62  ;;  %v1891_v61 = vld [vmem:[%s17822_s1 + $0x368] sm:$0xff] }
  0x4d   :  { %1995 = vmatprep.subr.mxu0 %v10293_v0  ;;  %2379 = vmatpush2.msra.mxu1 %v1831_v63  ;;  %v319_v62 = vld [vmem:[%s17821_s0 + $0x82] sm:$0xff] }
  0x4e   :  { %1996 = vmatpush2.msra.mxu0 %v1798_v1  ;;  %2380 = vmatprep.subr.mxu1 %v10293_v0  ;;  %v9369_v63 = vld [vmem:[%s17821_s0 + $0xa8] sm:$0xff]  ;;  %v1874_v1 = vld [vmem:[%s17822_s1 + $0x2e0] sm:$0xff] }
  0x4f   :  { %1998 = vmatmul.mubr.f32.vlgmr.msra.gmra.mxu0 %v52_v2  ;;  %2703 = vmatprep.subr.mxu0 %v10293_v0  ;;  %v193_v2 = vld [vmem:[%s17821_s0 + $0x99] sm:$0xff] }
  0x50   :  { %2381 = vmatpush2.msra.mxu1 %v1830_v3  ;;  %2382 = vmatprep.mubr.f32.mxu1 %v9357_v4  ;;  %v1890_v3 = vld [vmem:[%s17822_s1 + $0x360] sm:$0xff] }
  0x51   :  { %2704 = vmatpush1.msra.mxu0 %v1861_v5  ;;  %2383 = vmatmul.mubr.f32.vlgmr.msra.gmra.mxu1 %v308_v6  ;;  %v9370_v5 = vld [vmem:[%s17821_s0 + $0xb0] sm:$0xff]  ;;  %v1873_v6 = vld [vmem:[%s17822_s1 + $0x2d8] sm:$0xff] }
  0x52   :  { %2002 = vmatprep.mubr.f32.mxu0 %v181_v7  ;;  %2387 = vmatprep.mubr.f32.mxu1 %v9358_v8  ;;  %v194_v7 = vld [vmem:[%s17821_s0 + $0xa9] sm:$0xff] }
  0x53   :  { %2003 = vmatmul.mubr.f32.gmra.mxu0 %v53_v9  ;;  %2705 = vmatprep.subr.mxu0 %v10293_v0  ;;  %v321_v9 = vld [vmem:[%s17821_s0 + $0x9a] sm:$0xff] }
  0x54   :  { %2007 = vmatprep.mubr.f32.mxu0 %v182_v10  ;;  %2706 = vmatpush1.msra.mxu0 %v1860_v11  ;;  %v9371_v10 = vld [vmem:[%s17821_s0 + $0xc0] sm:$0xff]  ;;  %v1872_v11 = vld [vmem:[%s17822_s1 + $0x2d0] sm:$0xff] }
  0x55   :  { %2388 = vmatmul.mubr.f32.gmra.mxu1 %v309_v12  ;;  %2707 = vmatprep.subr.mxu0 %v10293_v0  ;;  %v195_v12 = vld [vmem:[%s17821_s0 + $0xb1] sm:$0xff] }
  0x56   :  { %2392 = vmatprep.mubr.f32.mxu1 %v9359_v13  ;;  %2708 = vmatpush1.msra.mxu0 %v1859_v14  ;;  %v322_v14 = vld [vmem:[%s17821_s0 + $0xaa] sm:$0xff] }
  0x57   :  { %2008 = vmatmul.mubr.f32.gmra.mxu0 %v9357_v4  ;;  %2709 = vmatprep.subr.mxu0 %v10293_v0  ;;  %v320_v4 = vld [vmem:[%s17821_s0 + $0x92] sm:$0xff] }
  0x58   :  { %2012 = vmatprep.mubr.f32.mxu0 %v183_v15  ;;  %2710 = vmatpush1.msra.mxu0 %v1858_v16  ;;  %v9372_v15 = vld [vmem:[%s17821_s0 + $0xc8] sm:$0xff] }
  0x59   :  { %2393 = vmatmul.mubr.f32.gmra.mxu1 %v310_v17  ;;  %2711 = vmatprep.subr.mxu0 %v10293_v0  ;;  %v1871_v16 = vld [vmem:[%s17822_s1 + $0x2c8] sm:$0xff] }
  0x5a   :  { %2397 = vmatprep.mubr.f32.mxu1 %v9360_v18  ;;  %2712 = vmatpush1.msra.mxu0 %v1857_v19  ;;  %v196_v17 = vld [vmem:[%s17821_s0 + $0xc1] sm:$0xff]  ;;  %v323_v19 = vld [vmem:[%s17821_s0 + $0xb2] sm:$0xff] }
  0x5b   :  { %2013 = vmatmul.mubr.f32.gmra.mxu0 %v9358_v8  ;;  %2713 = vmatprep.subr.mxu0 %v10293_v0  ;;  %v1889_v8 = vld [vmem:[%s17822_s1 + $0x358] sm:$0xff] }
  0x5c   :  { %2017 = vmatprep.mubr.f32.mxu0 %v184_v20  ;;  %2714 = vmatpush1.msra.mxu0 %v1856_v21  ;;  %v9373_v20 = vld [vmem:[%s17821_s0 + $0xd8] sm:$0xff]  ;;  %v1870_v21 = vld [vmem:[%s17822_s1 + $0x2c0] sm:$0xff] }
  0x5d   :  { %2398 = vmatmul.mubr.f32.gmra.mxu1 %v311_v22  ;;  %2715 = vmatprep.subr.mxu0 %v10293_v0  ;;  %v197_v22 = vld [vmem:[%s17821_s0 + $0xc9] sm:$0xff] }
  0x5e   :  { %2402 = vmatprep.mubr.f32.mxu1 %v9361_v23  ;;  %2716 = vmatpush1.msra.mxu0 %v1855_v24  ;;  %v324_v24 = vld [vmem:[%s17821_s0 + $0xc2] sm:$0xff] }
  0x5f   :  { %2018 = vmatmul.mubr.f32.gmra.mxu0 %v9359_v13  ;;  %2717 = vmatprep.subr.mxu0 %v10293_v0  ;;  %v1888_v13 = vld [vmem:[%s17822_s1 + $0x350] sm:$0xff] }
  0x60   :  { %2022 = vmatprep.mubr.f32.mxu0 %v185_v25  ;;  %2718 = vmatpush1.msra.mxu0 %v1854_v26  ;;  %v9374_v25 = vld [vmem:[%s17821_s0 + $0xe0] sm:$0xff]  ;;  %v1869_v26 = vld [vmem:[%s17822_s1 + $0x2b8] sm:$0xff] }
  0x61   :  { %2403 = vmatmul.mubr.f32.gmra.mxu1 %v312_v27  ;;  %2719 = vmatprep.subr.mxu0 %v10293_v0  ;;  %v198_v27 = vld [vmem:[%s17821_s0 + $0xd9] sm:$0xff] }
  0x62   :  { %2407 = vmatprep.mubr.f32.mxu1 %v9362_v28  ;;  %2720 = vmatpush1.msra.mxu0 %v1853_v29  ;;  %v1885_v29 = vld [vmem:[%s17822_s1 + $0x338] sm:$0xff] }
  0x63   :  { %2023 = vmatmul.mubr.f32.gmra.mxu0 %v9360_v18  ;;  %2721 = vmatprep.subr.mxu0 %v10293_v0  ;;  %v1887_v18 = vld [vmem:[%s17822_s1 + $0x348] sm:$0xff] }
  0x64   :  { %2027 = vmatprep.mubr.f32.mxu0 %v186_v30  ;;  %2722 = vmatpush1.msra.mxu0 %v1852_v31  ;;  %v9375_v30 = vld [vmem:[%s17821_s0 + $0xf0] sm:$0xff]  ;;  %v199_v31 = vld [vmem:[%s17821_s0 + $0xe1] sm:$0xff] }
  0x65   :  { %2408 = vmatmul.mubr.f32.gmra.mxu1 %v313_v32  ;;  %2723 = vmatprep.subr.mxu0 %v10293_v0  ;;  %v326_v32 = vld [vmem:[%s17821_s0 + $0xda] sm:$0xff] }
  0x66   :  { %2412 = vmatprep.mubr.f32.mxu1 %v9363_v33  ;;  %2724 = vmatpush1.msra.mxu0 %v1851_v34  ;;  %v1868_v34 = vld [vmem:[%s17822_s1 + $0x2b0] sm:$0xff] }
  0x67   :  { %2028 = vmatmul.mubr.f32.gmra.mxu0 %v9361_v23  ;;  %2725 = vmatprep.subr.mxu0 %v10293_v0  ;;  %v1886_v23 = vld [vmem:[%s17822_s1 + $0x340] sm:$0xff] }
  0x68   :  { %2032 = vmatprep.mubr.f32.mxu0 %v187_v35  ;;  %2726 = vmatpush1.msra.mxu0 %v1850_v36  ;;  %v200_v35 = vld [vmem:[%s17821_s0 + $0xf1] sm:$0xff] }
  0x69   :  { %2413 = vmatmul.mubr.f32.gmra.mxu1 %v314_v37  ;;  %2727 = vmatprep.subr.mxu0 %v10293_v0  ;;  %v1884_v36 = vld [vmem:[%s17822_s1 + $0x330] sm:$0xff]  ;;  %v11021_v37 = vld [vmem:[#allocation3] sm:$0xff] }
  0x6a   :  { %2417 = vmatprep.mubr.f32.mxu1 %v9364_v38  ;;  %2728 = vmatpush1.msra.mxu0 %v1849_v39  ;;  %v201_v39 = vld [vmem:[%s17821_s0 + $0xf9] sm:$0xff] }
  0x6b   :  { %2033 = vmatmul.mubr.f32.gmra.mxu0 %v9362_v28  ;;  %2729 = vmatprep.subr.mxu0 %v10293_v0  ;;  %v325_v28 = vld [vmem:[%s17821_s0 + $0xca] sm:$0xff] }
  0x6c   :  { %2037 = vmatprep.mubr.f32.mxu0 %v188_v40  ;;  %2730 = vmatpush1.msra.mxu0 %v1848_v41  ;;  %v328_v40 = vld [vmem:[%s17821_s0 + $0xf2] sm:$0xff] }
  0x6d   :  { %2418 = vmatmul.mubr.f32.gmra.mxu1 %v315_v42  ;;  %2731 = vmatprep.subr.mxu0 %v10293_v0  ;;  %v9378_v41 = vld [vmem:[%s17821_s0 + $0x110] sm:$0xff]  ;;  %v1867_v42 = vld [vmem:[%s17822_s1 + $0x2a8] sm:$0xff] }
  0x6e   :  { %2422 = vmatprep.mubr.f32.mxu1 %v9365_v43  ;;  %2732 = vmatpush1.msra.mxu0 %v1847_v44  ;;  %v329_v44 = vld [vmem:[%s17821_s0 + $0xfa] sm:$0xff] }
  0x6f   :  { %2038 = vmatmul.mubr.f32.gmra.mxu0 %v9363_v33  ;;  %2733 = vmatprep.subr.mxu0 %v10293_v0  ;;  %v9376_v33 = vld [vmem:[%s17821_s0 + $0xf8] sm:$0xff] }
  0x70   :  { %2042 = vmatprep.mubr.f32.mxu0 %v189_v45  ;;  %2734 = vmatpush1.msra.mxu0 %v1846_v46  ;;  %v1883_v45 = vld [vmem:[%s17822_s1 + $0x328] sm:$0xff]  ;;  %v9379_v46 = vld [vmem:[%s17821_s0 + $0x120] sm:$0xff] }
  0x71   :  { %2423 = vmatmul.mubr.f32.gmra.mxu1 %v316_v47  ;;  %2735 = vmatprep.subr.mxu0 %v10293_v0  ;;  %v203_v47 = vld [vmem:[%s17821_s0 + $0x111] sm:$0xff] }
  0x72   :  { %2427 = vmatprep.mubr.f32.mxu1 %v9366_v48  ;;  %2736 = vmatpush2.msra.mxu0 %v1877_v49  ;;  %v9380_v49 = vld [vmem:[%s17821_s0 + $0x128] sm:$0xff] }
  0x73   :  { %2043 = vmatmul.mubr.f32.gmra.mxu0 %v9364_v38  ;;  %3088 = vmatprep.subr.mxu1 %v10293_v0  ;;  %v9377_v38 = vld [vmem:[%s17821_s0 + $0x108] sm:$0xff] }
  0x74   :  { %2047 = vmatprep.mubr.f32.mxu0 %v190_v50  ;;  %3089 = vmatpush1.msra.mxu1 %v1893_v51  ;;  %v1882_v50 = vld [vmem:[%s17822_s1 + $0x320] sm:$0xff] }
  0x75   :  { %2428 = vmatmul.mubr.f32.gmra.mxu1 %v317_v52  ;;  %2737 = vmatprep.subr.mxu0 %v10293_v0  ;;  %v1866_v51 = vld [vmem:[%s17822_s1 + $0x2a0] sm:$0xff] }
  0x76   :  { %2432 = vmatprep.mubr.f32.mxu1 %v9367_v53  ;;  %2738 = vmatpush2.msra.mxu0 %v1876_v54  ;;  %v204_v52 = vld [vmem:[%s17821_s0 + $0x121] sm:$0xff]  ;;  %v331_v54 = vld [vmem:[%s17821_s0 + $0x112] sm:$0xff] }
  0x77   :  { %2048 = vmatmul.mubr.f32.gmra.mxu0 %v9365_v43  ;;  %3090 = vmatprep.subr.mxu1 %v10293_v0  ;;  %v202_v43 = vld [vmem:[%s17821_s0 + $0x109] sm:$0xff] }
  0x78   :  { %2052 = vmatprep.mubr.f32.mxu0 %v191_v55  ;;  %3091 = vmatpush1.msra.mxu1 %v1892_v56  ;;  %v9381_v55 = vld [vmem:[%s17821_s0 + $0x138] sm:$0xff]  ;;  %v1880_v56 = vld [vmem:[%s17822_s1 + $0x310] sm:$0xff] }
  0x79   :  { %2433 = vmatmul.mubr.f32.gmra.mxu1 %v318_v57  ;;  %2739 = vmatprep.subr.mxu0 %v10293_v0  ;;  %v205_v57 = vld [vmem:[%s17821_s0 + $0x129] sm:$0xff] }
  0x7a   :  { %2437 = vmatprep.mubr.f32.mxu1 %v9368_v58  ;;  %2740 = vmatpush2.msra.mxu0 %v1875_v59  ;;  %v332_v59 = vld [vmem:[%s17821_s0 + $0x122] sm:$0xff] }
  0x7b   :  { %2053 = vmatmul.mubr.f32.gmra.mxu0 %v9366_v48  ;;  %3092 = vmatprep.subr.mxu1 %v10293_v0  ;;  %v330_v48 = vld [vmem:[%s17821_s0 + $0x10a] sm:$0xff] }
  0x7c   :  { %2057 = vmatprep.mubr.f32.mxu0 %v192_v60  ;;  %3093 = vmatpush1.msra.mxu1 %v1891_v61  ;;  %v9382_v60 = vld [vmem:[%s17821_s0 + $0x140] sm:$0xff]  ;;  %v1865_v61 = vld [vmem:[%s17822_s1 + $0x298] sm:$0xff] }
  0x7d   :  { %2438 = vmatmul.mubr.f32.gmra.mxu1 %v319_v62  ;;  %2741 = vmatprep.subr.mxu0 %v10293_v0  ;;  %v1878_v62 = vld [vmem:[%s17822_s1 + $0x300] sm:$0xff] }
  0x7e   :  { %2442 = vmatprep.mubr.f32.mxu1 %v9369_v63  ;;  %2742 = vmatpush2.msra.mxu0 %v1874_v1  ;;  %v333_v1 = vld [vmem:[%s17821_s0 + $0x12a] sm:$0xff] }
  0x7f   :  { %2058 = vmatmul.mubr.f32.gmra.mxu0 %v9367_v53  ;;  %3094 = vmatprep.subr.mxu1 %v10293_v0  ;;  %v1881_v53 = vld [vmem:[%s17822_s1 + $0x318] sm:$0xff] }
  0x80   :  { %2062 = vmatprep.mubr.f32.mxu0 %v193_v2  ;;  %3095 = vmatpush1.msra.mxu1 %v1890_v3  ;;  %v9383_v2 = vld [vmem:[%s17821_s0 + $0x150] sm:$0xff]  ;;  %v1909_v3 = vld [vmem:[%s17822_s1 + $0x3f8] sm:$0xff] }
  0x81   :  { %2443 = vmatmul.mubr.f32.gmra.mxu1 %v320_v4  ;;  %2743 = vmatprep.subr.mxu0 %v10293_v0  ;;  %v207_v4 = vld [vmem:[%s17821_s0 + $0x141] sm:$0xff] }
  0x82   :  { %2447 = vmatprep.mubr.f32.mxu1 %v9370_v5  ;;  %2744 = vmatpush2.msra.mxu0 %v1873_v6  ;;  %v334_v6 = vld [vmem:[%s17821_s0 + $0x13a] sm:$0xff] }
  0x83   :  { %2063 = vmatmul.mubr.f32.gmra.mxu0 %v9368_v58  ;;  %3096 = vmatprep.subr.mxu1 %v10293_v0  ;;  %v1879_v58 = vld [vmem:[%s17822_s1 + $0x308] sm:$0xff] }
  0x84   :  { %2067 = vmatprep.mubr.f32.mxu0 %v194_v7  ;;  %3097 = vmatpush1.msra.mxu1 %v1889_v8  ;;  %v9384_v7 = vld [vmem:[%s17821_s0 + $0x158] sm:$0xff]  ;;  %v1907_v8 = vld [vmem:[%s17822_s1 + $0x3e8] sm:$0xff] }
  0x85   :  { %2448 = vmatmul.mubr.f32.gmra.mxu1 %v321_v9  ;;  %2745 = vmatprep.subr.mxu0 %v10293_v0  ;;  %v208_v9 = vld [vmem:[%s17821_s0 + $0x151] sm:$0xff] }
  0x86   :  { %2452 = vmatprep.mubr.f32.mxu1 %v9371_v10  ;;  %2746 = vmatpush2.msra.mxu0 %v1872_v11  ;;  %v335_v11 = vld [vmem:[%s17821_s0 + $0x142] sm:$0xff] }
  0x87   :  { %2068 = vmatmul.mubr.f32.gmra.mxu0 %v9369_v63  ;;  %3098 = vmatprep.subr.mxu1 %v10293_v0  ;;  %v206_v63 = vld [vmem:[%s17821_s0 + $0x139] sm:$0xff] }
  0x88   :  { %2072 = vmatprep.mubr.f32.mxu0 %v195_v12  ;;  %3099 = vmatpush1.msra.mxu1 %v1888_v13  ;;  %v9385_v12 = vld [vmem:[%s17821_s0 + $0x168] sm:$0xff]  ;;  %v1906_v13 = vld [vmem:[%s17822_s1 + $0x3e0] sm:$0xff] }
  0x89   :  { %2453 = vmatmul.mubr.f32.gmra.mxu1 %v322_v14  ;;  %2747 = vmatprep.subr.mxu0 %v10293_v0  ;;  %v209_v14 = vld [vmem:[%s17821_s0 + $0x159] sm:$0xff] }
  0x8a   :  { %2457 = vmatprep.mubr.f32.mxu1 %v9372_v15  ;;  %2748 = vmatpush2.msra.mxu0 %v1871_v16  ;;  %v336_v16 = vld [vmem:[%s17821_s0 + $0x152] sm:$0xff] }
  0x8b   :  { %2073 = vmatmul.mubr.f32.gmra.mxu0 %v9370_v5  ;;  %3100 = vmatprep.subr.mxu1 %v10293_v0  ;;  %v1908_v5 = vld [vmem:[%s17822_s1 + $0x3f0] sm:$0xff] }
  0x8c   :  { %2077 = vmatprep.mubr.f32.mxu0 %v196_v17  ;;  %3101 = vmatpush1.msra.mxu1 %v1887_v18  ;;  %v9386_v17 = vld [vmem:[%s17821_s0 + $0x170] sm:$0xff] }
  0x8d   :  { %2458 = vmatmul.mubr.f32.gmra.mxu1 %v323_v19  ;;  %2749 = vmatprep.subr.mxu0 %v10293_v0  ;;  %v1904_v18 = vld [vmem:[%s17822_s1 + $0x3d0] sm:$0xff] }
  0x8e   :  { %2462 = vmatprep.mubr.f32.mxu1 %v9373_v20  ;;  %2750 = vmatpush2.msra.mxu0 %v1870_v21  ;;  %v210_v19 = vld [vmem:[%s17821_s0 + $0x169] sm:$0xff]  ;;  %v337_v21 = vld [vmem:[%s17821_s0 + $0x15a] sm:$0xff] }
  0x8f   :  { %2078 = vmatmul.mubr.f32.gmra.mxu0 %v9371_v10  ;;  %3102 = vmatprep.subr.mxu1 %v10293_v0  ;;  %v1864_v10 = vld [vmem:[%s17822_s1 + $0x290] sm:$0xff] }
  0x90   :  { %2082 = vmatprep.mubr.f32.mxu0 %v197_v22  ;;  %3103 = vmatpush1.msra.mxu1 %v1886_v23  ;;  %v9387_v22 = vld [vmem:[%s17821_s0 + $0x180] sm:$0xff]  ;;  %v1863_v23 = vld [vmem:[%s17822_s1 + $0x288] sm:$0xff] }
  0x91   :  { %2463 = vmatmul.mubr.f32.gmra.mxu1 %v324_v24  ;;  %2751 = vmatprep.subr.mxu0 %v10293_v0  ;;  %v1902_v24 = vld [vmem:[%s17822_s1 + $0x3c0] sm:$0xff] }
  0x92   :  { %2467 = vmatprep.mubr.f32.mxu1 %v9374_v25  ;;  %2752 = vmatpush2.msra.mxu0 %v1869_v26  ;;  %v338_v26 = vld [vmem:[%s17821_s0 + $0x16a] sm:$0xff] }
  0x93   :  { %2083 = vmatmul.mubr.f32.gmra.mxu0 %v9372_v15  ;;  %3104 = vmatprep.subr.mxu1 %v10293_v0  ;;  %v1905_v15 = vld [vmem:[%s17822_s1 + $0x3d8] sm:$0xff] }
  0x94   :  { %2087 = vmatprep.mubr.f32.mxu0 %v198_v27  ;;  %3105 = vmatpush1.msra.mxu1 %v1885_v29  ;;  %v9388_v27 = vld [vmem:[%s17821_s0 + $0x188] sm:$0xff]  ;;  %v212_v29 = vld [vmem:[%s17821_s0 + $0x1b1] sm:$0xff] }
  0x95   :  { %2468 = vmatmul.mubr.f32.gmra.mxu1 %v325_v28  ;;  %2753 = vmatprep.subr.mxu0 %v10293_v0  ;;  %v1901_v28 = vld [vmem:[%s17822_s1 + $0x3b8] sm:$0xff] }
  0x96   :  { %2472 = vmatprep.mubr.f32.mxu1 %v9375_v30  ;;  %3106 = vmatprep.subr.mxu1 %v10293_v0  ;;  %v327_v0 = vld [vmem:[%s17821_s0 + $0xe2] sm:$0xff] }
  0x97   :  { %2088 = vmatmul.mubr.f32.gmra.mxu0 %v9373_v20  ;;  %3107 = vmatpush1.msra.mxu1 %v1884_v36  ;;  %v1903_v20 = vld [vmem:[%s17822_s1 + $0x3c8] sm:$0xff]  ;;  %v340_v36 = vld [vmem:[%s17821_s0 + $0x1b2] sm:$0xff] }
  0x98   :  { %2092 = vmatprep.mubr.f32.mxu0 %v199_v31  ;;  %2754 = vmatpush2.msra.mxu0 %v1868_v34  ;;  %v339_v31 = vld [vmem:[%s17821_s0 + $0x172] sm:$0xff] }
  0x99   :  { %2473 = vmatmul.mubr.f32.gmra.mxu1 %v326_v32  ;;  %2755 = vmatprep.subr.mxu0 %v11021_v37  ;;  %v9389_v32 = vld [vmem:[%s17821_s0 + $0x1c8] sm:$0xff]  ;;  %v84_v34 = vld [vmem:[%s17821_s0 + $0x1b0] sm:$0xff] }
  0x9a   :  { %2477 = vmatprep.mubr.f32.mxu1 %v9376_v33  ;;  %3108 = vmatprep.subr.mxu1 %v11021_v37 }
  0x9b   :  { %2093 = vmatmul.mubr.f32.gmra.mxu0 %v9374_v25  ;;  %3109 = vmatpush1.msra.mxu1 %v1883_v45  ;;  %v211_v25 = vld [vmem:[%s17821_s0 + $0x171] sm:$0xff]  ;;  %v9391_v45 = vld [vmem:[%s17821_s0 + $0x1e0] sm:$0xff] }
  0x9c   :  { %2097 = vmatprep.mubr.f32.mxu0 %v200_v35  ;;  %2756 = vmatpush2.msra.mxu0 %v1867_v42  ;;  %v213_v35 = vld [vmem:[%s17821_s0 + $0x1b9] sm:$0xff]  ;;  %v214_v42 = vld [vmem:[%s17821_s0 + $0x1c9] sm:$0xff] }
  0x9d   :  { %2478 = vmatmul.mubr.f32.gmra.mxu1 %v327_v0  ;;  %2757 = vmatprep.subr.mxu0 %v11021_v37  ;;  %v1862_v0 = vld [vmem:[%s17822_s1 + $0x280] sm:$0xff] }
  0x9e   :  { %2482 = vmatprep.mubr.f32.mxu1 %v9377_v38  ;;  %3110 = vmatprep.subr.mxu1 %v11021_v37 }
  0x9f   :  { %2098 = vmatmul.mubr.f32.gmra.mxu0 %v9375_v30  ;;  %3111 = vmatpush1.msra.mxu1 %v1882_v50  ;;  %v1900_v30 = vld [vmem:[%s17822_s1 + $0x3b0] sm:$0xff]  ;;  %v9392_v50 = vld [vmem:[%s17821_s0 + $0x1e8] sm:$0xff] }
  0xa0   :  { %2102 = vmatprep.mubr.f32.mxu0 %v201_v39  ;;  %2758 = vmatpush2.msra.mxu0 %v1866_v51  ;;  %v1898_v39 = vld [vmem:[%s17822_s1 + $0x3a0] sm:$0xff] }
  0xa1   :  { %2483 = vmatmul.mubr.f32.gmra.mxu1 %v328_v40  ;;  %3112 = vmatprep.subr.mxu1 %v11021_v37  ;;  %v85_v40 = vld [vmem:[%s17821_s0 + $0x1b8] sm:$0xff]  ;;  %v1894_v51 = vld [vmem:[%s17822_s1 + $0x380] sm:$0xff] }
  0xa2   :  { %2487 = vmatprep.mubr.f32.mxu1 %v9378_v41  ;;  %3113 = vmatpush1.msra.mxu1 %v1881_v53  ;;  %v343_v53 = vld [vmem:[%s17821_s0 + $0x1d2] sm:$0xff] }
  0xa3   :  { %2103 = vmatmul.mubr.f32.gmra.mxu0 %v9376_v33  ;;  %3114 = vmatprep.subr.mxu1 %v11021_v37  ;;  %v1899_v33 = vld [vmem:[%s17822_s1 + $0x3a8] sm:$0xff] }
  0xa4   :  { %2107 = vmatprep.mubr.f32.mxu0 %v202_v43  ;;  %2759 = vmatprep.subr.mxu0 %v11021_v37  ;;  %v1897_v43 = vld [vmem:[%s17822_s1 + $0x398] sm:$0xff] }
  0xa5   :  { %2488 = vmatmul.mubr.f32.gmra.mxu1 %v329_v44  ;;  %2760 = vmatpush2.msra.mxu0 %v1865_v61  ;;  %v341_v44 = vld [vmem:[%s17821_s0 + $0x1ba] sm:$0xff] }
  0xa6   :  { %2492 = vmatprep.mubr.f32.mxu1 %v9379_v46  ;;  %3115 = vmatpush1.msra.mxu1 %v1880_v56  ;;  %v344_v56 = vld [vmem:[%s17821_s0 + $0x1e2] sm:$0xff]  ;;  %v346_v61 = vld [vmem:[%s17821_s0 + $0x1fa] sm:$0xff] }
  0xa7   :  { %2108 = vmatmul.mubr.f32.gmra.mxu0 %v9377_v38  ;;  %3116 = vmatprep.subr.mxu1 %v11021_v37  ;;  %v9390_v38 = vld [vmem:[%s17821_s0 + $0x1d0] sm:$0xff] }
  0xa8   :  { %2112 = vmatprep.mubr.f32.mxu0 %v203_v47  ;;  %3117 = vmatpush1.msra.mxu1 %v1879_v58  ;;  %v215_v47 = vld [vmem:[%s17821_s0 + $0x1d1] sm:$0xff] }
  0xa9   :  { %2493 = vmatmul.mubr.f32.gmra.mxu1 %v330_v48  ;;  %3118 = vmatprep.subr.mxu1 %v11021_v37  ;;  %v1895_v48 = vld [vmem:[%s17822_s1 + $0x388] sm:$0xff] }
  0xaa   :  { %2497 = vmatprep.mubr.f32.mxu1 %v9380_v49  ;;  %3119 = vmatpush1.msra.mxu1 %v1878_v62  ;;  %v345_v58 = vld [vmem:[%s17821_s0 + $0x1ea] sm:$0xff]  ;;  %v9396_v62 = vld [vmem:[%s17821_s0 + $0x218] sm:$0xff] }
  0xab   :  { %2113 = vmatmul.mubr.f32.gmra.mxu0 %v9378_v41  ;;  %3120 = vmatprep.subr.mxu1 %v11021_v37  ;;  %v11248_v41 = vld [vmem:[%s17822_s1 + $0x478] sm:$0xff] }
  0xac   :  { %2117 = vmatprep.mubr.f32.mxu0 %v204_v52  ;;  %2761 = vmatprep.subr.mxu0 %v11021_v37  ;;  %v216_v52 = vld [vmem:[%s17821_s0 + $0x1e1] sm:$0xff] }
  0xad   :  { %2498 = vmatmul.mubr.f32.gmra.mxu1 %v331_v54  ;;  %2762 = vmatpush2.msra.mxu0 %v1864_v10  ;;  %v9393_v54 = vld [vmem:[%s17821_s0 + $0x1f8] sm:$0xff]  ;;  %v350_v10 = vld [vmem:[%s17821_s0 + $0x22a] sm:$0xff] }
  0xae   :  { %2502 = vmatprep.mubr.f32.mxu1 %v9381_v55  ;;  %3121 = vmatpush2.msra.mxu1 %v1909_v3  ;;  %v221_v3 = vld [vmem:[%s17821_s0 + $0x219] sm:$0xff] }
  0xaf   :  { %2118 = vmatmul.mubr.f32.gmra.mxu0 %v9379_v46  ;;  %3122 = vmatprep.subr.mxu1 %v11021_v37  ;;  %v1896_v46 = vld [vmem:[%s17822_s1 + $0x390] sm:$0xff] }
  0xb0   :  { %2122 = vmatprep.mubr.f32.mxu0 %v205_v57  ;;  %3123 = vmatpush2.msra.mxu1 %v1908_v5  ;;  %v9394_v57 = vld [vmem:[%s17821_s0 + $0x200] sm:$0xff]  ;;  %v9398_v5 = vld [vmem:[%s17821_s0 + $0x230] sm:$0xff] }
  0xb1   :  { %2503 = vmatmul.mubr.f32.gmra.mxu1 %v332_v59  ;;  %3124 = vmatprep.subr.mxu1 %v11021_v37  ;;  %v9395_v59 = vld [vmem:[%s17821_s0 + $0x210] sm:$0xff] }
  0xb2   :  { %2507 = vmatprep.mubr.f32.mxu1 %v9382_v60  ;;  %3125 = vmatpush2.msra.mxu1 %v1907_v8  ;;  %v9399_v8 = vld [vmem:[%s17821_s0 + $0x240] sm:$0xff] }
  0xb3   :  { %2123 = vmatmul.mubr.f32.gmra.mxu0 %v9380_v49  ;;  %3126 = vmatprep.subr.mxu1 %v11021_v37  ;;  %v342_v49 = vld [vmem:[%s17821_s0 + $0x1ca] sm:$0xff] }
  0xb4   :  { %2127 = vmatprep.mubr.f32.mxu0 %v206_v63  ;;  %2763 = vmatprep.subr.mxu0 %v11021_v37  ;;  %v220_v63 = vld [vmem:[%s17821_s0 + $0x211] sm:$0xff] }
  0xb5   :  { %2508 = vmatmul.mubr.f32.gmra.mxu1 %v333_v1  ;;  %2764 = vmatpush2.msra.mxu0 %v1863_v23  ;;  %v347_v1 = vld [vmem:[%s17821_s0 + $0x202] sm:$0xff]  ;;  %v9404_v23 = vld [vmem:[%s17821_s0 + $0x278] sm:$0xff] }
  0xb6   :  { %2512 = vmatprep.mubr.f32.mxu1 %v9383_v2  ;;  %3127 = vmatpush2.msra.mxu1 %v1906_v13  ;;  %v351_v13 = vld [vmem:[%s17821_s0 + $0x232] sm:$0xff] }
  0xb7   :  { %2128 = vmatmul.mubr.f32.gmra.mxu0 %v9381_v55  ;;  %3128 = vmatprep.subr.mxu1 %v11021_v37  ;;  %v217_v55 = vld [vmem:[%s17821_s0 + $0x1e9] sm:$0xff] }
  0xb8   :  { %2132 = vmatprep.mubr.f32.mxu0 %v207_v4  ;;  %3129 = vmatpush2.msra.mxu1 %v1905_v15  ;;  %v348_v4 = vld [vmem:[%s17821_s0 + $0x212] sm:$0xff]  ;;  %v225_v15 = vld [vmem:[%s17821_s0 + $0x249] sm:$0xff] }
  0xb9   :  { %2513 = vmatmul.mubr.f32.gmra.mxu1 %v334_v6  ;;  %3130 = vmatprep.subr.mxu1 %v11021_v37  ;;  %v222_v6 = vld [vmem:[%s17821_s0 + $0x229] sm:$0xff] }
  0xba   :  { %2517 = vmatprep.mubr.f32.mxu1 %v9384_v7  ;;  %3131 = vmatpush2.msra.mxu1 %v1904_v18  ;;  %v226_v18 = vld [vmem:[%s17821_s0 + $0x259] sm:$0xff] }
  0xbb   :  { %2133 = vmatmul.mubr.f32.gmra.mxu0 %v9382_v60  ;;  %3132 = vmatprep.subr.mxu1 %v11021_v37  ;;  %v219_v60 = vld [vmem:[%s17821_s0 + $0x201] sm:$0xff] }
  0xbc   :  { %2137 = vmatprep.mubr.f32.mxu0 %v208_v9  ;;  %3133 = vmatpush2.msra.mxu1 %v1903_v20  ;;  %v223_v9 = vld [vmem:[%s17821_s0 + $0x231] sm:$0xff] }
  0xbd   :  { %2518 = vmatmul.mubr.f32.gmra.mxu1 %v335_v11  ;;  %3134 = vmatprep.subr.mxu1 %v11021_v37  ;;  %v9400_v11 = vld [vmem:[%s17821_s0 + $0x248] sm:$0xff]  ;;  %v9403_v20 = vld [vmem:[%s17821_s0 + $0x270] sm:$0xff] }
  0xbe   :  { %2522 = vmatprep.mubr.f32.mxu1 %v9385_v12  ;;  %3135 = vmatpush2.msra.mxu1 %v1902_v24  ;;  %v228_v24 = vld [vmem:[%s17821_s0 + $0x271] sm:$0xff] }
  0xbf   :  { %2138 = vmatmul.mubr.f32.gmra.mxu0 %v9383_v2  ;;  %3136 = vmatprep.subr.mxu1 %v11021_v37  ;;  %v9397_v2 = vld [vmem:[%s17821_s0 + $0x228] sm:$0xff] }
  0xc0   :  { %2142 = vmatprep.mubr.f32.mxu0 %v209_v14  ;;  %2765 = vmatprep.subr.mxu0 %v11021_v37  ;;  %v9401_v14 = vld [vmem:[%s17821_s0 + $0x258] sm:$0xff] }
  0xc1   :  { %2523 = vmatmul.mubr.f32.gmra.mxu1 %v336_v16  ;;  %2766 = vmatpush2.msra.mxu0 %v1862_v0  ;;  %v352_v16 = vld [vmem:[%s17821_s0 + $0x242] sm:$0xff] }
  0xc2   :  { %2527 = vmatprep.mubr.f32.mxu1 %v9386_v17  ;;  %3137 = vmatpush2.msra.mxu1 %v1901_v28  ;;  %v229_v28 = vld [vmem:[%s17821_s0 + $0x279] sm:$0xff] }
  0xc3   :  { %2143 = vmatmul.mubr.f32.gmra.mxu0 %v9384_v7  ;;  %3138 = vmatprep.subr.mxu1 %v11021_v37  ;;  %v349_v7 = vld [vmem:[%s17821_s0 + $0x21a] sm:$0xff] }
  0xc4   :  { %2147 = vmatprep.mubr.f32.mxu0 %v210_v19  ;;  %3139 = vmatpush2.msra.mxu1 %v1900_v30  ;;  %v353_v19 = vld [vmem:[%s17821_s0 + $0x24a] sm:$0xff] }
  0xc5   :  { %2528 = vmatmul.mubr.f32.gmra.mxu1 %v337_v21  ;;  %3140 = vmatprep.subr.mxu1 %v11021_v37  ;;  %v227_v21 = vld [vmem:[%s17821_s0 + $0x261] sm:$0xff] }
  0xc6   :  { %2532 = vmatprep.mubr.f32.mxu1 %v9387_v22  ;;  %3141 = vmatpush2.msra.mxu1 %v1899_v33  ;;  %v354_v22 = vld [vmem:[%s17821_s0 + $0x25a] sm:$0xff] }
  0xc7   :  { %2148 = vmatmul.mubr.f32.gmra.mxu0 %v9385_v12  ;;  %3142 = vmatprep.subr.mxu1 %v11021_v37  ;;  %v224_v12 = vld [vmem:[%s17821_s0 + $0x241] sm:$0xff] }
  0xc8   :  { %2152 = vmatprep.mubr.f32.mxu0 %v211_v25  ;;  %9971 = vmatprep.subr.mxu0 %v11248_v41  ;;  %v355_v25 = vld [vmem:[%s17821_s0 + $0x262] sm:$0xff] }
  0xc9   :  { %2533 = vmatmul.mubr.f32.gmra.mxu1 %v338_v26  ;;  %v9405_v26 = vld [vmem:[%s17821_s0 + $0x288] sm:$0xff] }
  0xca   :  { %2537 = vmatprep.mubr.f32.mxu1 %v9388_v27  ;;  %3143 = vmatpush2.msra.mxu1 %v1898_v39  ;;  %v11406_v27 = vld [vmem:[%s17823_s2] ss:$0 sm:$0xff] }
  0xcb   :  { %2153 = vmatmul.mubr.f32.gmra.mxu0 %v9386_v17  ;;  %3144 = vmatprep.subr.mxu1 %v11021_v37  ;;  %v9402_v17 = vld [vmem:[%s17821_s0 + $0x260] sm:$0xff] }
  0xcc   :  { %2157 = vmatprep.mubr.f32.mxu0 %v212_v29  ;;  %3145 = vmatpush2.msra.mxu1 %v1897_v43  ;;  %v356_v29 = vld [vmem:[%s17821_s0 + $0x272] sm:$0xff] }
  0xcd   :  { %2538 = vmatmul.mubr.f32.gmra.mxu1 %v339_v31  ;;  %3146 = vmatprep.subr.mxu1 %v11021_v37  ;;  %v9406_v31 = vld [vmem:[%s17821_s0 + $0x290] sm:$0xff] }
  0xce   :  { %2542 = vmatprep.mubr.f32.mxu1 %v9389_v32  ;;  %3147 = vmatpush2.msra.mxu1 %v1896_v46 }
  0xcf   :  { %2158 = vmatmul.mubr.f32.gmra.mxu0 %v84_v34  ;;  %3148 = vmatprep.subr.mxu1 %v11021_v37 }
  0xd0   :  { %2162 = vmatprep.mubr.f32.mxu0 %v213_v35  ;;  %3149 = vmatpush2.msra.mxu1 %v1895_v48  ;;  %v230_v35 = vld [vmem:[%s17821_s0 + $0x289] sm:$0xff] }
  0xd1   :  { %2543 = vmatmul.mubr.f32.gmra.mxu1 %v340_v36  ;;  %3150 = vmatprep.subr.mxu1 %v11021_v37  ;;  %v357_v36 = vld [vmem:[%s17821_s0 + $0x27a] sm:$0xff] }
  0xd2   :  { %2547 = vmatprep.mubr.f32.mxu1 %v9390_v38  ;;  %3151 = vmatpush2.msra.mxu1 %v1894_v51 }
  0xd3   :  { %2163 = vmatmul.mubr.f32.gmra.mxu0 %v85_v40  ;;  %6552 = vmatprep.subr.mxu1 %v11021_v37  ;;  %v218_v37 = vld [vmem:[%s17821_s0 + $0x1f9] sm:$0xff] }
  0xd4   :  { %2167 = vmatprep.mubr.f32.mxu0 %v214_v42  ;;  %v9407_v40 = vld [vmem:[%s17821_s0 + $0x2a0] sm:$0xff] }
  0xd5   :  { %2548 = vmatmul.mubr.f32.gmra.mxu1 %v341_v44 }
  0xd6   :  { %2552 = vmatprep.mubr.f32.mxu1 %v9391_v45 }
  0xd7   :  { %2168 = vmatmul.mubr.f32.gmra.mxu0 %v9389_v32 }
  0xd8   :  { %2172 = vmatprep.mubr.f32.mxu0 %v215_v47  ;;  %v358_v47 = vld [vmem:[%s17821_s0 + $0x28a] sm:$0xff] }
  0xd9   :  { %2553 = vmatmul.mubr.f32.gmra.mxu1 %v342_v49 }
  0xda   :  { %2557 = vmatprep.mubr.f32.mxu1 %v9392_v50 }
  0xdb   :  { %2173 = vmatmul.mubr.f32.gmra.mxu0 %v9390_v38 }
  0xdc   :  { %2177 = vmatprep.mubr.f32.mxu0 %v216_v52 }
  0xdd   :  { %2558 = vmatmul.mubr.f32.gmra.mxu1 %v343_v53 }
  0xde   :  { %2562 = vmatprep.mubr.f32.mxu1 %v9393_v54 }
  0xdf   :  { %2178 = vmatmul.mubr.f32.gmra.mxu0 %v9391_v45  ;;  %v231_v45 = vld [vmem:[%s17821_s0 + $0x291] sm:$0xff] }
  0xe0   :  { %2182 = vmatprep.mubr.f32.mxu0 %v217_v55 }
  0xe1   :  { %2563 = vmatmul.mubr.f32.gmra.mxu1 %v344_v56  ;;  %v359_v56 = vld [vmem:[%s17821_s0 + $0x292] sm:$0xff] }
  0xe2   :  { %2567 = vmatprep.mubr.f32.mxu1 %v9394_v57 }
  0xe3   :  { %2183 = vmatmul.mubr.f32.gmra.mxu0 %v9392_v50  ;;  %v9408_v50 = vld [vmem:[%s17821_s0 + $0x2a8] sm:$0xff] }
  0xe4   :  { %2187 = vmatprep.mubr.f32.mxu0 %v218_v37 }
  0xe5   :  { %2568 = vmatmul.mubr.f32.gmra.mxu1 %v345_v58  ;;  %v9409_v58 = vld [vmem:[%s17821_s0 + $0x2b8] sm:$0xff] }
  0xe6   :  { %2572 = vmatprep.mubr.f32.mxu1 %v9395_v59 }
  0xe7   :  { %2188 = vmatmul.mubr.f32.gmra.mxu0 %v9393_v54  ;;  %v232_v54 = vld [vmem:[%s17821_s0 + $0x2a1] sm:$0xff] }
  0xe8   :  { %2192 = vmatprep.mubr.f32.mxu0 %v219_v60 }
  0xe9   :  { %2573 = vmatmul.mubr.f32.gmra.mxu1 %v346_v61 }
  0xea   :  { %2577 = vmatprep.mubr.f32.mxu1 %v9396_v62 }
  0xeb   :  { %2193 = vmatmul.mubr.f32.gmra.mxu0 %v9394_v57 }
  0xec   :  { %2197 = vmatprep.mubr.f32.mxu0 %v220_v63 }
  0xed   :  { %2578 = vmatmul.mubr.f32.gmra.mxu1 %v347_v1  ;;  %v360_v1 = vld [vmem:[%s17821_s0 + $0x2a2] sm:$0xff] }
  0xee   :  { %2582 = vmatprep.mubr.f32.mxu1 %v9397_v2 }
  0xef   :  { %2198 = vmatmul.mubr.f32.gmra.mxu0 %v9395_v59 }
  0xf0   :  { %2202 = vmatprep.mubr.f32.mxu0 %v221_v3 }
  0xf1   :  { %2583 = vmatmul.mubr.f32.gmra.mxu1 %v348_v4  ;;  %v9410_v4 = vld [vmem:[%s17821_s0 + $0x2c0] sm:$0xff] }
  0xf2   :  { %2587 = vmatprep.mubr.f32.mxu1 %v9398_v5 }
  0xf3   :  { %2203 = vmatmul.mubr.f32.gmra.mxu0 %v9396_v62  ;;  %v233_v62 = vld [vmem:[%s17821_s0 + $0x2a9] sm:$0xff] }
  0xf4   :  { %2207 = vmatprep.mubr.f32.mxu0 %v222_v6 }
  0xf5   :  { %2588 = vmatmul.mubr.f32.gmra.mxu1 %v349_v7 }
  0xf6   :  { %2592 = vmatprep.mubr.f32.mxu1 %v9399_v8 }
  0xf7   :  { %2208 = vmatmul.mubr.f32.gmra.mxu0 %v9397_v2 }
  0xf8   :  { %2212 = vmatprep.mubr.f32.mxu0 %v223_v9 }
  0xf9   :  { %2593 = vmatmul.mubr.f32.gmra.mxu1 %v350_v10  ;;  %v361_v10 = vld [vmem:[%s17821_s0 + $0x2aa] sm:$0xff] }
  0xfa   :  { %2597 = vmatprep.mubr.f32.mxu1 %v9400_v11 }
  0xfb   :  { %2213 = vmatmul.mubr.f32.gmra.mxu0 %v9398_v5 }
  0xfc   :  { %2217 = vmatprep.mubr.f32.mxu0 %v224_v12 }
  0xfd   :  { %2598 = vmatmul.mubr.f32.gmra.mxu1 %v351_v13  ;;  %v9411_v13 = vld [vmem:[%s17821_s0 + $0x2d0] sm:$0xff] }
  0xfe   :  { %2602 = vmatprep.mubr.f32.mxu1 %v9401_v14 }
  0xff   :  { %2218 = vmatmul.mubr.f32.gmra.mxu0 %v9399_v8  ;;  %v234_v8 = vld [vmem:[%s17821_s0 + $0x2b9] sm:$0xff] }
 0x100   :  { %2222 = vmatprep.mubr.f32.mxu0 %v225_v15 }
 0x101   :  { %2603 = vmatmul.mubr.f32.gmra.mxu1 %v352_v16 }
 0x102   :  { %2607 = vmatprep.mubr.f32.mxu1 %v9402_v17 }
 0x103   :  { %2223 = vmatmul.mubr.f32.gmra.mxu0 %v9400_v11 }
 0x104   :  { %2227 = vmatprep.mubr.f32.mxu0 %v226_v18 }
 0x105   :  { %2608 = vmatmul.mubr.f32.gmra.mxu1 %v353_v19  ;;  %v362_v19 = vld [vmem:[%s17821_s0 + $0x2ba] sm:$0xff] }
 0x106   :  { %2612 = vmatprep.mubr.f32.mxu1 %v9403_v20 }
 0x107   :  { %2228 = vmatmul.mubr.f32.gmra.mxu0 %v9401_v14 }
 0x108   :  { %2232 = vmatprep.mubr.f32.mxu0 %v227_v21 }
 0x109   :  { %2613 = vmatmul.mubr.f32.gmra.mxu1 %v354_v22  ;;  %v9412_v22 = vld [vmem:[%s17821_s0 + $0x2d8] sm:$0xff] }
 0x10a   :  { %2617 = vmatprep.mubr.f32.mxu1 %v9404_v23 }
 0x10b   :  { %2233 = vmatmul.mubr.f32.gmra.mxu0 %v9402_v17  ;;  %v235_v17 = vld [vmem:[%s17821_s0 + $0x2c1] sm:$0xff] }
 0x10c   :  { %2237 = vmatprep.mubr.f32.mxu0 %v228_v24 }
 0x10d   :  { %2618 = vmatmul.mubr.f32.gmra.mxu1 %v355_v25 }
 0x10e   :  { %2622 = vmatprep.mubr.f32.mxu1 %v9405_v26 }
 0x10f   :  { %v1999_v30 = vpop.f32.mrf.mxu0  ;;  %2238 = vmatmul.mubr.f32.gmra.mxu0 %v9403_v20 }
 0x110   :  { %v2000_v32 = vadd.f32 %v11406_v27, %v1999_v30  ;;  %2242 = vmatprep.mubr.f32.mxu0 %v229_v28 }
 0x111   :  { %v2001_v33 = vpop.f32.mrf.mxu0  ;;  %v2384_v34 = vpop.f32.mrf.mxu1  ;;  %2623 = vmatmul.mubr.f32.gmra.mxu1 %v356_v29  ;;  %v363_v29 = vld [vmem:[%s17821_s0 + $0x2c2] sm:$0xff] }
 0x112   :  { %v11421_v0 = vadd.f32 %v2384_v34, %v2000_v32  ;;  %2627 = vmatprep.mubr.f32.mxu1 %v9406_v31  ;;  %v9413_v32 = vld [vmem:[%s17821_s0 + $0x2e8] sm:$0xff] }
 0x113   :  { %v2004_v38 = vpop.f32.mrf.mxu0  ;;  %2243 = vmatmul.mubr.f32.gmra.mxu0 %v9404_v23  ;;  %v2386_v39 = vpop.f32.mrf.mxu1 }
 0x114   :  { %v2005_v42 = vadd.f32 %v11406_v27, %v2004_v38  ;;  %2247 = vmatprep.mubr.f32.mxu0 %v230_v35  ;;  %v364_v39 = vld [vmem:[%s17821_s0 + $0x2d2] sm:$0xff] }
 0x115   :  { %v2006_v43 = vpop.f32.mrf.mxu0  ;;  %v2389_v44 = vpop.f32.mrf.mxu1  ;;  %2628 = vmatmul.mubr.f32.gmra.mxu1 %v357_v36  ;;  %v237_v36 = vld [vmem:[%s17821_s0 + $0x2d9] sm:$0xff] }
 0x116   :  { %v11433_v46 = vadd.f32 %v2389_v44, %v2005_v42  ;;  %2632 = vmatprep.mubr.f32.mxu1 %v9407_v40  ;;  %v9414_v43 = vld [vmem:[%s17821_s0 + $0x2f0] sm:$0xff] }
 0x117   :  { %v2009_v48 = vpop.f32.mrf.mxu0  ;;  %2248 = vmatmul.mubr.f32.gmra.mxu0 %v9405_v26  ;;  %v2391_v49 = vpop.f32.mrf.mxu1  ;;  %v236_v26 = vld [vmem:[%s17821_s0 + $0x2d1] sm:$0xff] }
 0x118   :  { %v2010_v51 = vadd.f32 %v11406_v27, %v2009_v48  ;;  %2252 = vmatprep.mubr.f32.mxu0 %v231_v45  ;;  %v238_v48 = vld [vmem:[%s17821_s0 + $0x2e9] sm:$0xff] }
 0x119   :  { %v2011_v52 = vpop.f32.mrf.mxu0  ;;  %v2394_v53 = vpop.f32.mrf.mxu1  ;;  %2633 = vmatmul.mubr.f32.gmra.mxu1 %v358_v47 }
 0x11a   :  { %v11445_v55 = vadd.f32 %v2394_v53, %v2010_v51  ;;  %2637 = vmatprep.mubr.f32.mxu1 %v9408_v50  ;;  %v9415_v53 = vld [vmem:[%s17821_s0 + $0x300] sm:$0xff] }
 0x11b   :  { %v2014_v57 = vpop.f32.mrf.mxu0  ;;  %2253 = vmatmul.mubr.f32.gmra.mxu0 %v9406_v31  ;;  %v2396_v37 = vpop.f32.mrf.mxu1 }
 0x11c   :  { %v2015_v59 = vadd.f32 %v11406_v27, %v2014_v57  ;;  %2257 = vmatprep.mubr.f32.mxu0 %v232_v54  ;;  %v239_v37 = vld [vmem:[%s17821_s0 + $0x2f1] sm:$0xff] }
 0x11d   :  { %v2016_v60 = vpop.f32.mrf.mxu0  ;;  %v2399_v61 = vpop.f32.mrf.mxu1  ;;  %2638 = vmatmul.mubr.f32.gmra.mxu1 %v359_v56 }
 0x11e   :  { %v11457_v63 = vadd.f32 %v2399_v61, %v2015_v59  ;;  %2642 = vmatprep.mubr.f32.mxu1 %v9409_v58  ;;  %v366_v59 = vld [vmem:[%s17821_s0 + $0x2ea] sm:$0xff] }
 0x11f   :  { %v2019_v2 = vpop.f32.mrf.mxu0  ;;  %2258 = vmatmul.mubr.f32.gmra.mxu0 %v9407_v40  ;;  %v2401_v3 = vpop.f32.mrf.mxu1 }
 0x120   :  { %v2020_v5 = vadd.f32 %v11406_v27, %v2019_v2  ;;  %2262 = vmatprep.mubr.f32.mxu0 %v233_v62  ;;  %v9416_v62 = vld [vmem:[%s17821_s0 + $0x308] sm:$0xff] }
 0x121   :  { %v2021_v6 = vpop.f32.mrf.mxu0  ;;  %v2404_v7 = vpop.f32.mrf.mxu1  ;;  %2643 = vmatmul.mubr.f32.gmra.mxu1 %v360_v1 }
 0x122   :  { %v11469_v9 = vadd.f32 %v2404_v7, %v2020_v5  ;;  %2647 = vmatprep.mubr.f32.mxu1 %v9410_v4  ;;  %v367_v6 = vld [vmem:[%s17821_s0 + $0x2f2] sm:$0xff] }
 0x123   :  { %v2024_v11 = vpop.f32.mrf.mxu0  ;;  %2263 = vmatmul.mubr.f32.gmra.mxu0 %v9408_v50  ;;  %v2406_v12 = vpop.f32.mrf.mxu1  ;;  %v365_v50 = vld [vmem:[%s17821_s0 + $0x2da] sm:$0xff] }
 0x124   :  { %v2025_v14 = vadd.f32 %v11406_v27, %v2024_v11  ;;  %2267 = vmatprep.mubr.f32.mxu0 %v234_v8 }
 0x125   :  { %v2026_v15 = vpop.f32.mrf.mxu0  ;;  %v2409_v16 = vpop.f32.mrf.mxu1  ;;  %2648 = vmatmul.mubr.f32.gmra.mxu1 %v361_v10  ;;  %v9417_v10 = vld [vmem:[%s17821_s0 + $0x318] sm:$0xff] }
 0x126   :  { %v11481_v18 = vadd.f32 %v2409_v16, %v2025_v14  ;;  %2652 = vmatprep.mubr.f32.mxu1 %v9411_v13  ;;  %v241_v14 = vld [vmem:[%s17821_s0 + $0x309] sm:$0xff] }
 0x127   :  { %v2029_v20 = vpop.f32.mrf.mxu0  ;;  %2268 = vmatmul.mubr.f32.gmra.mxu0 %v9409_v58  ;;  %v2411_v21 = vpop.f32.mrf.mxu1  ;;  %v368_v16 = vld [vmem:[%s17821_s0 + $0x302] sm:$0xff] }
 0x128   :  { %v2030_v23 = vadd.f32 %v11406_v27, %v2029_v20  ;;  %2272 = vmatprep.mubr.f32.mxu0 %v235_v17  ;;  %v9418_v20 = vld [vmem:[%s17821_s0 + $0x320] sm:$0xff] }
 0x129   :  { %v2031_v24 = vpop.f32.mrf.mxu0  ;;  %v2414_v25 = vpop.f32.mrf.mxu1  ;;  %2653 = vmatmul.mubr.f32.gmra.mxu1 %v362_v19 }
 0x12a   :  { %v11493_v28 = vadd.f32 %v2414_v25, %v2030_v23  ;;  %2657 = vmatprep.mubr.f32.mxu1 %v9412_v22  ;;  %v242_v24 = vld [vmem:[%s17821_s0 + $0x319] sm:$0xff] }
 0x12b   :  { %v2034_v30 = vpop.f32.mrf.mxu0  ;;  %2273 = vmatmul.mubr.f32.gmra.mxu0 %v9410_v4  ;;  %v2416_v31 = vpop.f32.mrf.mxu1  ;;  %v240_v4 = vld [vmem:[%s17821_s0 + $0x301] sm:$0xff] }
 0x12c   :  { %v2035_v33 = vadd.f32 %v11406_v27, %v2034_v30  ;;  %2277 = vmatprep.mubr.f32.mxu0 %v236_v26  ;;  %v369_v26 = vld [vmem:[%s17821_s0 + $0x30a] sm:$0xff] }
 0x12d   :  { %v2036_v34 = vpop.f32.mrf.mxu0  ;;  %v2419_v35 = vpop.f32.mrf.mxu1  ;;  %2658 = vmatmul.mubr.f32.gmra.mxu1 %v363_v29  ;;  %v9419_v31 = vld [vmem:[%s17821_s0 + $0x330] sm:$0xff] }
 0x12e   :  { %v11505_v38 = vadd.f32 %v2419_v35, %v2035_v33  ;;  %2662 = vmatprep.mubr.f32.mxu1 %v9413_v32  ;;  %v243_v35 = vld [vmem:[%s17821_s0 + $0x321] sm:$0xff] }
 0x12f   :  { %v2039_v40 = vpop.f32.mrf.mxu0  ;;  %2278 = vmatmul.mubr.f32.gmra.mxu0 %v9411_v13  ;;  %v2421_v42 = vpop.f32.mrf.mxu1 }
 0x130   :  { %v2040_v44 = vadd.f32 %v11406_v27, %v2039_v40  ;;  %2282 = vmatprep.mubr.f32.mxu0 %v237_v36 }
 0x131   :  { %v2041_v45 = vpop.f32.mrf.mxu0  ;;  %v2424_v47 = vpop.f32.mrf.mxu1  ;;  %2663 = vmatmul.mubr.f32.gmra.mxu1 %v364_v39  ;;  %v370_v39 = vld [vmem:[%s17821_s0 + $0x31a] sm:$0xff] }
 0x132   :  { %v11517_v49 = vadd.f32 %v2424_v47, %v2040_v44  ;;  %2667 = vmatprep.mubr.f32.mxu1 %v9414_v43 }
 0x133   :  { %v2044_v51 = vpop.f32.mrf.mxu0  ;;  %2283 = vmatmul.mubr.f32.gmra.mxu0 %v9412_v22  ;;  %v2426_v52 = vpop.f32.mrf.mxu1 }
 0x134   :  { %v2045_v54 = vadd.f32 %v11406_v27, %v2044_v51  ;;  %2287 = vmatprep.mubr.f32.mxu0 %v238_v48  ;;  %v9485_v48 = vld [vmem:[%s17821_s0 + $0x1a] sm:$0xff]  ;;  %v371_v51 = vld [vmem:[%s17821_s0 + $0x322] sm:$0xff] }
 0x135   :  { %v2046_v56 = vpop.f32.mrf.mxu0  ;;  %v2429_v57 = vpop.f32.mrf.mxu1  ;;  %2668 = vmatmul.mubr.f32.gmra.mxu1 %v365_v50 }
 0x136   :  { %v11529_v58 = vadd.f32 %v2429_v57, %v2045_v54  ;;  %2672 = vmatprep.mubr.f32.mxu1 %v9415_v53  ;;  %v9613_v54 = vld [vmem:[%s17821_s0 + $0x31] sm:$0xff]  ;;  %v9421_v57 = vld [vmem:[%s17821_s0 + $0x19] sm:$0xff] }
 0x137   :  { %v2049_v60 = vpop.f32.mrf.mxu0  ;;  %2288 = vmatmul.mubr.f32.gmra.mxu0 %v9413_v32  ;;  %v2431_v61 = vpop.f32.mrf.mxu1 }
 0x138   :  { %v2050_v1 = vadd.f32 %v11406_v27, %v2049_v60  ;;  %2292 = vmatprep.mubr.f32.mxu0 %v239_v37  ;;  %v9486_v60 = vld [vmem:[%s17821_s0 + $0x22] sm:$0xff] }
 0x139   :  { %v2051_v2 = vpop.f32.mrf.mxu0  ;;  %v2434_v3 = vpop.f32.mrf.mxu1  ;;  %2673 = vmatmul.mubr.f32.gmra.mxu1 %v366_v59 }
 0x13a   :  { %v11541_v5 = vadd.f32 %v2434_v3, %v2050_v1  ;;  %2677 = vmatprep.mubr.f32.mxu1 %v9416_v62  ;;  %v1924_v1 = vld [vmem:[%s17822_s1 + $0x470] sm:$0xff] }
 0x13b   :  { %v2054_v7 = vpop.f32.mrf.mxu0  ;;  %2293 = vmatmul.mubr.f32.gmra.mxu0 %v9414_v43  ;;  %v2436_v8 = vpop.f32.mrf.mxu1  ;;  %v9420_v43 = vld [vmem:[%s17821_s0 + $0x338] sm:$0xff] }
 0x13c   :  { %v2055_v11 = vadd.f32 %v11406_v27, %v2054_v7  ;;  %2297 = vmatprep.mubr.f32.mxu0 %v240_v4  ;;  %v9614_v4 = vld [vmem:[%s17821_s0 + $0x39] sm:$0xff]  ;;  %v9422_v7 = vld [vmem:[%s17821_s0 + $0x21] sm:$0xff] }
 0x13d   :  { %v2056_v12 = vpop.f32.mrf.mxu0  ;;  %v2439_v13 = vpop.f32.mrf.mxu1  ;;  %2678 = vmatmul.mubr.f32.gmra.mxu1 %v367_v6  ;;  %v1923_v8 = vld [vmem:[%s17822_s1 + $0x468] sm:$0xff] }
 0x13e   :  { %v11553_v15 = vadd.f32 %v2439_v13, %v2055_v11  ;;  %2682 = vmatprep.mubr.f32.mxu1 %v9417_v10  ;;  %v9487_v12 = vld [vmem:[%s17821_s0 + $0x32] sm:$0xff] }
 0x13f   :  { %v2059_v17 = vpop.f32.mrf.mxu0  ;;  %2298 = vmatmul.mubr.f32.gmra.mxu0 %v9415_v53  ;;  %v2441_v19 = vpop.f32.mrf.mxu1 }
 0x140   :  { %v2060_v21 = vadd.f32 %v11406_v27, %v2059_v17  ;;  %2302 = vmatprep.mubr.f32.mxu0 %v241_v14  ;;  %v1922_v14 = vld [vmem:[%s17822_s1 + $0x460] sm:$0xff]  ;;  %v9615_v19 = vld [vmem:[%s17821_s0 + $0x49] sm:$0xff] }
 0x141   :  { %v2061_v22 = vpop.f32.mrf.mxu0  ;;  %v2444_v23 = vpop.f32.mrf.mxu1  ;;  %2683 = vmatmul.mubr.f32.gmra.mxu1 %v368_v16 }
 0x142   :  { %v11565_v25 = vadd.f32 %v2444_v23, %v2060_v21  ;;  %2687 = vmatprep.mubr.f32.mxu1 %v9418_v20  ;;  %v1921_v21 = vld [vmem:[%s17822_s1 + $0x458] sm:$0xff] }
 0x143   :  { %v2064_v29 = vpop.f32.mrf.mxu0  ;;  %2303 = vmatmul.mubr.f32.gmra.mxu0 %v9416_v62  ;;  %v2446_v30 = vpop.f32.mrf.mxu1  ;;  %v9549_v62 = vld [vmem:[%s17821_s0 + $0x30] sm:$0xff] }
 0x144   :  { %v2065_v32 = vadd.f32 %v11406_v27, %v2064_v29  ;;  %2307 = vmatprep.mubr.f32.mxu0 %v242_v24  ;;  %v9488_v24 = vld [vmem:[%s17821_s0 + $0x3a] sm:$0xff]  ;;  %v9551_v29 = vld [vmem:[%s17821_s0 + $0x48] sm:$0xff]  ;;  %v1920_v30 = vld [vmem:[%s17822_s1 + $0x450] sm:$0xff] }
 0x145   :  { %v2066_v33 = vpop.f32.mrf.mxu0  ;;  %v2449_v34 = vpop.f32.mrf.mxu1  ;;  %2688 = vmatmul.mubr.f32.gmra.mxu1 %v369_v26 }
 0x146   :  { %v11577_v36 = vadd.f32 %v2449_v34, %v2065_v32  ;;  %2692 = vmatprep.mubr.f32.mxu1 %v9419_v31  ;;  %v9616_v33 = vld [vmem:[%s17821_s0 + $0x51] sm:$0xff] }
 0x147   :  { %v2069_v40 = vpop.f32.mrf.mxu0  ;;  %2308 = vmatmul.mubr.f32.gmra.mxu0 %v9417_v10  ;;  %v2451_v42 = vpop.f32.mrf.mxu1 }
 0x148   :  { %v2070_v44 = vadd.f32 %v11406_v27, %v2069_v40  ;;  %2312 = vmatprep.mubr.f32.mxu0 %v243_v35  ;;  %v1919_v35 = vld [vmem:[%s17822_s1 + $0x448] sm:$0xff] }
 0x149   :  { %v2071_v45 = vpop.f32.mrf.mxu0  ;;  %v2454_v47 = vpop.f32.mrf.mxu1  ;;  %2693 = vmatmul.mubr.f32.gmra.mxu1 %v370_v39  ;;  %v9489_v42 = vld [vmem:[%s17821_s0 + $0x4a] sm:$0xff] }
 0x14a   :  { %v11589_v50 = vadd.f32 %v2454_v47, %v2070_v44  ;;  %2697 = vmatprep.mubr.f32.mxu1 %v9420_v43  ;;  %v9552_v44 = vld [vmem:[%s17821_s0 + $0x50] sm:$0xff]  ;;  %v1918_v45 = vld [vmem:[%s17822_s1 + $0x440] sm:$0xff] }
 0x14b   :  { %v2074_v52 = vpop.f32.mrf.mxu0  ;;  %2313 = vmatmul.mubr.f32.gmra.mxu0 %v9418_v20  ;;  %v2456_v53 = vpop.f32.mrf.mxu1 }
 0x14c   :  { %v2075_v56 = vadd.f32 %v11406_v27, %v2074_v52  ;;  %2767 = vmatprep.mubr.f32.mxu0 %v9485_v48  ;;  %v1917_v53 = vld [vmem:[%s17822_s1 + $0x438] sm:$0xff] }
 0x14d   :  { %v2076_v37 = vpop.f32.mrf.mxu0  ;;  %v2459_v59 = vpop.f32.mrf.mxu1  ;;  %2698 = vmatmul.mubr.f32.gmra.mxu1 %v371_v51  ;;  %v9617_v51 = vld [vmem:[%s17821_s0 + $0x61] sm:$0xff] }
 0x14e   :  { %v11604_v61 = vadd.f32 %v2459_v59, %v2075_v56  ;;  %3152 = vmatprep.mubr.f32.mxu1 %v9613_v54  ;;  %v9553_v59 = vld [vmem:[%s17821_s0 + $0x60] sm:$0xff] }
 0x14f   :  { %v2079_v2 = vpop.f32.mrf.mxu0  ;;  %v2461_v3 = vpop.f32.mrf.mxu1  ;;  %2768 = vmatmul.mubr.f32.vlgmr.msra.gmra.mxu0 %v9421_v57  ;;  %v9490_v57 = vld [vmem:[%s17821_s0 + $0x52] sm:$0xff] }
 0x150   :  { %v2080_v6 = vadd.f32 %v11406_v27, %v2079_v2  ;;  %9972 = vmatpush3.msra.mxu0 %v11248_v41  ;;  %2772 = vmatprep.mubr.f32.mxu0 %v9486_v60  ;;  %v9550_v41 = vld [vmem:[%s17821_s0 + $0x38] sm:$0xff]  ;;  %v1916_v3 = vld [vmem:[%s17822_s1 + $0x430] sm:$0xff] }
 0x151   :  { %v2081_v10 = vpop.f32.mrf.mxu0  ;;  %v2464_v11 = vpop.f32.mrf.mxu1  ;;  %3153 = vmatmul.mubr.f32.vlgmr.msra.gmra.mxu1 %v9549_v62  ;;  %9973 = vmatprep.subr.mxu0 %v1924_v1 }
 0x152   :  { %v11626_v13 = vadd.f32 %v2464_v11, %v2080_v6  ;;  %3157 = vmatprep.mubr.f32.mxu1 %v9614_v4  ;;  %9974 = vmatpush3.msra.mxu0 %v1924_v1  ;;  %v9618_v1 = vld [vmem:[%s17821_s0 + $0x69] sm:$0xff] }
 0x153   :  { %v2084_v16 = vpop.f32.mrf.mxu0  ;;  %v2466_v17 = vpop.f32.mrf.mxu1  ;;  %2773 = vmatmul.mubr.f32.gmra.mxu0 %v9422_v7  ;;  %9975 = vmatprep.subr.mxu0 %v1923_v8  ;;  %v9491_v7 = vld [vmem:[%s17821_s0 + $0x62] sm:$0xff] }
 0x154   :  { %v2085_v20 = vadd.f32 %v11406_v27, %v2084_v16  ;;  %2777 = vmatprep.mubr.f32.mxu0 %v9487_v12  ;;  %9976 = vmatpush3.msra.mxu0 %v1923_v8  ;;  %v9554_v10 = vld [vmem:[%s17821_s0 + $0x68] sm:$0xff] }
 0x155   :  { %v2086_v22 = vpop.f32.mrf.mxu0  ;;  %v2469_v23 = vpop.f32.mrf.mxu1  ;;  %3158 = vmatmul.mubr.f32.gmra.mxu1 %v9550_v41  ;;  %9977 = vmatprep.subr.mxu0 %v1922_v14  ;;  %v9619_v41 = vld [vmem:[%s17821_s0 + $0x79] sm:$0xff] }
 0x156   :  { %v11644_v26 = vadd.f32 %v2469_v23, %v2085_v20  ;;  %3162 = vmatprep.mubr.f32.mxu1 %v9615_v19  ;;  %9978 = vmatpush3.msra.mxu0 %v1922_v14 }
 0x157   :  { %v2089_v31 = vpop.f32.mrf.mxu0  ;;  %v2471_v32 = vpop.f32.mrf.mxu1  ;;  %2778 = vmatmul.mubr.f32.gmra.mxu0 %v9613_v54  ;;  %9979 = vmatprep.subr.mxu0 %v1921_v21 }
 0x158   :  { %v2090_v34 = vadd.f32 %v11406_v27, %v2089_v31  ;;  %2782 = vmatprep.mubr.f32.mxu0 %v9488_v24  ;;  %9980 = vmatpush3.msra.mxu0 %v1921_v21  ;;  %v9555_v21 = vld [vmem:[%s17821_s0 + $0x78] sm:$0xff]  ;;  %v9620_v24 = vld [vmem:[%s17821_s0 + $0x81] sm:$0xff] }
 0x159   :  { %v2091_v39 = vpop.f32.mrf.mxu0  ;;  %v2474_v40 = vpop.f32.mrf.mxu1  ;;  %3163 = vmatmul.mubr.f32.gmra.mxu1 %v9551_v29  ;;  %9981 = vmatprep.subr.mxu0 %v1920_v30  ;;  %v9493_v32 = vld [vmem:[%s17821_s0 + $0x7a] sm:$0xff] }
 0x15a   :  { %v11662_v43 = vadd.f32 %v2474_v40, %v2090_v34  ;;  %3167 = vmatprep.mubr.f32.mxu1 %v9616_v33  ;;  %9982 = vmatpush3.msra.mxu0 %v1920_v30  ;;  %v9556_v34 = vld [vmem:[%s17821_s0 + $0x80] sm:$0xff]  ;;  %v9621_v40 = vld [vmem:[%s17821_s0 + $0x91] sm:$0xff] }
 0x15b   :  { %v2094_v47 = vpop.f32.mrf.mxu0  ;;  %v2476_v48 = vpop.f32.mrf.mxu1  ;;  %2783 = vmatmul.mubr.f32.gmra.mxu0 %v9614_v4  ;;  %9983 = vmatprep.subr.mxu0 %v1919_v35 }
 0x15c   :  { %v2095_v52 = vadd.f32 %v11406_v27, %v2094_v47  ;;  %2787 = vmatprep.mubr.f32.mxu0 %v9489_v42  ;;  %9984 = vmatpush3.msra.mxu0 %v1919_v35  ;;  %v9494_v47 = vld [vmem:[%s17821_s0 + $0x82] sm:$0xff] }
 0x15d   :  { %v2096_v54 = vpop.f32.mrf.mxu0  ;;  %v2479_v56 = vpop.f32.mrf.mxu1  ;;  %3168 = vmatmul.mubr.f32.gmra.mxu1 %v9552_v44  ;;  %9985 = vmatprep.subr.mxu0 %v1918_v45 }
 0x15e   :  { %v11680_v37 = vadd.f32 %v2479_v56, %v2095_v52  ;;  %3172 = vmatprep.mubr.f32.mxu1 %v9617_v51  ;;  %9986 = vmatpush3.msra.mxu0 %v1918_v45  ;;  %v9622_v54 = vld [vmem:[%s17821_s0 + $0x99] sm:$0xff] }
 0x15f   :  { %v2099_v60 = vpop.f32.mrf.mxu0  ;;  %v2481_v62 = vpop.f32.mrf.mxu1  ;;  %2788 = vmatmul.mubr.f32.gmra.mxu0 %v9615_v19  ;;  %9987 = vmatprep.subr.mxu0 %v1917_v53  ;;  %v9492_v19 = vld [vmem:[%s17821_s0 + $0x6a] sm:$0xff] }
 0x160   :  { %v2100_v2 = vadd.f32 %v11406_v27, %v2099_v60  ;;  %2792 = vmatprep.mubr.f32.mxu0 %v9490_v57  ;;  %9988 = vmatpush3.msra.mxu0 %v1917_v53  ;;  %v1915_v57 = vld [vmem:[%s17822_s1 + $0x428] sm:$0xff]  ;;  %v9495_v62 = vld [vmem:[%s17821_s0 + $0x92] sm:$0xff] }
 0x161   :  { %v2101_v4 = vpop.f32.mrf.mxu0  ;;  %v2484_v6 = vpop.f32.mrf.mxu1  ;;  %3173 = vmatmul.mubr.f32.gmra.mxu1 %v9553_v59  ;;  %9989 = vmatprep.subr.mxu0 %v1916_v3 }
 0x162   :  { %v11695_v8 = vadd.f32 %v2484_v6, %v2100_v2  ;;  %3177 = vmatprep.mubr.f32.mxu1 %v9618_v1  ;;  %9990 = vmatpush3.msra.mxu0 %v1916_v3  ;;  %v9558_v2 = vld [vmem:[%s17821_s0 + $0x98] sm:$0xff]  ;;  %v9623_v6 = vld [vmem:[%s17821_s0 + $0xa9] sm:$0xff] }
 0x163   :  { %v2104_v11 = vpop.f32.mrf.mxu0  ;;  %v2486_v12 = vpop.f32.mrf.mxu1  ;;  %2793 = vmatmul.mubr.f32.gmra.mxu0 %v9616_v33  ;;  %9991 = vmatprep.subr.mxu0 %v1915_v57 }
 0x164   :  { %v2105_v14 = vadd.f32 %v11406_v27, %v2104_v11  ;;  %2797 = vmatprep.mubr.f32.mxu0 %v9491_v7  ;;  %9992 = vmatpush3.msra.mxu0 %v1915_v57  ;;  %v9496_v12 = vld [vmem:[%s17821_s0 + $0x9a] sm:$0xff] }
 0x165   :  { %v2106_v16 = vpop.f32.mrf.mxu0  ;;  %v2489_v17 = vpop.f32.mrf.mxu1  ;;  %3178 = vmatmul.mubr.f32.gmra.mxu1 %v9554_v10 }
 0x166   :  { %v11707_v20 = vadd.f32 %v2489_v17, %v2105_v14  ;;  %3182 = vmatprep.mubr.f32.mxu1 %v9619_v41  ;;  %v9559_v14 = vld [vmem:[%s17821_s0 + $0xa8] sm:$0xff] }
 0x167   :  { %v2109_v22 = vpop.f32.mrf.mxu0  ;;  %v2491_v23 = vpop.f32.mrf.mxu1  ;;  %2798 = vmatmul.mubr.f32.gmra.mxu0 %v9617_v51  ;;  %v9557_v51 = vld [vmem:[%s17821_s0 + $0x90] sm:$0xff] }
 0x168   :  { %v2110_v29 = vadd.f32 %v11406_v27, %v2109_v22  ;;  %2802 = vmatprep.mubr.f32.mxu0 %v9492_v19  ;;  %v9624_v19 = vld [vmem:[%s17821_s0 + $0xb1] sm:$0xff] }
 0x169   :  { %v2111_v30 = vpop.f32.mrf.mxu0  ;;  %v2494_v31 = vpop.f32.mrf.mxu1  ;;  %3183 = vmatmul.mubr.f32.gmra.mxu1 %v9555_v21 }
 0x16a   :  { %v11719_v33 = vadd.f32 %v2494_v31, %v2110_v29  ;;  %3187 = vmatprep.mubr.f32.mxu1 %v9620_v24  ;;  %v9560_v30 = vld [vmem:[%s17821_s0 + $0xb0] sm:$0xff] }
 0x16b   :  { %v2114_v35 = vpop.f32.mrf.mxu0  ;;  %v2496_v39 = vpop.f32.mrf.mxu1  ;;  %2803 = vmatmul.mubr.f32.gmra.mxu0 %v9618_v1 }
 0x16c   :  { %v2115_v42 = vadd.f32 %v11406_v27, %v2114_v35  ;;  %2807 = vmatprep.mubr.f32.mxu0 %v9493_v32 }
 0x16d   :  { %v2116_v44 = vpop.f32.mrf.mxu0  ;;  %v2499_v45 = vpop.f32.mrf.mxu1  ;;  %3188 = vmatmul.mubr.f32.gmra.mxu1 %v9556_v34  ;;  %v9625_v34 = vld [vmem:[%s17821_s0 + $0xc1] sm:$0xff] }
 0x16e   :  { %v11731_v48 = vadd.f32 %v2499_v45, %v2115_v42  ;;  %3192 = vmatprep.mubr.f32.mxu1 %v9621_v40  ;;  %v9498_v42 = vld [vmem:[%s17821_s0 + $0xb2] sm:$0xff]  ;;  %v9561_v45 = vld [vmem:[%s17821_s0 + $0xc0] sm:$0xff] }
 0x16f   :  { %v2119_v52 = vpop.f32.mrf.mxu0  ;;  %v2501_v53 = vpop.f32.mrf.mxu1  ;;  %2808 = vmatmul.mubr.f32.gmra.mxu0 %v9619_v41 }
 0x170   :  { %v2120_v56 = vadd.f32 %v11406_v27, %v2119_v52  ;;  %2812 = vmatprep.mubr.f32.mxu0 %v9494_v47  ;;  %v9626_v52 = vld [vmem:[%s17821_s0 + $0xc9] sm:$0xff] }
 0x171   :  { %v2121_v59 = vpop.f32.mrf.mxu0  ;;  %v2504_v60 = vpop.f32.mrf.mxu1  ;;  %3193 = vmatmul.mubr.f32.gmra.mxu1 %v9557_v51 }
 0x172   :  { %v11746_v1 = vadd.f32 %v2504_v60, %v2120_v56  ;;  %3197 = vmatprep.mubr.f32.mxu1 %v9622_v54  ;;  %v9499_v59 = vld [vmem:[%s17821_s0 + $0xc2] sm:$0xff] }
 0x173   :  { %v2124_v3 = vpop.f32.mrf.mxu0  ;;  %v2506_v4 = vpop.f32.mrf.mxu1  ;;  %2813 = vmatmul.mubr.f32.gmra.mxu0 %v9620_v24  ;;  %v9497_v24 = vld [vmem:[%s17821_s0 + $0xaa] sm:$0xff] }
 0x174   :  { %v2125_v7 = vadd.f32 %v11406_v27, %v2124_v3  ;;  %2817 = vmatprep.mubr.f32.mxu0 %v9495_v62  ;;  %v9562_v62 = vld [vmem:[%s17821_s0 + $0xc8] sm:$0xff]  ;;  %v9627_v4 = vld [vmem:[%s17821_s0 + $0xd9] sm:$0xff] }
 0x175   :  { %v2126_v10 = vpop.f32.mrf.mxu0  ;;  %v2509_v11 = vpop.f32.mrf.mxu1  ;;  %3198 = vmatmul.mubr.f32.gmra.mxu1 %v9558_v2 }
 0x176   :  { %v11758_v41 = vadd.f32 %v2509_v11, %v2125_v7  ;;  %3202 = vmatprep.mubr.f32.mxu1 %v9623_v6  ;;  %v9500_v11 = vld [vmem:[%s17821_s0 + $0xca] sm:$0xff] }
 0x177   :  { %v2129_v16 = vpop.f32.mrf.mxu0  ;;  %v2511_v17 = vpop.f32.mrf.mxu1  ;;  %2818 = vmatmul.mubr.f32.gmra.mxu0 %v9621_v40 }
 0x178   :  { %v2130_v21 = vadd.f32 %v11406_v27, %v2129_v16  ;;  %2822 = vmatprep.mubr.f32.mxu0 %v9496_v12 }
 0x179   :  { %v2131_v22 = vpop.f32.mrf.mxu0  ;;  %v2514_v23 = vpop.f32.mrf.mxu1  ;;  %3203 = vmatmul.mubr.f32.gmra.mxu1 %v9559_v14  ;;  %v9563_v14 = vld [vmem:[%s17821_s0 + $0xd8] sm:$0xff] }
 0x17a   :  { %v11770_v29 = vadd.f32 %v2514_v23, %v2130_v21  ;;  %3207 = vmatprep.mubr.f32.mxu1 %v9624_v19 }
 0x17b   :  { %v2134_v31 = vpop.f32.mrf.mxu0  ;;  %v2516_v32 = vpop.f32.mrf.mxu1  ;;  %2823 = vmatmul.mubr.f32.gmra.mxu0 %v9622_v54  ;;  %v1914_v54 = vld [vmem:[%s17822_s1 + $0x420] sm:$0xff] }
 0x17c   :  { %v2135_v35 = vadd.f32 %v11406_v27, %v2134_v31  ;;  %2827 = vmatprep.mubr.f32.mxu0 %v9497_v24  ;;  %9993 = vmatprep.subr.mxu0 %v1914_v54  ;;  %v9501_v24 = vld [vmem:[%s17821_s0 + $0xda] sm:$0xff] }
 0x17d   :  { %v2136_v39 = vpop.f32.mrf.mxu0  ;;  %v2519_v40 = vpop.f32.mrf.mxu1  ;;  %3208 = vmatmul.mubr.f32.gmra.mxu1 %v9560_v30  ;;  %9994 = vmatpush3.msra.mxu0 %v1914_v54  ;;  %v9564_v31 = vld [vmem:[%s17821_s0 + $0xe0] sm:$0xff] }
 0x17e   :  { %v11782_v44 = vadd.f32 %v2519_v40, %v2135_v35  ;;  %3212 = vmatprep.mubr.f32.mxu1 %v9625_v34  ;;  %v9629_v35 = vld [vmem:[%s17821_s0 + $0xf1] sm:$0xff]  ;;  %v9630_v54 = vld [vmem:[%s17821_s0 + $0xf9] sm:$0xff] }
 0x17f   :  { %v2139_v47 = vpop.f32.mrf.mxu0  ;;  %v2521_v51 = vpop.f32.mrf.mxu1  ;;  %2828 = vmatmul.mubr.f32.gmra.mxu0 %v9623_v6 }
 0x180   :  { %v2140_v53 = vadd.f32 %v11406_v27, %v2139_v47  ;;  %2832 = vmatprep.mubr.f32.mxu0 %v9498_v42  ;;  %v9565_v51 = vld [vmem:[%s17821_s0 + $0xf0] sm:$0xff] }
 0x181   :  { %v2141_v56 = vpop.f32.mrf.mxu0  ;;  %v2524_v57 = vpop.f32.mrf.mxu1  ;;  %3213 = vmatmul.mubr.f32.gmra.mxu1 %v9561_v45  ;;  %v9502_v45 = vld [vmem:[%s17821_s0 + $0xe2] sm:$0xff] }
 0x182   :  { %v11797_v60 = vadd.f32 %v2524_v57, %v2140_v53  ;;  %3217 = vmatprep.mubr.f32.mxu1 %v9626_v52  ;;  %v1913_v57 = vld [vmem:[%s17822_s1 + $0x418] sm:$0xff] }
 0x183   :  { %v2144_v2 = vpop.f32.mrf.mxu0  ;;  %v2526_v3 = vpop.f32.mrf.mxu1  ;;  %2833 = vmatmul.mubr.f32.gmra.mxu0 %v9624_v19  ;;  %v9628_v19 = vld [vmem:[%s17821_s0 + $0xe1] sm:$0xff]  ;;  %9995 = vmatprep.subr.mxu0 %v1913_v57 }
 0x184   :  { %v2145_v6 = vadd.f32 %v11406_v27, %v2144_v2  ;;  %2837 = vmatprep.mubr.f32.mxu0 %v9499_v59  ;;  %v9503_v2 = vld [vmem:[%s17821_s0 + $0xf2] sm:$0xff]  ;;  %9996 = vmatpush3.msra.mxu0 %v1913_v57 }
 0x185   :  { %v2146_v7 = vpop.f32.mrf.mxu0  ;;  %v2529_v10 = vpop.f32.mrf.mxu1  ;;  %3218 = vmatmul.mubr.f32.gmra.mxu1 %v9562_v62  ;;  %v9506_v57 = vld [vmem:[%s17821_s0 + $0x112] sm:$0xff] }
 0x186   :  { %v11809_v12 = vadd.f32 %v2529_v10, %v2145_v6  ;;  %3222 = vmatprep.mubr.f32.mxu1 %v9627_v4  ;;  %v9631_v10 = vld [vmem:[%s17821_s0 + $0x109] sm:$0xff] }
 0x187   :  { %v2149_v16 = vpop.f32.mrf.mxu0  ;;  %v2531_v17 = vpop.f32.mrf.mxu1  ;;  %2838 = vmatmul.mubr.f32.gmra.mxu0 %v9625_v34 }
 0x188   :  { %v2150_v21 = vadd.f32 %v11406_v27, %v2149_v16  ;;  %2842 = vmatprep.mubr.f32.mxu0 %v9500_v11  ;;  %v9504_v17 = vld [vmem:[%s17821_s0 + $0xfa] sm:$0xff] }
 0x189   :  { %v2151_v22 = vpop.f32.mrf.mxu0  ;;  %v2534_v23 = vpop.f32.mrf.mxu1  ;;  %3223 = vmatmul.mubr.f32.gmra.mxu1 %v9563_v14 }
 0x18a   :  { %v11821_v30 = vadd.f32 %v2534_v23, %v2150_v21  ;;  %3227 = vmatprep.mubr.f32.mxu1 %v9628_v19 }
 0x18b   :  { %v2154_v32 = vpop.f32.mrf.mxu0  ;;  %v2536_v34 = vpop.f32.mrf.mxu1  ;;  %2843 = vmatmul.mubr.f32.gmra.mxu0 %v9626_v52 }
 0x18c   :  { %v2155_v39 = vadd.f32 %v11406_v27, %v2154_v32  ;;  %2847 = vmatprep.mubr.f32.mxu0 %v9501_v24  ;;  %v9632_v24 = vld [vmem:[%s17821_s0 + $0x111] sm:$0xff] }
 0x18d   :  { %v2156_v40 = vpop.f32.mrf.mxu0  ;;  %v2539_v42 = vpop.f32.mrf.mxu1  ;;  %3228 = vmatmul.mubr.f32.gmra.mxu1 %v9564_v31 }
 0x18e   :  { %v11833_v47 = vadd.f32 %v2539_v42, %v2155_v39  ;;  %3232 = vmatprep.mubr.f32.mxu1 %v9629_v35  ;;  %v9505_v39 = vld [vmem:[%s17821_s0 + $0x10a] sm:$0xff] }
 0x18f   :  { %v2159_v52 = vpop.f32.mrf.mxu0  ;;  %v2541_v53 = vpop.f32.mrf.mxu1  ;;  %2848 = vmatmul.mubr.f32.gmra.mxu0 %v9627_v4  ;;  %v9566_v4 = vld [vmem:[%s17821_s0 + $0xf8] sm:$0xff] }
 0x190   :  { %v2160_v56 = vadd.f32 %v11406_v27, %v2159_v52  ;;  %2852 = vmatprep.mubr.f32.mxu0 %v9502_v45 }
 0x191   :  { %v2161_v59 = vpop.f32.mrf.mxu0  ;;  %v2544_v62 = vpop.f32.mrf.mxu1  ;;  %3233 = vmatmul.mubr.f32.gmra.mxu1 %v9565_v51  ;;  %v9633_v51 = vld [vmem:[%s17821_s0 + $0x121] sm:$0xff] }
 0x192   :  { %v11848_v3 = vadd.f32 %v2544_v62, %v2160_v56  ;;  %3237 = vmatprep.mubr.f32.mxu1 %v9630_v54 }
 0x193   :  { %v2164_v6 = vpop.f32.mrf.mxu0  ;;  %v2546_v7 = vpop.f32.mrf.mxu1  ;;  %2853 = vmatmul.mubr.f32.gmra.mxu0 %v9628_v19  ;;  %v9567_v19 = vld [vmem:[%s17821_s0 + $0x108] sm:$0xff] }
 0x194   :  { %v2165_v11 = vadd.f32 %v11406_v27, %v2164_v6  ;;  %2857 = vmatprep.mubr.f32.mxu0 %v9503_v2  ;;  %v1912_v7 = vld [vmem:[%s17822_s1 + $0x410] sm:$0xff] }
 0x195   :  { %v2166_v14 = vpop.f32.mrf.mxu0  ;;  %v2549_v16 = vpop.f32.mrf.mxu1  ;;  %3238 = vmatmul.mubr.f32.gmra.mxu1 %v9566_v4  ;;  %v11895_v4 = vld [vmem:[%s17823_s2] ss:$0 sm:$0xff]  ;;  %9997 = vmatprep.subr.mxu0 %v1912_v7  ;;  %s9345_s2 = sshll.u32 %s10294_s18, 4  ;;  %s9346_s2 = int_to_ptr.vmem [resolvable:$true] %s9345_s2 }
 0x196   :  { %v11860_v21 = vadd.f32 %v2549_v16, %v2165_v11  ;;  %3242 = vmatprep.mubr.f32.mxu1 %v9631_v10  ;;  %9998 = vmatpush3.msra.mxu0 %v1912_v7  ;;  %v9637_v7 = vld [vmem:[%s17821_s0 + $0x151] sm:$0xff]  ;;  %p10271_p6 = scmp.lt.s32.totalorder %s9346_s2, %s9346_s2 }
 0x197   :  { %v2169_v22 = vpop.f32.mrf.mxu0  ;;  %v2551_v23 = vpop.f32.mrf.mxu1  ;;  %2858 = vmatmul.mubr.f32.gmra.mxu0 %v9629_v35  ;;  %v9568_v35 = vld [vmem:[%s17821_s0 + $0x110] sm:$0xff] }
 0x198   :  { %v2170_v31 = vadd.f32 %v11406_v27, %v2169_v22  ;;  %2862 = vmatprep.mubr.f32.mxu0 %v9504_v17  ;;  %v9570_v17 = vld [vmem:[%s17821_s0 + $0x128] sm:$0xff]  ;;  %v9635_v23 = vld [vmem:[%s17821_s0 + $0x139] sm:$0xff] }
 0x199   :  { %v2171_v32 = vpop.f32.mrf.mxu0  ;;  %v2554_v34 = vpop.f32.mrf.mxu1  ;;  %3243 = vmatmul.mubr.f32.gmra.mxu1 %v9567_v19 }
 0x19a   :  { %v11872_v40 = vadd.f32 %v2554_v34, %v2170_v31  ;;  %3247 = vmatprep.mubr.f32.mxu1 %v9632_v24 }
 0x19b   :  { %v2174_v42 = vpop.f32.mrf.mxu0  ;;  %v2556_v45 = vpop.f32.mrf.mxu1  ;;  %2863 = vmatmul.mubr.f32.gmra.mxu0 %v9630_v54  ;;  %v9569_v54 = vld [vmem:[%s17821_s0 + $0x120] sm:$0xff] }
 0x19c   :  { %v2175_v52 = vadd.f32 %v11406_v27, %v2174_v42  ;;  %2867 = vmatprep.mubr.f32.mxu0 %v9505_v39  ;;  %v9634_v27 = vld [vmem:[%s17821_s0 + $0x129] sm:$0xff] }
 0x19d   :  { %v2176_v53 = vpop.f32.mrf.mxu0  ;;  %v2559_v56 = vpop.f32.mrf.mxu1  ;;  %3248 = vmatmul.mubr.f32.gmra.mxu1 %v9568_v35  ;;  %v9508_v39 = vld [vmem:[%s17821_s0 + $0x12a] sm:$0xff] }
 0x19e   :  { %v11884_v59 = vadd.f32 %v2559_v56, %v2175_v52  ;;  %3252 = vmatprep.mubr.f32.mxu1 %v9633_v51  ;;  %v9636_v52 = vld [vmem:[%s17821_s0 + $0x141] sm:$0xff] }
 0x19f   :  { %v2179_v62 = vpop.f32.mrf.mxu0  ;;  %v2561_v2 = vpop.f32.mrf.mxu1  ;;  %2868 = vmatmul.mubr.f32.gmra.mxu0 %v9631_v10  ;;  %v9507_v10 = vld [vmem:[%s17821_s0 + $0x122] sm:$0xff] }
 0x1a0   :  { %v2180_v6 = vadd.f32 %v11895_v4, %v2179_v62  ;;  %2872 = vmatprep.mubr.f32.mxu0 %v9506_v57 }
 0x1a1   :  { %v2181_v11 = vpop.f32.mrf.mxu0  ;;  %v2564_v14 = vpop.f32.mrf.mxu1  ;;  %3253 = vmatmul.mubr.f32.gmra.mxu1 %v9569_v54  ;;  %v9509_v54 = vld [vmem:[%s17821_s0 + $0x13a] sm:$0xff] }
 0x1a2   :  { %v11904_v16 = vadd.f32 %v2564_v14, %v2180_v6  ;;  %3257 = vmatprep.mubr.f32.mxu1 %v9634_v27 }
 0x1a3   :  { %v2184_v19 = vpop.f32.mrf.mxu0  ;;  %v2566_v22 = vpop.f32.mrf.mxu1  ;;  %2873 = vmatmul.mubr.f32.gmra.mxu0 %v9632_v24  ;;  %v9571_v24 = vld [vmem:[%s17821_s0 + $0x138] sm:$0xff] }
 0x1a4   :  { %v2185_v31 = vadd.f32 %v11895_v4, %v2184_v19  ;;  %2877 = vmatprep.mubr.f32.mxu0 %v9507_v10 }
 0x1a5   :  { %v2186_v32 = vpop.f32.mrf.mxu0  ;;  %v2569_v34 = vpop.f32.mrf.mxu1  ;;  %3258 = vmatmul.mubr.f32.gmra.mxu1 %v9570_v17  ;;  %v9510_v17 = vld [vmem:[%s17821_s0 + $0x142] sm:$0xff] }
 0x1a6   :  { %v11916_v35 = vadd.f32 %v2569_v34, %v2185_v31  ;;  %3262 = vmatprep.mubr.f32.mxu1 %v9635_v23  ;;  %v9638_v32 = vld [vmem:[%s17821_s0 + $0x159] sm:$0xff] }
 0x1a7   :  { %v2189_v42 = vpop.f32.mrf.mxu0  ;;  %v2571_v45 = vpop.f32.mrf.mxu1  ;;  %2878 = vmatmul.mubr.f32.gmra.mxu0 %v9633_v51  ;;  %v9572_v51 = vld [vmem:[%s17821_s0 + $0x140] sm:$0xff] }
 0x1a8   :  { %v2190_v53 = vadd.f32 %v11895_v4, %v2189_v42  ;;  %2882 = vmatprep.mubr.f32.mxu0 %v9508_v39  ;;  %v1911_v39 = vld [vmem:[%s17822_s1 + $0x408] sm:$0xff]  ;;  %v9511_v45 = vld [vmem:[%s17821_s0 + $0x152] sm:$0xff] }
 0x1a9   :  { %v2191_v56 = vpop.f32.mrf.mxu0  ;;  %v2574_v57 = vpop.f32.mrf.mxu1  ;;  %3263 = vmatmul.mubr.f32.gmra.mxu1 %v9571_v24  ;;  %9999 = vmatprep.subr.mxu0 %v1911_v39 }
 0x1aa   :  { %v11928_v62 = vadd.f32 %v2574_v57, %v2190_v53  ;;  %3267 = vmatprep.mubr.f32.mxu1 %v9636_v52  ;;  %v9574_v53 = vld [vmem:[%s17821_s0 + $0x158] sm:$0xff]  ;;  %10000 = vmatpush3.msra.mxu0 %v1911_v39  ;;  %v9513_v39 = vld [vmem:[%s17821_s0 + $0x16a] sm:$0xff] }
 0x1ab   :  { %v2194_v2 = vpop.f32.mrf.mxu0  ;;  %v2576_v6 = vpop.f32.mrf.mxu1  ;;  %2883 = vmatmul.mubr.f32.gmra.mxu0 %v9634_v27  ;;  %v9573_v27 = vld [vmem:[%s17821_s0 + $0x150] sm:$0xff] }
 0x1ac   :  { %v2195_v11 = vadd.f32 %v11895_v4, %v2194_v2  ;;  %2887 = vmatprep.mubr.f32.mxu0 %v9509_v54  ;;  %v9639_v54 = vld [vmem:[%s17821_s0 + $0x169] sm:$0xff] }
 0x1ad   :  { %v2196_v14 = vpop.f32.mrf.mxu0  ;;  %v2579_v10 = vpop.f32.mrf.mxu1  ;;  %3268 = vmatmul.mubr.f32.gmra.mxu1 %v9572_v51 }
 0x1ae   :  { %v11940_v19 = vadd.f32 %v2579_v10, %v2195_v11  ;;  %3272 = vmatprep.mubr.f32.mxu1 %v9637_v7  ;;  %v9512_v11 = vld [vmem:[%s17821_s0 + $0x15a] sm:$0xff] }
 0x1af   :  { %v2199_v22 = vpop.f32.mrf.mxu0  ;;  %v2581_v31 = vpop.f32.mrf.mxu1  ;;  %2888 = vmatmul.mubr.f32.gmra.mxu0 %v9635_v23 }
 0x1b0   :  { %v2200_v34 = vadd.f32 %v11895_v4, %v2199_v22  ;;  %2892 = vmatprep.mubr.f32.mxu0 %v9510_v17 }
 0x1b1   :  { %v2201_v24 = vpop.f32.mrf.mxu0  ;;  %v2584_v42 = vpop.f32.mrf.mxu1  ;;  %3273 = vmatmul.mubr.f32.gmra.mxu1 %v9573_v27  ;;  %v9640_v27 = vld [vmem:[%s17821_s0 + $0x171] sm:$0xff] }
 0x1b2   :  { %v11955_v23 = vadd.f32 %v2584_v42, %v2200_v34  ;;  %3277 = vmatprep.mubr.f32.mxu1 %v9638_v32 }
 0x1b3   :  { %v2204_v56 = vpop.f32.mrf.mxu0  ;;  %v2586_v57 = vpop.f32.mrf.mxu1  ;;  %2893 = vmatmul.mubr.f32.gmra.mxu0 %v9636_v52  ;;  %v9575_v52 = vld [vmem:[%s17821_s0 + $0x168] sm:$0xff] }
 0x1b4   :  { %v2205_v51 = vadd.f32 %v11895_v4, %v2204_v56  ;;  %2897 = vmatprep.mubr.f32.mxu0 %v9511_v45 }
 0x1b5   :  { %v2206_v2 = vpop.f32.mrf.mxu0  ;;  %v2589_v6 = vpop.f32.mrf.mxu1  ;;  %3278 = vmatmul.mubr.f32.gmra.mxu1 %v9574_v53  ;;  %v9641_v53 = vld [vmem:[%s17821_s0 + $0x181] sm:$0xff] }
 0x1b6   :  { %v11967_v14 = vadd.f32 %v2589_v6, %v2205_v51  ;;  %3282 = vmatprep.mubr.f32.mxu1 %v9639_v54  ;;  %v9514_v2 = vld [vmem:[%s17821_s0 + $0x172] sm:$0xff] }
 0x1b7   :  { %v2209_v10 = vpop.f32.mrf.mxu0  ;;  %v2591_v17 = vpop.f32.mrf.mxu1  ;;  %2898 = vmatmul.mubr.f32.gmra.mxu0 %v9637_v7  ;;  %v9576_v7 = vld [vmem:[%s17821_s0 + $0x170] sm:$0xff] }
 0x1b8   :  { %v2210_v22 = vadd.f32 %v11895_v4, %v2209_v10  ;;  %2902 = vmatprep.mubr.f32.mxu0 %v9512_v11  ;;  %v9642_v10 = vld [vmem:[%s17821_s0 + $0x189] sm:$0xff] }
 0x1b9   :  { %v2211_v31 = vpop.f32.mrf.mxu0  ;;  %v2594_v34 = vpop.f32.mrf.mxu1  ;;  %3283 = vmatmul.mubr.f32.gmra.mxu1 %v9575_v52 }
 0x1ba   :  { %v11979_v24 = vadd.f32 %v2594_v34, %v2210_v22  ;;  %3287 = vmatprep.mubr.f32.mxu1 %v9640_v27  ;;  %v1910_v22 = vld [vmem:[%s17822_s1 + $0x400] sm:$0xff] }
 0x1bb   :  { %v2214_v42 = vpop.f32.mrf.mxu0  ;;  %v2596_v45 = vpop.f32.mrf.mxu1  ;;  %2903 = vmatmul.mubr.f32.gmra.mxu0 %v9638_v32  ;;  %v9577_v32 = vld [vmem:[%s17821_s0 + $0x180] sm:$0xff]  ;;  %10001 = vmatprep.subr.mxu0 %v1910_v22 }
 0x1bc   :  { %v2215_v56 = vadd.f32 %v11895_v4, %v2214_v42  ;;  %2907 = vmatprep.mubr.f32.mxu0 %v9513_v39  ;;  %v9515_v39 = vld [vmem:[%s17821_s0 + $0x182] sm:$0xff]  ;;  %10002 = vmatpush3.msra.mxu0 %v1910_v22 }
 0x1bd   :  { %v2216_v57 = vpop.f32.mrf.mxu0  ;;  %v2599_v51 = vpop.f32.mrf.mxu1  ;;  %3288 = vmatmul.mubr.f32.gmra.mxu1 %v9576_v7  ;;  %v9578_v7 = vld [vmem:[%s17821_s0 + $0x188] sm:$0xff] }
 0x1be   :  { %v11991_v6 = vadd.f32 %v2599_v51, %v2215_v56  ;;  %3292 = vmatprep.mubr.f32.mxu1 %v9641_v53  ;;  %v9643_v56 = vld [vmem:[%s17821_s0 + $0x199] sm:$0xff] }
 0x1bf   :  { %v2219_v11 = vpop.f32.mrf.mxu0  ;;  %v2601_v52 = vpop.f32.mrf.mxu1  ;;  %2908 = vmatmul.mubr.f32.gmra.mxu0 %v9639_v54  ;;  %v12014_v57 = vld [vmem:[#allocation3] sm:$0xff] }
 0x1c0   :  { %v2220_v17 = vadd.f32 %v11895_v4, %v2219_v11  ;;  %2912 = vmatprep.mubr.f32.mxu0 %v9514_v2  ;;  %6937 = vmatprep.subr.mxu0 %v12014_v57  ;;  %v9516_v11 = vld [vmem:[%s17821_s0 + $0x18a] sm:$0xff] }
 0x1c1   :  { %v2221_v31 = vpop.f32.mrf.mxu0  ;;  %v2604_v34 = vpop.f32.mrf.mxu1  ;;  %3293 = vmatmul.mubr.f32.gmra.mxu1 %v9577_v32 }
 0x1c2   :  { %v12006_v54 = vadd.f32 %v2604_v34, %v2220_v17  ;;  %3297 = vmatprep.mubr.f32.mxu1 %v9642_v10  ;;  %v9644_v31 = vld [vmem:[%s17821_s0 + $0x1a1] sm:$0xff] }
 0x1c3   :  { %v2224_v42 = vpop.f32.mrf.mxu0  ;;  %v2606_v45 = vpop.f32.mrf.mxu1  ;;  %2913 = vmatmul.mubr.f32.gmra.mxu0 %v9640_v27  ;;  %v9579_v27 = vld [vmem:[%s17821_s0 + $0x198] sm:$0xff] }
 0x1c4   :  { %v2225_v51 = vadd.f32 %v11895_v4, %v2224_v42  ;;  %2917 = vmatprep.mubr.f32.mxu0 %v9515_v39  ;;  %v9517_v42 = vld [vmem:[%s17821_s0 + $0x1ca] sm:$0xff] }
 0x1c5   :  { %v2226_v2 = vpop.f32.mrf.mxu0  ;;  %v2609_v32 = vpop.f32.mrf.mxu1  ;;  %3298 = vmatmul.mubr.f32.gmra.mxu1 %v9578_v7 }
 0x1c6   :  { %v12021_v52 = vadd.f32 %v2609_v32, %v2225_v51  ;;  %3302 = vmatprep.mubr.f32.mxu1 %v9643_v56  ;;  %v9645_v2 = vld [vmem:[%s17821_s0 + $0x1e1] sm:$0xff] }
 0x1c7   :  { %v2229_v17 = vpop.f32.mrf.mxu0  ;;  %v2611_v22 = vpop.f32.mrf.mxu1  ;;  %2918 = vmatmul.mubr.f32.gmra.mxu0 %v9641_v53  ;;  %v9580_v53 = vld [vmem:[%s17821_s0 + $0x1a0] sm:$0xff] }
 0x1c8   :  { %17969 = vst [vmem:[#allocation11_spill] sm:$0xff] %v12021_v52  ;;  %v2230_v34 = vadd.f32 %v11895_v4, %v2229_v17  ;;  %2922 = vmatprep.mubr.f32.mxu0 %v9516_v11  ;;  %v9453_v11 = vld [vmem:[%s17821_s0 + $0x1c9] sm:$0xff]  ;;  %v9518_v22 = vld [vmem:[%s17821_s0 + $0x1d2] sm:$0xff] }
 0x1c9   :  { %v2231_v39 = vpop.f32.mrf.mxu0  ;;  %v2614_v7 = vpop.f32.mrf.mxu1  ;;  %3303 = vmatmul.mubr.f32.gmra.mxu1 %v9579_v27 }
 0x1ca   :  { %v12033_v45 = vadd.f32 %v2614_v7, %v2230_v34  ;;  %3307 = vmatprep.mubr.f32.mxu1 %v9644_v31  ;;  %v9646_v7 = vld [vmem:[%s17821_s0 + $0x1e9] sm:$0xff] }
 0x1cb   :  { %v2234_v56 = vpop.f32.mrf.mxu0  ;;  %v2616_v51 = vpop.f32.mrf.mxu1  ;;  %2923 = vmatmul.mubr.f32.gmra.mxu0 %v9642_v10  ;;  %v9581_v10 = vld [vmem:[%s17821_s0 + $0x1e0] sm:$0xff] }
 0x1cc   :  { %17970 = vst [vmem:[#allocation12_spill] sm:$0xff] %v12033_v45  ;;  %v2235_v32 = vadd.f32 %v11895_v4, %v2234_v56  ;;  %2927 = vmatprep.mubr.f32.mxu0 %v9517_v42 }
 0x1cd   :  { %v2236_v27 = vpop.f32.mrf.mxu0  ;;  %v2619_v17 = vpop.f32.mrf.mxu1  ;;  %3308 = vmatmul.mubr.f32.gmra.mxu1 %v9580_v53  ;;  %v9454_v53 = vld [vmem:[%s17821_s0 + $0x1d1] sm:$0xff] }
 0x1ce   :  { %v12048_v31 = vadd.f32 %v2619_v17, %v2235_v32  ;;  %3312 = vmatprep.mubr.f32.mxu1 %v9645_v2  ;;  %v9519_v32 = vld [vmem:[%s17821_s0 + $0x1e2] sm:$0xff] }
 0x1cf   :  { %v2239_v34 = vpop.f32.mrf.mxu0  ;;  %v2621_v39 = vpop.f32.mrf.mxu1  ;;  %2928 = vmatmul.mubr.f32.gmra.mxu0 %v9453_v11  ;;  %v9582_v11 = vld [vmem:[%s17821_s0 + $0x1e8] sm:$0xff] }
 0x1d0   :  { %17971 = vst [vmem:[#allocation13_spill] sm:$0xff] %v12048_v31  ;;  %v2240_v42 = vadd.f32 %v11895_v4, %v2239_v34  ;;  %2932 = vmatprep.mubr.f32.mxu0 %v9518_v22  ;;  %v9647_v34 = vld [vmem:[%s17821_s0 + $0x1f9] sm:$0xff] }
 0x1d1   :  { %v2241_v56 = vpop.f32.mrf.mxu0  ;;  %v2624_v51 = vpop.f32.mrf.mxu1  ;;  %3313 = vmatmul.mubr.f32.gmra.mxu1 %v9581_v10 }
 0x1d2   :  { %v12063_v27 = vadd.f32 %v2624_v51, %v2240_v42  ;;  %3317 = vmatprep.mubr.f32.mxu1 %v9646_v7  ;;  %v9520_v42 = vld [vmem:[%s17821_s0 + $0x1ea] sm:$0xff] }
 0x1d3   :  { %v2244_v17 = vpop.f32.mrf.mxu0  ;;  %v2626_v22 = vpop.f32.mrf.mxu1  ;;  %2933 = vmatmul.mubr.f32.gmra.mxu0 %v9454_v53  ;;  %v9583_v53 = vld [vmem:[%s17821_s0 + $0x1f8] sm:$0xff] }
 0x1d4   :  { %17972 = vst [vmem:[#allocation14_spill] sm:$0xff] %v12063_v27  ;;  %v2245_v10 = vadd.f32 %v11895_v4, %v2244_v17  ;;  %2937 = vmatprep.mubr.f32.mxu0 %v9519_v32  ;;  %v9648_v32 = vld [vmem:[%s17821_s0 + $0x201] sm:$0xff] }
 0x1d5   :  { %v2246_v39 = vpop.f32.mrf.mxu0  ;;  %v2629_v56 = vpop.f32.mrf.mxu1  ;;  %3318 = vmatmul.mubr.f32.gmra.mxu1 %v9582_v11 }
 0x1d6   :  { %v12075_v51 = vadd.f32 %v2629_v56, %v2245_v10  ;;  %3322 = vmatprep.mubr.f32.mxu1 %v9647_v34  ;;  %v9521_v10 = vld [vmem:[%s17821_s0 + $0x1fa] sm:$0xff] }
 0x1d7   :  { %v2249_v22 = vpop.f32.mrf.mxu0  ;;  %v2631_v27 = vpop.f32.mrf.mxu1  ;;  %2938 = vmatmul.mubr.f32.gmra.mxu0 %v9645_v2  ;;  %v9584_v2 = vld [vmem:[%s17821_s0 + $0x200] sm:$0xff] }
 0x1d8   :  { %17973 = vst [vmem:[#allocation15_spill] sm:$0xff] %v12075_v51  ;;  %v2250_v11 = vadd.f32 %v11895_v4, %v2249_v22  ;;  %2942 = vmatprep.mubr.f32.mxu0 %v9520_v42  ;;  %v9649_v42 = vld [vmem:[%s17821_s0 + $0x211] sm:$0xff] }
 0x1d9   :  { %v2251_v17 = vpop.f32.mrf.mxu0  ;;  %v2634_v39 = vpop.f32.mrf.mxu1  ;;  %3323 = vmatmul.mubr.f32.gmra.mxu1 %v9583_v53 }
 0x1da   :  { %v12087_v56 = vadd.f32 %v2634_v39, %v2250_v11  ;;  %3327 = vmatprep.mubr.f32.mxu1 %v9648_v32  ;;  %v9522_v11 = vld [vmem:[%s17821_s0 + $0x202] sm:$0xff] }
 0x1db   :  { %v2254_v27 = vpop.f32.mrf.mxu0  ;;  %v2636_v51 = vpop.f32.mrf.mxu1  ;;  %2943 = vmatmul.mubr.f32.gmra.mxu0 %v9646_v7  ;;  %v9585_v7 = vld [vmem:[%s17821_s0 + $0x210] sm:$0xff] }
 0x1dc   :  { %17974 = vst [vmem:[#allocation16_spill] sm:$0xff] %v12087_v56  ;;  %v2255_v53 = vadd.f32 %v11895_v4, %v2254_v27  ;;  %2947 = vmatprep.mubr.f32.mxu0 %v9521_v10  ;;  %v9650_v10 = vld [vmem:[%s17821_s0 + $0x219] sm:$0xff] }
 0x1dd   :  { %v2256_v22 = vpop.f32.mrf.mxu0  ;;  %v2639_v17 = vpop.f32.mrf.mxu1  ;;  %3328 = vmatmul.mubr.f32.gmra.mxu1 %v9584_v2 }
 0x1de   :  { %v12099_v39 = vadd.f32 %v2639_v17, %v2255_v53  ;;  %3332 = vmatprep.mubr.f32.mxu1 %v9649_v42  ;;  %v9523_v53 = vld [vmem:[%s17821_s0 + $0x212] sm:$0xff] }
 0x1df   :  { %v2259_v51 = vpop.f32.mrf.mxu0  ;;  %v2641_v56 = vpop.f32.mrf.mxu1  ;;  %2948 = vmatmul.mubr.f32.gmra.mxu0 %v9647_v34  ;;  %v9586_v34 = vld [vmem:[%s17821_s0 + $0x218] sm:$0xff] }
 0x1e0   :  { %17975 = vst [vmem:[#allocation17_spill] sm:$0xff] %v12099_v39  ;;  %v2260_v2 = vadd.f32 %v11895_v4, %v2259_v51  ;;  %2952 = vmatprep.mubr.f32.mxu0 %v9522_v11  ;;  %v9651_v11 = vld [vmem:[%s17821_s0 + $0x229] sm:$0xff] }
 0x1e1   :  { %v2261_v27 = vpop.f32.mrf.mxu0  ;;  %v2644_v22 = vpop.f32.mrf.mxu1  ;;  %3333 = vmatmul.mubr.f32.gmra.mxu1 %v9585_v7 }
 0x1e2   :  { %v12111_v17 = vadd.f32 %v2644_v22, %v2260_v2  ;;  %3337 = vmatprep.mubr.f32.mxu1 %v9650_v10  ;;  %v9524_v2 = vld [vmem:[%s17821_s0 + $0x21a] sm:$0xff] }
 0x1e3   :  { %v2264_v56 = vpop.f32.mrf.mxu0  ;;  %v2646_v39 = vpop.f32.mrf.mxu1  ;;  %2953 = vmatmul.mubr.f32.gmra.mxu0 %v9648_v32  ;;  %v9587_v32 = vld [vmem:[%s17821_s0 + $0x228] sm:$0xff] }
 0x1e4   :  { %17976 = vst [vmem:[#allocation18_spill] sm:$0xff] %v12111_v17  ;;  %v2265_v7 = vadd.f32 %v11895_v4, %v2264_v56  ;;  %2957 = vmatprep.mubr.f32.mxu0 %v9523_v53  ;;  %v9652_v53 = vld [vmem:[%s17821_s0 + $0x231] sm:$0xff] }
 0x1e5   :  { %v2266_v51 = vpop.f32.mrf.mxu0  ;;  %v2649_v27 = vpop.f32.mrf.mxu1  ;;  %3338 = vmatmul.mubr.f32.gmra.mxu1 %v9586_v34 }
 0x1e6   :  { %v12123_v22 = vadd.f32 %v2649_v27, %v2265_v7  ;;  %3342 = vmatprep.mubr.f32.mxu1 %v9651_v11  ;;  %v9525_v7 = vld [vmem:[%s17821_s0 + $0x22a] sm:$0xff] }
 0x1e7   :  { %v2269_v39 = vpop.f32.mrf.mxu0  ;;  %v2651_v17 = vpop.f32.mrf.mxu1  ;;  %2958 = vmatmul.mubr.f32.gmra.mxu0 %v9649_v42  ;;  %v9588_v42 = vld [vmem:[%s17821_s0 + $0x230] sm:$0xff] }
 0x1e8   :  { %17977 = vst [vmem:[#allocation19_spill] sm:$0xff] %v12123_v22  ;;  %v2270_v34 = vadd.f32 %v11895_v4, %v2269_v39  ;;  %2962 = vmatprep.mubr.f32.mxu0 %v9524_v2  ;;  %v9653_v2 = vld [vmem:[%s17821_s0 + $0x241] sm:$0xff] }
 0x1e9   :  { %v2271_v56 = vpop.f32.mrf.mxu0  ;;  %v2654_v51 = vpop.f32.mrf.mxu1  ;;  %3343 = vmatmul.mubr.f32.gmra.mxu1 %v9587_v32 }
 0x1ea   :  { %v12135_v27 = vadd.f32 %v2654_v51, %v2270_v34  ;;  %3347 = vmatprep.mubr.f32.mxu1 %v9652_v53  ;;  %v9526_v34 = vld [vmem:[%s17821_s0 + $0x232] sm:$0xff] }
 0x1eb   :  { %v2274_v17 = vpop.f32.mrf.mxu0  ;;  %v2656_v22 = vpop.f32.mrf.mxu1  ;;  %2963 = vmatmul.mubr.f32.gmra.mxu0 %v9650_v10  ;;  %v9589_v10 = vld [vmem:[%s17821_s0 + $0x240] sm:$0xff] }
 0x1ec   :  { %17978 = vst [vmem:[#allocation20_spill] sm:$0xff] %v12135_v27  ;;  %v2275_v32 = vadd.f32 %v11895_v4, %v2274_v17  ;;  %2967 = vmatprep.mubr.f32.mxu0 %v9525_v7  ;;  %v9654_v7 = vld [vmem:[%s17821_s0 + $0x249] sm:$0xff] }
 0x1ed   :  { %v2276_v39 = vpop.f32.mrf.mxu0  ;;  %v2659_v56 = vpop.f32.mrf.mxu1  ;;  %3348 = vmatmul.mubr.f32.gmra.mxu1 %v9588_v42 }
 0x1ee   :  { %v12147_v51 = vadd.f32 %v2659_v56, %v2275_v32  ;;  %3352 = vmatprep.mubr.f32.mxu1 %v9653_v2  ;;  %v9527_v32 = vld [vmem:[%s17821_s0 + $0x242] sm:$0xff] }
 0x1ef   :  { %v2279_v22 = vpop.f32.mrf.mxu0  ;;  %v2661_v27 = vpop.f32.mrf.mxu1  ;;  %2968 = vmatmul.mubr.f32.gmra.mxu0 %v9651_v11  ;;  %v9590_v11 = vld [vmem:[%s17821_s0 + $0x248] sm:$0xff] }
 0x1f0   :  { %17979 = vst [vmem:[#allocation21_spill] sm:$0xff] %v12147_v51  ;;  %v2280_v42 = vadd.f32 %v11895_v4, %v2279_v22  ;;  %2972 = vmatprep.mubr.f32.mxu0 %v9526_v34  ;;  %v9655_v34 = vld [vmem:[%s17821_s0 + $0x259] sm:$0xff] }
 0x1f1   :  { %v2281_v17 = vpop.f32.mrf.mxu0  ;;  %v2664_v39 = vpop.f32.mrf.mxu1  ;;  %3353 = vmatmul.mubr.f32.gmra.mxu1 %v9589_v10 }
 0x1f2   :  { %v12159_v56 = vadd.f32 %v2664_v39, %v2280_v42  ;;  %3357 = vmatprep.mubr.f32.mxu1 %v9654_v7  ;;  %v9528_v42 = vld [vmem:[%s17821_s0 + $0x24a] sm:$0xff] }
 0x1f3   :  { %v2284_v27 = vpop.f32.mrf.mxu0  ;;  %v2666_v51 = vpop.f32.mrf.mxu1  ;;  %2973 = vmatmul.mubr.f32.gmra.mxu0 %v9652_v53  ;;  %v9591_v53 = vld [vmem:[%s17821_s0 + $0x258] sm:$0xff] }
 0x1f4   :  { %17980 = vst [vmem:[#allocation22_spill] sm:$0xff] %v12159_v56  ;;  %v2285_v10 = vadd.f32 %v11895_v4, %v2284_v27  ;;  %2977 = vmatprep.mubr.f32.mxu0 %v9527_v32  ;;  %v9656_v32 = vld [vmem:[%s17821_s0 + $0x261] sm:$0xff] }
 0x1f5   :  { %v2286_v22 = vpop.f32.mrf.mxu0  ;;  %v2669_v17 = vpop.f32.mrf.mxu1  ;;  %3358 = vmatmul.mubr.f32.gmra.mxu1 %v9590_v11 }
 0x1f6   :  { %v12171_v39 = vadd.f32 %v2669_v17, %v2285_v10  ;;  %3362 = vmatprep.mubr.f32.mxu1 %v9655_v34  ;;  %v9529_v10 = vld [vmem:[%s17821_s0 + $0x25a] sm:$0xff] }
 0x1f7   :  { %v2289_v51 = vpop.f32.mrf.mxu0  ;;  %v2671_v56 = vpop.f32.mrf.mxu1  ;;  %2978 = vmatmul.mubr.f32.gmra.mxu0 %v9653_v2  ;;  %v9592_v2 = vld [vmem:[%s17821_s0 + $0x260] sm:$0xff] }
 0x1f8   :  { %17981 = vst [vmem:[#allocation23_spill] sm:$0xff] %v12171_v39  ;;  %v2290_v11 = vadd.f32 %v11895_v4, %v2289_v51  ;;  %2982 = vmatprep.mubr.f32.mxu0 %v9528_v42  ;;  %v9657_v42 = vld [vmem:[%s17821_s0 + $0x271] sm:$0xff] }
 0x1f9   :  { %v2291_v27 = vpop.f32.mrf.mxu0  ;;  %v2674_v22 = vpop.f32.mrf.mxu1  ;;  %3363 = vmatmul.mubr.f32.gmra.mxu1 %v9591_v53 }
 0x1fa   :  { %v12183_v17 = vadd.f32 %v2674_v22, %v2290_v11  ;;  %3367 = vmatprep.mubr.f32.mxu1 %v9656_v32  ;;  %v12195_v11 = vld [vmem:[%s17821_s0 + $0x262] sm:$0xff] }
 0x1fb   :  { %v2294_v56 = vpop.f32.mrf.mxu0  ;;  %v2676_v39 = vpop.f32.mrf.mxu1  ;;  %2983 = vmatmul.mubr.f32.gmra.mxu0 %v9654_v7  ;;  %v9593_v7 = vld [vmem:[%s17821_s0 + $0x270] sm:$0xff] }
 0x1fc   :  { %17982 = vst [vmem:[#allocation24_spill] sm:$0xff] %v12183_v17  ;;  %v2295_v53 = vadd.f32 %v11895_v4, %v2294_v56  ;;  %2987 = vmatprep.mubr.f32.mxu0 %v9529_v10  ;;  %v9658_v10 = vld [vmem:[%s17821_s0 + $0x279] sm:$0xff] }
 0x1fd   :  { %v2296_v51 = vpop.f32.mrf.mxu0  ;;  %v2679_v27 = vpop.f32.mrf.mxu1  ;;  %3368 = vmatmul.mubr.f32.gmra.mxu1 %v9592_v2 }
 0x1fe   :  { %v12197_v22 = vadd.f32 %v2679_v27, %v2295_v53  ;;  %3372 = vmatprep.mubr.f32.mxu1 %v9657_v42  ;;  %v12210_v53 = vld [vmem:[%s17821_s0 + $0x272] sm:$0xff] }
 0x1ff   :  { %v2299_v39 = vpop.f32.mrf.mxu0  ;;  %v2681_v17 = vpop.f32.mrf.mxu1  ;;  %2988 = vmatmul.mubr.f32.gmra.mxu0 %v9655_v34  ;;  %v9594_v34 = vld [vmem:[%s17821_s0 + $0x278] sm:$0xff] }
 0x200   :  { %17983 = vst [vmem:[#allocation25_spill] sm:$0xff] %v12197_v22  ;;  %v2300_v2 = vadd.f32 %v11895_v4, %v2299_v39  ;;  %2992 = vmatprep.mubr.f32.mxu0 %v12195_v11  ;;  %v9659_v39 = vld [vmem:[%s17821_s0 + $0x289] sm:$0xff] }
 0x201   :  { %v2301_v56 = vpop.f32.mrf.mxu0  ;;  %v2684_v51 = vpop.f32.mrf.mxu1  ;;  %3373 = vmatmul.mubr.f32.gmra.mxu1 %v9593_v7 }
 0x202   :  { %v12212_v27 = vadd.f32 %v2684_v51, %v2300_v2  ;;  %3377 = vmatprep.mubr.f32.mxu1 %v9658_v10  ;;  %v12225_v2 = vld [vmem:[%s17821_s0 + $0x27a] sm:$0xff] }
 0x203   :  { %v2304_v17 = vpop.f32.mrf.mxu0  ;;  %v2686_v22 = vpop.f32.mrf.mxu1  ;;  %2993 = vmatmul.mubr.f32.gmra.mxu0 %v9656_v32  ;;  %v9595_v32 = vld [vmem:[%s17821_s0 + $0x288] sm:$0xff] }
 0x204   :  { %17984 = vst [vmem:[#allocation26_spill] sm:$0xff] %v12212_v27  ;;  %v2305_v7 = vadd.f32 %v11895_v4, %v2304_v17  ;;  %2997 = vmatprep.mubr.f32.mxu0 %v12210_v53  ;;  %v9660_v17 = vld [vmem:[%s17821_s0 + $0x291] sm:$0xff] }
 0x205   :  { %v2306_v56 = vpop.f32.mrf.mxu0  ;;  %v2689_v31 = vpop.f32.mrf.mxu1  ;;  %3378 = vmatmul.mubr.f32.gmra.mxu1 %v9594_v34 }
 0x206   :  { %v12227_v51 = vadd.f32 %v2689_v31, %v2305_v7  ;;  %3382 = vmatprep.mubr.f32.mxu1 %v9659_v39  ;;  %v12240_v31 = vld [vmem:[%s17821_s0 + $0x28a] sm:$0xff] }
 0x207   :  { %v2309_v22 = vpop.f32.mrf.mxu0  ;;  %v2691_v27 = vpop.f32.mrf.mxu1  ;;  %2998 = vmatmul.mubr.f32.gmra.mxu0 %v9657_v42  ;;  %v9596_v42 = vld [vmem:[%s17821_s0 + $0x290] sm:$0xff] }
 0x208   :  { %17985 = vst [vmem:[#allocation27_spill] sm:$0xff] %v12227_v51  ;;  %v2310_v34 = vadd.f32 %v11895_v4, %v2309_v22  ;;  %3002 = vmatprep.mubr.f32.mxu0 %v12225_v2  ;;  %v9661_v22 = vld [vmem:[%s17821_s0 + $0x2a1] sm:$0xff] }
 0x209   :  { %v2311_v56 = vpop.f32.mrf.mxu0  ;;  %v2694_v45 = vpop.f32.mrf.mxu1  ;;  %3383 = vmatmul.mubr.f32.gmra.mxu1 %v9595_v32 }
 0x20a   :  { %v12242_v7 = vadd.f32 %v2694_v45, %v2310_v34  ;;  %3387 = vmatprep.mubr.f32.mxu1 %v9660_v17  ;;  %v12255_v45 = vld [vmem:[%s17821_s0 + $0x292] sm:$0xff] }
 0x20b   :  { %v2314_v27 = vpop.f32.mrf.mxu0  ;;  %v2696_v51 = vpop.f32.mrf.mxu1  ;;  %3003 = vmatmul.mubr.f32.gmra.mxu0 %v9658_v10  ;;  %v9597_v10 = vld [vmem:[%s17821_s0 + $0x2a0] sm:$0xff] }
 0x20c   :  { %17986 = vst [vmem:[#allocation28_spill] sm:$0xff] %v12242_v7  ;;  %v2315_v32 = vadd.f32 %v11895_v4, %v2314_v27  ;;  %3007 = vmatprep.mubr.f32.mxu0 %v12240_v31  ;;  %v9662_v4 = vld [vmem:[%s17821_s0 + $0x2a9] sm:$0xff] }
 0x20d   :  { %v2316_v56 = vpop.f32.mrf.mxu0  ;;  %v2699_v52 = vpop.f32.mrf.mxu1  ;;  %3388 = vmatmul.mubr.f32.gmra.mxu1 %v9596_v42 }
 0x20e   :  { %v12257_v34 = vadd.f32 %v2699_v52, %v2315_v32  ;;  %3392 = vmatprep.mubr.f32.mxu1 %v9661_v22  ;;  %v12270_v52 = vld [vmem:[%s17821_s0 + $0x2a2] sm:$0xff] }
 0x20f   :  { %v2701_v51 = vpop.f32.mrf.mxu1  ;;  %v2769_v7 = vpop.f32.mrf.mxu0  ;;  %3008 = vmatmul.mubr.f32.gmra.mxu0 %v9659_v39  ;;  %v9598_v39 = vld [vmem:[%s17821_s0 + $0x2a8] sm:$0xff] }
 0x210   :  { %17987 = vst [vmem:[#allocation29_spill] sm:$0xff] %v12257_v34  ;;  %v2770_v42 = vadd.f32 %v2769_v7, %v11421_v0  ;;  %3012 = vmatprep.mubr.f32.mxu0 %v12255_v45  ;;  %v9663_v7 = vld [vmem:[%s17821_s0 + $0x2b9] sm:$0xff] }
 0x211   :  { %v2771_v27 = vpop.f32.mrf.mxu0  ;;  %v3154_v56 = vpop.f32.mrf.mxu1  ;;  %3393 = vmatmul.mubr.f32.gmra.mxu1 %v9597_v10 }
 0x212   :  { %v12272_v32 = vadd.f32 %v3154_v56, %v2770_v42  ;;  %3397 = vmatprep.mubr.f32.mxu1 %v9662_v4  ;;  %v12285_v42 = vld [vmem:[%s17821_s0 + $0x2aa] sm:$0xff] }
 0x213   :  { %v2774_v51 = vpop.f32.mrf.mxu0  ;;  %3013 = vmatmul.mubr.f32.gmra.mxu0 %v9660_v17  ;;  %v3156_v0 = vpop.f32.mrf.mxu1  ;;  %v9599_v17 = vld [vmem:[%s17821_s0 + $0x2b8] sm:$0xff] }
 0x214   :  { %17988 = vst [vmem:[#allocation30_spill] sm:$0xff] %v12272_v32  ;;  %v2775_v10 = vadd.f32 %v2774_v51, %v11433_v46  ;;  %3017 = vmatprep.mubr.f32.mxu0 %v12270_v52  ;;  %v9664_v51 = vld [vmem:[%s17821_s0 + $0x2c1] sm:$0xff] }
 0x215   :  { %v2776_v27 = vpop.f32.mrf.mxu0  ;;  %v3159_v34 = vpop.f32.mrf.mxu1  ;;  %3398 = vmatmul.mubr.f32.gmra.mxu1 %v9598_v39 }
 0x216   :  { %v12287_v56 = vadd.f32 %v3159_v34, %v2775_v10  ;;  %3402 = vmatprep.mubr.f32.mxu1 %v9663_v7  ;;  %v12300_v34 = vld [vmem:[%s17821_s0 + $0x2ba] sm:$0xff] }
 0x217   :  { %v2779_v0 = vpop.f32.mrf.mxu0  ;;  %3018 = vmatmul.mubr.f32.gmra.mxu0 %v9661_v22  ;;  %v3161_v46 = vpop.f32.mrf.mxu1  ;;  %v9600_v22 = vld [vmem:[%s17821_s0 + $0x2c0] sm:$0xff] }
 0x218   :  { %17989 = vst [vmem:[#allocation31_spill] sm:$0xff] %v12287_v56  ;;  %v2780_v39 = vadd.f32 %v2779_v0, %v11445_v55  ;;  %3022 = vmatprep.mubr.f32.mxu0 %v12285_v42  ;;  %v9665_v0 = vld [vmem:[%s17821_s0 + $0x2d1] sm:$0xff] }
 0x219   :  { %v2781_v27 = vpop.f32.mrf.mxu0  ;;  %v3164_v32 = vpop.f32.mrf.mxu1  ;;  %3403 = vmatmul.mubr.f32.gmra.mxu1 %v9599_v17 }
 0x21a   :  { %v12302_v10 = vadd.f32 %v3164_v32, %v2780_v39  ;;  %3407 = vmatprep.mubr.f32.mxu1 %v9664_v51  ;;  %v12315_v32 = vld [vmem:[%s17821_s0 + $0x2c2] sm:$0xff] }
 0x21b   :  { %v2784_v46 = vpop.f32.mrf.mxu0  ;;  %3023 = vmatmul.mubr.f32.gmra.mxu0 %v9662_v4  ;;  %v3166_v55 = vpop.f32.mrf.mxu1  ;;  %v9601_v4 = vld [vmem:[%s17821_s0 + $0x2d0] sm:$0xff] }
 0x21c   :  { %17990 = vst [vmem:[#allocation32_spill] sm:$0xff] %v12302_v10  ;;  %v2785_v17 = vadd.f32 %v2784_v46, %v11457_v63  ;;  %3027 = vmatprep.mubr.f32.mxu0 %v12300_v34  ;;  %v9666_v46 = vld [vmem:[%s17821_s0 + $0x2d9] sm:$0xff] }
 0x21d   :  { %v2786_v27 = vpop.f32.mrf.mxu0  ;;  %v3169_v56 = vpop.f32.mrf.mxu1  ;;  %3408 = vmatmul.mubr.f32.gmra.mxu1 %v9600_v22 }
 0x21e   :  { %v12317_v39 = vadd.f32 %v3169_v56, %v2785_v17  ;;  %3412 = vmatprep.mubr.f32.mxu1 %v9665_v0  ;;  %v12330_v56 = vld [vmem:[%s17821_s0 + $0x2d2] sm:$0xff] }
 0x21f   :  { %v2789_v55 = vpop.f32.mrf.mxu0  ;;  %3028 = vmatmul.mubr.f32.gmra.mxu0 %v9663_v7  ;;  %v3171_v63 = vpop.f32.mrf.mxu1  ;;  %v9602_v7 = vld [vmem:[%s17821_s0 + $0x2d8] sm:$0xff] }
 0x220   :  { %17991 = vst [vmem:[#allocation33_spill] sm:$0xff] %v12317_v39  ;;  %v2790_v22 = vadd.f32 %v2789_v55, %v11469_v9  ;;  %3032 = vmatprep.mubr.f32.mxu0 %v12315_v32  ;;  %v9667_v55 = vld [vmem:[%s17821_s0 + $0x2e9] sm:$0xff] }
 0x221   :  { %v2791_v27 = vpop.f32.mrf.mxu0  ;;  %v3174_v10 = vpop.f32.mrf.mxu1  ;;  %3413 = vmatmul.mubr.f32.gmra.mxu1 %v9601_v4 }
 0x222   :  { %v12332_v17 = vadd.f32 %v3174_v10, %v2790_v22  ;;  %3417 = vmatprep.mubr.f32.mxu1 %v9666_v46  ;;  %v12345_v10 = vld [vmem:[%s17821_s0 + $0x2da] sm:$0xff] }
 0x223   :  { %v2794_v63 = vpop.f32.mrf.mxu0  ;;  %3033 = vmatmul.mubr.f32.gmra.mxu0 %v9664_v51  ;;  %v3176_v9 = vpop.f32.mrf.mxu1  ;;  %v9603_v51 = vld [vmem:[%s17821_s0 + $0x2e8] sm:$0xff] }
 0x224   :  { %17992 = vst [vmem:[#allocation34_spill] sm:$0xff] %v12332_v17  ;;  %v2795_v4 = vadd.f32 %v2794_v63, %v11481_v18  ;;  %3037 = vmatprep.mubr.f32.mxu0 %v12330_v56  ;;  %v9668_v63 = vld [vmem:[%s17821_s0 + $0x2f1] sm:$0xff] }
 0x225   :  { %v2796_v27 = vpop.f32.mrf.mxu0  ;;  %v3179_v39 = vpop.f32.mrf.mxu1  ;;  %3418 = vmatmul.mubr.f32.gmra.mxu1 %v9602_v7 }
 0x226   :  { %v12347_v22 = vadd.f32 %v3179_v39, %v2795_v4  ;;  %3422 = vmatprep.mubr.f32.mxu1 %v9667_v55  ;;  %v12360_v39 = vld [vmem:[%s17821_s0 + $0x2ea] sm:$0xff] }
 0x227   :  { %v2799_v9 = vpop.f32.mrf.mxu0  ;;  %3038 = vmatmul.mubr.f32.gmra.mxu0 %v9665_v0  ;;  %v3181_v18 = vpop.f32.mrf.mxu1  ;;  %v9604_v0 = vld [vmem:[%s17821_s0 + $0x2f0] sm:$0xff] }
 0x228   :  { %17993 = vst [vmem:[#allocation35_spill] sm:$0xff] %v12347_v22  ;;  %v2800_v7 = vadd.f32 %v2799_v9, %v11493_v28  ;;  %3042 = vmatprep.mubr.f32.mxu0 %v12345_v10  ;;  %v9669_v9 = vld [vmem:[%s17821_s0 + $0x301] sm:$0xff] }
 0x229   :  { %v2801_v27 = vpop.f32.mrf.mxu0  ;;  %v3184_v17 = vpop.f32.mrf.mxu1  ;;  %3423 = vmatmul.mubr.f32.gmra.mxu1 %v9603_v51 }
 0x22a   :  { %v12362_v4 = vadd.f32 %v3184_v17, %v2800_v7  ;;  %3427 = vmatprep.mubr.f32.mxu1 %v9668_v63  ;;  %v12375_v17 = vld [vmem:[%s17821_s0 + $0x2f2] sm:$0xff] }
 0x22b   :  { %v2804_v18 = vpop.f32.mrf.mxu0  ;;  %3043 = vmatmul.mubr.f32.gmra.mxu0 %v9666_v46  ;;  %v3186_v28 = vpop.f32.mrf.mxu1  ;;  %v9605_v46 = vld [vmem:[%s17821_s0 + $0x300] sm:$0xff] }
 0x22c   :  { %17994 = vst [vmem:[#allocation36_spill] sm:$0xff] %v12362_v4  ;;  %v2805_v51 = vadd.f32 %v2804_v18, %v11505_v38  ;;  %3047 = vmatprep.mubr.f32.mxu0 %v12360_v39  ;;  %v9670_v18 = vld [vmem:[%s17821_s0 + $0x309] sm:$0xff] }
 0x22d   :  { %v2806_v27 = vpop.f32.mrf.mxu0  ;;  %v3189_v22 = vpop.f32.mrf.mxu1  ;;  %3428 = vmatmul.mubr.f32.gmra.mxu1 %v9604_v0 }
 0x22e   :  { %v12377_v7 = vadd.f32 %v3189_v22, %v2805_v51  ;;  %3432 = vmatprep.mubr.f32.mxu1 %v9669_v9  ;;  %v12390_v22 = vld [vmem:[%s17821_s0 + $0x302] sm:$0xff] }
 0x22f   :  { %v2809_v28 = vpop.f32.mrf.mxu0  ;;  %3048 = vmatmul.mubr.f32.gmra.mxu0 %v9667_v55  ;;  %v3191_v38 = vpop.f32.mrf.mxu1  ;;  %v9606_v55 = vld [vmem:[%s17821_s0 + $0x308] sm:$0xff] }
 0x230   :  { %17995 = vst [vmem:[#allocation37_spill] sm:$0xff] %v12377_v7  ;;  %v2810_v0 = vadd.f32 %v2809_v28, %v11517_v49  ;;  %3052 = vmatprep.mubr.f32.mxu0 %v12375_v17  ;;  %v9671_v28 = vld [vmem:[%s17821_s0 + $0x319] sm:$0xff] }
 0x231   :  { %v2811_v27 = vpop.f32.mrf.mxu0  ;;  %v3194_v4 = vpop.f32.mrf.mxu1  ;;  %3433 = vmatmul.mubr.f32.gmra.mxu1 %v9605_v46 }
 0x232   :  { %v12392_v51 = vadd.f32 %v3194_v4, %v2810_v0  ;;  %3437 = vmatprep.mubr.f32.mxu1 %v9670_v18  ;;  %v12405_v4 = vld [vmem:[%s17821_s0 + $0x30a] sm:$0xff] }
 0x233   :  { %v2814_v38 = vpop.f32.mrf.mxu0  ;;  %3053 = vmatmul.mubr.f32.gmra.mxu0 %v9668_v63  ;;  %v3196_v49 = vpop.f32.mrf.mxu1  ;;  %v9607_v63 = vld [vmem:[%s17821_s0 + $0x318] sm:$0xff] }
 0x234   :  { %17996 = vst [vmem:[#allocation38_spill] sm:$0xff] %v12392_v51  ;;  %v2815_v46 = vadd.f32 %v2814_v38, %v11529_v58  ;;  %3057 = vmatprep.mubr.f32.mxu0 %v12390_v22  ;;  %v9672_v38 = vld [vmem:[%s17821_s0 + $0x321] sm:$0xff] }
 0x235   :  { %v2816_v27 = vpop.f32.mrf.mxu0  ;;  %v3199_v7 = vpop.f32.mrf.mxu1  ;;  %3438 = vmatmul.mubr.f32.gmra.mxu1 %v9606_v55 }
 0x236   :  { %v12407_v0 = vadd.f32 %v3199_v7, %v2815_v46  ;;  %3442 = vmatprep.mubr.f32.mxu1 %v9671_v28  ;;  %v12420_v7 = vld [vmem:[%s17821_s0 + $0x31a] sm:$0xff] }
 0x237   :  { %v2819_v49 = vpop.f32.mrf.mxu0  ;;  %3058 = vmatmul.mubr.f32.gmra.mxu0 %v9669_v9  ;;  %v3201_v58 = vpop.f32.mrf.mxu1  ;;  %v9608_v9 = vld [vmem:[%s17821_s0 + $0x320] sm:$0xff] }
 0x238   :  { %17997 = vst [vmem:[#allocation39_spill] sm:$0xff] %v12407_v0  ;;  %v2820_v55 = vadd.f32 %v2819_v49, %v11541_v5  ;;  %3062 = vmatprep.mubr.f32.mxu0 %v12405_v4  ;;  %v9673_v49 = vld [vmem:[%s17821_s0 + $0x331] sm:$0xff] }
 0x239   :  { %v2821_v27 = vpop.f32.mrf.mxu0  ;;  %v3204_v51 = vpop.f32.mrf.mxu1  ;;  %3443 = vmatmul.mubr.f32.gmra.mxu1 %v9607_v63 }
 0x23a   :  { %v12422_v46 = vadd.f32 %v3204_v51, %v2820_v55  ;;  %3447 = vmatprep.mubr.f32.mxu1 %v9672_v38  ;;  %v12435_v51 = vld [vmem:[%s17821_s0 + $0x322] sm:$0xff] }
 0x23b   :  { %v2824_v58 = vpop.f32.mrf.mxu0  ;;  %3063 = vmatmul.mubr.f32.gmra.mxu0 %v9670_v18  ;;  %v3206_v5 = vpop.f32.mrf.mxu1  ;;  %v9609_v18 = vld [vmem:[%s17821_s0 + $0x330] sm:$0xff] }
 0x23c   :  { %17998 = vst [vmem:[#allocation40_spill] sm:$0xff] %v12422_v46  ;;  %v2825_v63 = vadd.f32 %v2824_v58, %v11553_v15  ;;  %3067 = vmatprep.mubr.f32.mxu0 %v12420_v7  ;;  %v9674_v58 = vld [vmem:[%s17821_s0 + $0x339] sm:$0xff] }
 0x23d   :  { %v2826_v27 = vpop.f32.mrf.mxu0  ;;  %v3209_v0 = vpop.f32.mrf.mxu1  ;;  %3448 = vmatmul.mubr.f32.gmra.mxu1 %v9608_v9 }
 0x23e   :  { %v12437_v55 = vadd.f32 %v3209_v0, %v2825_v63  ;;  %3452 = vmatprep.mubr.f32.mxu1 %v9673_v49  ;;  %v12450_v0 = vld [vmem:[%s17821_s0 + $0x332] sm:$0xff] }
 0x23f   :  { %v2829_v5 = vpop.f32.mrf.mxu0  ;;  %3068 = vmatmul.mubr.f32.gmra.mxu0 %v9671_v28  ;;  %v3211_v15 = vpop.f32.mrf.mxu1  ;;  %v9610_v28 = vld [vmem:[%s17821_s0 + $0x338] sm:$0xff] }
 0x240   :  { %17999 = vst [vmem:[#allocation41_spill] sm:$0xff] %v12437_v55  ;;  %v2830_v9 = vadd.f32 %v2829_v5, %v11565_v25  ;;  %3072 = vmatprep.mubr.f32.mxu0 %v12435_v51  ;;  %v9675_v5 = vld [vmem:[%s17821_s0 + $0x349] sm:$0xff] }
 0x241   :  { %v2831_v27 = vpop.f32.mrf.mxu0  ;;  %v3214_v46 = vpop.f32.mrf.mxu1  ;;  %3453 = vmatmul.mubr.f32.gmra.mxu1 %v9609_v18 }
 0x242   :  { %v12452_v63 = vadd.f32 %v3214_v46, %v2830_v9  ;;  %3457 = vmatprep.mubr.f32.mxu1 %v9674_v58  ;;  %v6416_v27 = vld [vmem:[#allocation5 + $0x78] sm:$0xff] }
 0x243   :  { %v2834_v15 = vpop.f32.mrf.mxu0  ;;  %3073 = vmatmul.mubr.f32.gmra.mxu0 %v9672_v38  ;;  %v3216_v25 = vpop.f32.mrf.mxu1  ;;  %v12465_v9 = vld [vmem:[%s17821_s0 + $0x33a] sm:$0xff]  ;;  %v9611_v38 = vld [vmem:[%s17821_s0 + $0x348] sm:$0xff]  ;;  %6553 = vmatpush1.msra.mxu1 %v6416_v27 }
 0x244   :  { %18000 = vst [vmem:[#allocation42_spill] sm:$0xff] %v12452_v63  ;;  %v2835_v18 = vadd.f32 %v2834_v15, %v11577_v36  ;;  %3077 = vmatprep.mubr.f32.mxu0 %v12450_v0  ;;  %6554 = vmatprep.subr.mxu1 %v12014_v57 }
 0x245   :  { %v2836_v55 = vpop.f32.mrf.mxu0  ;;  %v3219_v46 = vpop.f32.mrf.mxu1  ;;  %3458 = vmatmul.mubr.f32.gmra.mxu1 %v9610_v28 }
 0x246   :  { %v12467_v63 = vadd.f32 %v3219_v46, %v2835_v18  ;;  %3462 = vmatprep.mubr.f32.mxu1 %v9675_v5  ;;  %v9676_v55 = vld [vmem:[%s17821_s0 + $0x351] sm:$0xff] }
 0x247   :  { %v2839_v36 = vpop.f32.mrf.mxu0  ;;  %3078 = vmatmul.mubr.f32.gmra.mxu0 %v9673_v49  ;;  %v3221_v15 = vpop.f32.mrf.mxu1  ;;  %v9677_v18 = vld [vmem:[%s17821_s0 + $0x32] sm:$0xff] }
 0x248   :  { %18001 = vst [vmem:[#allocation43_spill] sm:$0xff] %v12467_v63  ;;  %v2840_v28 = vadd.f32 %v2839_v36, %v11589_v50  ;;  %3082 = vmatprep.mubr.f32.mxu0 %v12465_v9  ;;  %v9612_v49 = vld [vmem:[%s17821_s0 + $0x350] sm:$0xff] }
 0x249   :  { %v2841_v25 = vpop.f32.mrf.mxu0  ;;  %v3224_v5 = vpop.f32.mrf.mxu1  ;;  %3463 = vmatmul.mubr.f32.gmra.mxu1 %v9611_v38  ;;  %v9678_v38 = vld [vmem:[%s17821_s0 + $0x3a] sm:$0xff]  ;;  %v6415_v36 = vld [vmem:[#allocation5 + $0x70] sm:$0xff] }
 0x24a   :  { %v12481_v27 = vadd.f32 %v3224_v5, %v2840_v28  ;;  %3467 = vmatprep.mubr.f32.mxu1 %v9676_v55  ;;  %v9679_v55 = vld [vmem:[%s17821_s0 + $0x4a] sm:$0xff]  ;;  %6555 = vmatpush1.msra.mxu1 %v6415_v36 }
 0x24b   :  { %v2844_v46 = vpop.f32.mrf.mxu0  ;;  %3083 = vmatmul.mubr.f32.gmra.mxu0 %v9674_v58  ;;  %v3226_v15 = vpop.f32.mrf.mxu1  ;;  %6556 = vmatprep.subr.mxu1 %v12014_v57 }
 0x24c   :  { %v2845_v50 = vadd.f32 %v2844_v46, %v11604_v61  ;;  %10003 = vmatprep.mubr.f32.mxu0 %v9677_v18  ;;  %v9680_v18 = vld [vmem:[%s17821_s0 + $0x52] sm:$0xff] }
 0x24d   :  { %v2846_v25 = vpop.f32.mrf.mxu0  ;;  %v3229_v63 = vpop.f32.mrf.mxu1  ;;  %3468 = vmatmul.mubr.f32.gmra.mxu1 %v9612_v49 }
 0x24e   :  { %v12493_v28 = vadd.f32 %v3229_v63, %v2845_v50  ;;  %v9681_v63 = vld [vmem:[%s17821_s0 + $0x62] sm:$0xff] }
 0x24f   :  { %v2849_v58 = vpop.f32.mrf.mxu0  ;;  %v3231_v5 = vpop.f32.mrf.mxu1  ;;  %10004 = vmatmul.mubr.f32.vlgmr.msra.gmra.mxu0 %v9678_v38  ;;  %v6414_v25 = vld [vmem:[#allocation5 + $0x68] sm:$0xff] }
 0x250   :  { %v2850_v61 = vadd.f32 %v2849_v58, %v11626_v13  ;;  %10006 = vmatprep.mubr.f32.mxu0 %v9679_v55  ;;  %v9682_v13 = vld [vmem:[%s17821_s0 + $0x6a] sm:$0xff]  ;;  %v9683_v5 = vld [vmem:[%s17821_s0 + $0x7a] sm:$0xff]  ;;  %6557 = vmatpush1.msra.mxu1 %v6414_v25 }
 0x251   :  { %v2851_v49 = vpop.f32.mrf.mxu0  ;;  %v3234_v46 = vpop.f32.mrf.mxu1  ;;  %6558 = vmatprep.subr.mxu1 %v12014_v57 }
 0x252   :  { %v12503_v15 = vadd.f32 %v3234_v46, %v2850_v61  ;;  %v9684_v46 = vld [vmem:[%s17821_s0 + $0x82] sm:$0xff] }
 0x253   :  { %v2854_v50 = vpop.f32.mrf.mxu0  ;;  %v3236_v36 = vpop.f32.mrf.mxu1  ;;  %10007 = vmatmul.mubr.f32.gmra.mxu0 %v9680_v18 }
 0x254   :  { %v2855_v38 = vadd.f32 %v2854_v50, %v11644_v26  ;;  %10009 = vmatprep.mubr.f32.mxu0 %v9681_v63  ;;  %v9685_v36 = vld [vmem:[%s17821_s0 + $0x92] sm:$0xff] }
 0x255   :  { %v2856_v55 = vpop.f32.mrf.mxu0  ;;  %v3239_v58 = vpop.f32.mrf.mxu1 }
 0x256   :  { %v12512_v61 = vadd.f32 %v3239_v58, %v2855_v38  ;;  %v6413_v58 = vld [vmem:[#allocation5 + $0x60] sm:$0xff] }
 0x257   :  { %v2859_v18 = vpop.f32.mrf.mxu0  ;;  %v3241_v49 = vpop.f32.mrf.mxu1  ;;  %10010 = vmatmul.mubr.f32.gmra.mxu0 %v9682_v13  ;;  %6559 = vmatpush1.msra.mxu1 %v6413_v58 }
 0x258   :  { %v2860_v26 = vadd.f32 %v2859_v18, %v11662_v43  ;;  %10012 = vmatprep.mubr.f32.mxu0 %v9683_v5  ;;  %v9686_v43 = vld [vmem:[%s17821_s0 + $0x9a] sm:$0xff]  ;;  %v9687_v49 = vld [vmem:[%s17821_s0 + $0xaa] sm:$0xff]  ;;  %6560 = vmatprep.subr.mxu1 %v12014_v57 }
 0x259   :  { %v2861_v63 = vpop.f32.mrf.mxu0  ;;  %v3244_v50 = vpop.f32.mrf.mxu1 }
 0x25a   :  { %v12522_v38 = vadd.f32 %v3244_v50, %v2860_v26  ;;  %v9688_v50 = vld [vmem:[%s17821_s0 + $0xb2] sm:$0xff] }
 0x25b   :  { %v2864_v25 = vpop.f32.mrf.mxu0  ;;  %v3246_v55 = vpop.f32.mrf.mxu1  ;;  %10013 = vmatmul.mubr.f32.gmra.mxu0 %v9684_v46 }
 0x25c   :  { %v2865_v13 = vadd.f32 %v2864_v25, %v11680_v37  ;;  %10015 = vmatprep.mubr.f32.mxu0 %v9685_v36  ;;  %v9689_v55 = vld [vmem:[%s17821_s0 + $0xc2] sm:$0xff] }
 0x25d   :  { %v2866_v5 = vpop.f32.mrf.mxu0  ;;  %v3249_v18 = vpop.f32.mrf.mxu1 }
 0x25e   :  { %v12531_v26 = vadd.f32 %v3249_v18, %v2865_v13  ;;  %v6412_v5 = vld [vmem:[#allocation5 + $0x58] sm:$0xff] }
 0x25f   :  { %v2869_v46 = vpop.f32.mrf.mxu0  ;;  %v3251_v63 = vpop.f32.mrf.mxu1  ;;  %10016 = vmatmul.mubr.f32.gmra.mxu0 %v9686_v43  ;;  %6561 = vmatpush1.msra.mxu1 %v6412_v5 }
 0x260   :  { %v2870_v37 = vadd.f32 %v2869_v46, %v11695_v8  ;;  %10018 = vmatprep.mubr.f32.mxu0 %v9687_v49  ;;  %v9690_v8 = vld [vmem:[%s17821_s0 + $0xca] sm:$0xff]  ;;  %v9691_v46 = vld [vmem:[%s17821_s0 + $0xda] sm:$0xff] }
 0x261   :  { %v2871_v36 = vpop.f32.mrf.mxu0  ;;  %v3254_v25 = vpop.f32.mrf.mxu1 }
 0x262   :  { %v12541_v13 = vadd.f32 %v3254_v25, %v2870_v37  ;;  %v12552_v37 = vld [vmem:[#allocation3] sm:$0xff] }
 0x263   :  { %v2874_v58 = vpop.f32.mrf.mxu0  ;;  %v3256_v57 = vpop.f32.mrf.mxu1  ;;  %10019 = vmatmul.mubr.f32.gmra.mxu0 %v9688_v50  ;;  %6562 = vmatprep.subr.mxu1 %v12552_v37  ;;  %v9692_v25 = vld [vmem:[%s17821_s0 + $0xe2] sm:$0xff] }
 0x264   :  { %v2875_v43 = vadd.f32 %v2874_v58, %v11707_v20  ;;  %10021 = vmatprep.mubr.f32.mxu0 %v9689_v55  ;;  %v9693_v57 = vld [vmem:[%s17821_s0 + $0xf2] sm:$0xff] }
 0x265   :  { %v2876_v18 = vpop.f32.mrf.mxu0  ;;  %v3259_v49 = vpop.f32.mrf.mxu1 }
 0x266   :  { %v12550_v63 = vadd.f32 %v3259_v49, %v2875_v43  ;;  %v6411_v49 = vld [vmem:[#allocation5 + $0x50] sm:$0xff] }
 0x267   :  { %v2879_v20 = vpop.f32.mrf.mxu0  ;;  %v3261_v50 = vpop.f32.mrf.mxu1  ;;  %10022 = vmatmul.mubr.f32.gmra.mxu0 %v9690_v8  ;;  %6563 = vmatpush1.msra.mxu1 %v6411_v49 }
 0x268   :  { %v2880_v36 = vadd.f32 %v2879_v20, %v11719_v33  ;;  %10024 = vmatprep.mubr.f32.mxu0 %v9691_v46  ;;  %v9694_v33 = vld [vmem:[%s17821_s0 + $0xfa] sm:$0xff]  ;;  %v9695_v50 = vld [vmem:[%s17821_s0 + $0x10a] sm:$0xff]  ;;  %6564 = vmatprep.subr.mxu1 %v12552_v37 }
 0x269   :  { %v2881_v55 = vpop.f32.mrf.mxu0  ;;  %v3264_v58 = vpop.f32.mrf.mxu1 }
 0x26a   :  { %v12562_v43 = vadd.f32 %v3264_v58, %v2880_v36  ;;  %v9696_v58 = vld [vmem:[%s17821_s0 + $0x112] sm:$0xff] }
 0x26b   :  { %v2884_v5 = vpop.f32.mrf.mxu0  ;;  %v3266_v18 = vpop.f32.mrf.mxu1  ;;  %10025 = vmatmul.mubr.f32.gmra.mxu0 %v9692_v25 }
 0x26c   :  { %v2885_v8 = vadd.f32 %v2884_v5, %v11731_v48  ;;  %10027 = vmatprep.mubr.f32.mxu0 %v9693_v57  ;;  %v9697_v18 = vld [vmem:[%s17821_s0 + $0x122] sm:$0xff] }
 0x26d   :  { %v2886_v46 = vpop.f32.mrf.mxu0  ;;  %v3269_v20 = vpop.f32.mrf.mxu1 }
 0x26e   :  { %v12571_v36 = vadd.f32 %v3269_v20, %v2885_v8  ;;  %v6410_v20 = vld [vmem:[#allocation5 + $0x48] sm:$0xff] }
 0x26f   :  { %v2889_v25 = vpop.f32.mrf.mxu0  ;;  %v3271_v55 = vpop.f32.mrf.mxu1  ;;  %10028 = vmatmul.mubr.f32.gmra.mxu0 %v9694_v33  ;;  %6565 = vmatpush1.msra.mxu1 %v6410_v20 }
 0x270   :  { %v2890_v48 = vadd.f32 %v2889_v25, %v11746_v1  ;;  %10030 = vmatprep.mubr.f32.mxu0 %v9695_v50  ;;  %v9698_v1 = vld [vmem:[%s17821_s0 + $0x12a] sm:$0xff]  ;;  %v9699_v55 = vld [vmem:[%s17821_s0 + $0x13a] sm:$0xff]  ;;  %6566 = vmatprep.subr.mxu1 %v12552_v37 }
 0x271   :  { %v2891_v57 = vpop.f32.mrf.mxu0  ;;  %v3274_v5 = vpop.f32.mrf.mxu1 }
 0x272   :  { %v12581_v8 = vadd.f32 %v3274_v5, %v2890_v48  ;;  %v9700_v5 = vld [vmem:[%s17821_s0 + $0x142] sm:$0xff] }
 0x273   :  { %v2894_v49 = vpop.f32.mrf.mxu0  ;;  %v3276_v46 = vpop.f32.mrf.mxu1  ;;  %10031 = vmatmul.mubr.f32.gmra.mxu0 %v9696_v58 }
 0x274   :  { %v2895_v33 = vadd.f32 %v2894_v49, %v11758_v41  ;;  %10033 = vmatprep.mubr.f32.mxu0 %v9697_v18  ;;  %v9701_v46 = vld [vmem:[%s17821_s0 + $0x152] sm:$0xff] }
 0x275   :  { %v2896_v50 = vpop.f32.mrf.mxu0  ;;  %v3279_v25 = vpop.f32.mrf.mxu1 }
 0x276   :  { %v12590_v48 = vadd.f32 %v3279_v25, %v2895_v33  ;;  %v6409_v25 = vld [vmem:[#allocation5 + $0x40] sm:$0xff] }
 0x277   :  { %v2899_v58 = vpop.f32.mrf.mxu0  ;;  %v3281_v57 = vpop.f32.mrf.mxu1  ;;  %10034 = vmatmul.mubr.f32.gmra.mxu0 %v9698_v1  ;;  %6567 = vmatpush1.msra.mxu1 %v6409_v25 }
 0x278   :  { %v2900_v41 = vadd.f32 %v2899_v58, %v11770_v29  ;;  %10036 = vmatprep.mubr.f32.mxu0 %v9699_v55  ;;  %v9702_v29 = vld [vmem:[%s17821_s0 + $0x15a] sm:$0xff]  ;;  %v9703_v57 = vld [vmem:[%s17821_s0 + $0x16a] sm:$0xff]  ;;  %6568 = vmatprep.subr.mxu1 %v12552_v37 }
 0x279   :  { %v2901_v18 = vpop.f32.mrf.mxu0  ;;  %v3284_v49 = vpop.f32.mrf.mxu1 }
 0x27a   :  { %v12600_v33 = vadd.f32 %v3284_v49, %v2900_v41  ;;  %v9704_v49 = vld [vmem:[%s17821_s0 + $0x172] sm:$0xff] }
 0x27b   :  { %v2904_v20 = vpop.f32.mrf.mxu0  ;;  %v3286_v50 = vpop.f32.mrf.mxu1  ;;  %10037 = vmatmul.mubr.f32.gmra.mxu0 %v9700_v5 }
 0x27c   :  { %v2905_v1 = vadd.f32 %v2904_v20, %v11782_v44  ;;  %10039 = vmatprep.mubr.f32.mxu0 %v9701_v46  ;;  %v9705_v50 = vld [vmem:[%s17821_s0 + $0x182] sm:$0xff] }
 0x27d   :  { %v2906_v55 = vpop.f32.mrf.mxu0  ;;  %v3289_v58 = vpop.f32.mrf.mxu1 }
 0x27e   :  { %v12609_v41 = vadd.f32 %v3289_v58, %v2905_v1  ;;  %v6408_v58 = vld [vmem:[#allocation5 + $0x38] sm:$0xff] }
 0x27f   :  { %v2909_v5 = vpop.f32.mrf.mxu0  ;;  %v3291_v18 = vpop.f32.mrf.mxu1  ;;  %10040 = vmatmul.mubr.f32.gmra.mxu0 %v9702_v29  ;;  %6569 = vmatpush1.msra.mxu1 %v6408_v58 }
 0x280   :  { %v2910_v44 = vadd.f32 %v2909_v5, %v11797_v60  ;;  %10042 = vmatprep.mubr.f32.mxu0 %v9703_v57  ;;  %v9706_v60 = vld [vmem:[%s17821_s0 + $0x18a] sm:$0xff]  ;;  %v9707_v18 = vld [vmem:[%s17821_s0 + $0x19a] sm:$0xff]  ;;  %6570 = vmatprep.subr.mxu1 %v12552_v37 }
 0x281   :  { %v2911_v46 = vpop.f32.mrf.mxu0  ;;  %v3294_v20 = vpop.f32.mrf.mxu1 }
 0x282   :  { %v12619_v1 = vadd.f32 %v3294_v20, %v2910_v44  ;;  %v9708_v20 = vld [vmem:[%s17821_s0 + $0x1a2] sm:$0xff] }
 0x283   :  { %v2914_v25 = vpop.f32.mrf.mxu0  ;;  %v3296_v55 = vpop.f32.mrf.mxu1  ;;  %10043 = vmatmul.mubr.f32.gmra.mxu0 %v9704_v49 }
 0x284   :  { %v2915_v29 = vadd.f32 %v2914_v25, %v11809_v12  ;;  %10045 = vmatprep.mubr.f32.mxu0 %v9705_v50  ;;  %v9709_v55 = vld [vmem:[%s17821_s0 + $0x1e2] sm:$0xff] }
 0x285   :  { %v2916_v57 = vpop.f32.mrf.mxu0  ;;  %v3299_v5 = vpop.f32.mrf.mxu1 }
 0x286   :  { %v12628_v44 = vadd.f32 %v3299_v5, %v2915_v29  ;;  %v6407_v5 = vld [vmem:[#allocation5 + $0x30] sm:$0xff] }
 0x287   :  { %v2919_v49 = vpop.f32.mrf.mxu0  ;;  %v3301_v46 = vpop.f32.mrf.mxu1  ;;  %10046 = vmatmul.mubr.f32.gmra.mxu0 %v9706_v60  ;;  %6571 = vmatpush1.msra.mxu1 %v6407_v5 }
 0x288   :  { %v2920_v12 = vadd.f32 %v2919_v49, %v11821_v30  ;;  %10048 = vmatprep.mubr.f32.mxu0 %v9707_v18  ;;  %v9710_v30 = vld [vmem:[%s17821_s0 + $0x1ea] sm:$0xff]  ;;  %v9711_v46 = vld [vmem:[%s17821_s0 + $0x1fa] sm:$0xff]  ;;  %6572 = vmatprep.subr.mxu1 %v12552_v37 }
 0x289   :  { %v2921_v50 = vpop.f32.mrf.mxu0  ;;  %v3304_v25 = vpop.f32.mrf.mxu1 }
 0x28a   :  { %v12638_v29 = vadd.f32 %v3304_v25, %v2920_v12  ;;  %v9712_v25 = vld [vmem:[%s17821_s0 + $0x202] sm:$0xff] }
 0x28b   :  { %v2924_v58 = vpop.f32.mrf.mxu0  ;;  %v3306_v57 = vpop.f32.mrf.mxu1  ;;  %10049 = vmatmul.mubr.f32.gmra.mxu0 %v9708_v20 }
 0x28c   :  { %v2925_v60 = vadd.f32 %v2924_v58, %v11833_v47  ;;  %10051 = vmatprep.mubr.f32.mxu0 %v9709_v55  ;;  %v9713_v57 = vld [vmem:[%s17821_s0 + $0x212] sm:$0xff] }
 0x28d   :  { %v2926_v18 = vpop.f32.mrf.mxu0  ;;  %v3309_v49 = vpop.f32.mrf.mxu1 }
 0x28e   :  { %v12647_v12 = vadd.f32 %v3309_v49, %v2925_v60 }
 0x28f   :  { %v2929_v20 = vpop.f32.mrf.mxu0  ;;  %v3311_v50 = vpop.f32.mrf.mxu1  ;;  %10052 = vmatmul.mubr.f32.gmra.mxu0 %v9710_v30 }
 0x290   :  { %v2930_v47 = vadd.f32 %v2929_v20, %v11848_v3  ;;  %10054 = vmatprep.mubr.f32.mxu0 %v9711_v46  ;;  %v9714_v3 = vld [vmem:[%s17821_s0 + $0x21a] sm:$0xff]  ;;  %v9715_v20 = vld [vmem:[%s17821_s0 + $0x22a] sm:$0xff] }
 0x291   :  { %v2931_v55 = vpop.f32.mrf.mxu0  ;;  %v3314_v58 = vpop.f32.mrf.mxu1 }
 0x292   :  { %v12657_v60 = vadd.f32 %v3314_v58, %v2930_v47  ;;  %v6406_v47 = vld [vmem:[#allocation5 + $0x28] sm:$0xff] }
 0x293   :  { %v2934_v5 = vpop.f32.mrf.mxu0  ;;  %v3316_v18 = vpop.f32.mrf.mxu1  ;;  %10055 = vmatmul.mubr.f32.gmra.mxu0 %v9712_v25  ;;  %6573 = vmatpush1.msra.mxu1 %v6406_v47  ;;  %v9716_v25 = vld [vmem:[%s17821_s0 + $0x232] sm:$0xff] }
 0x294   :  { %18002 = vst [vmem:[#allocation44_spill] sm:$0xff] %v12657_v60  ;;  %v2935_v30 = vadd.f32 %v2934_v5, %v11860_v21  ;;  %10057 = vmatprep.mubr.f32.mxu0 %v9713_v57  ;;  %6574 = vmatprep.subr.mxu1 %v12552_v37  ;;  %v9717_v18 = vld [vmem:[%s17821_s0 + $0x242] sm:$0xff] }
 0x295   :  { %v2936_v49 = vpop.f32.mrf.mxu0  ;;  %v3319_v46 = vpop.f32.mrf.mxu1 }
 0x296   :  { %v12666_v50 = vadd.f32 %v3319_v46, %v2935_v30  ;;  %v9718_v46 = vld [vmem:[%s17821_s0 + $0x24a] sm:$0xff] }
 0x297   :  { %v2939_v55 = vpop.f32.mrf.mxu0  ;;  %v3321_v58 = vpop.f32.mrf.mxu1  ;;  %10058 = vmatmul.mubr.f32.gmra.mxu0 %v9714_v3 }
 0x298   :  { %v2940_v21 = vadd.f32 %v2939_v55, %v11872_v40  ;;  %10060 = vmatprep.mubr.f32.mxu0 %v9715_v20  ;;  %v6405_v58 = vld [vmem:[#allocation5 + $0x20] sm:$0xff] }
 0x299   :  { %v2941_v57 = vpop.f32.mrf.mxu0  ;;  %v3324_v5 = vpop.f32.mrf.mxu1  ;;  %6575 = vmatpush1.msra.mxu1 %v6405_v58 }
 0x29a   :  { %v12676_v30 = vadd.f32 %v3324_v5, %v2940_v21  ;;  %6576 = vmatprep.subr.mxu1 %v12552_v37 }
 0x29b   :  { %v2944_v49 = vpop.f32.mrf.mxu0  ;;  %v3326_v3 = vpop.f32.mrf.mxu1  ;;  %10061 = vmatmul.mubr.f32.gmra.mxu0 %v9716_v25 }
 0x29c   :  { %v2945_v40 = vadd.f32 %v2944_v49, %v11884_v59  ;;  %10063 = vmatprep.mubr.f32.mxu0 %v9717_v18  ;;  %v10240_v59 = vld [vmem:[%s17821_s0 + $0x25a] sm:$0xff] }
 0x29d   :  { %v2946_v20 = vpop.f32.mrf.mxu0  ;;  %v3329_v47 = vpop.f32.mrf.mxu1 }
 0x29e   :  { %v12682_v55 = vadd.f32 %v3329_v47, %v2945_v40  ;;  %v6404_v20 = vld [vmem:[#allocation5 + $0x18] sm:$0xff] }
 0x29f   :  { %v2949_v57 = vpop.f32.mrf.mxu0  ;;  %v3331_v60 = vpop.f32.mrf.mxu1  ;;  %10064 = vmatmul.mubr.f32.gmra.mxu0 %v9718_v46  ;;  %6577 = vmatpush1.msra.mxu1 %v6404_v20 }
 0x2a0   :  { %v2950_v21 = vadd.f32 %v2949_v57, %v11904_v16  ;;  %10066 = vmatprep.mubr.f32.mxu0 %v10240_v59  ;;  %6578 = vmatprep.subr.mxu1 %v12552_v37 }
 0x2a1   :  { %v2951_v25 = vpop.f32.mrf.mxu0  ;;  %v3334_v5 = vpop.f32.mrf.mxu1 }
 0x2a2   :  { %v12689_v18 = vadd.f32 %v3334_v5, %v2950_v21 }
 0x2a3   :  { %v2954_v49 = vpop.f32.mrf.mxu0  ;;  %v3336_v3 = vpop.f32.mrf.mxu1  ;;  %10067 = vmatmul.mubr.f32.gmra.mxu0 %v12195_v11 }
 0x2a4   :  { %v2955_v60 = vadd.f32 %v2954_v49, %v11916_v35  ;;  %10069 = vmatprep.mubr.f32.mxu0 %v12210_v53 }
 0x2a5   :  { %v2956_v16 = vpop.f32.mrf.mxu0  ;;  %v3339_v40 = vpop.f32.mrf.mxu1 }
 0x2a6   :  { %v12694_v46 = vadd.f32 %v3339_v40, %v2955_v60 }
 0x2a7   :  { %v2959_v47 = vpop.f32.mrf.mxu0  ;;  %v3341_v58 = vpop.f32.mrf.mxu1  ;;  %10070 = vmatmul.mubr.f32.gmra.mxu0 %v12225_v2 }
 0x2a8   :  { %v2960_v57 = vadd.f32 %v2959_v47, %v11928_v62  ;;  %10072 = vmatprep.mubr.f32.mxu0 %v12240_v31  ;;  %v6403_v62 = vld [vmem:[#allocation5 + $0x10] sm:$0xff] }
 0x2a9   :  { %v2961_v11 = vpop.f32.mrf.mxu0  ;;  %v3344_v35 = vpop.f32.mrf.mxu1  ;;  %6579 = vmatpush1.msra.mxu1 %v6403_v62 }
 0x2aa   :  { %v12700_v21 = vadd.f32 %v3344_v35, %v2960_v57  ;;  %6580 = vmatprep.subr.mxu1 %v12552_v37 }
 0x2ab   :  { %v2964_v53 = vpop.f32.mrf.mxu0  ;;  %v3346_v59 = vpop.f32.mrf.mxu1  ;;  %10073 = vmatmul.mubr.f32.gmra.mxu0 %v12255_v45 }
 0x2ac   :  { %v2965_v25 = vadd.f32 %v2964_v53, %v11940_v19  ;;  %10075 = vmatprep.mubr.f32.mxu0 %v12270_v52 }
 0x2ad   :  { %v2966_v2 = vpop.f32.mrf.mxu0  ;;  %v3349_v5 = vpop.f32.mrf.mxu1 }
 0x2ae   :  { %v12705_v49 = vadd.f32 %v3349_v5, %v2965_v25 }
 0x2af   :  { %v2969_v31 = vpop.f32.mrf.mxu0  ;;  %v3351_v3 = vpop.f32.mrf.mxu1  ;;  %10076 = vmatmul.mubr.f32.gmra.mxu0 %v12285_v42 }
 0x2b0   :  { %v2970_v60 = vadd.f32 %v2969_v31, %v11955_v23  ;;  %10078 = vmatprep.mubr.f32.mxu0 %v12300_v34  ;;  %v6402_v23 = vld [vmem:[#allocation5 + $0x8] sm:$0xff] }
 0x2b1   :  { %v2971_v45 = vpop.f32.mrf.mxu0  ;;  %v3354_v19 = vpop.f32.mrf.mxu1  ;;  %6581 = vmatpush1.msra.mxu1 %v6402_v23 }
 0x2b2   :  { %v12711_v16 = vadd.f32 %v3354_v19, %v2970_v60  ;;  %6582 = vmatprep.subr.mxu1 %v12552_v37  ;;  %v18003_v60 = vld [vmem:[#allocation11_spill] sm:$0xff] }
 0x2b3   :  { %v2974_v52 = vpop.f32.mrf.mxu0  ;;  %v3356_v40 = vpop.f32.mrf.mxu1  ;;  %10079 = vmatmul.mubr.f32.gmra.mxu0 %v12315_v32 }
 0x2b4   :  { %v2975_v20 = vadd.f32 %v2974_v52, %v11967_v14  ;;  %10081 = vmatprep.mubr.f32.mxu0 %v12330_v56  ;;  %v6432_v52 = vld [vmem:[#allocation5 + $0xf8] sm:$0xff] }
 0x2b5   :  { %v2976_v42 = vpop.f32.mrf.mxu0  ;;  %v3359_v47 = vpop.f32.mrf.mxu1 }
 0x2b6   :  { %v12716_v58 = vadd.f32 %v3359_v47, %v2975_v20  ;;  %v18004_v42 = vld [vmem:[#allocation12_spill] sm:$0xff] }
 0x2b7   :  { %v2979_v34 = vpop.f32.mrf.mxu0  ;;  %v3361_v57 = vpop.f32.mrf.mxu1  ;;  %10082 = vmatmul.mubr.f32.gmra.mxu0 %v12345_v10 }
 0x2b8   :  { %v2980_v11 = vadd.f32 %v2979_v34, %v11979_v24  ;;  %10084 = vmatprep.mubr.f32.mxu0 %v12360_v39  ;;  %v6401_v24 = vld [vmem:[#allocation5] sm:$0xff] }
 0x2b9   :  { %v2981_v32 = vpop.f32.mrf.mxu0  ;;  %v3364_v14 = vpop.f32.mrf.mxu1  ;;  %6583 = vmatpush1.msra.mxu1 %v6401_v24  ;;  %v18006_v24 = vld [vmem:[#allocation14_spill] sm:$0xff] }
 0x2ba   :  { %v12722_v35 = vadd.f32 %v3364_v14, %v2980_v11  ;;  %6584 = vmatprep.subr.mxu1 %v12552_v37  ;;  %v18005_v32 = vld [vmem:[#allocation13_spill] sm:$0xff] }
 0x2bb   :  { %v2984_v56 = vpop.f32.mrf.mxu0  ;;  %v3366_v53 = vpop.f32.mrf.mxu1  ;;  %10085 = vmatmul.mubr.f32.gmra.mxu0 %v12375_v17  ;;  %6585 = vmatpush2.msra.mxu1 %v6432_v52 }
 0x2bc   :  { %v2985_v59 = vadd.f32 %v2984_v56, %v11991_v6  ;;  %10087 = vmatprep.mubr.f32.mxu0 %v12390_v22  ;;  %6586 = vmatprep.subr.mxu1 %v12552_v37 }
 0x2bd   :  { %v2986_v10 = vpop.f32.mrf.mxu0  ;;  %v3369_v25 = vpop.f32.mrf.mxu1 }
 0x2be   :  { %v12727_v2 = vadd.f32 %v3369_v25, %v2985_v59  ;;  %v6431_v59 = vld [vmem:[#allocation5 + $0xf0] sm:$0xff] }
 0x2bf   :  { %v2989_v39 = vpop.f32.mrf.mxu0  ;;  %v3371_v5 = vpop.f32.mrf.mxu1  ;;  %10088 = vmatmul.mubr.f32.gmra.mxu0 %v12405_v4  ;;  %6587 = vmatpush2.msra.mxu1 %v6431_v59  ;;  %v6429_v59 = vld [vmem:[#allocation5 + $0xe0] sm:$0xff] }
 0x2c0   :  { %v2990_v62 = vadd.f32 %v2989_v39, %v12006_v54  ;;  %10090 = vmatprep.mubr.f32.mxu0 %v12420_v7  ;;  %v9739_v54 = vld [vmem:[%s17821_s0 + $0x34a] sm:$0xff]  ;;  %6588 = vmatprep.subr.mxu1 %v12552_v37 }
 0x2c1   :  { %v2991_v17 = vpop.f32.mrf.mxu0  ;;  %v3374_v6 = vpop.f32.mrf.mxu1 }
 0x2c2   :  { %v12733_v31 = vadd.f32 %v3374_v6, %v2990_v62 }
 0x2c3   :  { %v2994_v22 = vpop.f32.mrf.mxu0  ;;  %v3376_v3 = vpop.f32.mrf.mxu1  ;;  %10091 = vmatmul.mubr.f32.gmra.mxu0 %v12435_v51 }
 0x2c4   :  { %v2995_v45 = vadd.f32 %v2994_v22, %v18003_v60  ;;  %10093 = vmatprep.mubr.f32.mxu0 %v12450_v0  ;;  %v9740_v0 = vld [vmem:[%s17821_s0 + $0x352] sm:$0xff]  ;;  %v18007_v3 = vld [vmem:[#allocation15_spill] sm:$0xff] }
 0x2c5   :  { %v2996_v4 = vpop.f32.mrf.mxu0  ;;  %v3379_v19 = vpop.f32.mrf.mxu1 }
 0x2c6   :  { %v12741_v7 = vadd.f32 %v3379_v19, %v2995_v45 }
 0x2c7   :  { %v2999_v40 = vpop.f32.mrf.mxu0  ;;  %v3381_v20 = vpop.f32.mrf.mxu1  ;;  %10094 = vmatmul.mubr.f32.gmra.mxu0 %v12465_v9 }
 0x2c8   :  { %v3000_v51 = vadd.f32 %v2999_v40, %v18004_v42  ;;  %10096 = vmatprep.mubr.f32.mxu0 %v9739_v54  ;;  %v6430_v54 = vld [vmem:[#allocation5 + $0xe8] sm:$0xff] }
 0x2c9   :  { %v3001_v47 = vpop.f32.mrf.mxu0  ;;  %v3384_v23 = vpop.f32.mrf.mxu1  ;;  %6589 = vmatpush2.msra.mxu1 %v6430_v54  ;;  %v18008_v20 = vld [vmem:[#allocation16_spill] sm:$0xff] }
 0x2ca   :  { %v12749_v34 = vadd.f32 %v3384_v23, %v3000_v51  ;;  %6590 = vmatprep.subr.mxu1 %v12552_v37 }
 0x2cb   :  { %v3004_v57 = vpop.f32.mrf.mxu0  ;;  %v3386_v11 = vpop.f32.mrf.mxu1  ;;  %10097 = vmatmul.mubr.f32.gmra.mxu0 %v9740_v0  ;;  %6591 = vmatpush2.msra.mxu1 %v6429_v59 }
 0x2cc   :  { %v3005_v14 = vadd.f32 %v3004_v57, %v18005_v32  ;;  %v18009_v11 = vld [vmem:[#allocation17_spill] sm:$0xff]  ;;  %6592 = vmatprep.subr.mxu1 %v12552_v37 }
 0x2cd   :  { %v3006_v9 = vpop.f32.mrf.mxu0  ;;  %v3389_v56 = vpop.f32.mrf.mxu1 }
 0x2ce   :  { %v12752_v53 = vadd.f32 %v3389_v56, %v3005_v14 }
 0x2cf   :  { %v3009_v10 = vpop.f32.mrf.mxu0  ;;  %v3391_v25 = vpop.f32.mrf.mxu1 }
 0x2d0   :  { %v3010_v39 = vadd.f32 %v3009_v10, %v18006_v24  ;;  %v18010_v24 = vld [vmem:[#allocation18_spill] sm:$0xff] }
 0x2d1   :  { %v3011_v5 = vpop.f32.mrf.mxu0  ;;  %v3394_v62 = vpop.f32.mrf.mxu1 }
 0x2d2   :  { %v12756_v17 = vadd.f32 %v3394_v62, %v3010_v39 }
 0x2d3   :  { %v3014_v6 = vpop.f32.mrf.mxu0  ;;  %v3396_v22 = vpop.f32.mrf.mxu1 }
 0x2d4   :  { %v3015_v60 = vadd.f32 %v3014_v6, %v18007_v3 }
 0x2d5   :  { %v3016_v45 = vpop.f32.mrf.mxu0  ;;  %v3399_v4 = vpop.f32.mrf.mxu1 }
 0x2d6   :  { %v12759_v19 = vadd.f32 %v3399_v4, %v3015_v60  ;;  %v18011_v60 = vld [vmem:[#allocation19_spill] sm:$0xff] }
 0x2d7   :  { %v3019_v52 = vpop.f32.mrf.mxu0  ;;  %v3401_v40 = vpop.f32.mrf.mxu1 }
 0x2d8   :  { %v3020_v42 = vadd.f32 %v3019_v52, %v18008_v20  ;;  %v6428_v40 = vld [vmem:[#allocation5 + $0xd8] sm:$0xff] }
 0x2d9   :  { %v3021_v51 = vpop.f32.mrf.mxu0  ;;  %v3404_v0 = vpop.f32.mrf.mxu1  ;;  %6593 = vmatpush2.msra.mxu1 %v6428_v40 }
 0x2da   :  { %v12763_v47 = vadd.f32 %v3404_v0, %v3020_v42  ;;  %v18012_v51 = vld [vmem:[#allocation20_spill] sm:$0xff]  ;;  %6594 = vmatprep.subr.mxu1 %v12552_v37 }
 0x2db   :  { %v3024_v23 = vpop.f32.mrf.mxu0  ;;  %v3406_v57 = vpop.f32.mrf.mxu1 }
 0x2dc   :  { %v3025_v32 = vadd.f32 %v3024_v23, %v18009_v11 }
 0x2dd   :  { %v3026_v14 = vpop.f32.mrf.mxu0  ;;  %v3409_v9 = vpop.f32.mrf.mxu1 }
 0x2de   :  { %v12766_v56 = vadd.f32 %v3409_v9, %v3025_v32  ;;  %v18013_v9 = vld [vmem:[#allocation21_spill] sm:$0xff] }
 0x2df   :  { %v3029_v10 = vpop.f32.mrf.mxu0  ;;  %v3411_v25 = vpop.f32.mrf.mxu1 }
 0x2e0   :  { %v3030_v39 = vadd.f32 %v3029_v10, %v18010_v24 }
 0x2e1   :  { %v3031_v5 = vpop.f32.mrf.mxu0  ;;  %v3414_v62 = vpop.f32.mrf.mxu1 }
 0x2e2   :  { %v12770_v6 = vadd.f32 %v3414_v62, %v3030_v39  ;;  %v6427_v39 = vld [vmem:[#allocation5 + $0xd0] sm:$0xff] }
 0x2e3   :  { %v3034_v22 = vpop.f32.mrf.mxu0  ;;  %v3416_v3 = vpop.f32.mrf.mxu1  ;;  %6595 = vmatpush2.msra.mxu1 %v6427_v39 }
 0x2e4   :  { %v3035_v45 = vadd.f32 %v3034_v22, %v18011_v60  ;;  %v18014_v22 = vld [vmem:[#allocation22_spill] sm:$0xff]  ;;  %6596 = vmatprep.subr.mxu1 %v12552_v37 }
 0x2e5   :  { %v3036_v4 = vpop.f32.mrf.mxu0  ;;  %v3419_v54 = vpop.f32.mrf.mxu1 }
 0x2e6   :  { %v12773_v52 = vadd.f32 %v3419_v54, %v3035_v45 }
 0x2e7   :  { %v3039_v20 = vpop.f32.mrf.mxu0  ;;  %v3421_v42 = vpop.f32.mrf.mxu1 }
 0x2e8   :  { %v3040_v0 = vadd.f32 %v3039_v20, %v18012_v51  ;;  %v18016_v20 = vld [vmem:[#allocation23_spill] sm:$0xff] }
 0x2e9   :  { %v3041_v23 = vpop.f32.mrf.mxu0  ;;  %v3424_v57 = vpop.f32.mrf.mxu1 }
 0x2ea   :  { %v12777_v11 = vadd.f32 %v3424_v57, %v3040_v0  ;;  %v6426_v57 = vld [vmem:[#allocation5 + $0xc8] sm:$0xff] }
 0x2eb   :  { %v3044_v32 = vpop.f32.mrf.mxu0  ;;  %v3426_v14 = vpop.f32.mrf.mxu1  ;;  %6597 = vmatpush2.msra.mxu1 %v6426_v57 }
 0x2ec   :  { %v3045_v59 = vadd.f32 %v3044_v32, %v18013_v9  ;;  %v18017_v9 = vld [vmem:[#allocation24_spill] sm:$0xff]  ;;  %6598 = vmatprep.subr.mxu1 %v12552_v37 }
 0x2ed   :  { %v3046_v10 = vpop.f32.mrf.mxu0  ;;  %v3429_v25 = vpop.f32.mrf.mxu1 }
 0x2ee   :  { %v12780_v24 = vadd.f32 %v3429_v25, %v3045_v59 }
 0x2ef   :  { %v3049_v5 = vpop.f32.mrf.mxu0  ;;  %v3431_v62 = vpop.f32.mrf.mxu1 }
 0x2f0   :  { %v3050_v3 = vadd.f32 %v3049_v5, %v18014_v22  ;;  %v18019_v22 = vld [vmem:[#allocation25_spill] sm:$0xff] }
 0x2f1   :  { %v3051_v60 = vpop.f32.mrf.mxu0  ;;  %v3434_v45 = vpop.f32.mrf.mxu1 }
 0x2f2   :  { %v12784_v4 = vadd.f32 %v3434_v45, %v3050_v3 }
 0x2f3   :  { %v3054_v54 = vpop.f32.mrf.mxu0  ;;  %v3436_v40 = vpop.f32.mrf.mxu1 }
 0x2f4   :  { %18015 = vst [vmem:[#allocation11_spill] sm:$0xff] %v12784_v4  ;;  %v3055_v42 = vadd.f32 %v3054_v54, %v18016_v20  ;;  %v6425_v40 = vld [vmem:[#allocation5 + $0xc0] sm:$0xff] }
 0x2f5   :  { %v3056_v51 = vpop.f32.mrf.mxu0  ;;  %v3439_v0 = vpop.f32.mrf.mxu1  ;;  %6599 = vmatpush2.msra.mxu1 %v6425_v40  ;;  %v18025_v40 = vld [vmem:[#allocation28_spill] sm:$0xff] }
 0x2f6   :  { %v12787_v23 = vadd.f32 %v3439_v0, %v3055_v42  ;;  %v18021_v51 = vld [vmem:[#allocation26_spill] sm:$0xff]  ;;  %6600 = vmatprep.subr.mxu1 %v12552_v37 }
 0x2f7   :  { %v3059_v32 = vpop.f32.mrf.mxu0  ;;  %v3441_v14 = vpop.f32.mrf.mxu1 }
 0x2f8   :  { %v3060_v59 = vadd.f32 %v3059_v32, %v18017_v9 }
 0x2f9   :  { %v3061_v10 = vpop.f32.mrf.mxu0  ;;  %v3444_v25 = vpop.f32.mrf.mxu1 }
 0x2fa   :  { %v12791_v39 = vadd.f32 %v3444_v25, %v3060_v59  ;;  %v18023_v10 = vld [vmem:[#allocation27_spill] sm:$0xff] }
 0x2fb   :  { %v3064_v5 = vpop.f32.mrf.mxu0  ;;  %v3446_v62 = vpop.f32.mrf.mxu1 }
 0x2fc   :  { %18018 = vst [vmem:[#allocation12_spill] sm:$0xff] %v12791_v39  ;;  %v3065_v3 = vadd.f32 %v3064_v5, %v18019_v22 }
 0x2fd   :  { %v3066_v60 = vpop.f32.mrf.mxu0  ;;  %v3449_v45 = vpop.f32.mrf.mxu1 }
 0x2fe   :  { %v12794_v54 = vadd.f32 %v3449_v45, %v3065_v3  ;;  %v6424_v3 = vld [vmem:[#allocation5 + $0xb8] sm:$0xff] }
 0x2ff   :  { %v3069_v20 = vpop.f32.mrf.mxu0  ;;  %v3451_v42 = vpop.f32.mrf.mxu1  ;;  %6601 = vmatpush2.msra.mxu1 %v6424_v3  ;;  %v6423_v3 = vld [vmem:[#allocation5 + $0xb0] sm:$0xff] }
 0x300   :  { %18020 = vst [vmem:[#allocation13_spill] sm:$0xff] %v12794_v54  ;;  %v3070_v0 = vadd.f32 %v3069_v20, %v18021_v51  ;;  %6602 = vmatprep.subr.mxu1 %v12552_v37  ;;  %v18041_v54 = vld [vmem:[#allocation37_spill] sm:$0xff] }
 0x301   :  { %v3071_v57 = vpop.f32.mrf.mxu0  ;;  %v3454_v32 = vpop.f32.mrf.mxu1  ;;  %6603 = vmatpush2.msra.mxu1 %v6423_v3 }
 0x302   :  { %v12798_v14 = vadd.f32 %v3454_v32, %v3070_v0  ;;  %v6448_v57 = vld [vmem:[#allocation5 + $0x178] sm:$0xff]  ;;  %6604 = vmatprep.subr.mxu1 %v12552_v37 }
 0x303   :  { %v3074_v9 = vpop.f32.mrf.mxu0  ;;  %v3456_v59 = vpop.f32.mrf.mxu1  ;;  %6938 = vmatpush1.msra.mxu0 %v6448_v57 }
 0x304   :  { %18022 = vst [vmem:[#allocation14_spill] sm:$0xff] %v12798_v14  ;;  %v3075_v25 = vadd.f32 %v3074_v9, %v18023_v10  ;;  %v18027_v9 = vld [vmem:[#allocation29_spill] sm:$0xff]  ;;  %6939 = vmatprep.subr.mxu0 %v12552_v37 }
 0x305   :  { %v3076_v5 = vpop.f32.mrf.mxu0  ;;  %v3459_v62 = vpop.f32.mrf.mxu1 }
 0x306   :  { %v12801_v22 = vadd.f32 %v3459_v62, %v3075_v25 }
 0x307   :  { %v3079_v60 = vpop.f32.mrf.mxu0  ;;  %v3461_v45 = vpop.f32.mrf.mxu1 }
 0x308   :  { %18024 = vst [vmem:[#allocation15_spill] sm:$0xff] %v12801_v22  ;;  %v3080_v20 = vadd.f32 %v3079_v60, %v18025_v40 }
 0x309   :  { %v3081_v42 = vpop.f32.mrf.mxu0  ;;  %v3464_v51 = vpop.f32.mrf.mxu1 }
 0x30a   :  { %v12805_v0 = vadd.f32 %v3464_v51, %v3080_v20  ;;  %v18029_v20 = vld [vmem:[#allocation31_spill] sm:$0xff]  ;;  %v18031_v51 = vld [vmem:[#allocation30_spill] sm:$0xff] }
 0x30b   :  { %v3084_v32 = vpop.f32.mrf.mxu0  ;;  %v3466_v59 = vpop.f32.mrf.mxu1 }
 0x30c   :  { %18026 = vst [vmem:[#allocation16_spill] sm:$0xff] %v12805_v0  ;;  %v3085_v10 = vadd.f32 %v3084_v32, %v18027_v9 }
 0x30d   :  { %v3086_v25 = vpop.f32.mrf.mxu0  ;;  %v3469_v5 = vpop.f32.mrf.mxu1 }
 0x30e   :  { %v12809_v62 = vadd.f32 %v3469_v5, %v3085_v10  ;;  %v18033_v5 = vld [vmem:[#allocation33_spill] sm:$0xff] }
 0x30f   :  { %v10005_v60 = vpop.f32.mrf.mxu0  ;;  %v3471_v45 = vpop.f32.mrf.mxu1 }
 0x310   :  { %18028 = vst [vmem:[#allocation17_spill] sm:$0xff] %v12809_v62  ;;  %v12813_v42 = vadd.f32 %v10005_v60, %v18029_v20  ;;  %v18035_v45 = vld [vmem:[#allocation32_spill] sm:$0xff]  ;;  %v18037_v62 = vld [vmem:[#allocation35_spill] sm:$0xff] }
 0x311   :  { %v3539_v40 = vpop.f32.mrf.mxu0 }
 0x312   :  { %18030 = vst [vmem:[#allocation18_spill] sm:$0xff] %v12813_v42  ;;  %v12816_v57 = vadd.f32 %v3539_v40, %v18031_v51  ;;  %v3928_v10 = vmul.f32 %v12813_v42, %v12813_v42 }
 0x313   :  { %v10008_v32 = vpop.f32.mrf.mxu0 }
 0x314   :  { %18032 = vst [vmem:[#allocation19_spill] sm:$0xff] %v12816_v57  ;;  %v3927_v59 = vmul.f32 %v12816_v57, %v12816_v57  ;;  %v3858_v25 = vadd.f32 %v12813_v42, %v12816_v57  ;;  %v12825_v3 = vadd.f32 %v10008_v32, %v18033_v5  ;;  %v18039_v57 = vld [vmem:[#allocation34_spill] sm:$0xff] }
 0x315   :  { %v3549_v9 = vpop.f32.mrf.mxu0 }
 0x316   :  { %18034 = vst [vmem:[#allocation20_spill] sm:$0xff] %v12825_v3  ;;  %v12828_v60 = vadd.f32 %v3549_v9, %v18035_v45  ;;  %v3991_v40 = vadd.f32 %v3928_v10, %v3927_v59  ;;  %v3930_v42 = vmul.f32 %v12825_v3, %v12825_v3 }
 0x317   :  { %v10011_v20 = vpop.f32.mrf.mxu0 }
 0x318   :  { %18036 = vst [vmem:[#allocation21_spill] sm:$0xff] %v12828_v60  ;;  %v3859_v51 = vadd.f32 %v3858_v25, %v12828_v60  ;;  %v3929_v0 = vmul.f32 %v12828_v60, %v12828_v60  ;;  %v12834_v14 = vadd.f32 %v10011_v20, %v18037_v62  ;;  %v6447_v60 = vld [vmem:[#allocation5 + $0x170] sm:$0xff] }
 0x319   :  { %v3559_v22 = vpop.f32.mrf.mxu0  ;;  %6940 = vmatpush1.msra.mxu0 %v6447_v60 }
 0x31a   :  { %18038 = vst [vmem:[#allocation22_spill] sm:$0xff] %v12834_v14  ;;  %v3860_v32 = vadd.f32 %v3859_v51, %v12825_v3  ;;  %v3992_v5 = vadd.f32 %v3991_v40, %v3929_v0  ;;  %v12840_v9 = vadd.f32 %v3559_v22, %v18039_v57  ;;  %v3932_v62 = vmul.f32 %v12834_v14, %v12834_v14  ;;  %v18043_v0 = vld [vmem:[#allocation36_spill] sm:$0xff] }
 0x31b   :  { %v10014_v45 = vpop.f32.mrf.mxu0  ;;  %6941 = vmatprep.subr.mxu0 %v12552_v37 }
 0x31c   :  { %18040 = vst [vmem:[#allocation23_spill] sm:$0xff] %v12840_v9  ;;  %v3993_v59 = vadd.f32 %v3992_v5, %v3930_v42  ;;  %v3861_v10 = vadd.f32 %v3860_v32, %v12840_v9  ;;  %v3931_v25 = vmul.f32 %v12840_v9, %v12840_v9  ;;  %v12848_v4 = vadd.f32 %v10014_v45, %v18041_v54  ;;  %v18045_v5 = vld [vmem:[#allocation39_spill] sm:$0xff] }
 0x31d   :  { %v3569_v20 = vpop.f32.mrf.mxu0 }
 0x31e   :  { %v3994_v39 = vadd.f32 %v3993_v59, %v3931_v25  ;;  %18042 = vst [vmem:[#allocation24_spill] sm:$0xff] %v12848_v4  ;;  %v12851_v40 = vadd.f32 %v3569_v20, %v18043_v0  ;;  %v3862_v22 = vadd.f32 %v3861_v10, %v12834_v14  ;;  %v3934_v45 = vmul.f32 %v12848_v4, %v12848_v4  ;;  %v18046_v20 = vld [vmem:[#allocation38_spill] sm:$0xff]  ;;  %v18048_v14 = vld [vmem:[#allocation41_spill] sm:$0xff] }
 0x31f   :  { %v10017_v42 = vpop.f32.mrf.mxu0 }
 0x320   :  { %18044 = vst [vmem:[#allocation25_spill] sm:$0xff] %v12851_v40  ;;  %v3863_v57 = vadd.f32 %v3862_v22, %v12851_v40  ;;  %v3933_v51 = vmul.f32 %v12851_v40, %v12851_v40  ;;  %v3995_v32 = vadd.f32 %v3994_v39, %v3932_v62  ;;  %v12859_v59 = vadd.f32 %v10017_v42, %v18045_v5 }
 0x321   :  { %v3579_v54 = vpop.f32.mrf.mxu0 }
 0x322   :  { %v3996_v25 = vadd.f32 %v3995_v32, %v3933_v51  ;;  %v12864_v10 = vadd.f32 %v3579_v54, %v18046_v20  ;;  %v3864_v60 = vadd.f32 %v3863_v57, %v12848_v4  ;;  %v3936_v62 = vmul.f32 %v12859_v59, %v12859_v59  ;;  %v18049_v51 = vld [vmem:[#allocation40_spill] sm:$0xff] }
 0x323   :  { %v10020_v0 = vpop.f32.mrf.mxu0 }
 0x324   :  { %18047 = vst [vmem:[#allocation26_spill] sm:$0xff] %v12864_v10  ;;  %v3865_v22 = vadd.f32 %v3864_v60, %v12864_v10  ;;  %v3935_v40 = vmul.f32 %v12864_v10, %v12864_v10  ;;  %v3997_v39 = vadd.f32 %v3996_v25, %v3934_v45  ;;  %v12873_v9 = vadd.f32 %v10020_v0, %v18048_v14  ;;  %v18051_v25 = vld [vmem:[#allocation43_spill] sm:$0xff]  ;;  %v18052_v0 = vld [vmem:[#allocation42_spill] sm:$0xff] }
 0x325   :  { %v3589_v42 = vpop.f32.mrf.mxu0 }
 0x326   :  { %v3998_v5 = vadd.f32 %v3997_v39, %v3935_v40  ;;  %v12876_v32 = vadd.f32 %v3589_v42, %v18049_v51  ;;  %v3866_v57 = vadd.f32 %v3865_v22, %v12859_v59  ;;  %v3938_v14 = vmul.f32 %v12873_v9, %v12873_v9 }
 0x327   :  { %v10023_v54 = vpop.f32.mrf.mxu0 }
 0x328   :  { %18050 = vst [vmem:[#allocation27_spill] sm:$0xff] %v12876_v32  ;;  %v3867_v20 = vadd.f32 %v3866_v57, %v12876_v32  ;;  %v3937_v60 = vmul.f32 %v12876_v32, %v12876_v32  ;;  %v3999_v45 = vadd.f32 %v3998_v5, %v3936_v62  ;;  %v12883_v10 = vadd.f32 %v10023_v54, %v18051_v25 }
 0x329   :  { %v3599_v4 = vpop.f32.mrf.mxu0 }
 0x32a   :  { %v4000_v40 = vadd.f32 %v3999_v45, %v3937_v60  ;;  %v12888_v39 = vadd.f32 %v3599_v4, %v18052_v0  ;;  %v3868_v22 = vadd.f32 %v3867_v20, %v12873_v9  ;;  %v3940_v5 = vmul.f32 %v12883_v10, %v12883_v10 }
 0x32b   :  { %v10026_v42 = vpop.f32.mrf.mxu0 }
 0x32c   :  { %v3869_v51 = vadd.f32 %v3868_v22, %v12888_v39  ;;  %v3939_v57 = vmul.f32 %v12888_v39, %v12888_v39  ;;  %v4001_v62 = vadd.f32 %v4000_v40, %v3938_v14  ;;  %v12897_v32 = vadd.f32 %v10026_v42, %v12493_v28 }
 0x32d   :  { %v3609_v54 = vpop.f32.mrf.mxu0 }
 0x32e   :  { %v4002_v25 = vadd.f32 %v4001_v62, %v3939_v57  ;;  %v12900_v4 = vadd.f32 %v3609_v54, %v12481_v27  ;;  %v3870_v20 = vadd.f32 %v3869_v51, %v12883_v10  ;;  %v3942_v28 = vmul.f32 %v12897_v32, %v12897_v32 }
 0x32f   :  { %v10029_v60 = vpop.f32.mrf.mxu0 }
 0x330   :  { %v3871_v45 = vadd.f32 %v3870_v20, %v12900_v4  ;;  %v3941_v0 = vmul.f32 %v12900_v4, %v12900_v4  ;;  %v4003_v14 = vadd.f32 %v4002_v25, %v3940_v5  ;;  %v12907_v40 = vadd.f32 %v10029_v60, %v12512_v61 }
 0x331   :  { %v3619_v22 = vpop.f32.mrf.mxu0 }
 0x332   :  { %v4004_v42 = vadd.f32 %v4003_v14, %v3941_v0  ;;  %v12912_v27 = vadd.f32 %v3619_v22, %v12503_v15  ;;  %v3872_v51 = vadd.f32 %v3871_v45, %v12897_v32  ;;  %v3944_v61 = vmul.f32 %v12907_v40, %v12907_v40 }
 0x333   :  { %v10032_v57 = vpop.f32.mrf.mxu0 }
 0x334   :  { %v3873_v62 = vadd.f32 %v3872_v51, %v12912_v27  ;;  %v3943_v54 = vmul.f32 %v12912_v27, %v12912_v27  ;;  %v4005_v5 = vadd.f32 %v4004_v42, %v3942_v28  ;;  %v12921_v60 = vadd.f32 %v10032_v57, %v12531_v26 }
 0x335   :  { %v3629_v25 = vpop.f32.mrf.mxu0 }
 0x336   :  { %v4006_v20 = vadd.f32 %v4005_v5, %v3943_v54  ;;  %v12924_v15 = vadd.f32 %v3629_v25, %v12522_v38  ;;  %v3874_v45 = vadd.f32 %v3873_v62, %v12907_v40  ;;  %v3946_v26 = vmul.f32 %v12921_v60, %v12921_v60  ;;  %v6446_v54 = vld [vmem:[#allocation5 + $0x168] sm:$0xff] }
 0x337   :  { %v10035_v0 = vpop.f32.mrf.mxu0  ;;  %6942 = vmatpush1.msra.mxu0 %v6446_v54 }
 0x338   :  { %v3875_v14 = vadd.f32 %v3874_v45, %v12924_v15  ;;  %v3945_v22 = vmul.f32 %v12924_v15, %v12924_v15  ;;  %v4007_v28 = vadd.f32 %v4006_v20, %v3944_v61  ;;  %v12931_v42 = vadd.f32 %v10035_v0, %v12550_v63  ;;  %6943 = vmatprep.subr.mxu0 %v12552_v37 }
 0x339   :  { %v3639_v51 = vpop.f32.mrf.mxu0 }
 0x33a   :  { %v4008_v57 = vadd.f32 %v4007_v28, %v3945_v22  ;;  %v12936_v38 = vadd.f32 %v3639_v51, %v12541_v13  ;;  %v3876_v62 = vadd.f32 %v3875_v14, %v12921_v60  ;;  %v3948_v20 = vmul.f32 %v12931_v42, %v12931_v42 }
 0x33b   :  { %v10038_v5 = vpop.f32.mrf.mxu0 }
 0x33c   :  { %v3877_v25 = vadd.f32 %v3876_v62, %v12936_v38  ;;  %v3947_v61 = vmul.f32 %v12936_v38, %v12936_v38  ;;  %v4009_v63 = vadd.f32 %v4008_v57, %v3946_v26  ;;  %v12946_v13 = vadd.f32 %v10038_v5, %v12571_v36 }
 0x33d   :  { %v3649_v45 = vpop.f32.mrf.mxu0 }
 0x33e   :  { %v4010_v0 = vadd.f32 %v4009_v63, %v3947_v61  ;;  %v12949_v14 = vadd.f32 %v3649_v45, %v12562_v43  ;;  %v3878_v22 = vadd.f32 %v3877_v25, %v12931_v42  ;;  %v3950_v36 = vmul.f32 %v12946_v13, %v12946_v13 }
 0x33f   :  { %v10041_v28 = vpop.f32.mrf.mxu0 }
 0x340   :  { %v3879_v51 = vadd.f32 %v3878_v22, %v12949_v14  ;;  %v3949_v26 = vmul.f32 %v12949_v14, %v12949_v14  ;;  %v4011_v37 = vadd.f32 %v4010_v0, %v3948_v20  ;;  %v12956_v57 = vadd.f32 %v10041_v28, %v12590_v48 }
 0x341   :  { %v3659_v62 = vpop.f32.mrf.mxu0 }
 0x342   :  { %v4012_v54 = vadd.f32 %v4011_v37, %v3949_v26  ;;  %v12961_v43 = vadd.f32 %v3659_v62, %v12581_v8  ;;  %v3880_v5 = vadd.f32 %v3879_v51, %v12946_v13  ;;  %v3952_v48 = vmul.f32 %v12956_v57, %v12956_v57 }
 0x343   :  { %v10044_v25 = vpop.f32.mrf.mxu0 }
 0x344   :  { %v3881_v61 = vadd.f32 %v3880_v5, %v12961_v43  ;;  %v3951_v63 = vmul.f32 %v12961_v43, %v12961_v43  ;;  %v4013_v20 = vadd.f32 %v4012_v54, %v3950_v36  ;;  %v12970_v22 = vadd.f32 %v10044_v25, %v12609_v41 }
 0x345   :  { %v3669_v45 = vpop.f32.mrf.mxu0 }
 0x346   :  { %v4014_v0 = vadd.f32 %v4013_v20, %v3951_v63  ;;  %v12973_v8 = vadd.f32 %v3669_v45, %v12600_v33  ;;  %v3882_v28 = vadd.f32 %v3881_v61, %v12956_v57  ;;  %v3954_v41 = vmul.f32 %v12970_v22, %v12970_v22 }
 0x347   :  { %v10047_v51 = vpop.f32.mrf.mxu0 }
 0x348   :  { %v3883_v26 = vadd.f32 %v3882_v28, %v12973_v8  ;;  %v3953_v37 = vmul.f32 %v12973_v8, %v12973_v8  ;;  %v4015_v62 = vadd.f32 %v4014_v0, %v3952_v48  ;;  %v12980_v36 = vadd.f32 %v10047_v51, %v12628_v44 }
 0x349   :  { %v3679_v54 = vpop.f32.mrf.mxu0 }
 0x34a   :  { %v4016_v5 = vadd.f32 %v4015_v62, %v3953_v37  ;;  %v12985_v33 = vadd.f32 %v3679_v54, %v12619_v1  ;;  %v3884_v25 = vadd.f32 %v3883_v26, %v12970_v22  ;;  %v3956_v44 = vmul.f32 %v12980_v36, %v12980_v36 }
 0x34b   :  { %v10050_v61 = vpop.f32.mrf.mxu0 }
 0x34c   :  { %v3885_v63 = vadd.f32 %v3884_v25, %v12985_v33  ;;  %v3955_v20 = vmul.f32 %v12985_v33, %v12985_v33  ;;  %v4017_v48 = vadd.f32 %v4016_v5, %v3954_v41  ;;  %v12994_v28 = vadd.f32 %v10050_v61, %v12647_v12  ;;  %v18053_v61 = vld [vmem:[#allocation44_spill] sm:$0xff] }
 0x34d   :  { %v3689_v45 = vpop.f32.mrf.mxu0 }
 0x34e   :  { %v4018_v0 = vadd.f32 %v4017_v48, %v3955_v20  ;;  %v12997_v1 = vadd.f32 %v3689_v45, %v12638_v29  ;;  %v3886_v51 = vadd.f32 %v3885_v63, %v12980_v36  ;;  %v3958_v12 = vmul.f32 %v12994_v28, %v12994_v28 }
 0x34f   :  { %v10053_v26 = vpop.f32.mrf.mxu0 }
 0x350   :  { %v3887_v37 = vadd.f32 %v3886_v51, %v12997_v1  ;;  %v3957_v62 = vmul.f32 %v12997_v1, %v12997_v1  ;;  %v4019_v54 = vadd.f32 %v4018_v0, %v3956_v44  ;;  %v13004_v41 = vadd.f32 %v10053_v26, %v12666_v50 }
 0x351   :  { %v3699_v5 = vpop.f32.mrf.mxu0 }
 0x352   :  { %v4020_v25 = vadd.f32 %v4019_v54, %v3957_v62  ;;  %v13009_v29 = vadd.f32 %v3699_v5, %v18053_v61  ;;  %v3888_v63 = vadd.f32 %v3887_v37, %v12994_v28  ;;  %v3960_v50 = vmul.f32 %v13004_v41, %v13004_v41 }
 0x353   :  { %v10056_v20 = vpop.f32.mrf.mxu0 }
 0x354   :  { %v3889_v48 = vadd.f32 %v3888_v63, %v13009_v29  ;;  %v3959_v45 = vmul.f32 %v13009_v29, %v13009_v29  ;;  %v4021_v44 = vadd.f32 %v4020_v25, %v3958_v12  ;;  %v13018_v26 = vadd.f32 %v10056_v20, %v12682_v55 }
 0x355   :  { %v3709_v0 = vpop.f32.mrf.mxu0 }
 0x356   :  { %v4022_v51 = vadd.f32 %v4021_v44, %v3959_v45  ;;  %v13021_v62 = vadd.f32 %v3709_v0, %v12676_v30  ;;  %v3890_v37 = vadd.f32 %v3889_v48, %v13004_v41  ;;  %v3962_v55 = vmul.f32 %v13018_v26, %v13018_v26 }
 0x357   :  { %v10059_v54 = vpop.f32.mrf.mxu0 }
 0x358   :  { %v3891_v5 = vadd.f32 %v3890_v37, %v13021_v62  ;;  %v3961_v61 = vmul.f32 %v13021_v62, %v13021_v62  ;;  %v4023_v12 = vadd.f32 %v4022_v51, %v3960_v50  ;;  %v13028_v25 = vadd.f32 %v10059_v54, %v12694_v46 }
 0x359   :  { %v3719_v63 = vpop.f32.mrf.mxu0 }
 0x35a   :  { %v4024_v20 = vadd.f32 %v4023_v12, %v3961_v61  ;;  %v13033_v30 = vadd.f32 %v3719_v63, %v12689_v18  ;;  %v3892_v48 = vadd.f32 %v3891_v5, %v13018_v26  ;;  %v3964_v46 = vmul.f32 %v13028_v25, %v13028_v25 }
 0x35b   :  { %v10062_v45 = vpop.f32.mrf.mxu0 }
 0x35c   :  { %v3893_v44 = vadd.f32 %v3892_v48, %v13033_v30  ;;  %v3963_v0 = vmul.f32 %v13033_v30, %v13033_v30  ;;  %v4025_v50 = vadd.f32 %v4024_v20, %v3962_v55  ;;  %v13042_v54 = vadd.f32 %v10062_v45, %v12705_v49 }
 0x35d   :  { %v3729_v51 = vpop.f32.mrf.mxu0 }
 0x35e   :  { %v4026_v37 = vadd.f32 %v4025_v50, %v3963_v0  ;;  %18054 = vst [vmem:[#allocation28_spill] sm:$0xff] %v13042_v54  ;;  %v13045_v18 = vadd.f32 %v3729_v51, %v12700_v21  ;;  %v3894_v5 = vadd.f32 %v3893_v44, %v13028_v25  ;;  %v3966_v49 = vmul.f32 %v13042_v54, %v13042_v54 }
 0x35f   :  { %v10065_v61 = vpop.f32.mrf.mxu0 }
 0x360   :  { %v3895_v12 = vadd.f32 %v3894_v5, %v13045_v18  ;;  %v3965_v63 = vmul.f32 %v13045_v18, %v13045_v18  ;;  %v4027_v55 = vadd.f32 %v4026_v37, %v3964_v46  ;;  %v13052_v20 = vadd.f32 %v10065_v61, %v12716_v58 }
 0x361   :  { %v3739_v48 = vpop.f32.mrf.mxu0 }
 0x362   :  { %18055 = vst [vmem:[#allocation29_spill] sm:$0xff] %v13052_v20  ;;  %v4028_v45 = vadd.f32 %v4027_v55, %v3965_v63  ;;  %v13057_v21 = vadd.f32 %v3739_v48, %v12711_v16  ;;  %v3896_v44 = vadd.f32 %v3895_v12, %v13042_v54  ;;  %v3968_v58 = vmul.f32 %v13052_v20, %v13052_v20  ;;  %v6445_v55 = vld [vmem:[#allocation5 + $0x160] sm:$0xff] }
 0x363   :  { %v10068_v0 = vpop.f32.mrf.mxu0  ;;  %6944 = vmatpush1.msra.mxu0 %v6445_v55 }
 0x364   :  { %18056 = vst [vmem:[#allocation31_spill] sm:$0xff] %v13057_v21  ;;  %v3897_v50 = vadd.f32 %v3896_v44, %v13057_v21  ;;  %v3967_v51 = vmul.f32 %v13057_v21, %v13057_v21  ;;  %v4029_v46 = vadd.f32 %v4028_v45, %v3966_v49  ;;  %v13066_v61 = vadd.f32 %v10068_v0, %v12727_v2  ;;  %v13078_v2 = vld [vmem:[#allocation3] sm:$0xff]  ;;  %v18079_v21 = vld [vmem:[#allocation16_spill] sm:$0xff] }
 0x365   :  { %v3749_v37 = vpop.f32.mrf.mxu0  ;;  %6945 = vmatprep.subr.mxu0 %v13078_v2 }
 0x366   :  { %v4030_v5 = vadd.f32 %v4029_v46, %v3967_v51  ;;  %18057 = vst [vmem:[#allocation30_spill] sm:$0xff] %v13066_v61  ;;  %v13069_v16 = vadd.f32 %v3749_v37, %v12722_v35  ;;  %v3898_v12 = vadd.f32 %v3897_v50, %v13052_v20  ;;  %v6444_v35 = vld [vmem:[#allocation5 + $0x158] sm:$0xff]  ;;  %v3970_v0 = vmul.f32 %v13066_v61, %v13066_v61 }
 0x367   :  { %v10071_v63 = vpop.f32.mrf.mxu0  ;;  %6946 = vmatpush1.msra.mxu0 %v6444_v35 }
 0x368   :  { %18058 = vst [vmem:[#allocation33_spill] sm:$0xff] %v13069_v16  ;;  %v3899_v48 = vadd.f32 %v3898_v12, %v13069_v16  ;;  %v3969_v49 = vmul.f32 %v13069_v16, %v13069_v16  ;;  %v4031_v45 = vadd.f32 %v4030_v5, %v3968_v58  ;;  %v13076_v44 = vadd.f32 %v10071_v63, %v12741_v7  ;;  %v6443_v7 = vld [vmem:[#allocation5 + $0x150] sm:$0xff] }
 0x369   :  { %v3759_v51 = vpop.f32.mrf.mxu0  ;;  %6947 = vmatprep.subr.mxu0 %v13078_v2 }
 0x36a   :  { %18059 = vst [vmem:[#allocation32_spill] sm:$0xff] %v13076_v44  ;;  %v4032_v50 = vadd.f32 %v4031_v45, %v3969_v49  ;;  %v13084_v46 = vadd.f32 %v3759_v51, %v12733_v31  ;;  %v3900_v37 = vadd.f32 %v3899_v48, %v13066_v61  ;;  %6948 = vmatpush1.msra.mxu0 %v6443_v7  ;;  %v6442_v31 = vld [vmem:[#allocation5 + $0x148] sm:$0xff] }
 0x36b   :  { %v10074_v58 = vpop.f32.mrf.mxu0  ;;  %v3972_v55 = vmul.f32 %v13076_v44, %v13076_v44  ;;  %6949 = vmatprep.subr.mxu0 %v13078_v2 }
 0x36c   :  { %18060 = vst [vmem:[#allocation35_spill] sm:$0xff] %v13084_v46  ;;  %v3901_v5 = vadd.f32 %v3900_v37, %v13084_v46  ;;  %v3971_v12 = vmul.f32 %v13084_v46, %v13084_v46  ;;  %v4033_v63 = vadd.f32 %v4032_v50, %v3970_v0  ;;  %v13095_v45 = vadd.f32 %v10074_v58, %v12752_v53  ;;  %v6441_v0 = vld [vmem:[#allocation5 + $0x140] sm:$0xff] }
 0x36d   :  { %v3769_v49 = vpop.f32.mrf.mxu0  ;;  %6950 = vmatpush1.msra.mxu0 %v6442_v31 }
 0x36e   :  { %v4034_v48 = vadd.f32 %v4033_v63, %v3971_v12  ;;  %18061 = vst [vmem:[#allocation34_spill] sm:$0xff] %v13095_v45  ;;  %v13098_v51 = vadd.f32 %v3769_v49, %v12749_v34  ;;  %v3902_v35 = vadd.f32 %v3901_v5, %v13076_v44  ;;  %6951 = vmatprep.subr.mxu0 %v13078_v2  ;;  %v6440_v34 = vld [vmem:[#allocation5 + $0x138] sm:$0xff] }
 0x36f   :  { %v10077_v37 = vpop.f32.mrf.mxu0  ;;  %6952 = vmatpush1.msra.mxu0 %v6441_v0  ;;  %v3974_v5 = vmul.f32 %v13095_v45, %v13095_v45 }
 0x370   :  { %v3903_v50 = vadd.f32 %v3902_v35, %v13098_v51  ;;  %v3973_v7 = vmul.f32 %v13098_v51, %v13098_v51  ;;  %v4035_v46 = vadd.f32 %v4034_v48, %v3972_v55  ;;  %v13106_v53 = vadd.f32 %v10077_v37, %v12759_v19  ;;  %6953 = vmatprep.subr.mxu0 %v13078_v2  ;;  %v6439_v55 = vld [vmem:[#allocation5 + $0x130] sm:$0xff] }
 0x371   :  { %v3779_v58 = vpop.f32.mrf.mxu0  ;;  %6954 = vmatpush1.msra.mxu0 %v6440_v34 }
 0x372   :  { %v4036_v12 = vadd.f32 %v4035_v46, %v3973_v7  ;;  %v13112_v63 = vadd.f32 %v3779_v58, %v12756_v17  ;;  %v3904_v49 = vadd.f32 %v3903_v50, %v13095_v45  ;;  %6955 = vmatprep.subr.mxu0 %v13078_v2  ;;  %v3976_v46 = vmul.f32 %v13106_v53, %v13106_v53  ;;  %v6438_v17 = vld [vmem:[#allocation5 + $0x128] sm:$0xff] }
 0x373   :  { %v10080_v31 = vpop.f32.mrf.mxu0  ;;  %6956 = vmatpush1.msra.mxu0 %v6439_v55 }
 0x374   :  { %v3905_v19 = vadd.f32 %v3904_v49, %v13112_v63  ;;  %v3975_v48 = vmul.f32 %v13112_v63, %v13112_v63  ;;  %v4037_v35 = vadd.f32 %v4036_v12, %v3974_v5  ;;  %6957 = vmatprep.subr.mxu0 %v13078_v2  ;;  %v13123_v50 = vadd.f32 %v10080_v31, %v12766_v56  ;;  %v6437_v5 = vld [vmem:[#allocation5 + $0x120] sm:$0xff] }
 0x375   :  { %v3789_v37 = vpop.f32.mrf.mxu0  ;;  %6958 = vmatpush1.msra.mxu0 %v6438_v17 }
 0x376   :  { %v4038_v0 = vadd.f32 %v4037_v35, %v3975_v48  ;;  %v13126_v7 = vadd.f32 %v3789_v37, %v12763_v47  ;;  %v3906_v58 = vadd.f32 %v3905_v19, %v13106_v53  ;;  %6959 = vmatprep.subr.mxu0 %v13078_v2  ;;  %v6436_v47 = vld [vmem:[#allocation5 + $0x118] sm:$0xff]  ;;  %v3978_v19 = vmul.f32 %v13123_v50, %v13123_v50 }
 0x377   :  { %v10083_v34 = vpop.f32.mrf.mxu0  ;;  %6960 = vmatpush1.msra.mxu0 %v6437_v5 }
 0x378   :  { %v3907_v12 = vadd.f32 %v3906_v58, %v13126_v7  ;;  %v3977_v49 = vmul.f32 %v13126_v7, %v13126_v7  ;;  %v4039_v55 = vadd.f32 %v4038_v0, %v3976_v46  ;;  %v13134_v56 = vadd.f32 %v10083_v34, %v12773_v52  ;;  %6961 = vmatprep.subr.mxu0 %v13078_v2  ;;  %v6435_v46 = vld [vmem:[#allocation5 + $0x110] sm:$0xff] }
 0x379   :  { %v3799_v31 = vpop.f32.mrf.mxu0  ;;  %6962 = vmatpush1.msra.mxu0 %v6436_v47 }
 0x37a   :  { %18062 = vst [vmem:[#allocation37_spill] sm:$0xff] %v13134_v56  ;;  %v4040_v48 = vadd.f32 %v4039_v55, %v3977_v49  ;;  %v13140_v35 = vadd.f32 %v3799_v31, %v12770_v6  ;;  %v3908_v37 = vadd.f32 %v3907_v12, %v13123_v50  ;;  %6963 = vmatprep.subr.mxu0 %v13078_v2  ;;  %v6434_v6 = vld [vmem:[#allocation5 + $0x108] sm:$0xff] }
 0x37b   :  { %v10086_v17 = vpop.f32.mrf.mxu0  ;;  %6964 = vmatpush1.msra.mxu0 %v6435_v46  ;;  %v3980_v34 = vmul.f32 %v13134_v56, %v13134_v56 }
 0x37c   :  { %18063 = vst [vmem:[#allocation36_spill] sm:$0xff] %v13140_v35  ;;  %v3909_v52 = vadd.f32 %v3908_v37, %v13140_v35  ;;  %v3979_v0 = vmul.f32 %v13140_v35, %v13140_v35  ;;  %v4041_v58 = vadd.f32 %v4040_v48, %v3978_v19  ;;  %6965 = vmatprep.subr.mxu0 %v13078_v2  ;;  %v6433_v19 = vld [vmem:[#allocation5 + $0x100] sm:$0xff] }
 0x37d   :  { %v3809_v5 = vpop.f32.mrf.mxu0  ;;  %v13151_v49 = vadd.f32 %v10086_v17, %v12780_v24  ;;  %6966 = vmatpush1.msra.mxu0 %v6434_v6 }
 0x37e   :  { %v4042_v12 = vadd.f32 %v4041_v58, %v3979_v0  ;;  %v13154_v55 = vadd.f32 %v3809_v5, %v12777_v11  ;;  %v3910_v31 = vadd.f32 %v3909_v52, %v13134_v56  ;;  %6967 = vmatprep.subr.mxu0 %v13078_v2  ;;  %v6464_v11 = vld [vmem:[#allocation5 + $0x1f8] sm:$0xff]  ;;  %v18067_v58 = vld [vmem:[#allocation11_spill] sm:$0xff] }
 0x37f   :  { %18064 = vst [vmem:[#allocation39_spill] sm:$0xff] %v13151_v49  ;;  %v10089_v47 = vpop.f32.mrf.mxu0  ;;  %6968 = vmatpush1.msra.mxu0 %v6433_v19  ;;  %v3982_v52 = vmul.f32 %v13151_v49, %v13151_v49 }
 0x380   :  { %18065 = vst [vmem:[#allocation38_spill] sm:$0xff] %v13154_v55  ;;  %v3911_v48 = vadd.f32 %v3910_v31, %v13154_v55  ;;  %v3981_v37 = vmul.f32 %v13154_v55, %v13154_v55  ;;  %v4043_v46 = vadd.f32 %v4042_v12, %v3980_v34  ;;  %v13162_v24 = vadd.f32 %v10089_v47, %v12787_v23  ;;  %v6463_v34 = vld [vmem:[#allocation5 + $0x1f0] sm:$0xff] }
 0x381   :  { %v3819_v17 = vpop.f32.mrf.mxu0  ;;  %6969 = vmatprep.subr.mxu0 %v13078_v2 }
 0x382   :  { %18066 = vst [vmem:[#allocation41_spill] sm:$0xff] %v13162_v24  ;;  %v4044_v0 = vadd.f32 %v4043_v46, %v3981_v37  ;;  %v13168_v5 = vadd.f32 %v3819_v17, %v18067_v58  ;;  %v3912_v6 = vadd.f32 %v3911_v48, %v13151_v49  ;;  %6970 = vmatpush2.msra.mxu0 %v6464_v11  ;;  %v6462_v46 = vld [vmem:[#allocation5 + $0x1e8] sm:$0xff]  ;;  %v18069_v17 = vld [vmem:[#allocation13_spill] sm:$0xff] }
 0x383   :  { %v10092_v31 = vpop.f32.mrf.mxu0  ;;  %6971 = vmatprep.subr.mxu0 %v13078_v2  ;;  %v3984_v19 = vmul.f32 %v13162_v24, %v13162_v24  ;;  %v18071_v58 = vld [vmem:[#allocation12_spill] sm:$0xff] }
 0x384   :  { %18068 = vst [vmem:[#allocation40_spill] sm:$0xff] %v13168_v5  ;;  %v3913_v23 = vadd.f32 %v3912_v6, %v13168_v5  ;;  %v3983_v12 = vmul.f32 %v13168_v5, %v13168_v5  ;;  %v4045_v47 = vadd.f32 %v4044_v0, %v3982_v52  ;;  %6972 = vmatpush2.msra.mxu0 %v6463_v34  ;;  %v6422_v52 = vld [vmem:[#allocation5 + $0xa8] sm:$0xff]  ;;  %v6461_v0 = vld [vmem:[#allocation5 + $0x1e0] sm:$0xff] }
 0x385   :  { %v3829_v37 = vpop.f32.mrf.mxu0  ;;  %6973 = vmatprep.subr.mxu0 %v13078_v2  ;;  %v13179_v11 = vadd.f32 %v10092_v31, %v18069_v17  ;;  %6605 = vmatpush2.msra.mxu1 %v6422_v52  ;;  %v18073_v31 = vld [vmem:[#allocation15_spill] sm:$0xff] }
 0x386   :  { %v4046_v48 = vadd.f32 %v4045_v47, %v3983_v12  ;;  %v13182_v45 = vadd.f32 %v3829_v37, %v18071_v58  ;;  %v3914_v6 = vadd.f32 %v3913_v23, %v13162_v24  ;;  %6974 = vmatpush2.msra.mxu0 %v6462_v46  ;;  %6606 = vmatprep.subr.mxu1 %v13078_v2  ;;  %v6421_v23 = vld [vmem:[#allocation5 + $0xa0] sm:$0xff]  ;;  %v18075_v58 = vld [vmem:[#allocation14_spill] sm:$0xff] }
 0x387   :  { %18070 = vst [vmem:[#allocation43_spill] sm:$0xff] %v13179_v11  ;;  %v10095_v44 = vpop.f32.mrf.mxu0  ;;  %6975 = vmatprep.subr.mxu0 %v13078_v2  ;;  %v3986_v46 = vmul.f32 %v13179_v11, %v13179_v11  ;;  %6607 = vmatpush2.msra.mxu1 %v6421_v23 }
 0x388   :  { %18072 = vst [vmem:[#allocation42_spill] sm:$0xff] %v13182_v45  ;;  %v3915_v34 = vadd.f32 %v3914_v6, %v13182_v45  ;;  %v3985_v61 = vmul.f32 %v13182_v45, %v13182_v45  ;;  %v4047_v12 = vadd.f32 %v4046_v48, %v3984_v19  ;;  %v13190_v47 = vadd.f32 %v10095_v44, %v18073_v31  ;;  %v6460_v19 = vld [vmem:[#allocation5 + $0x1d8] sm:$0xff] }
 0x389   :  { %v3839_v37 = vpop.f32.mrf.mxu0  ;;  %6976 = vmatpush2.msra.mxu0 %v6461_v0  ;;  %6608 = vmatprep.subr.mxu1 %v13078_v2  ;;  %v6420_v44 = vld [vmem:[#allocation5 + $0x98] sm:$0xff] }
 0x38a   :  { %18074 = vst [vmem:[#allocation44_spill] sm:$0xff] %v13190_v47  ;;  %v4048_v17 = vadd.f32 %v4047_v12, %v3985_v61  ;;  %v13196_v16 = vadd.f32 %v3839_v37, %v18075_v58  ;;  %v3916_v6 = vadd.f32 %v3915_v34, %v13179_v11  ;;  %6977 = vmatprep.subr.mxu0 %v13078_v2  ;;  %v6419_v34 = vld [vmem:[#allocation5 + $0x90] sm:$0xff] }
 0x38b   :  { %v10098_v48 = vpop.f32.mrf.mxu0  ;;  %6609 = vmatpush2.msra.mxu1 %v6420_v44  ;;  %v3988_v61 = vmul.f32 %v13190_v47, %v13190_v47  ;;  %6978 = vmatpush2.msra.mxu0 %v6460_v19  ;;  %v6459_v37 = vld [vmem:[#allocation5 + $0x1d0] sm:$0xff] }
 0x38c   :  { %18076 = vst [vmem:[#allocation11_spill] sm:$0xff] %v13196_v16  ;;  %v3917_v52 = vadd.f32 %v3916_v6, %v13196_v16  ;;  %v3987_v0 = vmul.f32 %v13196_v16, %v13196_v16  ;;  %v4049_v31 = vadd.f32 %v4048_v17, %v3986_v46  ;;  %6610 = vmatprep.subr.mxu1 %v13078_v2  ;;  %v18077_v58 = vld [vmem:[#allocation17_spill] sm:$0xff]  ;;  %v6418_v46 = vld [vmem:[#allocation5 + $0x88] sm:$0xff] }
 0x38d   :  { %v3849_v12 = vpop.f32.mrf.mxu0  ;;  %v13208_v20 = vadd.f32 %v10098_v48, %v18077_v58  ;;  %6611 = vmatpush2.msra.mxu1 %v6419_v34  ;;  %6979 = vmatprep.subr.mxu0 %v13078_v2  ;;  %v6458_v17 = vld [vmem:[#allocation5 + $0x1c8] sm:$0xff]  ;;  %v6417_v48 = vld [vmem:[#allocation5 + $0x80] sm:$0xff] }
 0x38e   :  { %v4050_v23 = vadd.f32 %v4049_v31, %v3987_v0  ;;  %v13211_v6 = vadd.f32 %v3849_v12, %v18079_v21  ;;  %v3918_v54 = vadd.f32 %v3917_v52, %v13190_v47  ;;  %6612 = vmatprep.subr.mxu1 %v13078_v2  ;;  %6980 = vmatpush2.msra.mxu0 %v6459_v37  ;;  %v6457_v21 = vld [vmem:[#allocation5 + $0x1c0] sm:$0xff]  ;;  %v4801_v58 = vld [vmem:[#allocation3 + $0x9] sm:$0xff] }
 0x38f   :  { %18078 = vst [vmem:[#allocation13_spill] sm:$0xff] %v13208_v20  ;;  %6613 = vmatpush2.msra.mxu1 %v6418_v46  ;;  %6981 = vmatprep.subr.mxu0 %v13078_v2  ;;  %v4800_v52 = vld [vmem:[#allocation3 + $0x1] sm:$0xff]  ;;  %v3990_v31 = vmul.f32 %v13208_v20, %v13208_v20  ;;  %v18092_v47 = vld [vmem:[#allocation29_spill] sm:$0xff] }
 0x390   :  { %v3919_v44 = vadd.f32 %v3918_v54, %v13211_v6  ;;  %v3989_v19 = vmul.f32 %v13211_v6, %v13211_v6  ;;  %v4051_v0 = vadd.f32 %v4050_v23, %v3988_v61  ;;  %6614 = vmatprep.subr.mxu1 %v13078_v2  ;;  %6982 = vmatpush2.msra.mxu0 %v6458_v17  ;;  %v6456_v54 = vld [vmem:[#allocation5 + $0x1b8] sm:$0xff]  ;;  %v6455_v23 = vld [vmem:[#allocation5 + $0x1b0] sm:$0xff]  ;;  %v6454_v17 = vld [vmem:[#allocation5 + $0x1a8] sm:$0xff] }
 0x391   :  { %6615 = vmatpush2.msra.mxu1 %v6417_v48  ;;  %6983 = vmatprep.subr.mxu0 %v13078_v2  ;;  %v6480_v48 = vld [vmem:[#allocation5 + $0x278] sm:$0xff] }
 0x392   :  { %v3920_v12 = vadd.f32 %v3919_v44, %v13208_v20  ;;  %v4052_v34 = vadd.f32 %v4051_v0, %v3989_v19  ;;  %6616 = vmatprep.mubr.f32.mxu1 %v4800_v52  ;;  %6984 = vmatpush2.msra.mxu0 %v6457_v21  ;;  %v6453_v21 = vld [vmem:[#allocation5 + $0x1a0] sm:$0xff] }
 0x393   :  { %6617 = vmatmul.mubr.f32.vlgmr.msra.gmra.mxu1 %v13078_v2  ;;  %6985 = vmatprep.subr.mxu0 %v13078_v2  ;;  %v18091_v20 = vld [vmem:[#allocation31_spill] sm:$0xff] }
 0x394   :  { %v3921_v61 = vrot.slane %v3920_v12, 4  ;;  %v4053_v37 = vadd.f32 %v4052_v34, %v3990_v31  ;;  %7322 = vmatprep.subr.mxu1 %v13078_v2  ;;  %6986 = vmatpush2.msra.mxu0 %v6456_v54  ;;  %v6452_v34 = vld [vmem:[#allocation5 + $0x198] sm:$0xff] }
 0x395   :  { %6621 = vmatprep.mubr.f32.mxu1 %v4801_v58  ;;  %6987 = vmatprep.subr.mxu0 %v13078_v2 }
 0x396   :  { %v3922_v46 = vadd.f32 %v3921_v61, %v3920_v12  ;;  %v4054_v44 = vrot.slane %v4053_v37, 4  ;;  %6988 = vmatpush2.msra.mxu0 %v6455_v23  ;;  %7323 = vmatpush1.msra.mxu1 %v6480_v48  ;;  %v6479_v12 = vld [vmem:[#allocation5 + $0x270] sm:$0xff] }
 0x397   :  { %6622 = vmatmul.mubr.f32.gmra.mxu1 %v13078_v2  ;;  %6989 = vmatprep.subr.mxu0 %v13078_v2  ;;  %v6451_v23 = vld [vmem:[#allocation5 + $0x190] sm:$0xff] }
 0x398   :  { %v3923_v19 = vrot.slane %v3922_v46, 2  ;;  %v4055_v0 = vadd.f32 %v4054_v44, %v4053_v37  ;;  %6990 = vmatpush2.msra.mxu0 %v6454_v17  ;;  %7324 = vmatprep.subr.mxu1 %v13078_v2  ;;  %v6478_v37 = vld [vmem:[#allocation5 + $0x268] sm:$0xff] }
 0x399   :  { %6991 = vmatprep.subr.mxu0 %v13078_v2  ;;  %7325 = vmatpush1.msra.mxu1 %v6479_v12  ;;  %v6450_v44 = vld [vmem:[#allocation5 + $0x188] sm:$0xff]  ;;  %v6477_v12 = vld [vmem:[#allocation5 + $0x260] sm:$0xff] }
 0x39a   :  { %v3924_v52 = vadd.f32 %v3923_v19, %v3922_v46  ;;  %v4056_v31 = vrot.slane %v4055_v0, 2  ;;  %6992 = vmatpush2.msra.mxu0 %v6453_v21  ;;  %7326 = vmatprep.subr.mxu1 %v13078_v2 }
 0x39b   :  { %6993 = vmatprep.subr.mxu0 %v13078_v2  ;;  %7327 = vmatpush1.msra.mxu1 %v6478_v37  ;;  %v6476_v37 = vld [vmem:[#allocation5 + $0x258] sm:$0xff] }
 0x39c   :  { %v3925_v54 = vrot.slane %v3924_v52, 1  ;;  %v4057_v61 = vadd.f32 %v4056_v31, %v4055_v0  ;;  %6994 = vmatpush2.msra.mxu0 %v6452_v34  ;;  %7328 = vmatprep.subr.mxu1 %v13078_v2  ;;  %v6449_v0 = vld [vmem:[#allocation5 + $0x180] sm:$0xff] }
 0x39d   :  { %6995 = vmatprep.subr.mxu0 %v13078_v2  ;;  %7329 = vmatpush1.msra.mxu1 %v6477_v12 }
 0x39e   :  { %v3926_v58 = vadd.f32 %v3925_v54, %v3924_v52  ;;  %v4058_v46 = vrot.slane %v4057_v61, 1  ;;  %6996 = vmatpush2.msra.mxu0 %v6451_v23  ;;  %7330 = vmatprep.subr.mxu1 %v13078_v2  ;;  %v13250_v54 = vstv %s17830_s9  ;;  %v18086_v52 = vld [vmem:[#allocation25_spill] sm:$0xff] }
 0x39f   :  { %6997 = vmatprep.subr.mxu0 %v13078_v2  ;;  %18080 = vst [vmem:[#allocation12_spill] sm:$0xff] %v13250_v54  ;;  %7331 = vmatpush1.msra.mxu1 %v6476_v37  ;;  %v6475_v54 = vld [vmem:[#allocation5 + $0x250] sm:$0xff] }
 0x3a0   :  { %v4059_v17 = vadd.f32 %v4058_v46, %v4057_v61  ;;  %v13237_v19 = vmul.f32 0.001953125, %v3926_v58  ;;  %6998 = vmatpush2.msra.mxu0 %v6450_v44  ;;  %v18081_v61 = vld [vmem:[#allocation19_spill] sm:$0xff]  ;;  %v18083_v44 = vld [vmem:[#allocation21_spill] sm:$0xff]  ;;  %v18088_v46 = vld [vmem:[#allocation26_spill] sm:$0xff]  ;;  %7332 = vmatprep.subr.mxu1 %v13078_v2 }
 0x3a1   :  { %6999 = vmatprep.subr.mxu0 %v13078_v2  ;;  %7333 = vmatpush1.msra.mxu1 %v6475_v54 }
 0x3a2   :  { %v4061_v48 = vmul.f32 0.001953125, %v4059_v17  ;;  %v4062_v21 = vmul.f32 %v13237_v19, %v13237_v19  ;;  %7000 = vmatpush2.msra.mxu0 %v6449_v0  ;;  %v18089_v0 = vld [vmem:[#allocation27_spill] sm:$0xff]  ;;  %v4101_v17 = vsub.f32 %v13033_v30, %v13237_v19  ;;  %v4102_v12 = vsub.f32 %v13028_v25, %v13237_v19  ;;  %7334 = vmatprep.subr.mxu1 %v13078_v2 }
 0x3a3   :  { %7707 = vmatprep.subr.mxu0 %v13078_v2  ;;  %v4103_v58 = vsub.f32 %v13045_v18, %v13237_v19  ;;  %v4105_v3 = vsub.f32 %v18091_v20, %v13237_v19  ;;  %v4106_v16 = vsub.f32 %v18092_v47, %v13237_v19  ;;  %v13377_v25 = vld [vmem:[%s17824_s3] ss:$0 sm:$0xff]  ;;  %v18094_v18 = vld [vmem:[#allocation30_spill] sm:$0xff]  ;;  %v18096_v47 = vld [vmem:[#allocation32_spill] sm:$0xff]  ;;  %v18098_v5 = vsub.f32 %v13211_v6, %v13237_v19 }
 0x3a4   :  { %v4063_v31 = vsub.f32 %v4061_v48, %v4062_v21  ;;  %v18084_v48 = vld [vmem:[#allocation23_spill] sm:$0xff]  ;;  %v4100_v21 = vsub.f32 %v13018_v26, %v13237_v19  ;;  %v18093_v26 = vld [vmem:[#allocation33_spill] sm:$0xff]  ;;  %v4108_v54 = vsub.f32 %v18094_v18, %v13237_v19  ;;  %v4110_v45 = vsub.f32 %v18096_v47, %v13237_v19  ;;  %v18100_v18 = vld [vmem:[#allocation18_spill] sm:$0xff] }
 0x3a5   :  { %v4107_v11 = vsub.f32 %v18093_v26, %v13237_v19  ;;  %v18095_v20 = vld [vmem:[#allocation35_spill] sm:$0xff]  ;;  %v18097_v26 = vld [vmem:[#allocation34_spill] sm:$0xff]  ;;  %v18099_v55 = vsub.f32 %v18081_v61, %v13237_v19  ;;  %v18102_v47 = vsub.f32 %v18083_v44, %v13237_v19  ;;  %v18105_v6 = vld [vmem:[#allocation20_spill] sm:$0xff] }
 0x3a6   :  { %v4064_v34 = vmax.f32 %v4063_v31, 0.0  ;;  %v18085_v31 = vld [vmem:[#allocation22_spill] sm:$0xff]  ;;  %v4112_v24 = vsub.f32 %v18097_v26, %v13237_v19 }
 0x3a7   :  { %v18108_v44 = vsub.f32 %v18085_v31, %v13237_v19  ;;  %v18111_v31 = vsub.f32 %v18088_v46, %v13237_v19 }
 0x3a8   :  { %v4129_v23 = vadd.f32 1e-05, %v4064_v34  ;;  %v18087_v34 = vld [vmem:[#allocation24_spill] sm:$0xff] }
 0x3aa   :  { %10232 = vrsqrt.f32 %v4129_v23  ;;  %v18090_v23 = vld [vmem:[#allocation28_spill] sm:$0xff] }
 0x3ab   :  { %v4104_v37 = vsub.f32 %v18090_v23, %v13237_v19  ;;  %v4109_v23 = vsub.f32 %v18095_v20, %v13237_v19  ;;  %v18101_v20 = vsub.f32 %v18100_v18, %v13237_v19  ;;  %v18107_v18 = vsub.f32 %v18084_v48, %v13237_v19 }
 0x3ac   :  { %v18110_v48 = vsub.f32 %v18087_v34, %v13237_v19 }
 0x3b7   :  { %v13372_v30 = vpop.eup %10232 }
 0x3b8   :  { %v4193_v49 = vmul.f32 %v13372_v30, %v18098_v5  ;;  %v13395_v56 = vmul.f32 %v13372_v30, %v18099_v55  ;;  %v13401_v35 = vmul.f32 %v13372_v30, %v18101_v20  ;;  %v13407_v26 = vmul.f32 %v13372_v30, %v18102_v47  ;;  %v13412_v5 = vld [vmem:[%s17825_s4] ss:$0 sm:$0xff] }
 0x3b9   :  { %18104 = vst [vmem:[#allocation14_spill] sm:$0xff] %v13412_v5  ;;  %v18106_v55 = vsub.f32 %v18105_v6, %v13237_v19  ;;  %v13424_v20 = vmul.f32 %v13372_v30, %v18107_v18  ;;  %v13430_v47 = vmul.f32 %v13372_v30, %v18108_v44  ;;  %v13443_v18 = vmul.f32 %v13372_v30, %v18110_v48 }
 0x3ba   :  { %18103 = vst [vmem:[#allocation15_spill] sm:$0xff] %v13407_v26  ;;  %v18109_v26 = vsub.f32 %v18086_v52, %v13237_v19  ;;  %v13449_v44 = vmul.f32 %v13372_v30, %v18111_v31  ;;  %v18112_v52 = vsub.f32 %v12859_v59, %v13237_v19  ;;  %v18114_v48 = vsub.f32 %v12873_v9, %v13237_v19 }
 0x3bb   :  { %v13418_v61 = vmul.f32 %v13372_v30, %v18106_v55  ;;  %v4264_v55 = vmul.f32 %v13377_v25, %v4193_v49  ;;  %v18113_v49 = vsub.f32 %v18089_v0, %v13237_v19  ;;  %v18115_v31 = vsub.f32 %v12888_v39, %v13237_v19 }
 0x3bc   :  { %v13436_v6 = vmul.f32 %v13372_v30, %v18109_v26  ;;  %v13455_v26 = vmul.f32 %v13372_v30, %v18112_v52  ;;  %v13467_v46 = vmul.f32 %v13372_v30, %v18114_v48  ;;  %v18116_v52 = vsub.f32 %v12883_v10, %v13237_v19 }
 0x3bd   :  { %v13461_v34 = vmul.f32 %v13372_v30, %v18113_v49  ;;  %v13473_v59 = vmul.f32 %v13372_v30, %v18115_v31  ;;  %v4335_v49 = vadd.f32 %v13412_v5, %v4264_v55  ;;  %v18118_v9 = vsub.f32 %v12900_v4, %v13237_v19 }
 0x3be   :  { %v13479_v0 = vmul.f32 %v13372_v30, %v18116_v52  ;;  %v18119_v39 = vsub.f32 %v12897_v32, %v13237_v19  ;;  %v18120_v10 = vsub.f32 %v12912_v27, %v13237_v19  ;;  %v18121_v55 = vsub.f32 %v12907_v40, %v13237_v19 }
 0x3bf   :  { %v13486_v48 = vmul.f32 %v13372_v30, %v18118_v9  ;;  %v18122_v9 = vsub.f32 %v12924_v15, %v13237_v19  ;;  %vm4399_vm0 = vcmp.ge.f32.partialorder %v4335_v49, 0.0  ;;  %v18126_v15 = vsub.f32 %v12931_v42, %v13237_v19 }
 0x3c0   :  { %18117 = vst [vmem:[#allocation17_spill] sm:$0xff] %v13479_v0  ;;  %v13492_v31 = vmul.f32 %v13372_v30, %v18119_v39  ;;  %v13498_v52 = vmul.f32 %v13372_v30, %v18120_v10  ;;  %v6474_v0 = vld [vmem:[#allocation5 + $0x248] sm:$0xff]  ;;  %v13504_v4 = vmul.f32 %v13372_v30, %v18121_v55  ;;  %v18123_v39 = vsub.f32 %v12921_v60, %v13237_v19 }
 0x3c1   :  { %v13510_v32 = vmul.f32 %v13372_v30, %v18122_v9  ;;  %v18124_v10 = vsub.f32 %v12936_v38, %v13237_v19  ;;  %7335 = vmatpush1.msra.mxu1 %v6474_v0  ;;  %v18125_v55 = vld [vmem:[#allocation12_spill] sm:$0xff]  ;;  %v13529_v9 = vmul.f32 %v13372_v30, %v18126_v15  ;;  %v18127_v60 = vsub.f32 %v12949_v14, %v13237_v19 }
 0x3c2   :  { %v13516_v27 = vmul.f32 %v13372_v30, %v18123_v39  ;;  %v4464_v5 = vmul.f32 %v18125_v55, %v4335_v49  ;;  %7336 = vmatprep.subr.mxu1 %v13078_v2  ;;  %v18128_v38 = vsub.f32 %v12946_v13, %v13237_v19  ;;  %v18129_v42 = vsub.f32 %v12961_v43, %v13237_v19 }
 0x3c3   :  { %v13522_v40 = vmul.f32 %v13372_v30, %v18124_v10  ;;  %v13535_v39 = vmul.f32 %v13372_v30, %v18127_v60  ;;  %v18130_v14 = vsub.f32 %v12956_v57, %v13237_v19  ;;  %v18131_v60 = vsub.f32 %v12973_v8, %v13237_v19 }
 0x3c4   :  { %v13542_v0 = vmul.f32 %v13372_v30, %v18128_v38  ;;  %v13548_v10 = vmul.f32 %v13372_v30, %v18129_v42  ;;  %v4528_v38 = vsel %vm4399_vm0, %v4335_v49, %v4464_v5  ;;  %v18132_v55 = vsub.f32 %v12970_v22, %v13237_v19 }
 0x3c5   :  { %v13554_v15 = vmul.f32 %v13372_v30, %v18130_v14  ;;  %v13560_v13 = vmul.f32 %v13372_v30, %v18131_v60  ;;  %v18133_v42 = vsub.f32 %v12985_v33, %v13237_v19  ;;  %v18134_v14 = vsub.f32 %v12980_v36, %v13237_v19  ;;  %4670 = vst [vmem:[#allocation3 + $0x331] sm:$0xff] %v4528_v38 }
 0x3c6   :  { %v13566_v43 = vmul.f32 %v13372_v30, %v18132_v55  ;;  %v18135_v5 = vsub.f32 %v12997_v1, %v13237_v19  ;;  %v18136_v49 = vsub.f32 %v12994_v28, %v13237_v19  ;;  %v18137_v55 = vsub.f32 %v13009_v29, %v13237_v19 }
 0x3c7   :  { %v13572_v57 = vmul.f32 %v13372_v30, %v18133_v42  ;;  %v13578_v8 = vmul.f32 %v13372_v30, %v18134_v14  ;;  %v18138_v60 = vsub.f32 %v13004_v41, %v13237_v19  ;;  %v18139_v38 = vsub.f32 %v13021_v62, %v13237_v19 }
 0x3c8   :  { %v13584_v22 = vmul.f32 %v13372_v30, %v18135_v5  ;;  %v13590_v33 = vmul.f32 %v13372_v30, %v18136_v49  ;;  %v13596_v36 = vmul.f32 %v13372_v30, %v18137_v55  ;;  %v13611_v42 = vmul.f32 %v13372_v30, %v4100_v21 }
 0x3c9   :  { %v13602_v1 = vmul.f32 %v13372_v30, %v18138_v60  ;;  %v13608_v28 = vmul.f32 %v13372_v30, %v18139_v38  ;;  %v13614_v29 = vmul.f32 %v13372_v30, %v4101_v17  ;;  %v13617_v14 = vmul.f32 %v13372_v30, %v4102_v12  ;;  %v18146_v38 = vld [vmem:[#allocation36_spill] sm:$0xff] }
 0x3ca   :  { %v13620_v41 = vmul.f32 %v13372_v30, %v4103_v58  ;;  %v13623_v5 = vmul.f32 %v13372_v30, %v4104_v37  ;;  %v13626_v62 = vmul.f32 %v13372_v30, %v4105_v3  ;;  %v13629_v49 = vmul.f32 %v13372_v30, %v4106_v16  ;;  %v6473_v37 = vld [vmem:[#allocation5 + $0x240] sm:$0xff] }
 0x3cb   :  { %v13632_v21 = vmul.f32 %v13372_v30, %v4107_v11  ;;  %v13635_v17 = vmul.f32 %v13372_v30, %v4108_v54  ;;  %v13638_v12 = vmul.f32 %v13372_v30, %v4109_v23  ;;  %v13641_v58 = vmul.f32 %v13372_v30, %v4110_v45  ;;  %7337 = vmatpush1.msra.mxu1 %v6473_v37 }
 0x3cc   :  { %v18140_v3 = vsub.f32 %v13098_v51, %v13237_v19  ;;  %v13650_v16 = vmul.f32 %v13372_v30, %v4112_v24  ;;  %v18141_v11 = vsub.f32 %v13112_v63, %v13237_v19  ;;  %v18142_v45 = vsub.f32 %v13106_v53, %v13237_v19  ;;  %7338 = vmatprep.subr.mxu1 %v13078_v2 }
 0x3cd   :  { %v18143_v51 = vsub.f32 %v13126_v7, %v13237_v19  ;;  %v18144_v24 = vsub.f32 %v13123_v50, %v13237_v19 }
 0x3ce   :  { %v13647_v55 = vmul.f32 %v13372_v30, %v18140_v3  ;;  %v13656_v54 = vmul.f32 %v13372_v30, %v18141_v11  ;;  %v13662_v23 = vmul.f32 %v13372_v30, %v18142_v45  ;;  %v18147_v3 = vsub.f32 %v18146_v38, %v13237_v19  ;;  %v18149_v11 = vld [vmem:[#allocation37_spill] sm:$0xff]  ;;  %v18152_v45 = vld [vmem:[#allocation38_spill] sm:$0xff] }
 0x3cf   :  { %v13668_v60 = vmul.f32 %v13372_v30, %v18143_v51  ;;  %v13674_v63 = vmul.f32 %v13372_v30, %v18144_v24  ;;  %v18150_v37 = vsub.f32 %v18149_v11, %v13237_v19  ;;  %v18153_v50 = vsub.f32 %v18152_v45, %v13237_v19  ;;  %v18155_v24 = vld [vmem:[#allocation39_spill] sm:$0xff] }
 0x3d0   :  { %v13680_v53 = vmul.f32 %v13372_v30, %v18147_v3  ;;  %v18156_v38 = vsub.f32 %v18155_v24, %v13237_v19 }
 0x3d1   :  { %18145 = vst [vmem:[#allocation16_spill] sm:$0xff] %v13674_v63  ;;  %v13686_v7 = vmul.f32 %v13372_v30, %v18150_v37  ;;  %v13693_v51 = vmul.f32 %v13372_v30, %v18153_v50  ;;  %v18164_v50 = vld [vmem:[#allocation42_spill] sm:$0xff] }
 0x3d2   :  { %18148 = vst [vmem:[#allocation19_spill] sm:$0xff] %v13680_v53  ;;  %v13699_v3 = vmul.f32 %v13372_v30, %v18156_v38  ;;  %v18158_v53 = vld [vmem:[#allocation40_spill] sm:$0xff]  ;;  %v18167_v38 = vld [vmem:[#allocation43_spill] sm:$0xff] }
 0x3d3   :  { %18151 = vst [vmem:[#allocation21_spill] sm:$0xff] %v13686_v7  ;;  %18154 = vst [vmem:[#allocation23_spill] sm:$0xff] %v13693_v51  ;;  %v18159_v11 = vsub.f32 %v18158_v53, %v13237_v19  ;;  %v18161_v7 = vld [vmem:[#allocation41_spill] sm:$0xff]  ;;  %v18165_v51 = vsub.f32 %v18164_v50, %v13237_v19 }
 0x3d4   :  { %18157 = vst [vmem:[#allocation22_spill] sm:$0xff] %v13699_v3  ;;  %v18162_v63 = vsub.f32 %v18161_v7, %v13237_v19  ;;  %v18168_v3 = vsub.f32 %v18167_v38, %v13237_v19 }
 0x3d5   :  { %v13705_v37 = vmul.f32 %v13372_v30, %v18159_v11  ;;  %v13717_v24 = vmul.f32 %v13372_v30, %v18165_v51  ;;  %v18169_v11 = vld [vmem:[#allocation11_spill] sm:$0xff]  ;;  %v18173_v51 = vld [vmem:[#allocation13_spill] sm:$0xff] }
 0x3d6   :  { %v13711_v45 = vmul.f32 %v13372_v30, %v18162_v63  ;;  %v13723_v53 = vmul.f32 %v13372_v30, %v18168_v3  ;;  %v18171_v63 = vld [vmem:[#allocation44_spill] sm:$0xff]  ;;  %v13745_v3 = vmul.f32 %v13377_v25, %v13395_v56  ;;  %v13765_v56 = vmul.f32 %v13377_v25, %v13430_v47 }
 0x3d7   :  { %18160 = vst [vmem:[#allocation25_spill] sm:$0xff] %v13705_v37  ;;  %18166 = vst [vmem:[#allocation26_spill] sm:$0xff] %v13717_v24  ;;  %v18170_v37 = vsub.f32 %v18169_v11, %v13237_v19  ;;  %v18174_v24 = vsub.f32 %v18173_v51, %v13237_v19  ;;  %v18175_v11 = vld [vmem:[#allocation15_spill] sm:$0xff]  ;;  %v13785_v47 = vmul.f32 %v13377_v25, %v13461_v34  ;;  %v6472_v51 = vld [vmem:[#allocation5 + $0x238] sm:$0xff] }
 0x3d8   :  { %18163 = vst [vmem:[#allocation24_spill] sm:$0xff] %v13711_v45  ;;  %v18172_v45 = vsub.f32 %v18171_v63, %v13237_v19  ;;  %v13753_v63 = vmul.f32 %v13377_v25, %v18175_v11  ;;  %v13761_v19 = vmul.f32 %v13377_v25, %v13424_v20  ;;  %v13781_v20 = vmul.f32 %v13377_v25, %v13455_v26 }
 0x3d9   :  { %v13729_v7 = vmul.f32 %v13372_v30, %v18170_v37  ;;  %v13741_v38 = vmul.f32 %v13372_v30, %v18174_v24  ;;  %v13749_v37 = vmul.f32 %v13377_v25, %v13401_v35  ;;  %v13769_v35 = vmul.f32 %v13377_v25, %v13436_v6  ;;  %v18176_v24 = vld [vmem:[#allocation17_spill] sm:$0xff]  ;;  %7339 = vmatpush1.msra.mxu1 %v6472_v51 }
 0x3da   :  { %v13735_v50 = vmul.f32 %v13372_v30, %v18172_v45  ;;  %v13757_v45 = vmul.f32 %v13377_v25, %v13418_v61  ;;  %v13773_v30 = vmul.f32 %v13377_v25, %v13443_v18  ;;  %v13777_v61 = vmul.f32 %v13377_v25, %v13449_v44  ;;  %7340 = vmatprep.subr.mxu1 %v13078_v2 }
 0x3db   :  { %v13789_v6 = vmul.f32 %v13377_v25, %v13467_v46  ;;  %v13793_v18 = vmul.f32 %v13377_v25, %v13473_v59  ;;  %v13797_v44 = vmul.f32 %v13377_v25, %v18176_v24  ;;  %v13801_v26 = vmul.f32 %v13377_v25, %v13486_v48  ;;  %v6471_v24 = vld [vmem:[#allocation5 + $0x230] sm:$0xff] }
 0x3dc   :  { %v13805_v34 = vmul.f32 %v13377_v25, %v13492_v31  ;;  %v13809_v46 = vmul.f32 %v13377_v25, %v13498_v52  ;;  %v13813_v59 = vmul.f32 %v13377_v25, %v13504_v4  ;;  %v13817_v11 = vmul.f32 %v13377_v25, %v13510_v32  ;;  %7341 = vmatpush1.msra.mxu1 %v6471_v24 }
 0x3dd   :  { %v13821_v48 = vmul.f32 %v13377_v25, %v13516_v27  ;;  %v13825_v31 = vmul.f32 %v13377_v25, %v13522_v40  ;;  %v13829_v52 = vmul.f32 %v13377_v25, %v13529_v9  ;;  %v13833_v4 = vmul.f32 %v13377_v25, %v13535_v39  ;;  %7342 = vmatprep.subr.mxu1 %v13078_v2 }
 0x3de   :  { %v13838_v32 = vmul.f32 %v13377_v25, %v13542_v0  ;;  %v13842_v27 = vmul.f32 %v13377_v25, %v13548_v10  ;;  %v13846_v40 = vmul.f32 %v13377_v25, %v13554_v15  ;;  %v13850_v9 = vmul.f32 %v13377_v25, %v13560_v13 }
 0x3df   :  { %v13854_v39 = vmul.f32 %v13377_v25, %v13566_v43  ;;  %v13858_v0 = vmul.f32 %v13377_v25, %v13572_v57  ;;  %v13862_v10 = vmul.f32 %v13377_v25, %v13578_v8  ;;  %v13866_v15 = vmul.f32 %v13377_v25, %v13584_v22 }
 0x3e0   :  { %v13870_v13 = vmul.f32 %v13377_v25, %v13590_v33  ;;  %v13874_v43 = vmul.f32 %v13377_v25, %v13596_v36  ;;  %v13878_v57 = vmul.f32 %v13377_v25, %v13602_v1  ;;  %v13882_v8 = vmul.f32 %v13377_v25, %v13608_v28 }
 0x3e1   :  { %v13886_v22 = vmul.f32 %v13377_v25, %v13611_v42  ;;  %v13890_v33 = vmul.f32 %v13377_v25, %v13614_v29  ;;  %v13894_v36 = vmul.f32 %v13377_v25, %v13617_v14  ;;  %v13898_v1 = vmul.f32 %v13377_v25, %v13620_v41 }
 0x3e2   :  { %v13902_v28 = vmul.f32 %v13377_v25, %v13623_v5  ;;  %v13906_v42 = vmul.f32 %v13377_v25, %v13626_v62  ;;  %v13910_v29 = vmul.f32 %v13377_v25, %v13629_v49  ;;  %v13914_v14 = vmul.f32 %v13377_v25, %v13632_v21 }
 0x3e3   :  { %v13918_v41 = vmul.f32 %v13377_v25, %v13635_v17  ;;  %v13922_v5 = vmul.f32 %v13377_v25, %v13638_v12  ;;  %v13926_v62 = vmul.f32 %v13377_v25, %v13641_v58  ;;  %v13930_v49 = vmul.f32 %v13377_v25, %v13647_v55  ;;  %v18180_v55 = vld [vmem:[#allocation16_spill] sm:$0xff] }
 0x3e4   :  { %v13934_v21 = vmul.f32 %v13377_v25, %v13650_v16  ;;  %v13938_v17 = vmul.f32 %v13377_v25, %v13656_v54  ;;  %v13942_v12 = vmul.f32 %v13377_v25, %v13662_v23  ;;  %v13946_v58 = vmul.f32 %v13377_v25, %v13668_v60  ;;  %v18187_v60 = vld [vmem:[#allocation22_spill] sm:$0xff] }
 0x3e5   :  { %18177 = vst [vmem:[#allocation27_spill] sm:$0xff] %v13930_v49  ;;  %v13950_v51 = vmul.f32 %v13377_v25, %v18180_v55  ;;  %v18182_v49 = vld [vmem:[#allocation19_spill] sm:$0xff]  ;;  %v13967_v24 = vmul.f32 %v13377_v25, %v18187_v60  ;;  %v18188_v55 = vld [vmem:[#allocation25_spill] sm:$0xff]  ;;  %v13987_v60 = vmul.f32 %v13377_v25, %v13729_v7 }
 0x3e6   :  { %18178 = vst [vmem:[#allocation28_spill] sm:$0xff] %v13934_v21  ;;  %18179 = vst [vmem:[#allocation31_spill] sm:$0xff] %v13938_v17  ;;  %v13954_v16 = vmul.f32 %v13377_v25, %v18182_v49  ;;  %v18184_v21 = vld [vmem:[#allocation21_spill] sm:$0xff]  ;;  %v18186_v17 = vld [vmem:[#allocation23_spill] sm:$0xff] }
 0x3e7   :  { %18181 = vst [vmem:[#allocation29_spill] sm:$0xff] %v13950_v51  ;;  %v13958_v54 = vmul.f32 %v13377_v25, %v18184_v21  ;;  %v13962_v23 = vmul.f32 %v13377_v25, %v18186_v17  ;;  %v13971_v51 = vmul.f32 %v13377_v25, %v18188_v55  ;;  %v18189_v49 = vld [vmem:[#allocation24_spill] sm:$0xff]  ;;  %v18191_v21 = vld [vmem:[#allocation26_spill] sm:$0xff]  ;;  %v13983_v17 = vmul.f32 %v13377_v25, %v13723_v53 }
 0x3e8   :  { %18183 = vst [vmem:[#allocation33_spill] sm:$0xff] %v13954_v16  ;;  %v13975_v16 = vmul.f32 %v13377_v25, %v18189_v49  ;;  %v13991_v55 = vmul.f32 %v13377_v25, %v13735_v50  ;;  %v13995_v49 = vmul.f32 %v13377_v25, %v13741_v38 }
 0x3e9   :  { %18185 = vst [vmem:[#allocation30_spill] sm:$0xff] %v13958_v54  ;;  %v13979_v54 = vmul.f32 %v13377_v25, %v18191_v21 }
 0x3ea   :  { %18190 = vst [vmem:[#allocation35_spill] sm:$0xff] %v13975_v16  ;;  %v18192_v16 = vld [vmem:[#allocation14_spill] sm:$0xff] }
 0x3eb   :  { %v13999_v21 = vadd.f32 %v18192_v16, %v13745_v3  ;;  %v14003_v53 = vadd.f32 %v18192_v16, %v13749_v37  ;;  %v14007_v7 = vadd.f32 %v18192_v16, %v13753_v63  ;;  %v14011_v50 = vadd.f32 %v18192_v16, %v13757_v45 }
 0x3ec   :  { %v14015_v25 = vadd.f32 %v18192_v16, %v13761_v19  ;;  %v14019_v38 = vadd.f32 %v18192_v16, %v13765_v56  ;;  %v14023_v3 = vadd.f32 %v18192_v16, %v13769_v35  ;;  %v14027_v37 = vadd.f32 %v18192_v16, %v13773_v30 }
 0x3ed   :  { %v14031_v63 = vadd.f32 %v18192_v16, %v13777_v61  ;;  %v14035_v45 = vadd.f32 %v18192_v16, %v13781_v20  ;;  %v14039_v19 = vadd.f32 %v18192_v16, %v13785_v47  ;;  %v14043_v56 = vadd.f32 %v18192_v16, %v13789_v6  ;;  %v6470_v47 = vld [vmem:[#allocation5 + $0x228] sm:$0xff] }
 0x3ee   :  { %v14047_v35 = vadd.f32 %v18192_v16, %v13793_v18  ;;  %v14051_v30 = vadd.f32 %v18192_v16, %v13797_v44  ;;  %v14055_v61 = vadd.f32 %v18192_v16, %v13801_v26  ;;  %v14059_v20 = vadd.f32 %v18192_v16, %v13805_v34  ;;  %7343 = vmatpush1.msra.mxu1 %v6470_v47  ;;  %v18206_v47 = vld [vmem:[#allocation28_spill] sm:$0xff] }
 0x3ef   :  { %v14063_v6 = vadd.f32 %v18192_v16, %v13809_v46  ;;  %v14067_v18 = vadd.f32 %v18192_v16, %v13813_v59  ;;  %v14071_v44 = vadd.f32 %v18192_v16, %v13817_v11  ;;  %v14075_v26 = vadd.f32 %v18192_v16, %v13821_v48  ;;  %7344 = vmatprep.subr.mxu1 %v13078_v2 }
 0x3f0   :  { %v14079_v34 = vadd.f32 %v18192_v16, %v13825_v31  ;;  %v14083_v46 = vadd.f32 %v18192_v16, %v13829_v52  ;;  %v14087_v59 = vadd.f32 %v18192_v16, %v13833_v4  ;;  %v14091_v11 = vadd.f32 %v18192_v16, %v13838_v32 }
 0x3f1   :  { %18193 = vst [vmem:[#allocation32_spill] sm:$0xff] %v14075_v26  ;;  %v14096_v48 = vadd.f32 %v18192_v16, %v13842_v27  ;;  %v14100_v31 = vadd.f32 %v18192_v16, %v13846_v40  ;;  %v14104_v52 = vadd.f32 %v18192_v16, %v13850_v9  ;;  %v14108_v4 = vadd.f32 %v18192_v16, %v13854_v39 }
 0x3f2   :  { %18194 = vst [vmem:[#allocation34_spill] sm:$0xff] %v14087_v59  ;;  %18195 = vst [vmem:[#allocation18_spill] sm:$0xff] %v14091_v11  ;;  %v14112_v32 = vadd.f32 %v18192_v16, %v13858_v0  ;;  %v14116_v2 = vadd.f32 %v18192_v16, %v13862_v10  ;;  %v14120_v27 = vadd.f32 %v18192_v16, %v13866_v15  ;;  %vm4337_vm1 = vcmp.ge.f32.partialorder %v13999_v21, 0.0 }
 0x3f3   :  { %18196 = vst [vmem:[#allocation20_spill] sm:$0xff] %v14100_v31  ;;  %18197 = vst [vmem:[#allocation36_spill] sm:$0xff] %v14104_v52  ;;  %v14124_v40 = vadd.f32 %v18192_v16, %v13870_v13  ;;  %v14128_v9 = vadd.f32 %v18192_v16, %v13874_v43  ;;  %v14132_v39 = vadd.f32 %v18192_v16, %v13878_v57  ;;  %vm4338_vm2 = vcmp.ge.f32.partialorder %v14003_v53, 0.0 }
 0x3f4   :  { %18198 = vst [vmem:[#allocation37_spill] sm:$0xff] %v14112_v32  ;;  %v14136_v0 = vadd.f32 %v18192_v16, %v13882_v8  ;;  %v14140_v10 = vadd.f32 %v18192_v16, %v13886_v22  ;;  %v14144_v15 = vadd.f32 %v18192_v16, %v13890_v33  ;;  %v14148_v13 = vadd.f32 %v18192_v16, %v13894_v36 }
 0x3f5   :  { %18199 = vst [vmem:[#allocation38_spill] sm:$0xff] %v14124_v40  ;;  %v14152_v43 = vadd.f32 %v18192_v16, %v13898_v1  ;;  %v14156_v57 = vadd.f32 %v18192_v16, %v13902_v28  ;;  %v14160_v8 = vadd.f32 %v18192_v16, %v13906_v42  ;;  %v14164_v22 = vadd.f32 %v18192_v16, %v13910_v29  ;;  %v18204_v42 = vld [vmem:[#allocation27_spill] sm:$0xff] }
 0x3f6   :  { %v14168_v33 = vadd.f32 %v18192_v16, %v13914_v14  ;;  %v14172_v36 = vadd.f32 %v18192_v16, %v13918_v41  ;;  %v14176_v1 = vadd.f32 %v18192_v16, %v13922_v5  ;;  %v14180_v28 = vadd.f32 %v18192_v16, %v13926_v62 }
 0x3f7   :  { %18200 = vst [vmem:[#allocation39_spill] sm:$0xff] %v14164_v22  ;;  %v14184_v29 = vadd.f32 %v18192_v16, %v18204_v42  ;;  %v14188_v14 = vadd.f32 %v18192_v16, %v18206_v47  ;;  %v18208_v22 = vld [vmem:[#allocation31_spill] sm:$0xff]  ;;  %v14196_v5 = vadd.f32 %v18192_v16, %v13942_v12  ;;  %v14200_v62 = vadd.f32 %v18192_v16, %v13946_v58  ;;  %v18211_v47 = vld [vmem:[#allocation33_spill] sm:$0xff] }
 0x3f8   :  { %18201 = vst [vmem:[#allocation40_spill] sm:$0xff] %v14168_v33  ;;  %18202 = vst [vmem:[#allocation41_spill] sm:$0xff] %v14176_v1  ;;  %v6469_v33 = vld [vmem:[#allocation5 + $0x220] sm:$0xff]  ;;  %v14192_v41 = vadd.f32 %v18192_v16, %v18208_v22  ;;  %v14216_v12 = vadd.f32 %v18192_v16, %v13962_v23  ;;  %v14220_v58 = vadd.f32 %v18192_v16, %v13967_v24  ;;  %vm4339_vm3 = vcmp.ge.f32.partialorder %v14007_v7, 0.0 }
 0x3f9   :  { %18203 = vst [vmem:[#allocation42_spill] sm:$0xff] %v14180_v28  ;;  %18205 = vst [vmem:[#allocation43_spill] sm:$0xff] %v14184_v29  ;;  %v18210_v28 = vld [vmem:[#allocation29_spill] sm:$0xff]  ;;  %7345 = vmatpush1.msra.mxu1 %v6469_v33  ;;  %v18212_v29 = vld [vmem:[#allocation30_spill] sm:$0xff]  ;;  %v14227_v33 = vadd.f32 %v18192_v16, %v13971_v51  ;;  %v14235_v23 = vadd.f32 %v18192_v16, %v13979_v54  ;;  %v14239_v24 = vadd.f32 %v18192_v16, %v13983_v17 }
 0x3fa   :  { %18207 = vst [vmem:[#allocation11_spill] sm:$0xff] %v14188_v14  ;;  %18209 = vst [vmem:[#allocation44_spill] sm:$0xff] %v14200_v62  ;;  %v14204_v42 = vadd.f32 %v18192_v16, %v18210_v28  ;;  %v14208_v14 = vadd.f32 %v18192_v16, %v18211_v47  ;;  %v14212_v22 = vadd.f32 %v18192_v16, %v18212_v29  ;;  %v14222_v62 = vld [vmem:[#allocation3] sm:$0xff]  ;;  %v6467_v54 = vld [vmem:[#allocation5 + $0x210] sm:$0xff]  ;;  %vm4340_vm4 = vcmp.ge.f32.partialorder %v14011_v50, 0.0 }
 0x3fb   :  { %7346 = vmatprep.subr.mxu1 %v14222_v62  ;;  %v18213_v28 = vld [vmem:[#allocation35_spill] sm:$0xff]  ;;  %v14243_v47 = vadd.f32 %v18192_v16, %v13987_v60  ;;  %v14247_v51 = vadd.f32 %v18192_v16, %v13991_v55  ;;  %v18215_v17 = vld [vmem:[#allocation12_spill] sm:$0xff]  ;;  %vm4341_vm5 = vcmp.ge.f32.partialorder %v14015_v25, 0.0  ;;  %vm4342_vm6 = vcmp.ge.f32.partialorder %v14019_v38, 0.0 }
 0x3fc   :  { %v14231_v29 = vadd.f32 %v18192_v16, %v18213_v28  ;;  %v14251_v28 = vadd.f32 %v18192_v16, %v13995_v49  ;;  %v14257_v60 = vmul.f32 %v18215_v17, %v13999_v21  ;;  %v14261_v55 = vmul.f32 %v18215_v17, %v14003_v53 }
 0x3fd   :  { %v14265_v16 = vmul.f32 %v18215_v17, %v14007_v7  ;;  %v14269_v49 = vmul.f32 %v18215_v17, %v14011_v50  ;;  %vm4343_vm7 = vcmp.ge.f32.partialorder %v14023_v3, 0.0  ;;  %vm4344_vm8 = vcmp.ge.f32.partialorder %v14027_v37, 0.0 }
 0x3fe   :  { %18214 = vst [vmem:[#allocation13_spill] sm:$0xff] %v14231_v29  ;;  %v6468_v29 = vld [vmem:[#allocation5 + $0x218] sm:$0xff]  ;;  %18216 = vst [vmem:[#allocation15_spill] sm:$0xff] %v14257_v60  ;;  %v14281_v60 = vmul.f32 %v18215_v17, %v14023_v3  ;;  %vm4345_vm9 = vcmp.ge.f32.partialorder %v14031_v63, 0.0  ;;  %vm4346_vm10 = vcmp.ge.f32.partialorder %v14035_v45, 0.0  ;;  %vm4347_vm11 = vcmp.ge.f32.partialorder %v14039_v19, 0.0 }
 0x3ff   :  { %7347 = vmatpush1.msra.mxu1 %v6468_v29  ;;  %18217 = vst [vmem:[#allocation17_spill] sm:$0xff] %v14261_v55  ;;  %18218 = vst [vmem:[#allocation16_spill] sm:$0xff] %v14265_v16  ;;  %v14273_v29 = vmul.f32 %v18215_v17, %v14015_v25  ;;  %v14285_v55 = vmul.f32 %v18215_v17, %v14027_v37  ;;  %v14289_v16 = vmul.f32 %v18215_v17, %v14031_v63 }
 0x400   :  { %7348 = vmatprep.subr.mxu1 %v14222_v62  ;;  %18219 = vst [vmem:[#allocation19_spill] sm:$0xff] %v14269_v49  ;;  %18222 = vst [vmem:[#allocation22_spill] sm:$0xff] %v14281_v60  ;;  %v14293_v49 = vmul.f32 %v18215_v17, %v14035_v45  ;;  %v14305_v60 = vmul.f32 %v18215_v17, %v14047_v35  ;;  %vm4348_vm12 = vcmp.ge.f32.partialorder %v14043_v56, 0.0  ;;  %vm4380_vm13 = vcmp.ge.f32.partialorder %v14172_v36, 0.0 }
 0x401   :  { %7349 = vmatpush1.msra.mxu1 %v6467_v54  ;;  %18220 = vst [vmem:[#allocation21_spill] sm:$0xff] %v14273_v29  ;;  %v14277_v54 = vmul.f32 %v18215_v17, %v14019_v38  ;;  %18223 = vst [vmem:[#allocation25_spill] sm:$0xff] %v14285_v55  ;;  %v14297_v29 = vmul.f32 %v18215_v17, %v14039_v19  ;;  %v14309_v55 = vmul.f32 %v18215_v17, %v14051_v30 }
 0x402   :  { %7350 = vmatprep.subr.mxu1 %v14222_v62  ;;  %18224 = vst [vmem:[#allocation24_spill] sm:$0xff] %v14289_v16  ;;  %18225 = vst [vmem:[#allocation26_spill] sm:$0xff] %v14293_v49  ;;  %v14313_v16 = vmul.f32 %v18215_v17, %v14055_v61  ;;  %v14317_v49 = vmul.f32 %v18215_v17, %v14059_v20  ;;  %vm4385_vm15 = vcmp.ge.f32.partialorder %v14192_v41, 0.0  ;;  %vm4386_vm14 = vcmp.ge.f32.partialorder %v14196_v5, 0.0 }
 0x403   :  { %18221 = vst [vmem:[#allocation23_spill] sm:$0xff] %v14277_v54  ;;  %18226 = vst [vmem:[#allocation14_spill] sm:$0xff] %v14297_v29  ;;  %v14301_v54 = vmul.f32 %v18215_v17, %v14043_v56  ;;  %v14321_v29 = vmul.f32 %v18215_v17, %v14063_v6 }
 0x404   :  { %18228 = vst [vmem:[#allocation28_spill] sm:$0xff] %v14305_v60  ;;  %18229 = vst [vmem:[#allocation31_spill] sm:$0xff] %v14313_v16  ;;  %v6466_v60 = vld [vmem:[#allocation5 + $0x208] sm:$0xff]  ;;  %v14332_v16 = vmul.f32 %v18215_v17, %v14071_v44 }
 0x405   :  { %18227 = vst [vmem:[#allocation27_spill] sm:$0xff] %v14301_v54  ;;  %18230 = vst [vmem:[#allocation29_spill] sm:$0xff] %v14317_v49  ;;  %v14325_v54 = vmul.f32 %v18215_v17, %v14067_v18  ;;  %v14336_v49 = vmul.f32 %v18215_v17, %v14075_v26  ;;  %7351 = vmatpush1.msra.mxu1 %v6466_v60  ;;  %v14364_v60 = vmul.f32 %v18215_v17, %v14100_v31 }
 0x406   :  { %18231 = vst [vmem:[#allocation33_spill] sm:$0xff] %v14321_v29  ;;  %v14340_v29 = vmul.f32 %v18215_v17, %v14079_v34  ;;  %7352 = vmatprep.subr.mxu1 %v14222_v62 }
 0x407   :  { %18232 = vst [vmem:[#allocation30_spill] sm:$0xff] %v14325_v54  ;;  %18233 = vst [vmem:[#allocation35_spill] sm:$0xff] %v14336_v49  ;;  %v14344_v54 = vmul.f32 %v18215_v17, %v14083_v46  ;;  %v14352_v49 = vmul.f32 %v18215_v17, %v14087_v59 }
 0x408   :  { %18234 = vst [vmem:[#allocation45_spill] sm:$0xff] %v14340_v29  ;;  %v14356_v29 = vmul.f32 %v18215_v17, %v14091_v11  ;;  %18239 = vst [vmem:[#allocation50_spill] sm:$0xff] %v14364_v60  ;;  %v14381_v60 = vmul.f32 %v18215_v17, %v14112_v32  ;;  %v6465_v32 = vld [vmem:[#allocation5 + $0x200] sm:$0xff] }
 0x409   :  { %18235 = vst [vmem:[#allocation46_spill] sm:$0xff] %v14344_v54  ;;  %18236 = vst [vmem:[#allocation47_spill] sm:$0xff] %v14352_v49  ;;  %v14360_v54 = vmul.f32 %v18215_v17, %v14096_v48  ;;  %v14385_v49 = vmul.f32 %v18215_v17, %v14116_v2  ;;  %7353 = vmatpush1.msra.mxu1 %v6465_v32  ;;  %v18277_v32 = vld [vmem:[#allocation13_spill] sm:$0xff] }
 0x40a   :  { %18237 = vst [vmem:[#allocation48_spill] sm:$0xff] %v14356_v29  ;;  %v14373_v29 = vmul.f32 %v18215_v17, %v14104_v52  ;;  %18242 = vst [vmem:[#allocation53_spill] sm:$0xff] %v14381_v60  ;;  %v14401_v60 = vmul.f32 %v18215_v17, %v14128_v9  ;;  %7354 = vmatprep.subr.mxu1 %v14222_v62 }
 0x40b   :  { %18238 = vst [vmem:[#allocation49_spill] sm:$0xff] %v14360_v54  ;;  %v14377_v54 = vmul.f32 %v18215_v17, %v14108_v4  ;;  %18243 = vst [vmem:[#allocation54_spill] sm:$0xff] %v14385_v49  ;;  %v14405_v49 = vmul.f32 %v18215_v17, %v14132_v39 }
 0x40c   :  { %18240 = vst [vmem:[#allocation51_spill] sm:$0xff] %v14373_v29  ;;  %v14393_v29 = vmul.f32 %v18215_v17, %v14120_v27  ;;  %18246 = vst [vmem:[#allocation57_spill] sm:$0xff] %v14401_v60  ;;  %v14421_v60 = vmul.f32 %v18215_v17, %v14144_v15 }
 0x40d   :  { %18241 = vst [vmem:[#allocation52_spill] sm:$0xff] %v14377_v54  ;;  %v14397_v54 = vmul.f32 %v18215_v17, %v14124_v40  ;;  %18247 = vst [vmem:[#allocation58_spill] sm:$0xff] %v14405_v49  ;;  %v14425_v49 = vmul.f32 %v18215_v17, %v14148_v13  ;;  %v14505_v40 = vmul.f32 %v18215_v17, %v14212_v22 }
 0x40e   :  { %18244 = vst [vmem:[#allocation55_spill] sm:$0xff] %v14393_v29  ;;  %v14413_v29 = vmul.f32 %v18215_v17, %v14136_v0  ;;  %18250 = vst [vmem:[#allocation61_spill] sm:$0xff] %v14421_v60  ;;  %v14441_v60 = vmul.f32 %v18215_v17, %v14160_v8 }
 0x40f   :  { %18245 = vst [vmem:[#allocation56_spill] sm:$0xff] %v14397_v54  ;;  %v14417_v54 = vmul.f32 %v18215_v17, %v14140_v10  ;;  %18251 = vst [vmem:[#allocation62_spill] sm:$0xff] %v14425_v49  ;;  %v18255_v49 = vld [vmem:[#allocation39_spill] sm:$0xff] }
 0x410   :  { %18248 = vst [vmem:[#allocation59_spill] sm:$0xff] %v14413_v29  ;;  %v14433_v29 = vmul.f32 %v18215_v17, %v14152_v43  ;;  %18254 = vst [vmem:[#allocation65_spill] sm:$0xff] %v14441_v60  ;;  %v14445_v26 = vmul.f32 %v18215_v17, %v18255_v49  ;;  %v14461_v60 = vmul.f32 %v18215_v17, %v14176_v1  ;;  %v18286_v1 = vld [vmem:[#allocation16_spill] sm:$0xff] }
 0x411   :  { %18249 = vst [vmem:[#allocation60_spill] sm:$0xff] %v14417_v54  ;;  %v14437_v54 = vmul.f32 %v18215_v17, %v14156_v57  ;;  %18273 = vst [vmem:[#allocation74_spill] sm:$0xff] %v14505_v40  ;;  %v14521_v40 = vmul.f32 %v18215_v17, %v14227_v33 }
 0x412   :  { %18252 = vst [vmem:[#allocation63_spill] sm:$0xff] %v14433_v29  ;;  %18256 = vst [vmem:[#allocation39_spill] sm:$0xff] %v14445_v26  ;;  %v18257_v29 = vld [vmem:[#allocation40_spill] sm:$0xff]  ;;  %v18261_v26 = vld [vmem:[#allocation42_spill] sm:$0xff] }
 0x413   :  { %18253 = vst [vmem:[#allocation64_spill] sm:$0xff] %v14437_v54  ;;  %v14453_v59 = vmul.f32 %v18215_v17, %v18257_v29  ;;  %v14457_v54 = vmul.f32 %v18215_v17, %v14172_v36  ;;  %18260 = vst [vmem:[#allocation68_spill] sm:$0xff] %v14461_v60  ;;  %v14465_v11 = vmul.f32 %v18215_v17, %v18261_v26  ;;  %v18285_v29 = vld [vmem:[#allocation17_spill] sm:$0xff] }
 0x414   :  { %v14481_v60 = vmul.f32 %v18215_v17, %v14192_v41  ;;  %18276 = vst [vmem:[#allocation77_spill] sm:$0xff] %v14521_v40  ;;  %v14538_v40 = vmul.f32 %v18215_v17, %v14239_v24 }
 0x415   :  { %18258 = vst [vmem:[#allocation66_spill] sm:$0xff] %v14453_v59  ;;  %18259 = vst [vmem:[#allocation67_spill] sm:$0xff] %v14457_v54  ;;  %v18263_v59 = vld [vmem:[#allocation43_spill] sm:$0xff] }
 0x416   :  { %18262 = vst [vmem:[#allocation42_spill] sm:$0xff] %v14465_v11  ;;  %v14473_v52 = vmul.f32 %v18215_v17, %v18263_v59  ;;  %v18265_v54 = vld [vmem:[#allocation11_spill] sm:$0xff]  ;;  %18267 = vst [vmem:[#allocation70_spill] sm:$0xff] %v14481_v60  ;;  %v14485_v11 = vmul.f32 %v18215_v17, %v14196_v5  ;;  %v14497_v60 = vmul.f32 %v18215_v17, %v14204_v42 }
 0x417   :  { %v14477_v31 = vmul.f32 %v18215_v17, %v18265_v54  ;;  %18280 = vst [vmem:[#allocation79_spill] sm:$0xff] %v14538_v40  ;;  %v18284_v40 = vld [vmem:[#allocation15_spill] sm:$0xff]  ;;  %v14570_v59 = vsel %vm4339_vm3, %v14007_v7, %v18286_v1  ;;  %vm4384_vm0 = vcmp.ge.f32.partialorder %v18265_v54, 0.0  ;;  %vm4389_vm3 = vcmp.ge.f32.partialorder %v14208_v14, 0.0 }
 0x418   :  { %18264 = vst [vmem:[#allocation69_spill] sm:$0xff] %v14473_v52  ;;  %18268 = vst [vmem:[#allocation71_spill] sm:$0xff] %v14485_v11  ;;  %v18269_v52 = vld [vmem:[#allocation44_spill] sm:$0xff]  ;;  %v14501_v11 = vmul.f32 %v18215_v17, %v14208_v14  ;;  %v18289_v1 = vld [vmem:[#allocation23_spill] sm:$0xff] }
 0x419   :  { %18266 = vst [vmem:[#allocation11_spill] sm:$0xff] %v14477_v31  ;;  %v14493_v31 = vmul.f32 %v18215_v17, %v18269_v52  ;;  %18271 = vst [vmem:[#allocation72_spill] sm:$0xff] %v14497_v60  ;;  %v14513_v60 = vmul.f32 %v18215_v17, %v14216_v12 }
 0x41a   :  { %18272 = vst [vmem:[#allocation73_spill] sm:$0xff] %v14501_v11  ;;  %v14517_v11 = vmul.f32 %v18215_v17, %v14220_v58  ;;  %4610 = vst [vmem:[#allocation3 + $0x31] sm:$0xff] %v14570_v59 }
 0x41b   :  { %18270 = vst [vmem:[#allocation44_spill] sm:$0xff] %v14493_v31  ;;  %18274 = vst [vmem:[#allocation75_spill] sm:$0xff] %v14513_v60  ;;  %v14525_v31 = vmul.f32 %v18215_v17, %v18277_v32  ;;  %v14546_v60 = vmul.f32 %v18215_v17, %v14247_v51 }
 0x41c   :  { %18275 = vst [vmem:[#allocation76_spill] sm:$0xff] %v14517_v11  ;;  %v14534_v11 = vmul.f32 %v18215_v17, %v14235_v23 }
 0x41d   :  { %18278 = vst [vmem:[#allocation13_spill] sm:$0xff] %v14525_v31  ;;  %v14542_v31 = vmul.f32 %v18215_v17, %v14243_v47  ;;  %18282 = vst [vmem:[#allocation81_spill] sm:$0xff] %v14546_v60  ;;  %v14564_v60 = vsel %vm4338_vm2, %v14003_v53, %v18285_v29  ;;  %v14592_v29 = vsel %vm4342_vm6, %v14019_v38, %v18289_v1  ;;  %vm4388_vm2 = vcmp.ge.f32.partialorder %v14204_v42, 0.0  ;;  %v18292_v38 = vld [vmem:[#allocation24_spill] sm:$0xff] }
 0x41e   :  { %18279 = vst [vmem:[#allocation78_spill] sm:$0xff] %v14534_v11  ;;  %v14554_v11 = vmul.f32 %v18215_v17, %v14251_v28  ;;  %v18290_v17 = vld [vmem:[#allocation22_spill] sm:$0xff]  ;;  %4609 = vst [vmem:[#allocation3 + $0x21] sm:$0xff] %v14564_v60  ;;  %vm4392_vm6 = vcmp.ge.f32.partialorder %v14220_v58, 0.0 }
 0x41f   :  { %18281 = vst [vmem:[#allocation80_spill] sm:$0xff] %v14542_v31  ;;  %v4466_v31 = vsel %vm4337_vm1, %v13999_v21, %v18284_v40  ;;  %vm4387_vm1 = vcmp.ge.f32.partialorder %v18269_v52, 0.0  ;;  %v18287_v21 = vld [vmem:[#allocation19_spill] sm:$0xff]  ;;  %v18288_v40 = vld [vmem:[#allocation21_spill] sm:$0xff]  ;;  %4613 = vst [vmem:[#allocation3 + $0x51] sm:$0xff] %v14592_v29 }
 0x420   :  { %18283 = vst [vmem:[#allocation82_spill] sm:$0xff] %v14554_v11  ;;  %v14580_v53 = vsel %vm4340_vm4, %v14011_v50, %v18287_v21  ;;  %v14586_v7 = vsel %vm4341_vm5, %v14015_v25, %v18288_v40  ;;  %v14598_v11 = vsel %vm4343_vm7, %v14023_v3, %v18290_v17  ;;  %4608 = vst [vmem:[#allocation3 + $0x19] sm:$0xff] %v4466_v31  ;;  %6626 = vmatprep.mubr.f32.mxu1 %v4466_v31  ;;  %v18291_v50 = vld [vmem:[#allocation25_spill] sm:$0xff]  ;;  %v18293_v31 = vld [vmem:[#allocation26_spill] sm:$0xff] }
 0x421   :  { %vm4390_vm4 = vcmp.ge.f32.partialorder %v14212_v22, 0.0  ;;  %vm4391_vm5 = vcmp.ge.f32.partialorder %v14216_v12, 0.0  ;;  %v14610_v25 = vsel %vm4344_vm8, %v14027_v37, %v18291_v50  ;;  %v14616_v3 = vsel %vm4345_vm9, %v14031_v63, %v18292_v38  ;;  %v18294_v21 = vld [vmem:[#allocation14_spill] sm:$0xff]  ;;  %4611 = vst [vmem:[#allocation3 + $0x39] sm:$0xff] %v14580_v53  ;;  %4612 = vst [vmem:[#allocation3 + $0x49] sm:$0xff] %v14586_v7  ;;  %v18295_v37 = vld [vmem:[#allocation27_spill] sm:$0xff] }
 0x422   :  { %v14622_v17 = vsel %vm4346_vm10, %v14035_v45, %v18293_v31  ;;  %v14628_v40 = vsel %vm4347_vm11, %v14039_v19, %v18294_v21  ;;  %4614 = vst [vmem:[#allocation3 + $0x61] sm:$0xff] %v14598_v11  ;;  %v14642_v63 = vsel %vm4348_vm12, %v14043_v56, %v18295_v37  ;;  %v18296_v45 = vld [vmem:[#allocation28_spill] sm:$0xff]  ;;  %vm18297_vm10 = vcmp.ge.f32.partialorder %v14047_v35, 0.0  ;;  %v18299_v50 = vld [vmem:[#allocation31_spill] sm:$0xff]  ;;  %4615 = vst [vmem:[#allocation3 + $0x69] sm:$0xff] %v14610_v25 }
 0x423   :  { %v14648_v19 = vsel %vm18297_vm10, %v14047_v35, %v18296_v45  ;;  %vm18298_vm11 = vcmp.ge.f32.partialorder %v14051_v30, 0.0  ;;  %vm18300_vm9 = vcmp.ge.f32.partialorder %v14055_v61, 0.0  ;;  %4616 = vst [vmem:[#allocation3 + $0x79] sm:$0xff] %v14616_v3  ;;  %4617 = vst [vmem:[#allocation3 + $0x81] sm:$0xff] %v14622_v17  ;;  %vm4396_vm12 = vcmp.ge.f32.partialorder %v14239_v24, 0.0  ;;  %v18301_v56 = vld [vmem:[#allocation29_spill] sm:$0xff] }
 0x424   :  { %v14654_v1 = vsel %vm18298_vm11, %v14051_v30, %v14309_v55  ;;  %v14660_v38 = vsel %vm18300_vm9, %v14055_v61, %v18299_v50  ;;  %4618 = vst [vmem:[#allocation3 + $0x91] sm:$0xff] %v14628_v40  ;;  %vm4398_vm11 = vcmp.ge.f32.partialorder %v14247_v51, 0.0  ;;  %vm18302_vm9 = vcmp.ge.f32.partialorder %v14059_v20, 0.0  ;;  %v18303_v30 = vld [vmem:[#allocation33_spill] sm:$0xff]  ;;  %v18305_v55 = vld [vmem:[#allocation30_spill] sm:$0xff]  ;;  %4619 = vst [vmem:[#allocation3 + $0x99] sm:$0xff] %v14642_v63 }
 0x425   :  { %v14674_v35 = vsel %vm18302_vm9, %v14059_v20, %v18301_v56  ;;  %vm18304_vm7 = vcmp.ge.f32.partialorder %v14063_v6, 0.0  ;;  %vm18306_vm10 = vcmp.ge.f32.partialorder %v14067_v18, 0.0  ;;  %vm18308_vm8 = vcmp.ge.f32.partialorder %v14071_v44, 0.0  ;;  %4620 = vst [vmem:[#allocation3 + $0xa9] sm:$0xff] %v14648_v19  ;;  %4621 = vst [vmem:[#allocation3 + $0xb1] sm:$0xff] %v14654_v1  ;;  %v6496_v20 = vld [vmem:[#allocation5 + $0x2f8] sm:$0xff] }
 0x426   :  { %v14680_v61 = vsel %vm18304_vm7, %v14063_v6, %v18303_v30  ;;  %v14686_v31 = vsel %vm18306_vm10, %v14067_v18, %v18305_v55  ;;  %v14692_v21 = vsel %vm18308_vm8, %v14071_v44, %v14332_v16  ;;  %4622 = vst [vmem:[#allocation3 + $0xc1] sm:$0xff] %v14660_v38  ;;  %v18310_v6 = vld [vmem:[#allocation35_spill] sm:$0xff]  ;;  %v18311_v37 = vld [vmem:[#allocation32_spill] sm:$0xff]  ;;  %v18313_v45 = vld [vmem:[#allocation45_spill] sm:$0xff]  ;;  %vm18314_vm8 = vcmp.ge.f32.partialorder %v14079_v34, 0.0  ;;  %7355 = vmatpush2.msra.mxu1 %v6496_v20 }
 0x427   :  { %18307 = vst [vmem:[#allocation15_spill] sm:$0xff] %v14686_v31  ;;  %18309 = vst [vmem:[#allocation17_spill] sm:$0xff] %v14692_v21  ;;  %vm18312_vm7 = vcmp.ge.f32.partialorder %v18311_v37, 0.0  ;;  %v14708_v44 = vsel %vm18314_vm8, %v14079_v34, %v18313_v45  ;;  %v18315_v16 = vld [vmem:[#allocation46_spill] sm:$0xff]  ;;  %vm18316_vm10 = vcmp.ge.f32.partialorder %v14083_v46, 0.0  ;;  %v18317_v56 = vld [vmem:[#allocation47_spill] sm:$0xff]  ;;  %7356 = vmatprep.subr.mxu1 %v14222_v62 }
 0x428   :  { %v14702_v18 = vsel %vm18312_vm7, %v18311_v37, %v18310_v6  ;;  %v14714_v50 = vsel %vm18316_vm10, %v14083_v46, %v18315_v16  ;;  %v18318_v30 = vld [vmem:[#allocation34_spill] sm:$0xff]  ;;  %4623 = vst [vmem:[#allocation3 + $0xc9] sm:$0xff] %v14674_v35  ;;  %4624 = vst [vmem:[#allocation3 + $0xd9] sm:$0xff] %v14680_v61  ;;  %v18321_v34 = vld [vmem:[#allocation48_spill] sm:$0xff]  ;;  %vm18325_vm8 = vcmp.ge.f32.partialorder %v14096_v48, 0.0 }
 0x429   :  { %vm18319_vm9 = vcmp.ge.f32.partialorder %v18318_v30, 0.0  ;;  %4625 = vst [vmem:[#allocation3 + $0xe1] sm:$0xff] %v14686_v31  ;;  %4626 = vst [vmem:[#allocation3 + $0xf1] sm:$0xff] %v14692_v21  ;;  %v18322_v6 = vld [vmem:[#allocation18_spill] sm:$0xff]  ;;  %v18324_v37 = vld [vmem:[#allocation49_spill] sm:$0xff] }
 0x42a   :  { %v14720_v55 = vsel %vm18319_vm9, %v18318_v30, %v18317_v56  ;;  %vm18323_vm7 = vcmp.ge.f32.partialorder %v18322_v6, 0.0  ;;  %v14736_v45 = vsel %vm18325_vm8, %v14096_v48, %v18324_v37  ;;  %v18326_v16 = vld [vmem:[#allocation50_spill] sm:$0xff]  ;;  %v18327_v56 = vld [vmem:[#allocation20_spill] sm:$0xff]  ;;  %v18329_v21 = vld [vmem:[#allocation51_spill] sm:$0xff]  ;;  %4627 = vst [vmem:[#allocation3 + $0xf9] sm:$0xff] %v14702_v18 }
 0x42b   :  { %18320 = vst [vmem:[#allocation16_spill] sm:$0xff] %v14720_v55  ;;  %v14730_v46 = vsel %vm18323_vm7, %v18322_v6, %v18321_v34  ;;  %vm18328_vm10 = vcmp.ge.f32.partialorder %v18327_v56, 0.0  ;;  %v18330_v20 = vld [vmem:[#allocation36_spill] sm:$0xff]  ;;  %4628 = vst [vmem:[#allocation3 + $0x109] sm:$0xff] %v14708_v44  ;;  %vm18334_vm7 = vcmp.ge.f32.partialorder %v14108_v4, 0.0  ;;  %v18335_v6 = vld [vmem:[#allocation53_spill] sm:$0xff] }
 0x42c   :  { %v14742_v30 = vsel %vm18328_vm10, %v18327_v56, %v18326_v16  ;;  %vm18331_vm9 = vcmp.ge.f32.partialorder %v18330_v20, 0.0  ;;  %4629 = vst [vmem:[#allocation3 + $0x111] sm:$0xff] %v14714_v50  ;;  %4630 = vst [vmem:[#allocation3 + $0x121] sm:$0xff] %v14720_v55  ;;  %v18333_v48 = vld [vmem:[#allocation52_spill] sm:$0xff]  ;;  %v18336_v37 = vld [vmem:[#allocation37_spill] sm:$0xff]  ;;  %vm18339_vm10 = vcmp.ge.f32.partialorder %v14116_v2, 0.0 }
 0x42d   :  { %v14748_v31 = vsel %vm18331_vm9, %v18330_v20, %v18329_v21  ;;  %v14759_v34 = vsel %vm18334_vm7, %v14108_v4, %v18333_v48  ;;  %vm18337_vm8 = vcmp.ge.f32.partialorder %v18336_v37, 0.0  ;;  %v18338_v16 = vld [vmem:[#allocation54_spill] sm:$0xff]  ;;  %v18341_v20 = vld [vmem:[#allocation55_spill] sm:$0xff]  ;;  %vm18342_vm9 = vcmp.ge.f32.partialorder %v14120_v27, 0.0  ;;  %4631 = vst [vmem:[#allocation3 + $0x129] sm:$0xff] %v14730_v46  ;;  %4632 = vst [vmem:[#allocation3 + $0x139] sm:$0xff] %v14736_v45 }
 0x42e   :  { %18332 = vst [vmem:[#allocation19_spill] sm:$0xff] %v14748_v31  ;;  %v14765_v21 = vsel %vm18337_vm8, %v18336_v37, %v18335_v6  ;;  %v14771_v56 = vsel %vm18339_vm10, %v14116_v2, %v18338_v16  ;;  %v4496_v55 = vsel %vm18342_vm9, %v14120_v27, %v18341_v20  ;;  %4633 = vst [vmem:[#allocation3 + $0x141] sm:$0xff] %v14742_v30  ;;  %v18343_v4 = vld [vmem:[#allocation56_spill] sm:$0xff]  ;;  %v18344_v48 = vld [vmem:[#allocation38_spill] sm:$0xff]  ;;  %vm18347_vm8 = vcmp.ge.f32.partialorder %v14128_v9, 0.0 }
 0x42f   :  { %18340 = vst [vmem:[#allocation21_spill] sm:$0xff] %v14771_v56  ;;  %4634 = vst [vmem:[#allocation3 + $0x151] sm:$0xff] %v14748_v31  ;;  %vm18345_vm7 = vcmp.ge.f32.partialorder %v18344_v48, 0.0  ;;  %v18346_v2 = vld [vmem:[#allocation57_spill] sm:$0xff]  ;;  %v18348_v27 = vld [vmem:[#allocation58_spill] sm:$0xff]  ;;  %vm18349_vm10 = vcmp.ge.f32.partialorder %v14132_v39, 0.0 }
 0x430   :  { %v4497_v6 = vsel %vm18345_vm7, %v18344_v48, %v18343_v4  ;;  %v14789_v37 = vsel %vm18347_vm8, %v14128_v9, %v18346_v2  ;;  %v14795_v16 = vsel %vm18349_vm10, %v14132_v39, %v18348_v27  ;;  %v18350_v20 = vld [vmem:[#allocation59_spill] sm:$0xff]  ;;  %vm18351_vm9 = vcmp.ge.f32.partialorder %v14136_v0, 0.0  ;;  %4635 = vst [vmem:[#allocation3 + $0x159] sm:$0xff] %v14759_v34  ;;  %4636 = vst [vmem:[#allocation3 + $0x169] sm:$0xff] %v14765_v21  ;;  %v5056_v9 = vld [vmem:[#allocation3 + $0x18] sm:$0xff] }
 0x431   :  { %v14801_v31 = vsel %vm18351_vm9, %v14136_v0, %v18350_v20  ;;  %4637 = vst [vmem:[#allocation3 + $0x171] sm:$0xff] %v14771_v56  ;;  %4638 = vst [vmem:[#allocation3 + $0x181] sm:$0xff] %v4496_v55  ;;  %v4928_v4 = vld [vmem:[#allocation3 + $0x2] sm:$0xff]  ;;  %vm18353_vm7 = vcmp.ge.f32.partialorder %v14140_v10, 0.0  ;;  %v18354_v2 = vld [vmem:[#allocation61_spill] sm:$0xff]  ;;  %vm18355_vm8 = vcmp.ge.f32.partialorder %v14144_v15, 0.0  ;;  %7001 = vmatprep.mubr.f32.mxu0 %v5056_v9  ;;  %6627 = vmatmul.mubr.f32.gmra.mxu1 %v5056_v9 }
 0x432   :  { %v18352_v48 = vld [vmem:[#allocation60_spill] sm:$0xff]  ;;  %v14816_v0 = vsel %vm18355_vm8, %v14144_v15, %v18354_v2  ;;  %v18356_v27 = vld [vmem:[#allocation62_spill] sm:$0xff]  ;;  %vm18357_vm10 = vcmp.ge.f32.partialorder %v14148_v13, 0.0  ;;  %v18359_v55 = vld [vmem:[#allocation63_spill] sm:$0xff]  ;;  %vm18360_vm9 = vcmp.ge.f32.partialorder %v14152_v43, 0.0  ;;  %4639 = vst [vmem:[#allocation3 + $0x189] sm:$0xff] %v4497_v6  ;;  %7002 = vmatmul.mubr.f32.vlgmr.msra.gmra.mxu0 %v4928_v4  ;;  %6631 = vmatprep.mubr.f32.mxu1 %v14564_v60 }
 0x433   :  { %v14810_v39 = vsel %vm18353_vm7, %v14140_v10, %v18352_v48  ;;  %v14822_v20 = vsel %vm18357_vm10, %v14148_v13, %v18356_v27  ;;  %v14828_v56 = vsel %vm18360_vm9, %v14152_v43, %v18359_v55  ;;  %4640 = vst [vmem:[#allocation3 + $0x1c9] sm:$0xff] %v14789_v37  ;;  %4641 = vst [vmem:[#allocation3 + $0x1d1] sm:$0xff] %v14795_v16  ;;  %v18361_v10 = vld [vmem:[#allocation64_spill] sm:$0xff]  ;;  %vm18362_vm7 = vcmp.ge.f32.partialorder %v14156_v57, 0.0  ;;  %v18363_v13 = vld [vmem:[#allocation65_spill] sm:$0xff] }
 0x434   :  { %18358 = vst [vmem:[#allocation23_spill] sm:$0xff] %v14822_v20  ;;  %4642 = vst [vmem:[#allocation3 + $0x1e1] sm:$0xff] %v14801_v31  ;;  %v4505_v15 = vsel %vm18362_vm7, %v14156_v57, %v18361_v10  ;;  %vm18364_vm8 = vcmp.ge.f32.partialorder %v14160_v8, 0.0  ;;  %v18365_v43 = vld [vmem:[#allocation39_spill] sm:$0xff]  ;;  %vm18366_vm10 = vcmp.ge.f32.partialorder %v18255_v49, 0.0  ;;  %v18367_v2 = vld [vmem:[#allocation66_spill] sm:$0xff] }
 0x435   :  { %v4506_v48 = vsel %vm18364_vm8, %v14160_v8, %v18363_v13  ;;  %v4507_v6 = vsel %vm18366_vm10, %v18255_v49, %v18365_v43  ;;  %v18368_v27 = vld [vmem:[#allocation40_spill] sm:$0xff]  ;;  %4643 = vst [vmem:[#allocation3 + $0x1e9] sm:$0xff] %v14810_v39  ;;  %4644 = vst [vmem:[#allocation3 + $0x1f9] sm:$0xff] %v14816_v0  ;;  %v18370_v57 = vld [vmem:[#allocation67_spill] sm:$0xff]  ;;  %vm18375_vm8 = vcmp.ge.f32.partialorder %v18261_v26, 0.0 }
 0x436   :  { %vm18369_vm9 = vcmp.ge.f32.partialorder %v18368_v27, 0.0  ;;  %4645 = vst [vmem:[#allocation3 + $0x201] sm:$0xff] %v14822_v20  ;;  %4646 = vst [vmem:[#allocation3 + $0x211] sm:$0xff] %v14828_v56  ;;  %v4509_v8 = vsel %vm4380_vm13, %v14172_v36, %v18370_v57  ;;  %v18371_v49 = vld [vmem:[#allocation68_spill] sm:$0xff]  ;;  %v18372_v10 = vld [vmem:[#allocation41_spill] sm:$0xff]  ;;  %vm18389_vm13 = vcmp.ge.f32.partialorder %v14227_v33, 0.0 }
 0x437   :  { %v4508_v55 = vsel %vm18369_vm9, %v18368_v27, %v18367_v2  ;;  %vm18373_vm7 = vcmp.ge.f32.partialorder %v18372_v10, 0.0  ;;  %v18374_v43 = vld [vmem:[#allocation42_spill] sm:$0xff]  ;;  %v18376_v27 = vld [vmem:[#allocation69_spill] sm:$0xff]  ;;  %v18377_v20 = vld [vmem:[#allocation43_spill] sm:$0xff]  ;;  %4647 = vst [vmem:[#allocation3 + $0x219] sm:$0xff] %v4505_v15 }
 0x438   :  { %v4510_v13 = vsel %vm18373_vm7, %v18372_v10, %v18371_v49  ;;  %v4511_v2 = vsel %vm18375_vm8, %v18261_v26, %v18374_v43  ;;  %vm18378_vm10 = vcmp.ge.f32.partialorder %v18377_v20, 0.0  ;;  %4648 = vst [vmem:[#allocation3 + $0x229] sm:$0xff] %v4506_v48  ;;  %4649 = vst [vmem:[#allocation3 + $0x231] sm:$0xff] %v4507_v6  ;;  %v18379_v36 = vld [vmem:[#allocation11_spill] sm:$0xff]  ;;  %v18380_v49 = vld [vmem:[#allocation70_spill] sm:$0xff] }
 0x439   :  { %v4512_v9 = vsel %vm18378_vm10, %v18377_v20, %v18376_v27  ;;  %4650 = vst [vmem:[#allocation3 + $0x241] sm:$0xff] %v4508_v55  ;;  %v4513_v57 = vsel %vm4384_vm0, %v18265_v54, %v18379_v36  ;;  %v4514_v26 = vsel %vm4385_vm15, %v14192_v41, %v18380_v49  ;;  %v18381_v10 = vld [vmem:[#allocation71_spill] sm:$0xff]  ;;  %v18382_v15 = vld [vmem:[#allocation44_spill] sm:$0xff]  ;;  %4651 = vst [vmem:[#allocation3 + $0x249] sm:$0xff] %v4509_v8  ;;  %vm18393_vm15 = vcmp.ge.f32.partialorder %v14235_v23, 0.0 }
 0x43a   :  { %v4515_v20 = vsel %vm4386_vm14, %v14196_v5, %v18381_v10  ;;  %v4516_v4 = vsel %vm4387_vm1, %v18269_v52, %v18382_v15  ;;  %4652 = vst [vmem:[#allocation3 + $0x259] sm:$0xff] %v4510_v13  ;;  %4653 = vst [vmem:[#allocation3 + $0x261] sm:$0xff] %v4511_v2  ;;  %v5057_v54 = vld [vmem:[#allocation3 + $0x20] sm:$0xff]  ;;  %v4929_v48 = vld [vmem:[#allocation3 + $0xa] sm:$0xff]  ;;  %vm18391_vm14 = vcmp.ge.f32.partialorder %v18277_v32, 0.0  ;;  %vm18396_vm0 = vcmp.ge.f32.partialorder %v14243_v47, 0.0 }
 0x43b   :  { %4654 = vst [vmem:[#allocation3 + $0x271] sm:$0xff] %v4512_v9  ;;  %v18383_v6 = vld [vmem:[#allocation72_spill] sm:$0xff]  ;;  %v18384_v55 = vld [vmem:[#allocation73_spill] sm:$0xff]  ;;  %v18385_v43 = vld [vmem:[#allocation74_spill] sm:$0xff]  ;;  %7006 = vmatprep.mubr.f32.mxu0 %v5057_v54  ;;  %6632 = vmatmul.mubr.f32.gmra.mxu1 %v5057_v54  ;;  %vm18399_vm1 = vcmp.ge.f32.partialorder %v14251_v28, 0.0 }
 0x43c   :  { %v4517_v41 = vsel %vm4388_vm2, %v14204_v42, %v18383_v6  ;;  %v4518_v5 = vsel %vm4389_vm3, %v14208_v14, %v18384_v55  ;;  %v4519_v52 = vsel %vm4390_vm4, %v14212_v22, %v18385_v43  ;;  %v18386_v8 = vld [vmem:[#allocation75_spill] sm:$0xff]  ;;  %4655 = vst [vmem:[#allocation3 + $0x279] sm:$0xff] %v4513_v57  ;;  %4656 = vst [vmem:[#allocation3 + $0x289] sm:$0xff] %v4514_v26  ;;  %v18387_v42 = vld [vmem:[#allocation76_spill] sm:$0xff]  ;;  %7007 = vmatmul.mubr.f32.gmra.mxu0 %v4929_v48 }
 0x43d   :  { %v4520_v60 = vsel %vm4391_vm5, %v14216_v12, %v18386_v8  ;;  %4657 = vst [vmem:[#allocation3 + $0x291] sm:$0xff] %v4515_v20  ;;  %4658 = vst [vmem:[#allocation3 + $0x2a1] sm:$0xff] %v4516_v4  ;;  %v4521_v14 = vsel %vm4392_vm6, %v14220_v58, %v18387_v42  ;;  %v18388_v13 = vld [vmem:[#allocation77_spill] sm:$0xff]  ;;  %v18392_v27 = vld [vmem:[#allocation78_spill] sm:$0xff]  ;;  %6636 = vmatprep.mubr.f32.mxu1 %v14570_v59 }
 0x43e   :  { %v4522_v22 = vsel %vm18389_vm13, %v14227_v33, %v18388_v13  ;;  %v18390_v2 = vld [vmem:[#allocation13_spill] sm:$0xff]  ;;  %v4524_v9 = vsel %vm18393_vm15, %v14235_v23, %v18392_v27  ;;  %4659 = vst [vmem:[#allocation3 + $0x2a9] sm:$0xff] %v4517_v41  ;;  %4660 = vst [vmem:[#allocation3 + $0x2b9] sm:$0xff] %v4518_v5  ;;  %v6512_v58 = vld [vmem:[#allocation5 + $0x378] sm:$0xff] }
 0x43f   :  { %v4523_v12 = vsel %vm18391_vm14, %v18277_v32, %v18390_v2  ;;  %4661 = vst [vmem:[#allocation3 + $0x2c1] sm:$0xff] %v4519_v52  ;;  %4662 = vst [vmem:[#allocation3 + $0x2d1] sm:$0xff] %v4520_v60  ;;  %v18394_v36 = vld [vmem:[#allocation79_spill] sm:$0xff]  ;;  %v18395_v57 = vld [vmem:[#allocation80_spill] sm:$0xff]  ;;  %7708 = vmatpush1.msra.mxu0 %v6512_v58 }
 0x440   :  { %v4525_v33 = vsel %vm4396_vm12, %v14239_v24, %v18394_v36  ;;  %v4526_v32 = vsel %vm18396_vm0, %v14243_v47, %v18395_v57  ;;  %v18397_v49 = vld [vmem:[#allocation81_spill] sm:$0xff]  ;;  %v18398_v26 = vld [vmem:[#allocation82_spill] sm:$0xff]  ;;  %4663 = vst [vmem:[#allocation3 + $0x2d9] sm:$0xff] %v4521_v14  ;;  %4664 = vst [vmem:[#allocation3 + $0x2e9] sm:$0xff] %v4522_v22  ;;  %7709 = vmatprep.subr.mxu0 %v14222_v62 }
 0x441   :  { %v4527_v23 = vsel %vm4398_vm11, %v14247_v51, %v18397_v49  ;;  %v4529_v10 = vsel %vm18399_vm1, %v14251_v28, %v18398_v26  ;;  %4665 = vst [vmem:[#allocation3 + $0x2f1] sm:$0xff] %v4523_v12  ;;  %4666 = vst [vmem:[#allocation3 + $0x301] sm:$0xff] %v4524_v9  ;;  %v5058_v24 = vld [vmem:[#allocation3 + $0x30] sm:$0xff]  ;;  %v4930_v47 = vld [vmem:[#allocation3 + $0x1a] sm:$0xff] }
 0x442   :  { %4667 = vst [vmem:[#allocation3 + $0x309] sm:$0xff] %v4525_v33  ;;  %4668 = vst [vmem:[#allocation3 + $0x319] sm:$0xff] %v4526_v32  ;;  %7011 = vmatprep.mubr.f32.mxu0 %v5058_v24  ;;  %6637 = vmatmul.mubr.f32.gmra.mxu1 %v5058_v24  ;;  %v5059_v51 = vld [vmem:[#allocation3 + $0x38] sm:$0xff]  ;;  %v4931_v28 = vld [vmem:[#allocation3 + $0x22] sm:$0xff] }
 0x443   :  { %4669 = vst [vmem:[#allocation3 + $0x321] sm:$0xff] %v4527_v23  ;;  %4671 = vst [vmem:[#allocation3 + $0x339] sm:$0xff] %v4529_v10  ;;  %7012 = vmatmul.mubr.f32.gmra.mxu0 %v4930_v47  ;;  %6641 = vmatprep.mubr.f32.mxu1 %v14580_v53  ;;  %v5060_v20 = vld [vmem:[#allocation3 + $0x48] sm:$0xff]  ;;  %v4932_v59 = vld [vmem:[#allocation3 + $0x32] sm:$0xff] }
 0x444   :  { %7016 = vmatprep.mubr.f32.mxu0 %v5059_v51  ;;  %v5061_v15 = vld [vmem:[#allocation3 + $0x50] sm:$0xff]  ;;  %v4933_v54 = vld [vmem:[#allocation3 + $0x3a] sm:$0xff]  ;;  %v5063_v41 = vld [vmem:[#allocation3 + $0x68] sm:$0xff] }
 0x445   :  { %v6495_v4 = vld [vmem:[#allocation5 + $0x2f0] sm:$0xff]  ;;  %v5062_v48 = vld [vmem:[#allocation3 + $0x60] sm:$0xff]  ;;  %v5064_v43 = vld [vmem:[#allocation3 + $0x78] sm:$0xff] }
 0x446   :  { %6642 = vmatmul.mubr.f32.gmra.mxu1 %v5059_v51  ;;  %v6511_v53 = vld [vmem:[#allocation5 + $0x370] sm:$0xff]  ;;  %v6509_v5 = vld [vmem:[#allocation5 + $0x360] sm:$0xff]  ;;  %v6508_v8 = vld [vmem:[#allocation5 + $0x358] sm:$0xff] }
 0x447   :  { %7017 = vmatmul.mubr.f32.gmra.mxu0 %v4931_v28  ;;  %6646 = vmatprep.mubr.f32.mxu1 %v14586_v7  ;;  %v6494_v7 = vld [vmem:[#allocation5 + $0x2e8] sm:$0xff]  ;;  %v4935_v55 = vld [vmem:[#allocation3 + $0x52] sm:$0xff]  ;;  %v5065_v60 = vld [vmem:[#allocation3 + $0x80] sm:$0xff] }
 0x448   :  { %7021 = vmatprep.mubr.f32.mxu0 %v5060_v20  ;;  %7357 = vmatpush2.msra.mxu1 %v6495_v4  ;;  %v4934_v6 = vld [vmem:[#allocation3 + $0x4a] sm:$0xff]  ;;  %v4936_v52 = vld [vmem:[#allocation3 + $0x62] sm:$0xff]  ;;  %v5067_v22 = vld [vmem:[#allocation3 + $0x98] sm:$0xff] }
 0x449   :  { %7710 = vmatpush1.msra.mxu0 %v6511_v53  ;;  %7358 = vmatprep.subr.mxu1 %v14222_v62  ;;  %v4937_v42 = vld [vmem:[#allocation3 + $0x6a] sm:$0xff]  ;;  %v4940_v9 = vld [vmem:[#allocation3 + $0x92] sm:$0xff]  ;;  %v6489_v58 = vld [vmem:[#allocation5 + $0x2c0] sm:$0xff] }
 0x44a   :  { %6647 = vmatmul.mubr.f32.gmra.mxu1 %v5060_v20  ;;  %7711 = vmatprep.subr.mxu0 %v14222_v62  ;;  %v6507_v14 = vld [vmem:[#allocation5 + $0x350] sm:$0xff]  ;;  %v6490_v2 = vld [vmem:[#allocation5 + $0x2c8] sm:$0xff]  ;;  %v6505_v36 = vld [vmem:[#allocation5 + $0x340] sm:$0xff] }
 0x44b   :  { %7022 = vmatmul.mubr.f32.gmra.mxu0 %v4932_v59  ;;  %6651 = vmatprep.mubr.f32.mxu1 %v14592_v29  ;;  %v6510_v29 = vld [vmem:[#allocation5 + $0x368] sm:$0xff]  ;;  %v5066_v13 = vld [vmem:[#allocation3 + $0x90] sm:$0xff]  ;;  %v4941_v33 = vld [vmem:[#allocation3 + $0x9a] sm:$0xff] }
 0x44c   :  { %7026 = vmatprep.mubr.f32.mxu0 %v5061_v15  ;;  %7359 = vmatpush2.msra.mxu1 %v6494_v7  ;;  %v6506_v12 = vld [vmem:[#allocation5 + $0x348] sm:$0xff]  ;;  %v6488_v32 = vld [vmem:[#allocation5 + $0x2b8] sm:$0xff]  ;;  %v5073_v10 = vld [vmem:[#allocation3 + $0xe0] sm:$0xff] }
 0x44d   :  { %7712 = vmatpush1.msra.mxu0 %v6510_v29  ;;  %7360 = vmatprep.subr.mxu1 %v14222_v62  ;;  %v5068_v27 = vld [vmem:[#allocation3 + $0xa8] sm:$0xff]  ;;  %v6504_v49 = vld [vmem:[#allocation5 + $0x338] sm:$0xff]  ;;  %v6487_v47 = vld [vmem:[#allocation5 + $0x2b0] sm:$0xff] }
 0x44e   :  { %6652 = vmatmul.mubr.f32.gmra.mxu1 %v5061_v15  ;;  %7713 = vmatprep.subr.mxu0 %v14222_v62  ;;  %v4942_v57 = vld [vmem:[#allocation3 + $0xaa] sm:$0xff]  ;;  %v4943_v23 = vld [vmem:[#allocation3 + $0xb2] sm:$0xff]  ;;  %v4944_v26 = vld [vmem:[#allocation3 + $0xc2] sm:$0xff] }
 0x44f   :  { %7027 = vmatmul.mubr.f32.gmra.mxu0 %v4933_v54  ;;  %6656 = vmatprep.mubr.f32.mxu1 %v14598_v11  ;;  %v6493_v11 = vld [vmem:[#allocation5 + $0x2e0] sm:$0xff]  ;;  %v6503_v51 = vld [vmem:[#allocation5 + $0x330] sm:$0xff]  ;;  %v5075_v53 = vld [vmem:[#allocation3 + $0xf8] sm:$0xff] }
 0x450   :  { %7031 = vmatprep.mubr.f32.mxu0 %v5062_v48  ;;  %7361 = vmatpush2.msra.mxu1 %v6493_v11  ;;  %v4945_v28 = vld [vmem:[#allocation3 + $0xca] sm:$0xff]  ;;  %v4946_v4 = vld [vmem:[#allocation3 + $0xda] sm:$0xff] }
 0x451   :  { %7714 = vmatpush1.msra.mxu0 %v6509_v5  ;;  %7362 = vmatprep.subr.mxu1 %v14222_v62  ;;  %v5074_v59 = vld [vmem:[#allocation3 + $0xf0] sm:$0xff]  ;;  %v6502_v7 = vld [vmem:[#allocation5 + $0x328] sm:$0xff]  ;;  %v6485_v11 = vld [vmem:[#allocation5 + $0x2a0] sm:$0xff] }
 0x452   :  { %6657 = vmatmul.mubr.f32.gmra.mxu1 %v5062_v48  ;;  %7715 = vmatprep.subr.mxu0 %v14222_v62  ;;  %v6486_v48 = vld [vmem:[#allocation5 + $0x2a8] sm:$0xff]  ;;  %v4949_v5 = vld [vmem:[#allocation3 + $0xfa] sm:$0xff] }
 0x453   :  { %7032 = vmatmul.mubr.f32.gmra.mxu0 %v4934_v6  ;;  %6661 = vmatprep.mubr.f32.mxu1 %v14610_v25  ;;  %v6492_v25 = vld [vmem:[#allocation5 + $0x2d8] sm:$0xff]  ;;  %v14967_v24 = vpop.f32.mrf.mxu1  ;;  %v4947_v6 = vld [vmem:[#allocation3 + $0xe2] sm:$0xff] }
 0x454   :  { %7036 = vmatprep.mubr.f32.mxu0 %v5063_v41  ;;  %7363 = vmatpush2.msra.mxu1 %v6492_v25  ;;  %v5076_v29 = vld [vmem:[#allocation3 + $0x108] sm:$0xff] }
 0x455   :  { %7716 = vmatpush1.msra.mxu0 %v6508_v8  ;;  %7364 = vmatprep.subr.mxu1 %v14222_v62  ;;  %v6620_v20 = vpop.f32.mrf.mxu1  ;;  %v4950_v25 = vld [vmem:[#allocation3 + $0x10a] sm:$0xff]  ;;  %v6500_v8 = vld [vmem:[#allocation5 + $0x318] sm:$0xff] }
 0x456   :  { %6662 = vmatmul.mubr.f32.gmra.mxu1 %v5063_v41  ;;  %7717 = vmatprep.subr.mxu0 %v14222_v62  ;;  %v4948_v41 = vld [vmem:[#allocation3 + $0xf2] sm:$0xff]  ;;  %v5087_v20 = vld [vmem:[#allocation3 + $0x188] sm:$0xff] }
 0x457   :  { %7037 = vmatmul.mubr.f32.gmra.mxu0 %v4935_v55  ;;  %6666 = vmatprep.mubr.f32.mxu1 %v14616_v3  ;;  %v6491_v3 = vld [vmem:[#allocation5 + $0x2d0] sm:$0xff]  ;;  %v14970_v15 = vpop.f32.mrf.mxu1  ;;  %v6501_v55 = vld [vmem:[#allocation5 + $0x320] sm:$0xff] }
 0x458   :  { %7041 = vmatprep.mubr.f32.mxu0 %v5064_v43  ;;  %7365 = vmatpush2.msra.mxu1 %v6491_v3  ;;  %v4951_v3 = vld [vmem:[#allocation3 + $0x112] sm:$0xff] }
 0x459   :  { %7718 = vmatpush1.msra.mxu0 %v6507_v14  ;;  %7366 = vmatprep.subr.mxu1 %v14222_v62  ;;  %v6625_v54 = vpop.f32.mrf.mxu1  ;;  %v6498_v14 = vld [vmem:[#allocation5 + $0x308] sm:$0xff] }
 0x45a   :  { %6667 = vmatmul.mubr.f32.gmra.mxu1 %v5064_v43  ;;  %7719 = vmatprep.subr.mxu0 %v14222_v62  ;;  %v5078_v43 = vld [vmem:[#allocation3 + $0x120] sm:$0xff]  ;;  %v5088_v54 = vld [vmem:[#allocation3 + $0x1c8] sm:$0xff] }
 0x45b   :  { %7042 = vmatmul.mubr.f32.gmra.mxu0 %v4936_v52  ;;  %6671 = vmatprep.mubr.f32.mxu1 %v14622_v17  ;;  %v4938_v17 = vld [vmem:[#allocation3 + $0x7a] sm:$0xff] }
 0x45c   :  { %7046 = vmatprep.mubr.f32.mxu0 %v5065_v60  ;;  %7367 = vmatpush2.msra.mxu1 %v6490_v2  ;;  %v6484_v52 = vld [vmem:[#allocation5 + $0x298] sm:$0xff] }
 0x45d   :  { %7720 = vmatpush1.msra.mxu0 %v6506_v12  ;;  %7368 = vmatprep.subr.mxu1 %v14222_v62  ;;  %v6528_v2 = vld [vmem:[#allocation5 + $0x3f8] sm:$0xff]  ;;  %v4953_v12 = vld [vmem:[#allocation3 + $0x12a] sm:$0xff] }
 0x45e   :  { %6672 = vmatmul.mubr.f32.gmra.mxu1 %v5065_v60  ;;  %7721 = vmatprep.subr.mxu0 %v14222_v62  ;;  %v6499_v60 = vld [vmem:[#allocation5 + $0x310] sm:$0xff] }
 0x45f   :  { %7047 = vmatmul.mubr.f32.gmra.mxu0 %v4937_v42  ;;  %6676 = vmatprep.mubr.f32.mxu1 %v14628_v40  ;;  %v4939_v40 = vld [vmem:[#allocation3 + $0x82] sm:$0xff]  ;;  %v5080_v42 = vld [vmem:[#allocation3 + $0x138] sm:$0xff] }
 0x460   :  { %7051 = vmatprep.mubr.f32.mxu0 %v5066_v13  ;;  %7369 = vmatpush2.msra.mxu1 %v6489_v58  ;;  %v6482_v58 = vld [vmem:[#allocation5 + $0x288] sm:$0xff] }
 0x461   :  { %7722 = vmatpush1.msra.mxu0 %v6505_v36  ;;  %7370 = vmatprep.subr.mxu1 %v14222_v62  ;;  %v6525_v36 = vld [vmem:[#allocation5 + $0x3e0] sm:$0xff] }
 0x462   :  { %6677 = vmatmul.mubr.f32.gmra.mxu1 %v5066_v13  ;;  %7723 = vmatprep.subr.mxu0 %v14222_v62  ;;  %v6497_v13 = vld [vmem:[#allocation5 + $0x300] sm:$0xff] }
 0x463   :  { %7052 = vmatmul.mubr.f32.gmra.mxu0 %v4938_v17  ;;  %6681 = vmatprep.mubr.f32.mxu1 %v14642_v63  ;;  %v5069_v63 = vld [vmem:[#allocation3 + $0xb0] sm:$0xff]  ;;  %v5081_v17 = vld [vmem:[#allocation3 + $0x140] sm:$0xff] }
 0x464   :  { %7056 = vmatprep.mubr.f32.mxu0 %v5067_v22  ;;  %7371 = vmatpush2.msra.mxu1 %v6488_v32  ;;  %v18404_v32 = vld [vmem:[#allocation21_spill] sm:$0xff] }
 0x465   :  { %7724 = vmatpush1.msra.mxu0 %v6504_v49  ;;  %7372 = vmatprep.subr.mxu1 %v14222_v62  ;;  %v5085_v49 = vld [vmem:[#allocation3 + $0x170] sm:$0xff] }
 0x466   :  { %6682 = vmatmul.mubr.f32.gmra.mxu1 %v5067_v22  ;;  %7725 = vmatprep.subr.mxu0 %v14222_v62  ;;  %v14988_v22 = vld [vmem:[#allocation3] sm:$0xff] }
 0x467   :  { %7057 = vmatmul.mubr.f32.gmra.mxu0 %v4939_v40  ;;  %6686 = vmatprep.mubr.f32.mxu1 %v14648_v19  ;;  %v5070_v19 = vld [vmem:[#allocation3 + $0xc0] sm:$0xff]  ;;  %v5082_v40 = vld [vmem:[#allocation3 + $0x150] sm:$0xff] }
 0x468   :  { %7061 = vmatprep.mubr.f32.mxu0 %v5068_v27  ;;  %7373 = vmatpush2.msra.mxu1 %v6487_v47  ;;  %v4833_v47 = vld [vmem:[#allocation3 + $0x1b9] sm:$0xff] }
 0x469   :  { %7726 = vmatpush1.msra.mxu0 %v6503_v51  ;;  %7374 = vmatprep.subr.mxu1 %v14222_v62  ;;  %v4958_v51 = vld [vmem:[#allocation3 + $0x16a] sm:$0xff] }
 0x46a   :  { %6687 = vmatmul.mubr.f32.gmra.mxu1 %v5068_v27  ;;  %7727 = vmatprep.subr.mxu0 %v14222_v62  ;;  %v6527_v27 = vld [vmem:[#allocation5 + $0x3f0] sm:$0xff] }
 0x46b   :  { %7062 = vmatmul.mubr.f32.gmra.mxu0 %v4940_v9  ;;  %6691 = vmatprep.mubr.f32.mxu1 %v14654_v1  ;;  %v5071_v1 = vld [vmem:[#allocation3 + $0xc8] sm:$0xff] }
 0x46c   :  { %7066 = vmatprep.mubr.f32.mxu0 %v5069_v63  ;;  %7375 = vmatpush2.msra.mxu1 %v6486_v48  ;;  %v6526_v9 = vld [vmem:[#allocation5 + $0x3e8] sm:$0xff]  ;;  %v4960_v48 = vld [vmem:[#allocation3 + $0x1b2] sm:$0xff] }
 0x46d   :  { %7728 = vmatpush1.msra.mxu0 %v6502_v7  ;;  %7376 = vmatprep.subr.mxu1 %v14222_v62  ;;  %v6517_v7 = vld [vmem:[#allocation5 + $0x3a0] sm:$0xff] }
 0x46e   :  { %6692 = vmatmul.mubr.f32.gmra.mxu1 %v5069_v63  ;;  %7729 = vmatprep.subr.mxu0 %v14222_v62  ;;  %v5083_v63 = vld [vmem:[#allocation3 + $0x158] sm:$0xff] }
 0x46f   :  { %7067 = vmatmul.mubr.f32.gmra.mxu0 %v4941_v33  ;;  %6696 = vmatprep.mubr.f32.mxu1 %v14660_v38  ;;  %v5072_v38 = vld [vmem:[#allocation3 + $0xd8] sm:$0xff]  ;;  %v4955_v33 = vld [vmem:[#allocation3 + $0x142] sm:$0xff] }
 0x470   :  { %7071 = vmatprep.mubr.f32.mxu0 %v5070_v19  ;;  %7377 = vmatpush2.msra.mxu1 %v6485_v11  ;;  %v6514_v11 = vld [vmem:[#allocation5 + $0x388] sm:$0xff] }
 0x471   :  { %7730 = vmatpush1.msra.mxu0 %v6501_v55  ;;  %7378 = vmatprep.subr.mxu1 %v14222_v62  ;;  %v5091_v55 = vld [vmem:[#allocation3 + $0x1e8] sm:$0xff] }
 0x472   :  { %6697 = vmatmul.mubr.f32.gmra.mxu1 %v5070_v19  ;;  %7731 = vmatprep.subr.mxu0 %v14222_v62  ;;  %v5084_v19 = vld [vmem:[#allocation3 + $0x168] sm:$0xff] }
 0x473   :  { %7072 = vmatmul.mubr.f32.gmra.mxu0 %v4942_v57  ;;  %6701 = vmatprep.mubr.f32.mxu1 %v14674_v35  ;;  %v18400_v35 = vld [vmem:[#allocation15_spill] sm:$0xff]  ;;  %v6524_v57 = vld [vmem:[#allocation5 + $0x3d8] sm:$0xff] }
 0x474   :  { %7076 = vmatprep.mubr.f32.mxu0 %v5071_v1  ;;  %7379 = vmatpush2.msra.mxu1 %v6484_v52  ;;  %v5094_v52 = vld [vmem:[#allocation3 + $0x210] sm:$0xff] }
 0x475   :  { %7732 = vmatpush1.msra.mxu0 %v6500_v8  ;;  %7380 = vmatprep.subr.mxu1 %v14222_v62  ;;  %v4966_v8 = vld [vmem:[#allocation3 + $0x1fa] sm:$0xff] }
 0x476   :  { %6702 = vmatmul.mubr.f32.gmra.mxu1 %v5071_v1  ;;  %7733 = vmatprep.subr.mxu0 %v14222_v62  ;;  %v6523_v1 = vld [vmem:[#allocation5 + $0x3d0] sm:$0xff] }
 0x477   :  { %7077 = vmatmul.mubr.f32.gmra.mxu0 %v4943_v23  ;;  %6706 = vmatprep.mubr.f32.mxu1 %v14680_v61  ;;  %v18401_v61 = vld [vmem:[#allocation17_spill] sm:$0xff] }
 0x478   :  { %7081 = vmatprep.mubr.f32.mxu0 %v5072_v38  ;;  %7734 = vmatpush1.msra.mxu0 %v6499_v60  ;;  %v4832_v23 = vld [vmem:[#allocation3 + $0x1b1] sm:$0xff] }
 0x479   :  { %7735 = vmatprep.subr.mxu0 %v14222_v62  ;;  %v18403_v62 = vld [vmem:[#allocation19_spill] sm:$0xff]  ;;  %v5095_v60 = vld [vmem:[#allocation3 + $0x218] sm:$0xff] }
 0x47a   :  { %6707 = vmatmul.mubr.f32.gmra.mxu1 %v5072_v38  ;;  %7736 = vmatpush1.msra.mxu0 %v6498_v14  ;;  %v6522_v38 = vld [vmem:[#allocation5 + $0x3c8] sm:$0xff] }
 0x47b   :  { %7082 = vmatmul.mubr.f32.gmra.mxu0 %v4944_v26  ;;  %6711 = vmatprep.mubr.f32.mxu1 %v18400_v35  ;;  %v4957_v26 = vld [vmem:[#allocation3 + $0x15a] sm:$0xff]  ;;  %v5096_v14 = vld [vmem:[#allocation3 + $0x228] sm:$0xff] }
 0x47c   :  { %7086 = vmatprep.mubr.f32.mxu0 %v5073_v10  ;;  %7737 = vmatprep.subr.mxu0 %v14988_v22  ;;  %v5086_v35 = vld [vmem:[#allocation3 + $0x180] sm:$0xff] }
 0x47d   :  { %7738 = vmatpush1.msra.mxu0 %v6497_v13  ;;  %v4843_v13 = vld [vmem:[#allocation3 + $0x231] sm:$0xff] }
 0x47e   :  { %6712 = vmatmul.mubr.f32.gmra.mxu1 %v5073_v10  ;;  %7739 = vmatprep.subr.mxu0 %v14988_v22  ;;  %v6521_v10 = vld [vmem:[#allocation5 + $0x3c0] sm:$0xff] }
 0x47f   :  { %7087 = vmatmul.mubr.f32.gmra.mxu0 %v4945_v28  ;;  %6716 = vmatprep.mubr.f32.mxu1 %v18401_v61  ;;  %v6520_v28 = vld [vmem:[#allocation5 + $0x3b8] sm:$0xff] }
 0x480   :  { %7091 = vmatprep.mubr.f32.mxu0 %v5074_v59  ;;  %7740 = vmatpush2.msra.mxu0 %v6528_v2  ;;  %v15007_v61 = vld [vmem:[#allocation5 + $0x478] sm:$0xff]  ;;  %v4970_v2 = vld [vmem:[#allocation3 + $0x22a] sm:$0xff] }
 0x481   :  { %7741 = vmatprep.subr.mxu0 %v14988_v22 }
 0x482   :  { %6717 = vmatmul.mubr.f32.gmra.mxu1 %v5074_v59  ;;  %7742 = vmatpush2.msra.mxu0 %v6527_v27  ;;  %v6519_v59 = vld [vmem:[#allocation5 + $0x3b0] sm:$0xff]  ;;  %v4846_v27 = vld [vmem:[#allocation3 + $0x259] sm:$0xff] }
 0x483   :  { %7092 = vmatmul.mubr.f32.gmra.mxu0 %v4946_v4  ;;  %6721 = vmatprep.mubr.f32.mxu1 %v14702_v18  ;;  %v5077_v18 = vld [vmem:[#allocation3 + $0x110] sm:$0xff] }
 0x484   :  { %7096 = vmatprep.mubr.f32.mxu0 %v5075_v53  ;;  %7743 = vmatprep.subr.mxu0 %v14988_v22  ;;  %v4959_v4 = vld [vmem:[#allocation3 + $0x172] sm:$0xff] }
 0x485   :  { %7744 = vmatpush2.msra.mxu0 %v6526_v9  ;;  %v4972_v9 = vld [vmem:[#allocation3 + $0x242] sm:$0xff] }
 0x486   :  { %6722 = vmatmul.mubr.f32.gmra.mxu1 %v5075_v53  ;;  %7745 = vmatprep.subr.mxu0 %v14988_v22  ;;  %v6518_v53 = vld [vmem:[#allocation5 + $0x3a8] sm:$0xff] }
 0x487   :  { %7097 = vmatmul.mubr.f32.gmra.mxu0 %v4947_v6  ;;  %6726 = vmatprep.mubr.f32.mxu1 %v14708_v44  ;;  %v18402_v44 = vld [vmem:[#allocation16_spill] sm:$0xff]  ;;  %v5089_v6 = vld [vmem:[#allocation3 + $0x1d0] sm:$0xff] }
 0x488   :  { %7101 = vmatprep.mubr.f32.mxu0 %v5076_v29  ;;  %7746 = vmatpush2.msra.mxu0 %v6525_v36  ;;  %v4973_v36 = vld [vmem:[#allocation3 + $0x24a] sm:$0xff] }
 0x489   :  { %7747 = vmatprep.subr.mxu0 %v14988_v22 }
 0x48a   :  { %6727 = vmatmul.mubr.f32.gmra.mxu1 %v5076_v29  ;;  %7748 = vmatpush2.msra.mxu0 %v6524_v57  ;;  %v4961_v29 = vld [vmem:[#allocation3 + $0x1ba] sm:$0xff] }
 0x48b   :  { %7102 = vmatmul.mubr.f32.gmra.mxu0 %v4948_v41  ;;  %6731 = vmatprep.mubr.f32.mxu1 %v14714_v50  ;;  %v5079_v50 = vld [vmem:[#allocation3 + $0x128] sm:$0xff]  ;;  %v5090_v41 = vld [vmem:[#allocation3 + $0x1e0] sm:$0xff] }
 0x48c   :  { %7106 = vmatprep.mubr.f32.mxu0 %v5077_v18  ;;  %7749 = vmatprep.subr.mxu0 %v14988_v22  ;;  %v4974_v57 = vld [vmem:[#allocation3 + $0x25a] sm:$0xff] }
 0x48d   :  { %7750 = vmatpush2.msra.mxu0 %v6523_v1  ;;  %v5103_v1 = vld [vmem:[#allocation3 + $0x278] sm:$0xff] }
 0x48e   :  { %6732 = vmatmul.mubr.f32.gmra.mxu1 %v5077_v18  ;;  %7751 = vmatprep.subr.mxu0 %v14988_v22  ;;  %v6515_v18 = vld [vmem:[#allocation5 + $0x390] sm:$0xff] }
 0x48f   :  { %7107 = vmatmul.mubr.f32.gmra.mxu0 %v4949_v5  ;;  %6736 = vmatprep.mubr.f32.mxu1 %v18402_v44  ;;  %v6513_v5 = vld [vmem:[#allocation5 + $0x380] sm:$0xff]  ;;  %v5092_v44 = vld [vmem:[#allocation3 + $0x1f8] sm:$0xff] }
 0x490   :  { %7111 = vmatprep.mubr.f32.mxu0 %v5078_v43  ;;  %7752 = vmatpush2.msra.mxu0 %v6522_v38 }
 0x491   :  { %7753 = vmatprep.subr.mxu0 %v14988_v22 }
 0x492   :  { %6737 = vmatmul.mubr.f32.gmra.mxu1 %v5078_v43  ;;  %7754 = vmatpush2.msra.mxu0 %v6521_v10  ;;  %v4964_v43 = vld [vmem:[#allocation3 + $0x1e2] sm:$0xff]  ;;  %v4851_v10 = vld [vmem:[#allocation3 + $0x291] sm:$0xff] }
 0x493   :  { %7112 = vmatmul.mubr.f32.gmra.mxu0 %v4950_v25  ;;  %6741 = vmatprep.mubr.f32.mxu1 %v14730_v46  ;;  %v4952_v46 = vld [vmem:[#allocation3 + $0x122] sm:$0xff] }
 0x494   :  { %7116 = vmatprep.mubr.f32.mxu0 %v5079_v50  ;;  %7755 = vmatprep.subr.mxu0 %v14988_v22  ;;  %v5093_v25 = vld [vmem:[#allocation3 + $0x200] sm:$0xff] }
 0x495   :  { %7756 = vmatpush2.msra.mxu0 %v6520_v28 }
 0x496   :  { %6742 = vmatmul.mubr.f32.gmra.mxu1 %v5079_v50  ;;  %7757 = vmatprep.subr.mxu0 %v14988_v22  ;;  %v4965_v50 = vld [vmem:[#allocation3 + $0x1ea] sm:$0xff] }
 0x497   :  { %7117 = vmatmul.mubr.f32.gmra.mxu0 %v4951_v3  ;;  %6746 = vmatprep.mubr.f32.mxu1 %v14736_v45  ;;  %v6483_v45 = vld [vmem:[#allocation5 + $0x290] sm:$0xff]  ;;  %v4967_v3 = vld [vmem:[#allocation3 + $0x202] sm:$0xff] }
 0x498   :  { %7121 = vmatprep.mubr.f32.mxu0 %v5080_v42  ;;  %7381 = vmatpush2.msra.mxu1 %v6483_v45  ;;  %v5098_v45 = vld [vmem:[#allocation3 + $0x240] sm:$0xff] }
 0x499   :  { %7382 = vmatprep.subr.mxu1 %v14988_v22  ;;  %7758 = vmatpush2.msra.mxu0 %v6519_v59 }
 0x49a   :  { %6747 = vmatmul.mubr.f32.gmra.mxu1 %v5080_v42  ;;  %7759 = vmatprep.subr.mxu0 %v14988_v22  ;;  %v4842_v42 = vld [vmem:[#allocation3 + $0x229] sm:$0xff] }
 0x49b   :  { %7122 = vmatmul.mubr.f32.gmra.mxu0 %v4952_v46  ;;  %6751 = vmatprep.mubr.f32.mxu1 %v14742_v30  ;;  %v4954_v30 = vld [vmem:[#allocation3 + $0x13a] sm:$0xff]  ;;  %v4968_v46 = vld [vmem:[#allocation3 + $0x212] sm:$0xff] }
 0x49c   :  { %7126 = vmatprep.mubr.f32.mxu0 %v5081_v17  ;;  %7383 = vmatpush2.msra.mxu1 %v6482_v58  ;;  %v5101_v58 = vld [vmem:[#allocation3 + $0x260] sm:$0xff] }
 0x49d   :  { %7384 = vmatprep.subr.mxu1 %v14988_v22  ;;  %7760 = vmatpush2.msra.mxu0 %v6518_v53  ;;  %v4977_v53 = vld [vmem:[#allocation3 + $0x27a] sm:$0xff] }
 0x49e   :  { %6752 = vmatmul.mubr.f32.gmra.mxu1 %v5081_v17  ;;  %7761 = vmatprep.subr.mxu0 %v14988_v22  ;;  %v4969_v17 = vld [vmem:[#allocation3 + $0x21a] sm:$0xff] }
 0x49f   :  { %7127 = vmatmul.mubr.f32.gmra.mxu0 %v4953_v12  ;;  %6756 = vmatprep.mubr.f32.mxu1 %v18403_v62  ;;  %v4845_v12 = vld [vmem:[#allocation3 + $0x249] sm:$0xff] }
 0x4a0   :  { %7131 = vmatprep.mubr.f32.mxu0 %v5082_v40  ;;  %7762 = vmatpush2.msra.mxu0 %v6517_v7  ;;  %v5099_v62 = vld [vmem:[#allocation3 + $0x248] sm:$0xff]  ;;  %v5106_v7 = vld [vmem:[#allocation3 + $0x2a0] sm:$0xff] }
 0x4a1   :  { %7763 = vmatprep.subr.mxu0 %v14988_v22 }
 0x4a2   :  { %6757 = vmatmul.mubr.f32.gmra.mxu1 %v5082_v40  ;;  %v4971_v40 = vld [vmem:[#allocation3 + $0x232] sm:$0xff] }
 0x4a3   :  { %7132 = vmatmul.mubr.f32.gmra.mxu0 %v4954_v30  ;;  %6761 = vmatprep.mubr.f32.mxu1 %v14759_v34  ;;  %v4956_v34 = vld [vmem:[#allocation3 + $0x152] sm:$0xff] }
 0x4a4   :  { %7136 = vmatprep.mubr.f32.mxu0 %v5083_v63  ;;  %v5100_v30 = vld [vmem:[#allocation3 + $0x258] sm:$0xff] }
 0x4a6   :  { %6762 = vmatmul.mubr.f32.gmra.mxu1 %v5083_v63  ;;  %v4847_v63 = vld [vmem:[#allocation3 + $0x261] sm:$0xff] }
 0x4a7   :  { %7137 = vmatmul.mubr.f32.gmra.mxu0 %v4955_v33  ;;  %6766 = vmatprep.mubr.f32.mxu1 %v14765_v21  ;;  %v6481_v21 = vld [vmem:[#allocation5 + $0x280] sm:$0xff]  ;;  %v4848_v33 = vld [vmem:[#allocation3 + $0x271] sm:$0xff] }
 0x4a8   :  { %7141 = vmatprep.mubr.f32.mxu0 %v5084_v19  ;;  %7385 = vmatpush2.msra.mxu1 %v6481_v21  ;;  %v5104_v21 = vld [vmem:[#allocation3 + $0x288] sm:$0xff] }
 0x4a9   :  { %10099 = vmatprep.subr.mxu1 %v15007_v61 }
 0x4aa   :  { %6767 = vmatmul.mubr.f32.gmra.mxu1 %v5084_v19  ;;  %v5102_v19 = vld [vmem:[#allocation3 + $0x270] sm:$0xff] }
 0x4ab   :  { %7142 = vmatmul.mubr.f32.gmra.mxu0 %v4956_v34  ;;  %6771 = vmatprep.mubr.f32.mxu1 %v18404_v32  ;;  %v4849_v34 = vld [vmem:[#allocation3 + $0x279] sm:$0xff]  ;;  %v4975_v32 = vld [vmem:[#allocation3 + $0x262] sm:$0xff] }
 0x4ac   :  { %7146 = vmatprep.mubr.f32.mxu0 %v5085_v49 }
 0x4ae   :  { %6772 = vmatmul.mubr.f32.gmra.mxu1 %v5085_v49  ;;  %v4850_v49 = vld [vmem:[#allocation3 + $0x289] sm:$0xff] }
 0x4af   :  { %7147 = vmatmul.mubr.f32.gmra.mxu0 %v4957_v26  ;;  %6776 = vmatprep.mubr.f32.mxu1 %v4832_v23  ;;  %v15028_v23 = vld [vmem:[%s17827_s6] ss:$0 sm:$0xff] }
 0x4b0   :  { %7151 = vmatprep.mubr.f32.mxu0 %v5086_v35  ;;  %v6619_v38 = vadd.f32 %v15028_v23, %v14967_v24  ;;  %v4976_v35 = vld [vmem:[#allocation3 + $0x272] sm:$0xff]  ;;  %v4852_v24 = vld [vmem:[#allocation3 + $0x2a1] sm:$0xff] }
 0x4b2   :  { %6777 = vmatmul.mubr.f32.gmra.mxu1 %v14988_v22 }
 0x4b3   :  { %7152 = vmatmul.mubr.f32.gmra.mxu0 %v4958_v51  ;;  %6781 = vmatprep.mubr.f32.mxu1 %v4833_v47  ;;  %v5105_v51 = vld [vmem:[#allocation3 + $0x290] sm:$0xff] }
 0x4b4   :  { %7156 = vmatprep.mubr.f32.mxu0 %v5087_v20 }
 0x4b6   :  { %6782 = vmatmul.mubr.f32.gmra.mxu1 %v14988_v22 }
 0x4b7   :  { %7157 = vmatmul.mubr.f32.gmra.mxu0 %v4959_v4  ;;  %6786 = vmatprep.mubr.f32.mxu1 %v14789_v37  ;;  %v6516_v37 = vld [vmem:[#allocation5 + $0x398] sm:$0xff]  ;;  %v6624_v4 = vadd.f32 %v15028_v23, %v14970_v15 }
 0x4b8   :  { %7161 = vmatprep.mubr.f32.mxu0 %v5088_v54  ;;  %7764 = vmatpush2.msra.mxu0 %v6516_v37 }
 0x4b9   :  { %7765 = vmatprep.subr.mxu0 %v14988_v22 }
 0x4ba   :  { %6787 = vmatmul.mubr.f32.gmra.mxu1 %v5088_v54  ;;  %7766 = vmatpush2.msra.mxu0 %v6515_v18 }
 0x4bb   :  { %7162 = vmatmul.mubr.f32.gmra.mxu0 %v4960_v48  ;;  %6791 = vmatprep.mubr.f32.mxu1 %v14795_v16  ;;  %v4962_v16 = vld [vmem:[#allocation3 + $0x1ca] sm:$0xff] }
 0x4bc   :  { %7166 = vmatprep.mubr.f32.mxu0 %v5089_v6  ;;  %7767 = vmatprep.subr.mxu0 %v14988_v22 }
 0x4bd   :  { %7768 = vmatpush2.msra.mxu0 %v6514_v11  ;;  %v4853_v11 = vld [vmem:[#allocation3 + $0x2a9] sm:$0xff] }
 0x4be   :  { %6792 = vmatmul.mubr.f32.gmra.mxu1 %v5089_v6  ;;  %7769 = vmatprep.subr.mxu0 %v14988_v22  ;;  %v4844_v22 = vld [vmem:[#allocation3 + $0x241] sm:$0xff] }
 0x4bf   :  { %7167 = vmatmul.mubr.f32.gmra.mxu0 %v4961_v29  ;;  %6796 = vmatprep.mubr.f32.mxu1 %v14801_v31  ;;  %v4963_v31 = vld [vmem:[#allocation3 + $0x1d2] sm:$0xff] }
 0x4c0   :  { %7171 = vmatprep.mubr.f32.mxu0 %v5090_v41  ;;  %7770 = vmatpush2.msra.mxu0 %v6513_v5 }
 0x4c2   :  { %6797 = vmatmul.mubr.f32.gmra.mxu1 %v5090_v41 }
 0x4c3   :  { %7172 = vmatmul.mubr.f32.gmra.mxu0 %v4962_v16  ;;  %6801 = vmatprep.mubr.f32.mxu1 %v14810_v39  ;;  %v18405_v39 = vld [vmem:[#allocation23_spill] sm:$0xff]  ;;  %v4978_v16 = vld [vmem:[#allocation3 + $0x28a] sm:$0xff] }
 0x4c4   :  { %7176 = vmatprep.mubr.f32.mxu0 %v5091_v55 }
 0x4c6   :  { %6802 = vmatmul.mubr.f32.gmra.mxu1 %v5091_v55  ;;  %v5107_v55 = vld [vmem:[#allocation3 + $0x2a8] sm:$0xff] }
 0x4c7   :  { %7177 = vmatmul.mubr.f32.gmra.mxu0 %v4963_v31  ;;  %6806 = vmatprep.mubr.f32.mxu1 %v14816_v0  ;;  %v4841_v0 = vld [vmem:[#allocation3 + $0x219] sm:$0xff] }
 0x4c8   :  { %7181 = vmatprep.mubr.f32.mxu0 %v5092_v44 }
 0x4ca   :  { %6807 = vmatmul.mubr.f32.gmra.mxu1 %v5092_v44 }
 0x4cb   :  { %7182 = vmatmul.mubr.f32.gmra.mxu0 %v4964_v43  ;;  %6811 = vmatprep.mubr.f32.mxu1 %v18405_v39 }
 0x4cc   :  { %7186 = vmatprep.mubr.f32.mxu0 %v5093_v25 }
 0x4ce   :  { %6812 = vmatmul.mubr.f32.gmra.mxu1 %v5093_v25  ;;  %v4979_v25 = vld [vmem:[#allocation3 + $0x292] sm:$0xff] }
 0x4cf   :  { %7187 = vmatmul.mubr.f32.gmra.mxu0 %v4965_v50  ;;  %6816 = vmatprep.mubr.f32.mxu1 %v14828_v56  ;;  %v5097_v56 = vld [vmem:[#allocation3 + $0x230] sm:$0xff]  ;;  %v4854_v50 = vld [vmem:[#allocation3 + $0x2b9] sm:$0xff] }
 0x4d0   :  { %7191 = vmatprep.mubr.f32.mxu0 %v5094_v52 }
 0x4d2   :  { %6817 = vmatmul.mubr.f32.gmra.mxu1 %v5094_v52 }
 0x4d3   :  { %7192 = vmatmul.mubr.f32.gmra.mxu0 %v4966_v8  ;;  %6821 = vmatprep.mubr.f32.mxu1 %v4841_v0  ;;  %v5108_v8 = vld [vmem:[#allocation3 + $0x2b8] sm:$0xff] }
 0x4d4   :  { %7196 = vmatprep.mubr.f32.mxu0 %v5095_v60 }
 0x4d6   :  { %6822 = vmatmul.mubr.f32.gmra.mxu1 %v5095_v60 }
 0x4d7   :  { %7197 = vmatmul.mubr.f32.gmra.mxu0 %v4967_v3  ;;  %6826 = vmatprep.mubr.f32.mxu1 %v4842_v42 }
 0x4d8   :  { %7201 = vmatprep.mubr.f32.mxu0 %v5096_v14 }
 0x4da   :  { %6827 = vmatmul.mubr.f32.gmra.mxu1 %v5096_v14 }
 0x4db   :  { %7202 = vmatmul.mubr.f32.gmra.mxu0 %v4968_v46  ;;  %6831 = vmatprep.mubr.f32.mxu1 %v4843_v13  ;;  %v4980_v46 = vld [vmem:[#allocation3 + $0x2a2] sm:$0xff] }
 0x4dc   :  { %7206 = vmatprep.mubr.f32.mxu0 %v5097_v56  ;;  %v4855_v13 = vld [vmem:[#allocation3 + $0x2c1] sm:$0xff] }
 0x4de   :  { %6832 = vmatmul.mubr.f32.gmra.mxu1 %v5097_v56 }
 0x4df   :  { %7207 = vmatmul.mubr.f32.gmra.mxu0 %v4969_v17  ;;  %6836 = vmatprep.mubr.f32.mxu1 %v4844_v22  ;;  %v5109_v17 = vld [vmem:[#allocation3 + $0x2c0] sm:$0xff] }
 0x4e0   :  { %7211 = vmatprep.mubr.f32.mxu0 %v5098_v45 }
 0x4e2   :  { %6837 = vmatmul.mubr.f32.gmra.mxu1 %v5098_v45 }
 0x4e3   :  { %7212 = vmatmul.mubr.f32.gmra.mxu0 %v4970_v2  ;;  %6841 = vmatprep.mubr.f32.mxu1 %v4845_v12 }
 0x4e4   :  { %7216 = vmatprep.mubr.f32.mxu0 %v5099_v62 }
 0x4e6   :  { %6842 = vmatmul.mubr.f32.gmra.mxu1 %v5099_v62 }
 0x4e7   :  { %7217 = vmatmul.mubr.f32.gmra.mxu0 %v4971_v40  ;;  %6846 = vmatprep.mubr.f32.mxu1 %v4846_v27  ;;  %v4981_v40 = vld [vmem:[#allocation3 + $0x2aa] sm:$0xff] }
 0x4e8   :  { %7221 = vmatprep.mubr.f32.mxu0 %v5100_v30  ;;  %v4856_v27 = vld [vmem:[#allocation3 + $0x2d1] sm:$0xff] }
 0x4ea   :  { %6847 = vmatmul.mubr.f32.gmra.mxu1 %v5100_v30 }
 0x4eb   :  { %7222 = vmatmul.mubr.f32.gmra.mxu0 %v4972_v9  ;;  %6851 = vmatprep.mubr.f32.mxu1 %v4847_v63  ;;  %v5110_v9 = vld [vmem:[#allocation3 + $0x2d0] sm:$0xff] }
 0x4ec   :  { %7226 = vmatprep.mubr.f32.mxu0 %v5101_v58 }
 0x4ee   :  { %6852 = vmatmul.mubr.f32.gmra.mxu1 %v5101_v58 }
 0x4ef   :  { %7227 = vmatmul.mubr.f32.gmra.mxu0 %v4973_v36  ;;  %6856 = vmatprep.mubr.f32.mxu1 %v4848_v33 }
 0x4f0   :  { %7231 = vmatprep.mubr.f32.mxu0 %v5102_v19 }
 0x4f1   :  { %v6628_v26 = vpop.f32.mrf.mxu1 }
 0x4f2   :  { %6857 = vmatmul.mubr.f32.gmra.mxu1 %v5102_v19  ;;  %v7003_v47 = vpop.f32.mrf.mxu0  ;;  %v6629_v41 = vadd.f32 %v15028_v23, %v6628_v26 }
 0x4f3   :  { %7232 = vmatmul.mubr.f32.gmra.mxu0 %v4974_v57  ;;  %6861 = vmatprep.mubr.f32.mxu1 %v4849_v34  ;;  %v15032_v28 = vadd.f32 %v7003_v47, %v6619_v38  ;;  %v6630_v20 = vpop.f32.mrf.mxu1  ;;  %v4982_v57 = vld [vmem:[#allocation3 + $0x2ba] sm:$0xff]  ;;  %v4858_v47 = vld [vmem:[#allocation3 + $0x2e9] sm:$0xff] }
 0x4f4   :  { %7236 = vmatprep.mubr.f32.mxu0 %v5103_v1  ;;  %v7005_v59 = vpop.f32.mrf.mxu0  ;;  %v4857_v34 = vld [vmem:[#allocation3 + $0x2d9] sm:$0xff]  ;;  %v5112_v20 = vld [vmem:[#allocation3 + $0x2e8] sm:$0xff] }
 0x4f6   :  { %6862 = vmatmul.mubr.f32.gmra.mxu1 %v5103_v1 }
 0x4f7   :  { %7237 = vmatmul.mubr.f32.gmra.mxu0 %v4975_v32  ;;  %6866 = vmatprep.mubr.f32.mxu1 %v4850_v49  ;;  %v5111_v32 = vld [vmem:[#allocation3 + $0x2d8] sm:$0xff] }
 0x4f8   :  { %7241 = vmatprep.mubr.f32.mxu0 %v5104_v21 }
 0x4fa   :  { %6867 = vmatmul.mubr.f32.gmra.mxu1 %v5104_v21 }
 0x4fb   :  { %7242 = vmatmul.mubr.f32.gmra.mxu0 %v4976_v35  ;;  %6871 = vmatprep.mubr.f32.mxu1 %v4851_v10  ;;  %v6633_v54 = vpop.f32.mrf.mxu1  ;;  %v4983_v10 = vld [vmem:[#allocation3 + $0x2c2] sm:$0xff] }
 0x4fc   :  { %7246 = vmatprep.mubr.f32.mxu0 %v5105_v51  ;;  %v7008_v48 = vpop.f32.mrf.mxu0  ;;  %v6634_v43 = vadd.f32 %v15028_v23, %v6633_v54 }
 0x4fd   :  { %v15036_v6 = vadd.f32 %v7008_v48, %v6624_v4  ;;  %v6635_v29 = vpop.f32.mrf.mxu1  ;;  %v4984_v48 = vld [vmem:[#allocation3 + $0x2d2] sm:$0xff] }
 0x4fe   :  { %6872 = vmatmul.mubr.f32.gmra.mxu1 %v5105_v51  ;;  %v7010_v37 = vpop.f32.mrf.mxu0 }
 0x4ff   :  { %7247 = vmatmul.mubr.f32.gmra.mxu0 %v4977_v53  ;;  %6876 = vmatprep.mubr.f32.mxu1 %v4852_v24  ;;  %v5113_v37 = vld [vmem:[#allocation3 + $0x2f0] sm:$0xff] }
 0x500   :  { %7251 = vmatprep.mubr.f32.mxu0 %v5106_v7 }
 0x502   :  { %v6638_v18 = vpop.f32.mrf.mxu1  ;;  %6877 = vmatmul.mubr.f32.gmra.mxu1 %v5106_v7  ;;  %v4859_v7 = vld [vmem:[#allocation3 + $0x2f1] sm:$0xff] }
 0x503   :  { %v7013_v15 = vpop.f32.mrf.mxu0  ;;  %7252 = vmatmul.mubr.f32.gmra.mxu0 %v4978_v16  ;;  %6881 = vmatprep.mubr.f32.mxu1 %v4853_v11  ;;  %v6639_v42 = vadd.f32 %v15028_v23, %v6638_v18 }
 0x504   :  { %v15039_v5 = vadd.f32 %v7013_v15, %v6629_v41  ;;  %7256 = vmatprep.mubr.f32.mxu0 %v5107_v55  ;;  %v6640_v31 = vpop.f32.mrf.mxu1 }
 0x505   :  { %v7015_v44 = vpop.f32.mrf.mxu0  ;;  %v4860_v31 = vld [vmem:[#allocation3 + $0x301] sm:$0xff] }
 0x506   :  { %v6643_v39 = vpop.f32.mrf.mxu1  ;;  %6882 = vmatmul.mubr.f32.gmra.mxu1 %v5107_v55  ;;  %v4985_v55 = vld [vmem:[#allocation3 + $0x2da] sm:$0xff] }
 0x507   :  { %v7018_v52 = vpop.f32.mrf.mxu0  ;;  %7257 = vmatmul.mubr.f32.gmra.mxu0 %v4979_v25  ;;  %6886 = vmatprep.mubr.f32.mxu1 %v4854_v50  ;;  %v6644_v12 = vadd.f32 %v15028_v23, %v6643_v39 }
 0x508   :  { %v15042_v0 = vadd.f32 %v7018_v52, %v6634_v43  ;;  %7261 = vmatprep.mubr.f32.mxu0 %v5108_v8  ;;  %v6645_v60 = vpop.f32.mrf.mxu1  ;;  %v5114_v43 = vld [vmem:[#allocation3 + $0x300] sm:$0xff] }
 0x509   :  { %v7020_v3 = vpop.f32.mrf.mxu0  ;;  %v4986_v60 = vld [vmem:[#allocation3 + $0x2ea] sm:$0xff] }
 0x50a   :  { %v6648_v14 = vpop.f32.mrf.mxu1  ;;  %6887 = vmatmul.mubr.f32.gmra.mxu1 %v5108_v8  ;;  %v4861_v3 = vld [vmem:[#allocation3 + $0x309] sm:$0xff] }
 0x50b   :  { %v7023_v56 = vpop.f32.mrf.mxu0  ;;  %7262 = vmatmul.mubr.f32.gmra.mxu0 %v4980_v46  ;;  %6891 = vmatprep.mubr.f32.mxu1 %v4855_v13  ;;  %v6649_v33 = vadd.f32 %v15028_v23, %v6648_v14  ;;  %v5115_v14 = vld [vmem:[#allocation3 + $0x308] sm:$0xff] }
 0x50c   :  { %v15045_v22 = vadd.f32 %v7023_v56, %v6639_v42  ;;  %7266 = vmatprep.mubr.f32.mxu0 %v5109_v17  ;;  %v6650_v45 = vpop.f32.mrf.mxu1 }
 0x50d   :  { %v7025_v2 = vpop.f32.mrf.mxu0 }
 0x50e   :  { %v6653_v62 = vpop.f32.mrf.mxu1  ;;  %6892 = vmatmul.mubr.f32.gmra.mxu1 %v5109_v17  ;;  %v4987_v2 = vld [vmem:[#allocation3 + $0x2f2] sm:$0xff] }
 0x50f   :  { %v7028_v30 = vpop.f32.mrf.mxu0  ;;  %7267 = vmatmul.mubr.f32.gmra.mxu0 %v4981_v40  ;;  %6896 = vmatprep.mubr.f32.mxu1 %v4856_v27  ;;  %v6654_v26 = vadd.f32 %v15028_v23, %v6653_v62  ;;  %v5116_v40 = vld [vmem:[#allocation3 + $0x318] sm:$0xff] }
 0x510   :  { %v15048_v63 = vadd.f32 %v7028_v30, %v6644_v12  ;;  %7271 = vmatprep.mubr.f32.mxu0 %v5110_v9  ;;  %v6655_v58 = vpop.f32.mrf.mxu1  ;;  %v4862_v12 = vld [vmem:[#allocation3 + $0x319] sm:$0xff] }
 0x511   :  { %v7030_v36 = vpop.f32.mrf.mxu0 }
 0x512   :  { %v6658_v19 = vpop.f32.mrf.mxu1  ;;  %6897 = vmatmul.mubr.f32.gmra.mxu1 %v5110_v9 }
 0x513   :  { %v7033_v1 = vpop.f32.mrf.mxu0  ;;  %7272 = vmatmul.mubr.f32.gmra.mxu0 %v4982_v57  ;;  %6901 = vmatprep.mubr.f32.mxu1 %v4857_v34  ;;  %v6659_v53 = vadd.f32 %v15028_v23, %v6658_v19  ;;  %v4863_v19 = vld [vmem:[#allocation3 + $0x321] sm:$0xff] }
 0x514   :  { %v15051_v49 = vadd.f32 %v7033_v1, %v6649_v33  ;;  %7276 = vmatprep.mubr.f32.mxu0 %v5111_v32  ;;  %v6660_v21 = vpop.f32.mrf.mxu1  ;;  %v4988_v33 = vld [vmem:[#allocation3 + $0x302] sm:$0xff] }
 0x515   :  { %v7035_v38 = vpop.f32.mrf.mxu0  ;;  %v5117_v34 = vld [vmem:[#allocation3 + $0x320] sm:$0xff] }
 0x516   :  { %v6663_v35 = vpop.f32.mrf.mxu1  ;;  %6902 = vmatmul.mubr.f32.gmra.mxu1 %v5111_v32 }
 0x517   :  { %v7038_v51 = vpop.f32.mrf.mxu0  ;;  %7277 = vmatmul.mubr.f32.gmra.mxu0 %v4983_v10  ;;  %6906 = vmatprep.mubr.f32.mxu1 %v4858_v47  ;;  %v6664_v11 = vadd.f32 %v15028_v23, %v6663_v35  ;;  %v4989_v35 = vld [vmem:[#allocation3 + $0x30a] sm:$0xff]  ;;  %v5312_v10 = vld [vmem:[#allocation3 + $0x1a] sm:$0xff] }
 0x518   :  { %v15054_v59 = vadd.f32 %v7038_v51, %v6654_v26  ;;  %7281 = vmatprep.mubr.f32.mxu0 %v5112_v20  ;;  %v6665_v4 = vpop.f32.mrf.mxu1  ;;  %v5118_v51 = vld [vmem:[#allocation3 + $0x330] sm:$0xff] }
 0x519   :  { %v7040_v54 = vpop.f32.mrf.mxu0 }
 0x51a   :  { %v6668_v24 = vpop.f32.mrf.mxu1  ;;  %6907 = vmatmul.mubr.f32.gmra.mxu1 %v5112_v20 }
 0x51b   :  { %v7043_v29 = vpop.f32.mrf.mxu0  ;;  %7282 = vmatmul.mubr.f32.gmra.mxu0 %v4984_v48  ;;  %6911 = vmatprep.mubr.f32.mxu1 %v4859_v7  ;;  %v6669_v52 = vadd.f32 %v15028_v23, %v6668_v24  ;;  %v4990_v7 = vld [vmem:[#allocation3 + $0x31a] sm:$0xff] }
 0x51c   :  { %v15057_v41 = vadd.f32 %v7043_v29, %v6659_v53  ;;  %7286 = vmatprep.mubr.f32.mxu0 %v5113_v37  ;;  %v6670_v18 = vpop.f32.mrf.mxu1  ;;  %v5184_v53 = vld [vmem:[#allocation3 + $0x19] sm:$0xff]  ;;  %v5313_v29 = vld [vmem:[#allocation3 + $0x22] sm:$0xff] }
 0x51d   :  { %v7045_v16 = vpop.f32.mrf.mxu0 }
 0x51e   :  { %v6673_v15 = vpop.f32.mrf.mxu1  ;;  %6912 = vmatmul.mubr.f32.gmra.mxu1 %v5113_v37  ;;  %v6543_v37 = vld [vmem:[#allocation5 + $0x470] sm:$0xff]  ;;  %v5119_v16 = vld [vmem:[#allocation3 + $0x338] sm:$0xff] }
 0x51f   :  { %v7048_v44 = vpop.f32.mrf.mxu0  ;;  %7287 = vmatmul.mubr.f32.gmra.mxu0 %v4985_v55  ;;  %6916 = vmatprep.mubr.f32.mxu1 %v4860_v31  ;;  %v6674_v17 = vadd.f32 %v15028_v23, %v6673_v15  ;;  %v5185_v31 = vld [vmem:[#allocation3 + $0x21] sm:$0xff] }
 0x520   :  { %v15060_v39 = vadd.f32 %v7048_v44, %v6664_v11  ;;  %7291 = vmatprep.mubr.f32.mxu0 %v5114_v43  ;;  %v6675_v25 = vpop.f32.mrf.mxu1 }
 0x521   :  { %v7050_v50 = vpop.f32.mrf.mxu0  ;;  %v4991_v25 = vld [vmem:[#allocation3 + $0x322] sm:$0xff] }
 0x522   :  { %v6678_v8 = vpop.f32.mrf.mxu1  ;;  %6917 = vmatmul.mubr.f32.gmra.mxu1 %v5114_v43  ;;  %v5314_v50 = vld [vmem:[#allocation3 + $0x32] sm:$0xff] }
 0x523   :  { %v7053_v42 = vpop.f32.mrf.mxu0  ;;  %7292 = vmatmul.mubr.f32.gmra.mxu0 %v4986_v60  ;;  %6921 = vmatprep.mubr.f32.mxu1 %v4861_v3  ;;  %v6679_v58 = vadd.f32 %v15028_v23, %v6678_v8  ;;  %v5569_v60 = vld [vmem:[#allocation3 + $0x31] sm:$0xff] }
 0x524   :  { %v15063_v46 = vadd.f32 %v7053_v42, %v6669_v52  ;;  %7296 = vmatprep.mubr.f32.mxu0 %v5115_v14  ;;  %v6680_v13 = vpop.f32.mrf.mxu1  ;;  %v6542_v52 = vld [vmem:[#allocation5 + $0x468] sm:$0xff] }
 0x525   :  { %v7055_v56 = vpop.f32.mrf.mxu0 }
 0x526   :  { %v6683_v45 = vpop.f32.mrf.mxu1  ;;  %6922 = vmatmul.mubr.f32.gmra.mxu1 %v5115_v14  ;;  %v5441_v56 = vld [vmem:[#allocation3 + $0x30] sm:$0xff] }
 0x527   :  { %v7058_v62 = vpop.f32.mrf.mxu0  ;;  %7297 = vmatmul.mubr.f32.gmra.mxu0 %v4987_v2  ;;  %6926 = vmatprep.mubr.f32.mxu1 %v4862_v12  ;;  %v6684_v38 = vadd.f32 %v15028_v23, %v6683_v45  ;;  %v6541_v45 = vld [vmem:[#allocation5 + $0x460] sm:$0xff] }
 0x528   :  { %v15066_v27 = vadd.f32 %v7058_v62, %v6674_v17  ;;  %7301 = vmatprep.mubr.f32.mxu0 %v5116_v40  ;;  %v6685_v30 = vpop.f32.mrf.mxu1  ;;  %v5315_v17 = vld [vmem:[#allocation3 + $0x3a] sm:$0xff] }
 0x529   :  { %v7060_v9 = vpop.f32.mrf.mxu0  ;;  %v5570_v12 = vld [vmem:[#allocation3 + $0x39] sm:$0xff] }
 0x52a   :  { %v6688_v36 = vpop.f32.mrf.mxu1  ;;  %6927 = vmatmul.mubr.f32.gmra.mxu1 %v5116_v40 }
 0x52b   :  { %v7063_v57 = vpop.f32.mrf.mxu0  ;;  %7302 = vmatmul.mubr.f32.gmra.mxu0 %v4988_v33  ;;  %6931 = vmatprep.mubr.f32.mxu1 %v4863_v19  ;;  %v6689_v24 = vadd.f32 %v15028_v23, %v6688_v36  ;;  %v5442_v36 = vld [vmem:[#allocation3 + $0x38] sm:$0xff]  ;;  %v5316_v33 = vld [vmem:[#allocation3 + $0x4a] sm:$0xff] }
 0x52c   :  { %v15069_v1 = vadd.f32 %v7063_v57, %v6679_v58  ;;  %7306 = vmatprep.mubr.f32.mxu0 %v5117_v34  ;;  %v6690_v32 = vpop.f32.mrf.mxu1  ;;  %v6540_v19 = vld [vmem:[#allocation5 + $0x458] sm:$0xff] }
 0x52d   :  { %v7065_v21 = vpop.f32.mrf.mxu0 }
 0x52e   :  { %v6693_v26 = vpop.f32.mrf.mxu1  ;;  %6932 = vmatmul.mubr.f32.gmra.mxu1 %v5117_v34  ;;  %v5571_v34 = vld [vmem:[#allocation3 + $0x49] sm:$0xff] }
 0x52f   :  { %v7068_v47 = vpop.f32.mrf.mxu0  ;;  %7307 = vmatmul.mubr.f32.gmra.mxu0 %v4989_v35  ;;  %7386 = vmatprep.mubr.f32.mxu1 %v5312_v10  ;;  %v6694_v44 = vadd.f32 %v15028_v23, %v6693_v26  ;;  %v5443_v10 = vld [vmem:[#allocation3 + $0x48] sm:$0xff] }
 0x530   :  { %v15072_v20 = vadd.f32 %v7068_v47, %v6684_v38  ;;  %7311 = vmatprep.mubr.f32.mxu0 %v5118_v51  ;;  %v6695_v4 = vpop.f32.mrf.mxu1  ;;  %v5317_v47 = vld [vmem:[#allocation3 + $0x52] sm:$0xff] }
 0x531   :  { %v7070_v54 = vpop.f32.mrf.mxu0  ;;  %v6539_v51 = vld [vmem:[#allocation5 + $0x450] sm:$0xff] }
 0x532   :  { %v6698_v48 = vpop.f32.mrf.mxu1  ;;  %7387 = vmatmul.mubr.f32.vlgmr.msra.gmra.mxu1 %v5184_v53  ;;  %v5572_v54 = vld [vmem:[#allocation3 + $0x51] sm:$0xff] }
 0x533   :  { %v7073_v18 = vpop.f32.mrf.mxu0  ;;  %7312 = vmatmul.mubr.f32.gmra.mxu0 %v4990_v7  ;;  %7391 = vmatprep.mubr.f32.mxu1 %v5313_v29  ;;  %v6699_v14 = vadd.f32 %v15028_v23, %v6698_v48 }
 0x534   :  { %v15075_v11 = vadd.f32 %v7073_v18, %v6689_v24  ;;  %7316 = vmatprep.mubr.f32.mxu0 %v5119_v16  ;;  %10100 = vmatpush3.msra.mxu1 %v15007_v61  ;;  %v6700_v15 = vpop.f32.mrf.mxu1  ;;  %v5318_v18 = vld [vmem:[#allocation3 + $0x62] sm:$0xff] }
 0x535   :  { %v7075_v55 = vpop.f32.mrf.mxu0  ;;  %10101 = vmatprep.subr.mxu1 %v6543_v37  ;;  %v6538_v16 = vld [vmem:[#allocation5 + $0x448] sm:$0xff] }
 0x536   :  { %v6703_v43 = vpop.f32.mrf.mxu1  ;;  %7392 = vmatmul.mubr.f32.gmra.mxu1 %v5185_v31  ;;  %v5573_v55 = vld [vmem:[#allocation3 + $0x61] sm:$0xff] }
 0x537   :  { %v7078_v8 = vpop.f32.mrf.mxu0  ;;  %7317 = vmatmul.mubr.f32.gmra.mxu0 %v4991_v25  ;;  %7396 = vmatprep.mubr.f32.mxu1 %v5314_v50  ;;  %v6704_v9 = vadd.f32 %v15028_v23, %v6703_v43 }
 0x538   :  { %v15079_v3 = vadd.f32 %v7078_v8, %v6694_v44  ;;  %7771 = vmatprep.mubr.f32.mxu0 %v5569_v60  ;;  %v6705_v42 = vpop.f32.mrf.mxu1  ;;  %10102 = vmatpush3.msra.mxu1 %v6543_v37  ;;  %v5444_v37 = vld [vmem:[#allocation3 + $0x50] sm:$0xff] }
 0x539   :  { %v7080_v61 = vpop.f32.mrf.mxu0  ;;  %10103 = vmatprep.subr.mxu1 %v6542_v52  ;;  %v5319_v8 = vld [vmem:[#allocation3 + $0x6a] sm:$0xff] }
 0x53a   :  { %v6708_v13 = vpop.f32.mrf.mxu1  ;;  %7397 = vmatmul.mubr.f32.gmra.mxu1 %v5569_v60  ;;  %v6537_v60 = vld [vmem:[#allocation5 + $0x440] sm:$0xff]  ;;  %v5574_v61 = vld [vmem:[#allocation3 + $0x69] sm:$0xff] }
 0x53b   :  { %v7083_v2 = vpop.f32.mrf.mxu0  ;;  %7772 = vmatmul.mubr.f32.vlgmr.msra.gmra.mxu0 %v5441_v56  ;;  %7401 = vmatprep.mubr.f32.mxu1 %v5315_v17  ;;  %v6709_v26 = vadd.f32 %v15028_v23, %v6708_v13 }
 0x53c   :  { %v15082_v62 = vadd.f32 %v7083_v2, %v6699_v14  ;;  %7776 = vmatprep.mubr.f32.mxu0 %v5570_v12  ;;  %v6710_v40 = vpop.f32.mrf.mxu1  ;;  %10104 = vmatpush3.msra.mxu1 %v6542_v52  ;;  %v5445_v52 = vld [vmem:[#allocation3 + $0x60] sm:$0xff]  ;;  %v5446_v2 = vld [vmem:[#allocation3 + $0x68] sm:$0xff] }
 0x53d   :  { %v7085_v30 = vpop.f32.mrf.mxu0  ;;  %10105 = vmatprep.subr.mxu1 %v6541_v45  ;;  %v6536_v40 = vld [vmem:[#allocation5 + $0x438] sm:$0xff] }
 0x53e   :  { %v6713_v58 = vpop.f32.mrf.mxu1  ;;  %7402 = vmatmul.mubr.f32.gmra.mxu1 %v5570_v12  ;;  %v5320_v12 = vld [vmem:[#allocation3 + $0x7a] sm:$0xff] }
 0x53f   :  { %v7088_v57 = vpop.f32.mrf.mxu0  ;;  %7777 = vmatmul.mubr.f32.gmra.mxu0 %v5442_v36  ;;  %7406 = vmatprep.mubr.f32.mxu1 %v5316_v33  ;;  %v6714_v7 = vadd.f32 %v15028_v23, %v6713_v58 }
 0x540   :  { %v15085_v32 = vadd.f32 %v7088_v57, %v6704_v9  ;;  %7781 = vmatprep.mubr.f32.mxu0 %v5571_v34  ;;  %v6715_v21 = vpop.f32.mrf.mxu1  ;;  %10106 = vmatpush3.msra.mxu1 %v6541_v45  ;;  %v5575_v9 = vld [vmem:[#allocation3 + $0x79] sm:$0xff] }
 0x541   :  { %v7090_v38 = vpop.f32.mrf.mxu0  ;;  %10107 = vmatprep.subr.mxu1 %v6540_v19  ;;  %v5321_v21 = vld [vmem:[#allocation3 + $0x82] sm:$0xff] }
 0x542   :  { %v6718_v35 = vpop.f32.mrf.mxu1  ;;  %7407 = vmatmul.mubr.f32.gmra.mxu1 %v5571_v34  ;;  %v5447_v34 = vld [vmem:[#allocation3 + $0x78] sm:$0xff]  ;;  %v6535_v38 = vld [vmem:[#allocation5 + $0x430] sm:$0xff] }
 0x543   :  { %v7093_v4 = vpop.f32.mrf.mxu0  ;;  %7782 = vmatmul.mubr.f32.gmra.mxu0 %v5443_v10  ;;  %7411 = vmatprep.mubr.f32.mxu1 %v5317_v47  ;;  %v6719_v25 = vadd.f32 %v15028_v23, %v6718_v35  ;;  %v5576_v35 = vld [vmem:[#allocation3 + $0x81] sm:$0xff] }
 0x544   :  { %v15088_v53 = vadd.f32 %v7093_v4, %v6709_v26  ;;  %7786 = vmatprep.mubr.f32.mxu0 %v5572_v54  ;;  %v6720_v24 = vpop.f32.mrf.mxu1  ;;  %10108 = vmatpush3.msra.mxu1 %v6540_v19 }
 0x545   :  { %v7095_v48 = vpop.f32.mrf.mxu0  ;;  %10109 = vmatprep.subr.mxu1 %v6539_v51  ;;  %v5448_v24 = vld [vmem:[#allocation3 + $0x80] sm:$0xff] }
 0x546   :  { %v6723_v29 = vpop.f32.mrf.mxu1  ;;  %7412 = vmatmul.mubr.f32.gmra.mxu1 %v5572_v54  ;;  %v5322_v48 = vld [vmem:[#allocation3 + $0x92] sm:$0xff] }
 0x547   :  { %v7098_v15 = vpop.f32.mrf.mxu0  ;;  %7787 = vmatmul.mubr.f32.gmra.mxu0 %v5444_v37  ;;  %7416 = vmatprep.mubr.f32.mxu1 %v5318_v18  ;;  %v6724_v17 = vadd.f32 %v15028_v23, %v6723_v29  ;;  %v5577_v37 = vld [vmem:[#allocation3 + $0x91] sm:$0xff] }
 0x548   :  { %v15091_v31 = vadd.f32 %v7098_v15, %v6714_v7  ;;  %7791 = vmatprep.mubr.f32.mxu0 %v5573_v55  ;;  %v6725_v44 = vpop.f32.mrf.mxu1  ;;  %10110 = vmatpush3.msra.mxu1 %v6539_v51  ;;  %v6534_v7 = vld [vmem:[#allocation5 + $0x428] sm:$0xff] }
 0x549   :  { %v7100_v43 = vpop.f32.mrf.mxu0  ;;  %10111 = vmatprep.subr.mxu1 %v6538_v16 }
 0x54a   :  { %v6728_v50 = vpop.f32.mrf.mxu1  ;;  %7417 = vmatmul.mubr.f32.gmra.mxu1 %v5573_v55  ;;  %v5449_v43 = vld [vmem:[#allocation3 + $0x90] sm:$0xff] }
 0x54b   :  { %v7103_v42 = vpop.f32.mrf.mxu0  ;;  %7792 = vmatmul.mubr.f32.gmra.mxu0 %v5445_v52  ;;  %7421 = vmatprep.mubr.f32.mxu1 %v5319_v8  ;;  %v6729_v19 = vadd.f32 %v15028_v23, %v6728_v50  ;;  %v5578_v52 = vld [vmem:[#allocation3 + $0x99] sm:$0xff] }
 0x54c   :  { %v15094_v14 = vadd.f32 %v7103_v42, %v6719_v25  ;;  %7796 = vmatprep.mubr.f32.mxu0 %v5574_v61  ;;  %v6730_v13 = vpop.f32.mrf.mxu1  ;;  %10112 = vmatpush3.msra.mxu1 %v6538_v16  ;;  %v5323_v25 = vld [vmem:[#allocation3 + $0x9a] sm:$0xff] }
 0x54d   :  { %v7105_v56 = vpop.f32.mrf.mxu0  ;;  %10113 = vmatprep.subr.mxu1 %v6537_v60 }
 0x54e   :  { %v6733_v45 = vpop.f32.mrf.mxu1  ;;  %7422 = vmatmul.mubr.f32.gmra.mxu1 %v5574_v61  ;;  %v5450_v56 = vld [vmem:[#allocation3 + $0x98] sm:$0xff] }
 0x54f   :  { %v7108_v30 = vpop.f32.mrf.mxu0  ;;  %7797 = vmatmul.mubr.f32.gmra.mxu0 %v5446_v2  ;;  %7426 = vmatprep.mubr.f32.mxu1 %v5320_v12  ;;  %v6734_v4 = vadd.f32 %v15028_v23, %v6733_v45  ;;  %v5579_v2 = vld [vmem:[#allocation3 + $0xa9] sm:$0xff] }
 0x550   :  { %v15097_v58 = vadd.f32 %v7108_v30, %v6724_v17  ;;  %7801 = vmatprep.mubr.f32.mxu0 %v5575_v9  ;;  %v6735_v36 = vpop.f32.mrf.mxu1  ;;  %10114 = vmatpush3.msra.mxu1 %v6537_v60  ;;  %v5324_v17 = vld [vmem:[#allocation3 + $0xaa] sm:$0xff] }
 0x551   :  { %v7110_v33 = vpop.f32.mrf.mxu0  ;;  %10115 = vmatprep.subr.mxu1 %v6536_v40 }
 0x552   :  { %v6738_v57 = vpop.f32.mrf.mxu1  ;;  %7427 = vmatmul.mubr.f32.gmra.mxu1 %v5575_v9  ;;  %v5451_v33 = vld [vmem:[#allocation3 + $0xa8] sm:$0xff] }
 0x553   :  { %v7113_v26 = vpop.f32.mrf.mxu0  ;;  %7802 = vmatmul.mubr.f32.gmra.mxu0 %v5447_v34  ;;  %7431 = vmatprep.mubr.f32.mxu1 %v5321_v21  ;;  %v6739_v55 = vadd.f32 %v15028_v23, %v6738_v57  ;;  %v5580_v34 = vld [vmem:[#allocation3 + $0xb1] sm:$0xff] }
 0x554   :  { %v15100_v10 = vadd.f32 %v7113_v26, %v6729_v19  ;;  %7806 = vmatprep.mubr.f32.mxu0 %v5576_v35  ;;  %v6740_v47 = vpop.f32.mrf.mxu1  ;;  %10116 = vmatpush3.msra.mxu1 %v6536_v40  ;;  %v5325_v19 = vld [vmem:[#allocation3 + $0xb2] sm:$0xff]  ;;  %v6533_v26 = vld [vmem:[#allocation5 + $0x420] sm:$0xff] }
 0x555   :  { %v7115_v51 = vpop.f32.mrf.mxu0  ;;  %10117 = vmatprep.subr.mxu1 %v6535_v38 }
 0x556   :  { %v6743_v54 = vpop.f32.mrf.mxu1  ;;  %7432 = vmatmul.mubr.f32.gmra.mxu1 %v5576_v35 }
 0x557   :  { %v7118_v29 = vpop.f32.mrf.mxu0  ;;  %7807 = vmatmul.mubr.f32.gmra.mxu0 %v5448_v24  ;;  %7436 = vmatprep.mubr.f32.mxu1 %v5322_v48  ;;  %v6744_v61 = vadd.f32 %v15028_v23, %v6743_v54  ;;  %v5326_v54 = vld [vmem:[#allocation3 + $0xc2] sm:$0xff] }
 0x558   :  { %v15103_v18 = vadd.f32 %v7118_v29, %v6734_v4  ;;  %7811 = vmatprep.mubr.f32.mxu0 %v5577_v37  ;;  %v6745_v16 = vpop.f32.mrf.mxu1  ;;  %10118 = vmatpush3.msra.mxu1 %v6535_v38  ;;  %v5452_v4 = vld [vmem:[#allocation3 + $0xb0] sm:$0xff]  ;;  %v5581_v48 = vld [vmem:[#allocation3 + $0xc1] sm:$0xff] }
 0x559   :  { %v7120_v15 = vpop.f32.mrf.mxu0  ;;  %10119 = vmatprep.subr.mxu1 %v6534_v7 }
 0x55a   :  { %v6748_v44 = vpop.f32.mrf.mxu1  ;;  %7437 = vmatmul.mubr.f32.gmra.mxu1 %v5577_v37 }
 0x55b   :  { %v7123_v50 = vpop.f32.mrf.mxu0  ;;  %7812 = vmatmul.mubr.f32.gmra.mxu0 %v5449_v43  ;;  %7441 = vmatprep.mubr.f32.mxu1 %v5323_v25  ;;  %v6749_v9 = vadd.f32 %v15028_v23, %v6748_v44  ;;  %v5327_v44 = vld [vmem:[#allocation3 + $0xca] sm:$0xff] }
 0x55c   :  { %v15106_v8 = vadd.f32 %v7123_v50, %v6739_v55  ;;  %7816 = vmatprep.mubr.f32.mxu0 %v5578_v52  ;;  %v6750_v60 = vpop.f32.mrf.mxu1  ;;  %10120 = vmatpush3.msra.mxu1 %v6534_v7  ;;  %v5453_v55 = vld [vmem:[#allocation3 + $0xc0] sm:$0xff]  ;;  %v5582_v25 = vld [vmem:[#allocation3 + $0xc9] sm:$0xff] }
 0x55d   :  { %v7125_v42 = vpop.f32.mrf.mxu0  ;;  %10121 = vmatprep.subr.mxu1 %v6533_v26 }
 0x55e   :  { %v6753_v13 = vpop.f32.mrf.mxu1  ;;  %7442 = vmatmul.mubr.f32.gmra.mxu1 %v5578_v52 }
 0x55f   :  { %v7128_v45 = vpop.f32.mrf.mxu0  ;;  %7817 = vmatmul.mubr.f32.gmra.mxu0 %v5450_v56  ;;  %7446 = vmatprep.mubr.f32.mxu1 %v5324_v17  ;;  %v6754_v47 = vadd.f32 %v15028_v23, %v6753_v13  ;;  %v5454_v13 = vld [vmem:[#allocation3 + $0xc8] sm:$0xff]  ;;  %v5328_v56 = vld [vmem:[#allocation3 + $0xda] sm:$0xff] }
 0x560   :  { %v15109_v12 = vadd.f32 %v7128_v45, %v6744_v61  ;;  %7821 = vmatprep.mubr.f32.mxu0 %v5579_v2  ;;  %v6755_v40 = vpop.f32.mrf.mxu1  ;;  %10122 = vmatpush3.msra.mxu1 %v6533_v26  ;;  %v5583_v45 = vld [vmem:[#allocation3 + $0xd9] sm:$0xff] }
 0x561   :  { %v7130_v30 = vpop.f32.mrf.mxu0 }
 0x562   :  { %v6758_v36 = vpop.f32.mrf.mxu1  ;;  %7447 = vmatmul.mubr.f32.gmra.mxu1 %v5579_v2 }
 0x563   :  { %v7133_v57 = vpop.f32.mrf.mxu0  ;;  %7822 = vmatmul.mubr.f32.gmra.mxu0 %v5451_v33  ;;  %7451 = vmatprep.mubr.f32.mxu1 %v5325_v19  ;;  %v6759_v16 = vadd.f32 %v15028_v23, %v6758_v36  ;;  %v5455_v33 = vld [vmem:[#allocation3 + $0xd8] sm:$0xff]  ;;  %v5329_v19 = vld [vmem:[#allocation3 + $0xe2] sm:$0xff] }
 0x564   :  { %v15112_v21 = vadd.f32 %v7133_v57, %v6749_v9  ;;  %7826 = vmatprep.mubr.f32.mxu0 %v5580_v34  ;;  %v6760_v38 = vpop.f32.mrf.mxu1 }
 0x565   :  { %v7135_v35 = vpop.f32.mrf.mxu0 }
 0x566   :  { %v6763_v51 = vpop.f32.mrf.mxu1  ;;  %7452 = vmatmul.mubr.f32.gmra.mxu1 %v5580_v34  ;;  %v5584_v34 = vld [vmem:[#allocation3 + $0xe1] sm:$0xff]  ;;  %v6532_v35 = vld [vmem:[#allocation5 + $0x418] sm:$0xff] }
 0x567   :  { %v7138_v24 = vpop.f32.mrf.mxu0  ;;  %7827 = vmatmul.mubr.f32.gmra.mxu0 %v5452_v4  ;;  %7456 = vmatprep.mubr.f32.mxu1 %v5326_v54  ;;  %v6764_v42 = vadd.f32 %v15028_v23, %v6763_v51  ;;  %v5456_v54 = vld [vmem:[#allocation3 + $0xe0] sm:$0xff] }
 0x568   :  { %v15115_v7 = vadd.f32 %v7138_v24, %v6754_v47  ;;  %7831 = vmatprep.mubr.f32.mxu0 %v5581_v48  ;;  %v6765_v29 = vpop.f32.mrf.mxu1  ;;  %10123 = vmatprep.subr.mxu1 %v6532_v35  ;;  %v5330_v24 = vld [vmem:[#allocation3 + $0xf2] sm:$0xff] }
 0x569   :  { %v7140_v37 = vpop.f32.mrf.mxu0  ;;  %v5585_v29 = vld [vmem:[#allocation3 + $0xf1] sm:$0xff]  ;;  %10124 = vmatpush3.msra.mxu1 %v6532_v35 }
 0x56a   :  { %v6768_v15 = vpop.f32.mrf.mxu1  ;;  %7457 = vmatmul.mubr.f32.gmra.mxu1 %v5581_v48  ;;  %v5333_v35 = vld [vmem:[#allocation3 + $0x112] sm:$0xff] }
 0x56b   :  { %v7143_v43 = vpop.f32.mrf.mxu0  ;;  %7832 = vmatmul.mubr.f32.gmra.mxu0 %v5453_v55  ;;  %7461 = vmatprep.mubr.f32.mxu1 %v5327_v44  ;;  %v6769_v9 = vadd.f32 %v15028_v23, %v6768_v15 }
 0x56c   :  { %v15118_v50 = vadd.f32 %v7143_v43, %v6759_v16  ;;  %7836 = vmatprep.mubr.f32.mxu0 %v5582_v25  ;;  %v6770_v52 = vpop.f32.mrf.mxu1  ;;  %v5457_v43 = vld [vmem:[#allocation3 + $0xf0] sm:$0xff] }
 0x56d   :  { %v7145_v60 = vpop.f32.mrf.mxu0 }
 0x56e   :  { %v6773_v61 = vpop.f32.mrf.mxu1  ;;  %7462 = vmatmul.mubr.f32.gmra.mxu1 %v5582_v25  ;;  %v5331_v25 = vld [vmem:[#allocation3 + $0xfa] sm:$0xff] }
 0x56f   :  { %v7148_v17 = vpop.f32.mrf.mxu0  ;;  %7837 = vmatmul.mubr.f32.gmra.mxu0 %v5454_v13  ;;  %7466 = vmatprep.mubr.f32.mxu1 %v5328_v56  ;;  %v6774_v51 = vadd.f32 %v15028_v23, %v6773_v61  ;;  %v5586_v60 = vld [vmem:[#allocation3 + $0xf9] sm:$0xff] }
 0x570   :  { %v15121_v2 = vadd.f32 %v7148_v17, %v6764_v42  ;;  %7841 = vmatprep.mubr.f32.mxu0 %v5583_v45  ;;  %v6775_v40 = vpop.f32.mrf.mxu1 }
 0x571   :  { %v7150_v30 = vpop.f32.mrf.mxu0  ;;  %v5332_v40 = vld [vmem:[#allocation3 + $0x10a] sm:$0xff] }
 0x572   :  { %v6778_v36 = vpop.f32.mrf.mxu1  ;;  %7467 = vmatmul.mubr.f32.gmra.mxu1 %v5583_v45  ;;  %v5458_v45 = vld [vmem:[#allocation3 + $0xf8] sm:$0xff] }
 0x573   :  { %v7153_v57 = vpop.f32.mrf.mxu0  ;;  %7842 = vmatmul.mubr.f32.gmra.mxu0 %v5455_v33  ;;  %7471 = vmatprep.mubr.f32.mxu1 %v5329_v19  ;;  %v6779_v55 = vadd.f32 %v15028_v23, %v6778_v36 }
 0x574   :  { %v15124_v38 = vadd.f32 %v7153_v57, %v6769_v9  ;;  %7846 = vmatprep.mubr.f32.mxu0 %v5584_v34  ;;  %v6780_v26 = vpop.f32.mrf.mxu1  ;;  %v5587_v9 = vld [vmem:[#allocation3 + $0x109] sm:$0xff] }
 0x575   :  { %v7155_v47 = vpop.f32.mrf.mxu0  ;;  %v5459_v26 = vld [vmem:[#allocation3 + $0x108] sm:$0xff] }
 0x576   :  { %v6783_v4 = vpop.f32.mrf.mxu1  ;;  %7472 = vmatmul.mubr.f32.gmra.mxu1 %v5584_v34 }
 0x577   :  { %v7158_v48 = vpop.f32.mrf.mxu0  ;;  %7847 = vmatmul.mubr.f32.gmra.mxu0 %v5456_v54  ;;  %7476 = vmatprep.mubr.f32.mxu1 %v5330_v24  ;;  %v6784_v56 = vadd.f32 %v15028_v23, %v6783_v4  ;;  %v6531_v24 = vld [vmem:[#allocation5 + $0x410] sm:$0xff] }
 0x578   :  { %v15127_v37 = vadd.f32 %v7158_v48, %v6774_v51  ;;  %7851 = vmatprep.mubr.f32.mxu0 %v5585_v29  ;;  %v6785_v16 = vpop.f32.mrf.mxu1  ;;  %v5588_v51 = vld [vmem:[#allocation3 + $0x111] sm:$0xff]  ;;  %10125 = vmatprep.subr.mxu1 %v6531_v24 }
 0x579   :  { %v7160_v15 = vpop.f32.mrf.mxu0  ;;  %10126 = vmatpush3.msra.mxu1 %v6531_v24 }
 0x57a   :  { %v6788_v44 = vpop.f32.mrf.mxu1  ;;  %7477 = vmatmul.mubr.f32.gmra.mxu1 %v5585_v29  ;;  %v5460_v15 = vld [vmem:[#allocation3 + $0x110] sm:$0xff] }
 0x57b   :  { %v7163_v52 = vpop.f32.mrf.mxu0  ;;  %7852 = vmatmul.mubr.f32.gmra.mxu0 %v5457_v43  ;;  %7481 = vmatprep.mubr.f32.mxu1 %v5331_v25  ;;  %v6789_v57 = vadd.f32 %v15028_v23, %v6788_v44  ;;  %v5589_v43 = vld [vmem:[#allocation3 + $0x121] sm:$0xff] }
 0x57c   :  { %v15130_v42 = vadd.f32 %v7163_v52, %v6779_v55  ;;  %7856 = vmatprep.mubr.f32.mxu0 %v5586_v60  ;;  %v6790_v61 = vpop.f32.mrf.mxu1  ;;  %v5334_v55 = vld [vmem:[#allocation3 + $0x122] sm:$0xff] }
 0x57d   :  { %v7165_v13 = vpop.f32.mrf.mxu0  ;;  %v15144_v61 = vld [vmem:[%s17827_s6] ss:$0 sm:$0xff] }
 0x57e   :  { %v6793_v17 = vpop.f32.mrf.mxu1  ;;  %7482 = vmatmul.mubr.f32.gmra.mxu1 %v5586_v60 }
 0x57f   :  { %v7168_v30 = vpop.f32.mrf.mxu0  ;;  %7857 = vmatmul.mubr.f32.gmra.mxu0 %v5458_v45  ;;  %7486 = vmatprep.mubr.f32.mxu1 %v5332_v40  ;;  %v6794_v29 = vadd.f32 %v15028_v23, %v6793_v17  ;;  %v5335_v17 = vld [vmem:[#allocation3 + $0x12a] sm:$0xff] }
 0x580   :  { %v15133_v36 = vadd.f32 %v7168_v30, %v6784_v56  ;;  %7861 = vmatprep.mubr.f32.mxu0 %v5587_v9  ;;  %v6795_v33 = vpop.f32.mrf.mxu1  ;;  %v5461_v56 = vld [vmem:[#allocation3 + $0x120] sm:$0xff]  ;;  %v5590_v40 = vld [vmem:[#allocation3 + $0x129] sm:$0xff] }
 0x581   :  { %v7170_v19 = vpop.f32.mrf.mxu0 }
 0x582   :  { %v6798_v34 = vpop.f32.mrf.mxu1  ;;  %7487 = vmatmul.mubr.f32.gmra.mxu1 %v5587_v9 }
 0x583   :  { %v7173_v47 = vpop.f32.mrf.mxu0  ;;  %7862 = vmatmul.mubr.f32.gmra.mxu0 %v5459_v26  ;;  %7491 = vmatprep.mubr.f32.mxu1 %v5333_v35  ;;  %v6799_v23 = vadd.f32 %v15144_v61, %v6798_v34  ;;  %v5462_v26 = vld [vmem:[#allocation3 + $0x128] sm:$0xff]  ;;  %v5336_v35 = vld [vmem:[#allocation3 + $0x13a] sm:$0xff] }
 0x584   :  { %v15136_v4 = vadd.f32 %v7173_v47, %v6789_v57  ;;  %7866 = vmatprep.mubr.f32.mxu0 %v5588_v51  ;;  %v6800_v54 = vpop.f32.mrf.mxu1  ;;  %v5591_v47 = vld [vmem:[#allocation3 + $0x139] sm:$0xff] }
 0x585   :  { %v7175_v48 = vpop.f32.mrf.mxu0 }
 0x586   :  { %v6803_v16 = vpop.f32.mrf.mxu1  ;;  %7492 = vmatmul.mubr.f32.gmra.mxu1 %v5588_v51 }
 0x587   :  { %v7178_v44 = vpop.f32.mrf.mxu0  ;;  %7867 = vmatmul.mubr.f32.gmra.mxu0 %v5460_v15  ;;  %7496 = vmatprep.mubr.f32.mxu1 %v5334_v55  ;;  %v6804_v19 = vadd.f32 %v15144_v61, %v6803_v16  ;;  %v5463_v15 = vld [vmem:[#allocation3 + $0x138] sm:$0xff]  ;;  %v5337_v55 = vld [vmem:[#allocation3 + $0x142] sm:$0xff] }
 0x588   :  { %v15139_v25 = vadd.f32 %v7178_v44, %v6794_v29  ;;  %7871 = vmatprep.mubr.f32.mxu0 %v5589_v43  ;;  %v6805_v52 = vpop.f32.mrf.mxu1  ;;  %v5592_v44 = vld [vmem:[#allocation3 + $0x141] sm:$0xff] }
 0x589   :  { %v7180_v60 = vpop.f32.mrf.mxu0 }
 0x58a   :  { %v6808_v13 = vpop.f32.mrf.mxu1  ;;  %7497 = vmatmul.mubr.f32.gmra.mxu1 %v5589_v43  ;;  %v6530_v60 = vld [vmem:[#allocation5 + $0x408] sm:$0xff] }
 0x58b   :  { %v7183_v45 = vpop.f32.mrf.mxu0  ;;  %7872 = vmatmul.mubr.f32.gmra.mxu0 %v5461_v56  ;;  %7501 = vmatprep.mubr.f32.mxu1 %v5335_v17  ;;  %v6809_v48 = vadd.f32 %v15144_v61, %v6808_v13  ;;  %v5464_v13 = vld [vmem:[#allocation3 + $0x140] sm:$0xff] }
 0x58c   :  { %v15147_v30 = vadd.f32 %v7183_v45, %v6799_v23  ;;  %7876 = vmatprep.mubr.f32.mxu0 %v5590_v40  ;;  %v6810_v9 = vpop.f32.mrf.mxu1  ;;  %10127 = vmatprep.subr.mxu1 %v6530_v60  ;;  %v5338_v45 = vld [vmem:[#allocation3 + $0x152] sm:$0xff] }
 0x58d   :  { %v7185_v33 = vpop.f32.mrf.mxu0  ;;  %v5593_v9 = vld [vmem:[#allocation3 + $0x151] sm:$0xff]  ;;  %10128 = vmatpush3.msra.mxu1 %v6530_v60 }
 0x58e   :  { %v6813_v57 = vpop.f32.mrf.mxu1  ;;  %7502 = vmatmul.mubr.f32.gmra.mxu1 %v5590_v40  ;;  %v5340_v60 = vld [vmem:[#allocation3 + $0x16a] sm:$0xff] }
 0x58f   :  { %v7188_v34 = vpop.f32.mrf.mxu0  ;;  %7877 = vmatmul.mubr.f32.gmra.mxu0 %v5462_v26  ;;  %7506 = vmatprep.mubr.f32.mxu1 %v5336_v35  ;;  %v6814_v56 = vadd.f32 %v15144_v61, %v6813_v57  ;;  %v5339_v57 = vld [vmem:[#allocation3 + $0x15a] sm:$0xff] }
 0x590   :  { %v15150_v51 = vadd.f32 %v7188_v34, %v6804_v19  ;;  %7881 = vmatprep.mubr.f32.mxu0 %v5591_v47  ;;  %v6815_v54 = vpop.f32.mrf.mxu1 }
 0x591   :  { %v7190_v24 = vpop.f32.mrf.mxu0 }
 0x592   :  { %v6818_v29 = vpop.f32.mrf.mxu1  ;;  %7507 = vmatmul.mubr.f32.gmra.mxu1 %v5591_v47  ;;  %v5465_v47 = vld [vmem:[#allocation3 + $0x150] sm:$0xff]  ;;  %v5594_v24 = vld [vmem:[#allocation3 + $0x159] sm:$0xff] }
 0x593   :  { %v7193_v16 = vpop.f32.mrf.mxu0  ;;  %7882 = vmatmul.mubr.f32.gmra.mxu0 %v5463_v15  ;;  %7511 = vmatprep.mubr.f32.mxu1 %v5337_v55  ;;  %v6819_v35 = vadd.f32 %v15144_v61, %v6818_v29 }
 0x594   :  { %v15153_v43 = vadd.f32 %v7193_v16, %v6809_v48  ;;  %7886 = vmatprep.mubr.f32.mxu0 %v5592_v44  ;;  %v6820_v52 = vpop.f32.mrf.mxu1 }
 0x595   :  { %v7195_v23 = vpop.f32.mrf.mxu0  ;;  %v5466_v52 = vld [vmem:[#allocation3 + $0x158] sm:$0xff] }
 0x596   :  { %v6823_v17 = vpop.f32.mrf.mxu1  ;;  %7512 = vmatmul.mubr.f32.gmra.mxu1 %v5592_v44  ;;  %v5595_v23 = vld [vmem:[#allocation3 + $0x169] sm:$0xff] }
 0x597   :  { %v7198_v40 = vpop.f32.mrf.mxu0  ;;  %7887 = vmatmul.mubr.f32.gmra.mxu0 %v5464_v13  ;;  %7516 = vmatprep.mubr.f32.mxu1 %v5338_v45  ;;  %v6824_v16 = vadd.f32 %v15144_v61, %v6823_v17 }
 0x598   :  { %v15156_v33 = vadd.f32 %v7198_v40, %v6814_v56  ;;  %7891 = vmatprep.mubr.f32.mxu0 %v5593_v9  ;;  %v6825_v19 = vpop.f32.mrf.mxu1 }
 0x599   :  { %v7200_v26 = vpop.f32.mrf.mxu0  ;;  %v5467_v19 = vld [vmem:[#allocation3 + $0x168] sm:$0xff] }
 0x59a   :  { %v6828_v34 = vpop.f32.mrf.mxu1  ;;  %7517 = vmatmul.mubr.f32.gmra.mxu1 %v5593_v9  ;;  %v5341_v26 = vld [vmem:[#allocation3 + $0x172] sm:$0xff] }
 0x59b   :  { %v7203_v54 = vpop.f32.mrf.mxu0  ;;  %7892 = vmatmul.mubr.f32.gmra.mxu0 %v5465_v47  ;;  %7521 = vmatprep.mubr.f32.mxu1 %v5339_v57  ;;  %v6829_v40 = vadd.f32 %v15144_v61, %v6828_v34  ;;  %v5468_v34 = vld [vmem:[#allocation3 + $0x170] sm:$0xff] }
 0x59c   :  { %v15159_v48 = vadd.f32 %v7203_v54, %v6819_v35  ;;  %7896 = vmatprep.mubr.f32.mxu0 %v5594_v24  ;;  %v6830_v15 = vpop.f32.mrf.mxu1  ;;  %v5596_v35 = vld [vmem:[#allocation3 + $0x171] sm:$0xff]  ;;  %v6529_v54 = vld [vmem:[#allocation5 + $0x400] sm:$0xff] }
 0x59d   :  { %v7205_v55 = vpop.f32.mrf.mxu0  ;;  %10129 = vmatprep.subr.mxu1 %v6529_v54 }
 0x59e   :  { %v6833_v44 = vpop.f32.mrf.mxu1  ;;  %7522 = vmatmul.mubr.f32.gmra.mxu1 %v5594_v24 }
 0x59f   :  { %v7208_v29 = vpop.f32.mrf.mxu0  ;;  %7897 = vmatmul.mubr.f32.gmra.mxu0 %v5466_v52  ;;  %7526 = vmatprep.mubr.f32.mxu1 %v5340_v60  ;;  %v6834_v15 = vadd.f32 %v15144_v61, %v6833_v44  ;;  %v5597_v60 = vld [vmem:[#allocation3 + $0x181] sm:$0xff]  ;;  %v5343_v44 = vld [vmem:[#allocation3 + $0x18a] sm:$0xff] }
 0x5a0   :  { %v15162_v56 = vadd.f32 %v7208_v29, %v6824_v16  ;;  %7901 = vmatprep.mubr.f32.mxu0 %v5595_v23  ;;  %v6835_v13 = vpop.f32.mrf.mxu1  ;;  %v5342_v16 = vld [vmem:[#allocation3 + $0x182] sm:$0xff]  ;;  %10130 = vmatpush3.msra.mxu1 %v6529_v54 }
 0x5a1   :  { %v7210_v45 = vpop.f32.mrf.mxu0 }
 0x5a2   :  { %18406 = vst [vmem:[#allocation22_spill] sm:$0xff] %v15162_v56  ;;  %v6838_v9 = vpop.f32.mrf.mxu1  ;;  %7527 = vmatmul.mubr.f32.gmra.mxu1 %v5595_v23 }
 0x5a3   :  { %v7213_v17 = vpop.f32.mrf.mxu0  ;;  %7902 = vmatmul.mubr.f32.gmra.mxu0 %v5467_v19  ;;  %7531 = vmatprep.mubr.f32.mxu1 %v5341_v26  ;;  %v6839_v45 = vadd.f32 %v15144_v61, %v6838_v9  ;;  %v5469_v19 = vld [vmem:[#allocation3 + $0x180] sm:$0xff]  ;;  %v5344_v9 = vld [vmem:[#allocation3 + $0x1ca] sm:$0xff] }
 0x5a4   :  { %v15165_v47 = vadd.f32 %v7213_v17, %v6829_v40  ;;  %7906 = vmatprep.mubr.f32.mxu0 %v5596_v35  ;;  %v6840_v57 = vpop.f32.mrf.mxu1  ;;  %v5598_v17 = vld [vmem:[#allocation3 + $0x189] sm:$0xff] }
 0x5a5   :  { %v7215_v24 = vpop.f32.mrf.mxu0 }
 0x5a6   :  { %18407 = vst [vmem:[#allocation25_spill] sm:$0xff] %v15165_v47  ;;  %v6843_v55 = vpop.f32.mrf.mxu1  ;;  %7532 = vmatmul.mubr.f32.gmra.mxu1 %v5596_v35 }
 0x5a7   :  { %v7218_v52 = vpop.f32.mrf.mxu0  ;;  %7907 = vmatmul.mubr.f32.gmra.mxu0 %v5468_v34  ;;  %7536 = vmatprep.mubr.f32.mxu1 %v5342_v16  ;;  %v6844_v34 = vadd.f32 %v15144_v61, %v6843_v55  ;;  %v5470_v16 = vld [vmem:[#allocation3 + $0x188] sm:$0xff] }
 0x5a8   :  { %v15168_v29 = vadd.f32 %v7218_v52, %v6834_v15  ;;  %7911 = vmatprep.mubr.f32.mxu0 %v5597_v60  ;;  %v6845_v23 = vpop.f32.mrf.mxu1  ;;  %v5599_v15 = vld [vmem:[#allocation3 + $0x199] sm:$0xff] }
 0x5a9   :  { %v7220_v13 = vpop.f32.mrf.mxu0 }
 0x5aa   :  { %18408 = vst [vmem:[#allocation24_spill] sm:$0xff] %v15168_v29  ;;  %v6848_v40 = vpop.f32.mrf.mxu1  ;;  %7537 = vmatmul.mubr.f32.gmra.mxu1 %v5597_v60 }
 0x5ab   :  { %v7223_v26 = vpop.f32.mrf.mxu0  ;;  %7912 = vmatmul.mubr.f32.gmra.mxu0 %v5469_v19  ;;  %7541 = vmatprep.mubr.f32.mxu1 %v5343_v44  ;;  %v5600_v19 = vld [vmem:[#allocation3 + $0x1a1] sm:$0xff]  ;;  %v6849_v44 = vadd.f32 %v15144_v61, %v6848_v40 }
 0x5ac   :  { %v15171_v35 = vadd.f32 %v7223_v26, %v6839_v45  ;;  %7916 = vmatprep.mubr.f32.mxu0 %v5598_v17  ;;  %v6850_v57 = vpop.f32.mrf.mxu1  ;;  %v5216_v45 = vld [vmem:[#allocation3 + $0x1c9] sm:$0xff] }
 0x5ad   :  { %v7225_v24 = vpop.f32.mrf.mxu0  ;;  %v5345_v57 = vld [vmem:[#allocation3 + $0x1d2] sm:$0xff]  ;;  %v5346_v40 = vld [vmem:[#allocation3 + $0x1e2] sm:$0xff] }
 0x5ae   :  { %18409 = vst [vmem:[#allocation26_spill] sm:$0xff] %v15171_v35  ;;  %v6853_v54 = vpop.f32.mrf.mxu1  ;;  %7542 = vmatmul.mubr.f32.gmra.mxu1 %v5598_v17  ;;  %v15177_v24 = vld [vmem:[#allocation3] sm:$0xff] }
 0x5af   :  { %v7228_v52 = vpop.f32.mrf.mxu0  ;;  %7917 = vmatmul.mubr.f32.gmra.mxu0 %v5470_v16  ;;  %7546 = vmatprep.mubr.f32.mxu1 %v5344_v9  ;;  %v6854_v9 = vadd.f32 %v15144_v61, %v6853_v54 }
 0x5b0   :  { %v15174_v60 = vadd.f32 %v7228_v52, %v6844_v34  ;;  %v6855_v23 = vpop.f32.mrf.mxu1  ;;  %7921 = vmatprep.mubr.f32.mxu0 %v5599_v15  ;;  %v5217_v15 = vld [vmem:[#allocation3 + $0x1d1] sm:$0xff] }
 0x5b1   :  { %v7230_v13 = vpop.f32.mrf.mxu0 }
 0x5b2   :  { %18410 = vst [vmem:[#allocation14_spill] sm:$0xff] %v15174_v60  ;;  %v6858_v26 = vpop.f32.mrf.mxu1  ;;  %7547 = vmatmul.mubr.f32.gmra.mxu1 %v5216_v45  ;;  %v5601_v13 = vld [vmem:[#allocation3 + $0x1e1] sm:$0xff] }
 0x5b3   :  { %v7233_v55 = vpop.f32.mrf.mxu0  ;;  %7922 = vmatmul.mubr.f32.gmra.mxu0 %v15177_v24  ;;  %7551 = vmatprep.mubr.f32.mxu1 %v5345_v57 }
 0x5b4   :  { %v15180_v17 = vadd.f32 %v7233_v55, %v6849_v44  ;;  %v6860_v34 = vpop.f32.mrf.mxu1  ;;  %7926 = vmatprep.mubr.f32.mxu0 %v5600_v19  ;;  %v6859_v55 = vadd.f32 %v15144_v61, %v6858_v26 }
 0x5b5   :  { %v7235_v16 = vpop.f32.mrf.mxu0  ;;  %v5473_v34 = vld [vmem:[#allocation3 + $0x1e0] sm:$0xff] }
 0x5b6   :  { %18411 = vst [vmem:[#allocation27_spill] sm:$0xff] %v15180_v17  ;;  %v6863_v52 = vpop.f32.mrf.mxu1  ;;  %7552 = vmatmul.mubr.f32.gmra.mxu1 %v5217_v15  ;;  %v5347_v16 = vld [vmem:[#allocation3 + $0x1ea] sm:$0xff] }
 0x5b7   :  { %v7238_v23 = vpop.f32.mrf.mxu0  ;;  %7927 = vmatmul.mubr.f32.gmra.mxu0 %v15177_v24  ;;  %7556 = vmatprep.mubr.f32.mxu1 %v5346_v40  ;;  %v5602_v15 = vld [vmem:[#allocation3 + $0x1e9] sm:$0xff] }
 0x5b8   :  { %v15184_v45 = vadd.f32 %v7238_v23, %v6854_v9  ;;  %7931 = vmatprep.mubr.f32.mxu0 %v5601_v13  ;;  %v6865_v57 = vpop.f32.mrf.mxu1  ;;  %v6864_v9 = vadd.f32 %v15144_v61, %v6863_v52 }
 0x5b9   :  { %v7240_v44 = vpop.f32.mrf.mxu0  ;;  %v5474_v57 = vld [vmem:[#allocation3 + $0x1e8] sm:$0xff] }
 0x5ba   :  { %18412 = vst [vmem:[#allocation28_spill] sm:$0xff] %v15184_v45  ;;  %v6868_v19 = vpop.f32.mrf.mxu1  ;;  %7557 = vmatmul.mubr.f32.gmra.mxu1 %v5601_v13  ;;  %v5348_v44 = vld [vmem:[#allocation3 + $0x1fa] sm:$0xff] }
 0x5bb   :  { %v7243_v54 = vpop.f32.mrf.mxu0  ;;  %7932 = vmatmul.mubr.f32.gmra.mxu0 %v5473_v34  ;;  %7561 = vmatprep.mubr.f32.mxu1 %v5347_v16  ;;  %v5603_v13 = vld [vmem:[#allocation3 + $0x1f9] sm:$0xff] }
 0x5bc   :  { %v15187_v17 = vadd.f32 %v7243_v54, %v6859_v55  ;;  %7936 = vmatprep.mubr.f32.mxu0 %v5602_v15  ;;  %v6870_v40 = vpop.f32.mrf.mxu1  ;;  %v6869_v55 = vadd.f32 %v15144_v61, %v6868_v19 }
 0x5bd   :  { %v7245_v60 = vpop.f32.mrf.mxu0  ;;  %v5349_v40 = vld [vmem:[#allocation3 + $0x202] sm:$0xff] }
 0x5be   :  { %18413 = vst [vmem:[#allocation31_spill] sm:$0xff] %v15187_v17  ;;  %v6873_v23 = vpop.f32.mrf.mxu1  ;;  %7562 = vmatmul.mubr.f32.gmra.mxu1 %v5602_v15  ;;  %v5475_v60 = vld [vmem:[#allocation3 + $0x1f8] sm:$0xff]  ;;  %v5604_v15 = vld [vmem:[#allocation3 + $0x201] sm:$0xff] }
 0x5bf   :  { %v7248_v26 = vpop.f32.mrf.mxu0  ;;  %7937 = vmatmul.mubr.f32.gmra.mxu0 %v5474_v57  ;;  %7566 = vmatprep.mubr.f32.mxu1 %v5348_v44 }
 0x5c0   :  { %v15190_v45 = vadd.f32 %v7248_v26, %v6864_v9  ;;  %7941 = vmatprep.mubr.f32.mxu0 %v5603_v13  ;;  %v6875_v34 = vpop.f32.mrf.mxu1  ;;  %v6874_v9 = vadd.f32 %v15144_v61, %v6873_v23 }
 0x5c1   :  { %v7250_v16 = vpop.f32.mrf.mxu0  ;;  %v5476_v34 = vld [vmem:[#allocation3 + $0x200] sm:$0xff] }
 0x5c2   :  { %18414 = vst [vmem:[#allocation29_spill] sm:$0xff] %v15190_v45  ;;  %v6878_v54 = vpop.f32.mrf.mxu1  ;;  %7567 = vmatmul.mubr.f32.gmra.mxu1 %v5603_v13  ;;  %v5350_v16 = vld [vmem:[#allocation3 + $0x212] sm:$0xff] }
 0x5c3   :  { %v7253_v52 = vpop.f32.mrf.mxu0  ;;  %7942 = vmatmul.mubr.f32.gmra.mxu0 %v5475_v60  ;;  %7571 = vmatprep.mubr.f32.mxu1 %v5349_v40  ;;  %v5605_v13 = vld [vmem:[#allocation3 + $0x211] sm:$0xff] }
 0x5c4   :  { %v15193_v17 = vadd.f32 %v7253_v52, %v6869_v55  ;;  %7946 = vmatprep.mubr.f32.mxu0 %v5604_v15  ;;  %v6880_v57 = vpop.f32.mrf.mxu1  ;;  %v6879_v55 = vadd.f32 %v15144_v61, %v6878_v54 }
 0x5c5   :  { %v7255_v44 = vpop.f32.mrf.mxu0  ;;  %v5477_v57 = vld [vmem:[#allocation3 + $0x210] sm:$0xff] }
 0x5c6   :  { %18415 = vst [vmem:[#allocation33_spill] sm:$0xff] %v15193_v17  ;;  %v6883_v26 = vpop.f32.mrf.mxu1  ;;  %7572 = vmatmul.mubr.f32.gmra.mxu1 %v5604_v15  ;;  %v5351_v44 = vld [vmem:[#allocation3 + $0x21a] sm:$0xff] }
 0x5c7   :  { %v7258_v19 = vpop.f32.mrf.mxu0  ;;  %7947 = vmatmul.mubr.f32.gmra.mxu0 %v5476_v34  ;;  %7576 = vmatprep.mubr.f32.mxu1 %v5350_v16  ;;  %v5606_v15 = vld [vmem:[#allocation3 + $0x219] sm:$0xff] }
 0x5c8   :  { %v15196_v45 = vadd.f32 %v7258_v19, %v6874_v9  ;;  %7951 = vmatprep.mubr.f32.mxu0 %v5605_v13  ;;  %v6885_v60 = vpop.f32.mrf.mxu1  ;;  %v6884_v9 = vadd.f32 %v15144_v61, %v6883_v26 }
 0x5c9   :  { %v7260_v40 = vpop.f32.mrf.mxu0  ;;  %v5478_v60 = vld [vmem:[#allocation3 + $0x218] sm:$0xff] }
 0x5ca   :  { %18416 = vst [vmem:[#allocation30_spill] sm:$0xff] %v15196_v45  ;;  %v6888_v52 = vpop.f32.mrf.mxu1  ;;  %7577 = vmatmul.mubr.f32.gmra.mxu1 %v5605_v13  ;;  %v5352_v40 = vld [vmem:[#allocation3 + $0x22a] sm:$0xff] }
 0x5cb   :  { %v7263_v23 = vpop.f32.mrf.mxu0  ;;  %7952 = vmatmul.mubr.f32.gmra.mxu0 %v5477_v57  ;;  %7581 = vmatprep.mubr.f32.mxu1 %v5351_v44  ;;  %v5607_v13 = vld [vmem:[#allocation3 + $0x229] sm:$0xff] }
 0x5cc   :  { %v15199_v17 = vadd.f32 %v7263_v23, %v6879_v55  ;;  %7956 = vmatprep.mubr.f32.mxu0 %v5606_v15  ;;  %v6890_v34 = vpop.f32.mrf.mxu1  ;;  %v6889_v55 = vadd.f32 %v15144_v61, %v6888_v52 }
 0x5cd   :  { %v7265_v16 = vpop.f32.mrf.mxu0  ;;  %v5479_v34 = vld [vmem:[#allocation3 + $0x228] sm:$0xff] }
 0x5ce   :  { %18417 = vst [vmem:[#allocation35_spill] sm:$0xff] %v15199_v17  ;;  %v6893_v19 = vpop.f32.mrf.mxu1  ;;  %7582 = vmatmul.mubr.f32.gmra.mxu1 %v5606_v15  ;;  %v5353_v16 = vld [vmem:[#allocation3 + $0x232] sm:$0xff] }
 0x5cf   :  { %v7268_v54 = vpop.f32.mrf.mxu0  ;;  %7957 = vmatmul.mubr.f32.gmra.mxu0 %v5478_v60  ;;  %7586 = vmatprep.mubr.f32.mxu1 %v5352_v40  ;;  %v5608_v15 = vld [vmem:[#allocation3 + $0x231] sm:$0xff] }
 0x5d0   :  { %v15202_v45 = vadd.f32 %v7268_v54, %v6884_v9  ;;  %7961 = vmatprep.mubr.f32.mxu0 %v5607_v13  ;;  %v6895_v57 = vpop.f32.mrf.mxu1  ;;  %v6894_v9 = vadd.f32 %v15144_v61, %v6893_v19 }
 0x5d1   :  { %v7270_v44 = vpop.f32.mrf.mxu0  ;;  %v5480_v57 = vld [vmem:[#allocation3 + $0x230] sm:$0xff] }
 0x5d2   :  { %18418 = vst [vmem:[#allocation32_spill] sm:$0xff] %v15202_v45  ;;  %v6898_v23 = vpop.f32.mrf.mxu1  ;;  %7587 = vmatmul.mubr.f32.gmra.mxu1 %v5607_v13  ;;  %v5354_v44 = vld [vmem:[#allocation3 + $0x242] sm:$0xff] }
 0x5d3   :  { %v7273_v26 = vpop.f32.mrf.mxu0  ;;  %7962 = vmatmul.mubr.f32.gmra.mxu0 %v5479_v34  ;;  %7591 = vmatprep.mubr.f32.mxu1 %v5353_v16  ;;  %v5609_v13 = vld [vmem:[#allocation3 + $0x241] sm:$0xff] }
 0x5d4   :  { %v15205_v17 = vadd.f32 %v7273_v26, %v6889_v55  ;;  %7966 = vmatprep.mubr.f32.mxu0 %v5608_v15  ;;  %v6900_v60 = vpop.f32.mrf.mxu1  ;;  %v6899_v55 = vadd.f32 %v15144_v61, %v6898_v23 }
 0x5d5   :  { %v7275_v40 = vpop.f32.mrf.mxu0  ;;  %v5481_v60 = vld [vmem:[#allocation3 + $0x240] sm:$0xff] }
 0x5d6   :  { %18419 = vst [vmem:[#allocation45_spill] sm:$0xff] %v15205_v17  ;;  %v6903_v54 = vpop.f32.mrf.mxu1  ;;  %7592 = vmatmul.mubr.f32.gmra.mxu1 %v5608_v15  ;;  %v5355_v40 = vld [vmem:[#allocation3 + $0x24a] sm:$0xff] }
 0x5d7   :  { %v7278_v52 = vpop.f32.mrf.mxu0  ;;  %7967 = vmatmul.mubr.f32.gmra.mxu0 %v5480_v57  ;;  %7596 = vmatprep.mubr.f32.mxu1 %v5354_v44  ;;  %v5610_v15 = vld [vmem:[#allocation3 + $0x249] sm:$0xff] }
 0x5d8   :  { %v15208_v45 = vadd.f32 %v7278_v52, %v6894_v9  ;;  %7971 = vmatprep.mubr.f32.mxu0 %v5609_v13  ;;  %v6905_v34 = vpop.f32.mrf.mxu1  ;;  %v6904_v9 = vadd.f32 %v15144_v61, %v6903_v54 }
 0x5d9   :  { %v7280_v16 = vpop.f32.mrf.mxu0  ;;  %v5482_v34 = vld [vmem:[#allocation3 + $0x248] sm:$0xff] }
 0x5da   :  { %18420 = vst [vmem:[#allocation46_spill] sm:$0xff] %v15208_v45  ;;  %v6908_v26 = vpop.f32.mrf.mxu1  ;;  %7597 = vmatmul.mubr.f32.gmra.mxu1 %v5609_v13  ;;  %v5356_v16 = vld [vmem:[#allocation3 + $0x25a] sm:$0xff] }
 0x5db   :  { %v7283_v19 = vpop.f32.mrf.mxu0  ;;  %7972 = vmatmul.mubr.f32.gmra.mxu0 %v5481_v60  ;;  %7601 = vmatprep.mubr.f32.mxu1 %v5355_v40  ;;  %v5611_v13 = vld [vmem:[#allocation3 + $0x259] sm:$0xff] }
 0x5dc   :  { %v15211_v17 = vadd.f32 %v7283_v19, %v6899_v55  ;;  %7976 = vmatprep.mubr.f32.mxu0 %v5610_v15  ;;  %v6910_v57 = vpop.f32.mrf.mxu1  ;;  %v6909_v55 = vadd.f32 %v15144_v61, %v6908_v26  ;;  %v5484_v26 = vld [vmem:[#allocation3 + $0x260] sm:$0xff] }
 0x5dd   :  { %v7285_v44 = vpop.f32.mrf.mxu0  ;;  %v5483_v57 = vld [vmem:[#allocation3 + $0x258] sm:$0xff] }
 0x5de   :  { %18421 = vst [vmem:[#allocation47_spill] sm:$0xff] %v15211_v17  ;;  %v6913_v52 = vpop.f32.mrf.mxu1  ;;  %7602 = vmatmul.mubr.f32.gmra.mxu1 %v5610_v15  ;;  %v15217_v44 = vld [vmem:[#allocation3 + $0x262] sm:$0xff] }
 0x5df   :  { %v7288_v23 = vpop.f32.mrf.mxu0  ;;  %7977 = vmatmul.mubr.f32.gmra.mxu0 %v5482_v34  ;;  %7606 = vmatprep.mubr.f32.mxu1 %v5356_v16  ;;  %v5612_v15 = vld [vmem:[#allocation3 + $0x261] sm:$0xff] }
 0x5e0   :  { %v15214_v45 = vadd.f32 %v7288_v23, %v6904_v9  ;;  %7981 = vmatprep.mubr.f32.mxu0 %v5611_v13  ;;  %v6915_v60 = vpop.f32.mrf.mxu1  ;;  %v6914_v23 = vadd.f32 %v15144_v61, %v6913_v52  ;;  %v5485_v52 = vld [vmem:[#allocation3 + $0x270] sm:$0xff] }
 0x5e1   :  { %v7290_v40 = vpop.f32.mrf.mxu0 }
 0x5e2   :  { %18422 = vst [vmem:[#allocation34_spill] sm:$0xff] %v15214_v45  ;;  %v6918_v19 = vpop.f32.mrf.mxu1  ;;  %7607 = vmatmul.mubr.f32.gmra.mxu1 %v5611_v13  ;;  %v15223_v40 = vld [vmem:[#allocation3 + $0x272] sm:$0xff] }
 0x5e3   :  { %v7293_v54 = vpop.f32.mrf.mxu0  ;;  %7982 = vmatmul.mubr.f32.gmra.mxu0 %v5483_v57  ;;  %7611 = vmatprep.mubr.f32.mxu1 %v15217_v44  ;;  %v5613_v57 = vld [vmem:[#allocation3 + $0x271] sm:$0xff] }
 0x5e4   :  { %v15220_v34 = vadd.f32 %v7293_v54, %v6909_v55  ;;  %7986 = vmatprep.mubr.f32.mxu0 %v5612_v15  ;;  %v6920_v9 = vpop.f32.mrf.mxu1 }
 0x5e5   :  { %v7295_v16 = vpop.f32.mrf.mxu0  ;;  %v6919_v9 = vadd.f32 %v15144_v61, %v6918_v19  ;;  %v5486_v19 = vld [vmem:[#allocation3 + $0x278] sm:$0xff] }
 0x5e6   :  { %18423 = vst [vmem:[#allocation48_spill] sm:$0xff] %v15220_v34  ;;  %v6923_v60 = vpop.f32.mrf.mxu1  ;;  %7612 = vmatmul.mubr.f32.gmra.mxu1 %v5612_v15  ;;  %v15229_v34 = vld [vmem:[#allocation3 + $0x27a] sm:$0xff] }
 0x5e7   :  { %v7298_v13 = vpop.f32.mrf.mxu0  ;;  %7987 = vmatmul.mubr.f32.gmra.mxu0 %v5484_v26  ;;  %7616 = vmatprep.mubr.f32.mxu1 %v15223_v40  ;;  %v5614_v26 = vld [vmem:[#allocation3 + $0x279] sm:$0xff] }
 0x5e8   :  { %v15226_v45 = vadd.f32 %v7298_v13, %v6914_v23  ;;  %7991 = vmatprep.mubr.f32.mxu0 %v5613_v57  ;;  %v6925_v55 = vpop.f32.mrf.mxu1 }
 0x5e9   :  { %v7300_v54 = vpop.f32.mrf.mxu0  ;;  %v6924_v55 = vadd.f32 %v15144_v61, %v6923_v60  ;;  %v5487_v60 = vld [vmem:[#allocation3 + $0x288] sm:$0xff] }
 0x5ea   :  { %18424 = vst [vmem:[#allocation18_spill] sm:$0xff] %v15226_v45  ;;  %v6928_v16 = vpop.f32.mrf.mxu1  ;;  %7617 = vmatmul.mubr.f32.gmra.mxu1 %v5613_v57  ;;  %v15235_v45 = vld [vmem:[#allocation3 + $0x28a] sm:$0xff] }
 0x5eb   :  { %v7303_v15 = vpop.f32.mrf.mxu0  ;;  %7992 = vmatmul.mubr.f32.gmra.mxu0 %v5485_v52  ;;  %7621 = vmatprep.mubr.f32.mxu1 %v15229_v34  ;;  %v5615_v52 = vld [vmem:[#allocation3 + $0x289] sm:$0xff] }
 0x5ec   :  { %v15232_v17 = vadd.f32 %v7303_v15, %v6919_v9  ;;  %7996 = vmatprep.mubr.f32.mxu0 %v5614_v26  ;;  %v6930_v23 = vpop.f32.mrf.mxu1 }
 0x5ed   :  { %v7305_v13 = vpop.f32.mrf.mxu0  ;;  %v6929_v23 = vadd.f32 %v15144_v61, %v6928_v16 }
 0x5ee   :  { %18425 = vst [vmem:[#allocation49_spill] sm:$0xff] %v15232_v17  ;;  %v6933_v54 = vpop.f32.mrf.mxu1  ;;  %7622 = vmatmul.mubr.f32.gmra.mxu1 %v5614_v26  ;;  %v15241_v17 = vld [vmem:[#allocation3 + $0x292] sm:$0xff] }
 0x5ef   :  { %v7308_v57 = vpop.f32.mrf.mxu0  ;;  %7997 = vmatmul.mubr.f32.gmra.mxu0 %v5486_v19  ;;  %7626 = vmatprep.mubr.f32.mxu1 %v15235_v45  ;;  %v5616_v19 = vld [vmem:[#allocation3 + $0x291] sm:$0xff] }
 0x5f0   :  { %v15238_v35 = vadd.f32 %v7308_v57, %v6924_v55  ;;  %8001 = vmatprep.mubr.f32.mxu0 %v5615_v52  ;;  %v6935_v9 = vpop.f32.mrf.mxu1 }
 0x5f1   :  { %v7310_v15 = vpop.f32.mrf.mxu0  ;;  %v6934_v9 = vadd.f32 %v15144_v61, %v6933_v54  ;;  %v5489_v61 = vld [vmem:[#allocation3 + $0x2a0] sm:$0xff]  ;;  %v15254_v54 = vld [vmem:[#allocation3 + $0x2aa] sm:$0xff] }
 0x5f2   :  { %18426 = vst [vmem:[#allocation50_spill] sm:$0xff] %v15238_v35  ;;  %v7388_v13 = vpop.f32.mrf.mxu1  ;;  %7627 = vmatmul.mubr.f32.gmra.mxu1 %v5615_v52  ;;  %v5488_v52 = vld [vmem:[#allocation3 + $0x290] sm:$0xff]  ;;  %v15248_v15 = vld [vmem:[#allocation3 + $0x2a2] sm:$0xff] }
 0x5f3   :  { %v7313_v26 = vpop.f32.mrf.mxu0  ;;  %v7389_v29 = vadd.f32 %v7388_v13, %v15032_v28  ;;  %8002 = vmatmul.mubr.f32.gmra.mxu0 %v5487_v60  ;;  %7631 = vmatprep.mubr.f32.mxu1 %v15241_v17  ;;  %v5617_v28 = vld [vmem:[#allocation3 + $0x2a1] sm:$0xff] }
 0x5f4   :  { %v15245_v47 = vadd.f32 %v7313_v26, %v6929_v23  ;;  %8006 = vmatprep.mubr.f32.mxu0 %v5616_v19  ;;  %v7390_v55 = vpop.f32.mrf.mxu1 }
 0x5f5   :  { %v7315_v57 = vpop.f32.mrf.mxu0 }
 0x5f6   :  { %v7393_v16 = vpop.f32.mrf.mxu1  ;;  %7632 = vmatmul.mubr.f32.gmra.mxu1 %v5616_v19 }
 0x5f7   :  { %v7318_v35 = vpop.f32.mrf.mxu0  ;;  %v7394_v56 = vadd.f32 %v7393_v16, %v15036_v6  ;;  %8007 = vmatmul.mubr.f32.gmra.mxu0 %v5488_v52  ;;  %7636 = vmatprep.mubr.f32.mxu1 %v15248_v15  ;;  %v5618_v6 = vld [vmem:[#allocation3 + $0x2a9] sm:$0xff] }
 0x5f8   :  { %v15252_v13 = vadd.f32 %v7318_v35, %v6934_v9  ;;  %8011 = vmatprep.mubr.f32.mxu0 %v5617_v28  ;;  %v7395_v23 = vpop.f32.mrf.mxu1  ;;  %v5490_v52 = vld [vmem:[#allocation3 + $0x2a8] sm:$0xff] }
 0x5f9   :  { %v7320_v60 = vpop.f32.mrf.mxu0  ;;  %v15260_v23 = vld [vmem:[#allocation3 + $0x2ba] sm:$0xff] }
 0x5fa   :  { %18427 = vst [vmem:[#allocation20_spill] sm:$0xff] %v15252_v13  ;;  %v7398_v26 = vpop.f32.mrf.mxu1  ;;  %7637 = vmatmul.mubr.f32.gmra.mxu1 %v5617_v28 }
 0x5fb   :  { %v7399_v19 = vadd.f32 %v7398_v26, %v15039_v5  ;;  %v7773_v55 = vpop.f32.mrf.mxu0  ;;  %8012 = vmatmul.mubr.f32.gmra.mxu0 %v5489_v61  ;;  %7641 = vmatprep.mubr.f32.mxu1 %v15254_v54  ;;  %v5619_v5 = vld [vmem:[#allocation3 + $0x2b9] sm:$0xff] }
 0x5fc   :  { %v15258_v57 = vadd.f32 %v7773_v55, %v7389_v29  ;;  %8016 = vmatprep.mubr.f32.mxu0 %v5618_v6  ;;  %v7400_v35 = vpop.f32.mrf.mxu1 }
 0x5fd   :  { %v7775_v9 = vpop.f32.mrf.mxu0  ;;  %v5491_v35 = vld [vmem:[#allocation3 + $0x2b8] sm:$0xff] }
 0x5fe   :  { %18428 = vst [vmem:[#allocation51_spill] sm:$0xff] %v15258_v57  ;;  %v7403_v16 = vpop.f32.mrf.mxu1  ;;  %7642 = vmatmul.mubr.f32.gmra.mxu1 %v5618_v6  ;;  %v15266_v9 = vld [vmem:[#allocation3 + $0x2c2] sm:$0xff] }
 0x5ff   :  { %v7404_v28 = vadd.f32 %v7403_v16, %v15042_v0  ;;  %v7778_v60 = vpop.f32.mrf.mxu0  ;;  %8017 = vmatmul.mubr.f32.gmra.mxu0 %v5490_v52  ;;  %7646 = vmatprep.mubr.f32.mxu1 %v15260_v23  ;;  %v5620_v0 = vld [vmem:[#allocation3 + $0x2c1] sm:$0xff] }
 0x600   :  { %v15264_v26 = vadd.f32 %v7778_v60, %v7394_v56  ;;  %8021 = vmatprep.mubr.f32.mxu0 %v5619_v5  ;;  %v7405_v29 = vpop.f32.mrf.mxu1 }
 0x601   :  { %v7780_v61 = vpop.f32.mrf.mxu0  ;;  %v5492_v29 = vld [vmem:[#allocation3 + $0x2c0] sm:$0xff] }
 0x602   :  { %18429 = vst [vmem:[#allocation36_spill] sm:$0xff] %v15264_v26  ;;  %v7408_v55 = vpop.f32.mrf.mxu1  ;;  %7647 = vmatmul.mubr.f32.gmra.mxu1 %v5619_v5  ;;  %v15272_v61 = vld [vmem:[#allocation3 + $0x2d2] sm:$0xff] }
 0x603   :  { %v7409_v6 = vadd.f32 %v7408_v55, %v15045_v22  ;;  %v7783_v57 = vpop.f32.mrf.mxu0  ;;  %8022 = vmatmul.mubr.f32.gmra.mxu0 %v5491_v35  ;;  %7651 = vmatprep.mubr.f32.mxu1 %v15266_v9  ;;  %v5621_v22 = vld [vmem:[#allocation3 + $0x2d1] sm:$0xff] }
 0x604   :  { %v15270_v16 = vadd.f32 %v7783_v57, %v7399_v19  ;;  %8026 = vmatprep.mubr.f32.mxu0 %v5620_v0  ;;  %v7410_v56 = vpop.f32.mrf.mxu1 }
 0x605   :  { %v7785_v52 = vpop.f32.mrf.mxu0  ;;  %v5493_v56 = vld [vmem:[#allocation3 + $0x2d0] sm:$0xff] }
 0x606   :  { %18430 = vst [vmem:[#allocation52_spill] sm:$0xff] %v15270_v16  ;;  %v7413_v60 = vpop.f32.mrf.mxu1  ;;  %7652 = vmatmul.mubr.f32.gmra.mxu1 %v5620_v0  ;;  %v15278_v52 = vld [vmem:[#allocation3 + $0x2da] sm:$0xff] }
 0x607   :  { %v7414_v5 = vadd.f32 %v7413_v60, %v15048_v63  ;;  %v7788_v26 = vpop.f32.mrf.mxu0  ;;  %8027 = vmatmul.mubr.f32.gmra.mxu0 %v5492_v29  ;;  %7656 = vmatprep.mubr.f32.mxu1 %v15272_v61  ;;  %v5622_v63 = vld [vmem:[#allocation3 + $0x2d9] sm:$0xff] }
 0x608   :  { %v15276_v55 = vadd.f32 %v7788_v26, %v7404_v28  ;;  %8031 = vmatprep.mubr.f32.mxu0 %v5621_v22  ;;  %v7415_v19 = vpop.f32.mrf.mxu1 }
 0x609   :  { %v7790_v57 = vpop.f32.mrf.mxu0  ;;  %v5494_v19 = vld [vmem:[#allocation3 + $0x2d8] sm:$0xff] }
 0x60a   :  { %18431 = vst [vmem:[#allocation53_spill] sm:$0xff] %v15276_v55  ;;  %v7418_v35 = vpop.f32.mrf.mxu1  ;;  %7657 = vmatmul.mubr.f32.gmra.mxu1 %v5621_v22  ;;  %v15284_v57 = vld [vmem:[#allocation3 + $0x2ea] sm:$0xff] }
 0x60b   :  { %v7419_v0 = vadd.f32 %v7418_v35, %v15051_v49  ;;  %v7793_v16 = vpop.f32.mrf.mxu0  ;;  %8032 = vmatmul.mubr.f32.gmra.mxu0 %v5493_v56  ;;  %7661 = vmatprep.mubr.f32.mxu1 %v15278_v52  ;;  %v5623_v49 = vld [vmem:[#allocation3 + $0x2e9] sm:$0xff] }
 0x60c   :  { %v15282_v60 = vadd.f32 %v7793_v16, %v7409_v6  ;;  %8036 = vmatprep.mubr.f32.mxu0 %v5622_v63  ;;  %v7420_v28 = vpop.f32.mrf.mxu1 }
 0x60d   :  { %v7795_v26 = vpop.f32.mrf.mxu0  ;;  %v5495_v28 = vld [vmem:[#allocation3 + $0x2e8] sm:$0xff] }
 0x60e   :  { %18432 = vst [vmem:[#allocation37_spill] sm:$0xff] %v15282_v60  ;;  %v7423_v29 = vpop.f32.mrf.mxu1  ;;  %7662 = vmatmul.mubr.f32.gmra.mxu1 %v5622_v63  ;;  %v15290_v26 = vld [vmem:[#allocation3 + $0x2f2] sm:$0xff] }
 0x60f   :  { %v7424_v22 = vadd.f32 %v7423_v29, %v15054_v59  ;;  %v7798_v55 = vpop.f32.mrf.mxu0  ;;  %8037 = vmatmul.mubr.f32.gmra.mxu0 %v5494_v19  ;;  %7666 = vmatprep.mubr.f32.mxu1 %v15284_v57  ;;  %v5624_v59 = vld [vmem:[#allocation3 + $0x2f1] sm:$0xff] }
 0x610   :  { %v15288_v35 = vadd.f32 %v7798_v55, %v7414_v5  ;;  %8041 = vmatprep.mubr.f32.mxu0 %v5623_v49  ;;  %v7425_v6 = vpop.f32.mrf.mxu1 }
 0x611   :  { %v7800_v16 = vpop.f32.mrf.mxu0  ;;  %v5496_v6 = vld [vmem:[#allocation3 + $0x2f0] sm:$0xff] }
 0x612   :  { %18433 = vst [vmem:[#allocation54_spill] sm:$0xff] %v15288_v35  ;;  %v7428_v56 = vpop.f32.mrf.mxu1  ;;  %7667 = vmatmul.mubr.f32.gmra.mxu1 %v5623_v49  ;;  %v15296_v16 = vld [vmem:[#allocation3 + $0x302] sm:$0xff] }
 0x613   :  { %v7429_v63 = vadd.f32 %v7428_v56, %v15057_v41  ;;  %v7803_v60 = vpop.f32.mrf.mxu0  ;;  %8042 = vmatmul.mubr.f32.gmra.mxu0 %v5495_v28  ;;  %7671 = vmatprep.mubr.f32.mxu1 %v15290_v26  ;;  %v5625_v41 = vld [vmem:[#allocation3 + $0x301] sm:$0xff] }
 0x614   :  { %v15294_v29 = vadd.f32 %v7803_v60, %v7419_v0  ;;  %8046 = vmatprep.mubr.f32.mxu0 %v5624_v59  ;;  %v7430_v5 = vpop.f32.mrf.mxu1 }
 0x615   :  { %v7805_v55 = vpop.f32.mrf.mxu0  ;;  %v5497_v5 = vld [vmem:[#allocation3 + $0x300] sm:$0xff] }
 0x616   :  { %18434 = vst [vmem:[#allocation55_spill] sm:$0xff] %v15294_v29  ;;  %v7433_v19 = vpop.f32.mrf.mxu1  ;;  %7672 = vmatmul.mubr.f32.gmra.mxu1 %v5624_v59  ;;  %v15302_v55 = vld [vmem:[#allocation3 + $0x30a] sm:$0xff] }
 0x617   :  { %v7434_v49 = vadd.f32 %v7433_v19, %v15060_v39  ;;  %v7808_v35 = vpop.f32.mrf.mxu0  ;;  %8047 = vmatmul.mubr.f32.gmra.mxu0 %v5496_v6  ;;  %7676 = vmatprep.mubr.f32.mxu1 %v15296_v16  ;;  %v5626_v39 = vld [vmem:[#allocation3 + $0x309] sm:$0xff] }
 0x618   :  { %v15300_v56 = vadd.f32 %v7808_v35, %v7424_v22  ;;  %8051 = vmatprep.mubr.f32.mxu0 %v5625_v41  ;;  %v7435_v0 = vpop.f32.mrf.mxu1 }
 0x619   :  { %v7810_v60 = vpop.f32.mrf.mxu0  ;;  %v5498_v0 = vld [vmem:[#allocation3 + $0x308] sm:$0xff] }
 0x61a   :  { %18435 = vst [vmem:[#allocation56_spill] sm:$0xff] %v15300_v56  ;;  %v7438_v28 = vpop.f32.mrf.mxu1  ;;  %7677 = vmatmul.mubr.f32.gmra.mxu1 %v5625_v41  ;;  %v15308_v60 = vld [vmem:[#allocation3 + $0x31a] sm:$0xff] }
 0x61b   :  { %v7439_v59 = vadd.f32 %v7438_v28, %v15063_v46  ;;  %v7813_v29 = vpop.f32.mrf.mxu0  ;;  %8052 = vmatmul.mubr.f32.gmra.mxu0 %v5497_v5  ;;  %7681 = vmatprep.mubr.f32.mxu1 %v15302_v55  ;;  %v5627_v46 = vld [vmem:[#allocation3 + $0x319] sm:$0xff] }
 0x61c   :  { %v15306_v19 = vadd.f32 %v7813_v29, %v7429_v63  ;;  %8056 = vmatprep.mubr.f32.mxu0 %v5626_v39  ;;  %v7440_v22 = vpop.f32.mrf.mxu1 }
 0x61d   :  { %v7815_v35 = vpop.f32.mrf.mxu0  ;;  %v5499_v22 = vld [vmem:[#allocation3 + $0x318] sm:$0xff] }
 0x61e   :  { %18436 = vst [vmem:[#allocation38_spill] sm:$0xff] %v15306_v19  ;;  %v7443_v6 = vpop.f32.mrf.mxu1  ;;  %7682 = vmatmul.mubr.f32.gmra.mxu1 %v5626_v39  ;;  %v15314_v35 = vld [vmem:[#allocation3 + $0x322] sm:$0xff] }
 0x61f   :  { %v7444_v41 = vadd.f32 %v7443_v6, %v15066_v27  ;;  %v7818_v56 = vpop.f32.mrf.mxu0  ;;  %8057 = vmatmul.mubr.f32.gmra.mxu0 %v5498_v0  ;;  %7686 = vmatprep.mubr.f32.mxu1 %v15308_v60  ;;  %v5628_v27 = vld [vmem:[#allocation3 + $0x321] sm:$0xff] }
 0x620   :  { %v15312_v28 = vadd.f32 %v7818_v56, %v7434_v49  ;;  %8061 = vmatprep.mubr.f32.mxu0 %v5627_v46  ;;  %v7445_v63 = vpop.f32.mrf.mxu1 }
 0x621   :  { %v7820_v29 = vpop.f32.mrf.mxu0  ;;  %v5500_v63 = vld [vmem:[#allocation3 + $0x320] sm:$0xff] }
 0x622   :  { %18437 = vst [vmem:[#allocation57_spill] sm:$0xff] %v15312_v28  ;;  %v7448_v5 = vpop.f32.mrf.mxu1  ;;  %7687 = vmatmul.mubr.f32.gmra.mxu1 %v5627_v46  ;;  %v15320_v29 = vld [vmem:[#allocation3 + $0x332] sm:$0xff] }
 0x623   :  { %v7449_v39 = vadd.f32 %v7448_v5, %v15069_v1  ;;  %v7823_v19 = vpop.f32.mrf.mxu0  ;;  %8062 = vmatmul.mubr.f32.gmra.mxu0 %v5499_v22  ;;  %7691 = vmatprep.mubr.f32.mxu1 %v15314_v35  ;;  %v5629_v1 = vld [vmem:[#allocation3 + $0x331] sm:$0xff] }
 0x624   :  { %v15318_v6 = vadd.f32 %v7823_v19, %v7439_v59  ;;  %8066 = vmatprep.mubr.f32.mxu0 %v5628_v27  ;;  %v7450_v49 = vpop.f32.mrf.mxu1 }
 0x625   :  { %v7825_v56 = vpop.f32.mrf.mxu0  ;;  %v5501_v49 = vld [vmem:[#allocation3 + $0x330] sm:$0xff] }
 0x626   :  { %18438 = vst [vmem:[#allocation58_spill] sm:$0xff] %v15318_v6  ;;  %v7453_v0 = vpop.f32.mrf.mxu1  ;;  %7692 = vmatmul.mubr.f32.gmra.mxu1 %v5628_v27  ;;  %v15326_v56 = vld [vmem:[#allocation3 + $0x33a] sm:$0xff] }
 0x627   :  { %v7454_v46 = vadd.f32 %v7453_v0, %v15072_v20  ;;  %v7828_v28 = vpop.f32.mrf.mxu0  ;;  %8067 = vmatmul.mubr.f32.gmra.mxu0 %v5500_v63  ;;  %7696 = vmatprep.mubr.f32.mxu1 %v15320_v29  ;;  %v5630_v20 = vld [vmem:[#allocation3 + $0x339] sm:$0xff]  ;;  %v5631_v63 = vld [vmem:[#allocation3 + $0x349] sm:$0xff] }
 0x628   :  { %v15324_v5 = vadd.f32 %v7828_v28, %v7444_v41  ;;  %8071 = vmatprep.mubr.f32.mxu0 %v5629_v1  ;;  %v7455_v59 = vpop.f32.mrf.mxu1 }
 0x629   :  { %v7830_v19 = vpop.f32.mrf.mxu0 }
 0x62a   :  { %18439 = vst [vmem:[#allocation59_spill] sm:$0xff] %v15324_v5  ;;  %v7458_v22 = vpop.f32.mrf.mxu1  ;;  %7697 = vmatmul.mubr.f32.gmra.mxu1 %v5629_v1  ;;  %v5502_v19 = vld [vmem:[#allocation3 + $0x338] sm:$0xff] }
 0x62b   :  { %v7459_v27 = vadd.f32 %v7458_v22, %v15075_v11  ;;  %v7833_v6 = vpop.f32.mrf.mxu0  ;;  %8072 = vmatmul.mubr.f32.gmra.mxu0 %v5501_v49  ;;  %7701 = vmatprep.mubr.f32.mxu1 %v15326_v56  ;;  %v5697_v1 = vld [vmem:[#allocation3 + $0x32] sm:$0xff] }
 0x62c   :  { %v15330_v0 = vadd.f32 %v7833_v6, %v7449_v39  ;;  %8076 = vmatprep.mubr.f32.mxu0 %v5630_v20  ;;  %v7460_v41 = vpop.f32.mrf.mxu1  ;;  %v5698_v39 = vld [vmem:[#allocation3 + $0x3a] sm:$0xff]  ;;  %v5632_v6 = vld [vmem:[#allocation3 + $0x351] sm:$0xff] }
 0x62d   :  { %v7835_v28 = vpop.f32.mrf.mxu0  ;;  %v5699_v41 = vld [vmem:[#allocation3 + $0x4a] sm:$0xff] }
 0x62e   :  { %18440 = vst [vmem:[#allocation60_spill] sm:$0xff] %v15330_v0  ;;  %v7463_v59 = vpop.f32.mrf.mxu1  ;;  %7702 = vmatmul.mubr.f32.gmra.mxu1 %v5630_v20 }
 0x62f   :  { %v7464_v5 = vadd.f32 %v7463_v59, %v15079_v3  ;;  %v7838_v13 = vpop.f32.mrf.mxu0  ;;  %8077 = vmatmul.mubr.f32.gmra.mxu0 %v5502_v19  ;;  %10131 = vmatprep.mubr.f32.mxu1 %v5697_v1 }
 0x630   :  { %v15333_v11 = vadd.f32 %v7838_v13, %v7454_v46  ;;  %v7465_v22 = vpop.f32.mrf.mxu1  ;;  %8081 = vmatprep.mubr.f32.mxu0 %v5631_v63  ;;  %v5700_v46 = vld [vmem:[#allocation3 + $0x52] sm:$0xff]  ;;  %v5701_v63 = vld [vmem:[#allocation3 + $0x62] sm:$0xff] }
 0x631   :  { %v7840_v49 = vpop.f32.mrf.mxu0 }
 0x632   :  { %v7468_v0 = vpop.f32.mrf.mxu1  ;;  %10132 = vmatmul.mubr.f32.vlgmr.msra.gmra.mxu1 %v5698_v39  ;;  %v5702_v39 = vld [vmem:[#allocation3 + $0x6a] sm:$0xff] }
 0x633   :  { %v7469_v28 = vadd.f32 %v7468_v0, %v15082_v62  ;;  %v7843_v20 = vpop.f32.mrf.mxu0  ;;  %8082 = vmatmul.mubr.f32.gmra.mxu0 %v15177_v24  ;;  %10134 = vmatprep.mubr.f32.mxu1 %v5699_v41  ;;  %v5703_v41 = vld [vmem:[#allocation3 + $0x7a] sm:$0xff] }
 0x634   :  { %v15337_v3 = vadd.f32 %v7843_v20, %v7459_v27  ;;  %v7470_v59 = vpop.f32.mrf.mxu1  ;;  %8086 = vmatprep.mubr.f32.mxu0 %v5632_v6 }
 0x635   :  { %v7845_v13 = vpop.f32.mrf.mxu0 }
 0x636   :  { %v7473_v19 = vpop.f32.mrf.mxu1  ;;  %10135 = vmatmul.mubr.f32.gmra.mxu1 %v5700_v46  ;;  %v5704_v46 = vld [vmem:[#allocation3 + $0x82] sm:$0xff] }
 0x637   :  { %v7474_v1 = vadd.f32 %v7473_v19, %v15085_v32  ;;  %v7848_v22 = vpop.f32.mrf.mxu0  ;;  %8087 = vmatmul.mubr.f32.gmra.mxu0 %v15177_v24  ;;  %10137 = vmatprep.mubr.f32.mxu1 %v5701_v63  ;;  %v5705_v24 = vld [vmem:[#allocation3 + $0x92] sm:$0xff] }
 0x638   :  { %v15341_v62 = vadd.f32 %v7848_v22, %v7464_v5  ;;  %v7475_v0 = vpop.f32.mrf.mxu1 }
 0x639   :  { %v7850_v49 = vpop.f32.mrf.mxu0 }
 0x63a   :  { %v7478_v27 = vpop.f32.mrf.mxu1  ;;  %10138 = vmatmul.mubr.f32.gmra.mxu1 %v5702_v39  ;;  %v5706_v39 = vld [vmem:[#allocation3 + $0x9a] sm:$0xff] }
 0x63b   :  { %v7479_v6 = vadd.f32 %v7478_v27, %v15088_v53  ;;  %v7853_v20 = vpop.f32.mrf.mxu0  ;;  %10140 = vmatprep.mubr.f32.mxu1 %v5703_v41  ;;  %v5707_v27 = vld [vmem:[#allocation3 + $0xaa] sm:$0xff] }
 0x63c   :  { %v15344_v59 = vadd.f32 %v7853_v20, %v7469_v28  ;;  %v7480_v13 = vpop.f32.mrf.mxu1 }
 0x63d   :  { %v7855_v32 = vpop.f32.mrf.mxu0 }
 0x63e   :  { %v7483_v19 = vpop.f32.mrf.mxu1  ;;  %10141 = vmatmul.mubr.f32.gmra.mxu1 %v5704_v46  ;;  %v5708_v46 = vld [vmem:[#allocation3 + $0xb2] sm:$0xff] }
 0x63f   :  { %v7484_v5 = vadd.f32 %v7483_v19, %v15091_v31  ;;  %v7858_v63 = vpop.f32.mrf.mxu0  ;;  %10143 = vmatprep.mubr.f32.mxu1 %v5705_v24  ;;  %v5709_v19 = vld [vmem:[#allocation3 + $0xc2] sm:$0xff] }
 0x640   :  { %v15347_v22 = vadd.f32 %v7858_v63, %v7474_v1  ;;  %v7485_v0 = vpop.f32.mrf.mxu1 }
 0x641   :  { %v7860_v49 = vpop.f32.mrf.mxu0 }
 0x642   :  { %v7488_v53 = vpop.f32.mrf.mxu1  ;;  %10144 = vmatmul.mubr.f32.gmra.mxu1 %v5706_v39  ;;  %v5710_v39 = vld [vmem:[#allocation3 + $0xca] sm:$0xff] }
 0x643   :  { %v7489_v28 = vadd.f32 %v7488_v53, %v15094_v14  ;;  %v7863_v41 = vpop.f32.mrf.mxu0  ;;  %10146 = vmatprep.mubr.f32.mxu1 %v5707_v27  ;;  %v5711_v53 = vld [vmem:[#allocation3 + $0xda] sm:$0xff] }
 0x644   :  { %v15350_v20 = vadd.f32 %v7863_v41, %v7479_v6  ;;  %v7490_v13 = vpop.f32.mrf.mxu1 }
 0x645   :  { %v7865_v32 = vpop.f32.mrf.mxu0 }
 0x646   :  { %v7493_v31 = vpop.f32.mrf.mxu1  ;;  %10147 = vmatmul.mubr.f32.gmra.mxu1 %v5708_v46  ;;  %v5712_v46 = vld [vmem:[#allocation3 + $0xe2] sm:$0xff] }
 0x647   :  { %v7494_v1 = vadd.f32 %v7493_v31, %v15097_v58  ;;  %v7868_v24 = vpop.f32.mrf.mxu0  ;;  %10149 = vmatprep.mubr.f32.mxu1 %v5709_v19  ;;  %v5713_v31 = vld [vmem:[#allocation3 + $0xf2] sm:$0xff] }
 0x648   :  { %v15353_v63 = vadd.f32 %v7868_v24, %v7484_v5  ;;  %v7495_v0 = vpop.f32.mrf.mxu1 }
 0x649   :  { %v7870_v49 = vpop.f32.mrf.mxu0 }
 0x64a   :  { %v7498_v14 = vpop.f32.mrf.mxu1  ;;  %10150 = vmatmul.mubr.f32.gmra.mxu1 %v5710_v39  ;;  %v5714_v39 = vld [vmem:[#allocation3 + $0xfa] sm:$0xff] }
 0x64b   :  { %v7499_v6 = vadd.f32 %v7498_v14, %v15100_v10  ;;  %v7873_v27 = vpop.f32.mrf.mxu0  ;;  %10152 = vmatprep.mubr.f32.mxu1 %v5711_v53  ;;  %v5715_v14 = vld [vmem:[#allocation3 + $0x10a] sm:$0xff] }
 0x64c   :  { %v15356_v41 = vadd.f32 %v7873_v27, %v7489_v28  ;;  %v7500_v13 = vpop.f32.mrf.mxu1 }
 0x64d   :  { %v7875_v32 = vpop.f32.mrf.mxu0 }
 0x64e   :  { %v7503_v58 = vpop.f32.mrf.mxu1  ;;  %10153 = vmatmul.mubr.f32.gmra.mxu1 %v5712_v46  ;;  %v5716_v46 = vld [vmem:[#allocation3 + $0x112] sm:$0xff] }
 0x64f   :  { %v7504_v5 = vadd.f32 %v7503_v58, %v15103_v18  ;;  %v7878_v19 = vpop.f32.mrf.mxu0  ;;  %10155 = vmatprep.mubr.f32.mxu1 %v5713_v31  ;;  %v5717_v58 = vld [vmem:[#allocation3 + $0x122] sm:$0xff] }
 0x650   :  { %v15359_v24 = vadd.f32 %v7878_v19, %v7494_v1  ;;  %v7505_v0 = vpop.f32.mrf.mxu1 }
 0x651   :  { %v7880_v49 = vpop.f32.mrf.mxu0 }
 0x652   :  { %v7508_v10 = vpop.f32.mrf.mxu1  ;;  %10156 = vmatmul.mubr.f32.gmra.mxu1 %v5714_v39  ;;  %v5718_v39 = vld [vmem:[#allocation3 + $0x12a] sm:$0xff] }
 0x653   :  { %v7509_v28 = vadd.f32 %v7508_v10, %v15106_v8  ;;  %v7883_v53 = vpop.f32.mrf.mxu0  ;;  %10158 = vmatprep.mubr.f32.mxu1 %v5715_v14  ;;  %v5719_v10 = vld [vmem:[#allocation3 + $0x13a] sm:$0xff] }
 0x654   :  { %v15362_v27 = vadd.f32 %v7883_v53, %v7499_v6  ;;  %v7510_v13 = vpop.f32.mrf.mxu1 }
 0x655   :  { %v7885_v32 = vpop.f32.mrf.mxu0 }
 0x656   :  { %v7513_v18 = vpop.f32.mrf.mxu1  ;;  %10159 = vmatmul.mubr.f32.gmra.mxu1 %v5716_v46  ;;  %v5720_v46 = vld [vmem:[#allocation3 + $0x142] sm:$0xff] }
 0x657   :  { %v7514_v1 = vadd.f32 %v7513_v18, %v15109_v12  ;;  %v7888_v31 = vpop.f32.mrf.mxu0  ;;  %10161 = vmatprep.mubr.f32.mxu1 %v5717_v58  ;;  %v5721_v18 = vld [vmem:[#allocation3 + $0x152] sm:$0xff] }
 0x658   :  { %v15365_v19 = vadd.f32 %v7888_v31, %v7504_v5  ;;  %v7515_v0 = vpop.f32.mrf.mxu1 }
 0x659   :  { %v7890_v49 = vpop.f32.mrf.mxu0 }
 0x65a   :  { %v7518_v8 = vpop.f32.mrf.mxu1  ;;  %10162 = vmatmul.mubr.f32.gmra.mxu1 %v5718_v39  ;;  %v5722_v39 = vld [vmem:[#allocation3 + $0x15a] sm:$0xff] }
 0x65b   :  { %v7519_v6 = vadd.f32 %v7518_v8, %v15112_v21  ;;  %v7893_v14 = vpop.f32.mrf.mxu0  ;;  %10164 = vmatprep.mubr.f32.mxu1 %v5719_v10  ;;  %v5723_v8 = vld [vmem:[#allocation3 + $0x16a] sm:$0xff] }
 0x65c   :  { %v15368_v53 = vadd.f32 %v7893_v14, %v7509_v28  ;;  %v7520_v13 = vpop.f32.mrf.mxu1 }
 0x65d   :  { %v7895_v32 = vpop.f32.mrf.mxu0 }
 0x65e   :  { %v7523_v12 = vpop.f32.mrf.mxu1  ;;  %10165 = vmatmul.mubr.f32.gmra.mxu1 %v5720_v46  ;;  %v5724_v46 = vld [vmem:[#allocation3 + $0x172] sm:$0xff] }
 0x65f   :  { %v7524_v5 = vadd.f32 %v7523_v12, %v15115_v7  ;;  %v7898_v58 = vpop.f32.mrf.mxu0  ;;  %10167 = vmatprep.mubr.f32.mxu1 %v5721_v18  ;;  %v5725_v12 = vld [vmem:[#allocation3 + $0x182] sm:$0xff] }
 0x660   :  { %v15371_v31 = vadd.f32 %v7898_v58, %v7514_v1  ;;  %v7525_v0 = vpop.f32.mrf.mxu1 }
 0x661   :  { %v7900_v49 = vpop.f32.mrf.mxu0 }
 0x662   :  { %v7528_v21 = vpop.f32.mrf.mxu1  ;;  %10168 = vmatmul.mubr.f32.gmra.mxu1 %v5722_v39  ;;  %v5727_v49 = vld [vmem:[#allocation3 + $0x19a] sm:$0xff] }
 0x663   :  { %v7529_v28 = vadd.f32 %v7528_v21, %v15118_v50  ;;  %v7903_v10 = vpop.f32.mrf.mxu0  ;;  %10170 = vmatprep.mubr.f32.mxu1 %v5723_v8  ;;  %v5726_v50 = vld [vmem:[#allocation3 + $0x18a] sm:$0xff] }
 0x664   :  { %v15374_v14 = vadd.f32 %v7903_v10, %v7519_v6  ;;  %v7530_v13 = vpop.f32.mrf.mxu1  ;;  %v5728_v10 = vld [vmem:[#allocation3 + $0x1a2] sm:$0xff] }
 0x665   :  { %v7905_v32 = vpop.f32.mrf.mxu0 }
 0x666   :  { %v7533_v7 = vpop.f32.mrf.mxu1  ;;  %10171 = vmatmul.mubr.f32.gmra.mxu1 %v5724_v46 }
 0x667   :  { %v7534_v1 = vadd.f32 %v7533_v7, %v15121_v2  ;;  %v7908_v18 = vpop.f32.mrf.mxu0  ;;  %10173 = vmatprep.mubr.f32.mxu1 %v5725_v12  ;;  %v5729_v7 = vld [vmem:[#allocation3 + $0x1e2] sm:$0xff] }
 0x668   :  { %v15377_v58 = vadd.f32 %v7908_v18, %v7524_v5  ;;  %v7535_v0 = vpop.f32.mrf.mxu1 }
 0x669   :  { %v7910_v39 = vpop.f32.mrf.mxu0 }
 0x66a   :  { %v7538_v21 = vpop.f32.mrf.mxu1  ;;  %10174 = vmatmul.mubr.f32.gmra.mxu1 %v5726_v50  ;;  %v5730_v50 = vld [vmem:[#allocation3 + $0x1ea] sm:$0xff] }
 0x66b   :  { %v7539_v6 = vadd.f32 %v7538_v21, %v15124_v38  ;;  %v7913_v8 = vpop.f32.mrf.mxu0  ;;  %10176 = vmatprep.mubr.f32.mxu1 %v5727_v49  ;;  %v5731_v49 = vld [vmem:[#allocation3 + $0x1fa] sm:$0xff] }
 0x66c   :  { %v15380_v13 = vadd.f32 %v7913_v8, %v7529_v28  ;;  %v7540_v32 = vpop.f32.mrf.mxu1 }
 0x66d   :  { %v7915_v46 = vpop.f32.mrf.mxu0 }
 0x66e   :  { %v7543_v2 = vpop.f32.mrf.mxu1  ;;  %10177 = vmatmul.mubr.f32.gmra.mxu1 %v5728_v10  ;;  %v5732_v46 = vld [vmem:[#allocation3 + $0x202] sm:$0xff] }
 0x66f   :  { %v7544_v5 = vadd.f32 %v7543_v2, %v15127_v37  ;;  %v7918_v12 = vpop.f32.mrf.mxu0  ;;  %10179 = vmatprep.mubr.f32.mxu1 %v5729_v7  ;;  %v5733_v2 = vld [vmem:[#allocation3 + $0x212] sm:$0xff] }
 0x670   :  { %v15383_v18 = vadd.f32 %v7918_v12, %v7534_v1  ;;  %v7545_v0 = vpop.f32.mrf.mxu1 }
 0x671   :  { %v7920_v39 = vpop.f32.mrf.mxu0 }
 0x672   :  { %v7548_v38 = vpop.f32.mrf.mxu1  ;;  %10180 = vmatmul.mubr.f32.gmra.mxu1 %v5730_v50  ;;  %v5734_v50 = vld [vmem:[#allocation3 + $0x21a] sm:$0xff] }
 0x673   :  { %v7549_v28 = vadd.f32 %v7548_v38, %v15130_v42  ;;  %v7923_v21 = vpop.f32.mrf.mxu0  ;;  %10182 = vmatprep.mubr.f32.mxu1 %v5731_v49  ;;  %v5735_v38 = vld [vmem:[#allocation3 + $0x22a] sm:$0xff] }
 0x674   :  { %v15386_v8 = vadd.f32 %v7923_v21, %v7539_v6  ;;  %v7550_v10 = vpop.f32.mrf.mxu1 }
 0x675   :  { %v7925_v32 = vpop.f32.mrf.mxu0 }
 0x676   :  { %v7553_v37 = vpop.f32.mrf.mxu1  ;;  %10183 = vmatmul.mubr.f32.gmra.mxu1 %v5732_v46  ;;  %v5736_v46 = vld [vmem:[#allocation3 + $0x232] sm:$0xff] }
 0x677   :  { %v7554_v1 = vadd.f32 %v7553_v37, %v15133_v36  ;;  %v7928_v7 = vpop.f32.mrf.mxu0  ;;  %10185 = vmatprep.mubr.f32.mxu1 %v5733_v2  ;;  %v5737_v37 = vld [vmem:[#allocation3 + $0x242] sm:$0xff] }
 0x678   :  { %v15389_v12 = vadd.f32 %v7928_v7, %v7544_v5  ;;  %v7555_v0 = vpop.f32.mrf.mxu1 }
 0x679   :  { %v7930_v39 = vpop.f32.mrf.mxu0 }
 0x67a   :  { %v7558_v42 = vpop.f32.mrf.mxu1  ;;  %10186 = vmatmul.mubr.f32.gmra.mxu1 %v5734_v50  ;;  %v5738_v50 = vld [vmem:[#allocation3 + $0x24a] sm:$0xff] }
 0x67b   :  { %v7559_v6 = vadd.f32 %v7558_v42, %v15136_v4  ;;  %v7933_v49 = vpop.f32.mrf.mxu0  ;;  %10188 = vmatprep.mubr.f32.mxu1 %v5735_v38  ;;  %v5739_v42 = vld [vmem:[#allocation3 + $0x25a] sm:$0xff] }
 0x67c   :  { %v15392_v21 = vadd.f32 %v7933_v49, %v7549_v28  ;;  %v7560_v10 = vpop.f32.mrf.mxu1 }
 0x67d   :  { %v7935_v32 = vpop.f32.mrf.mxu0 }
 0x67e   :  { %v7563_v36 = vpop.f32.mrf.mxu1  ;;  %10189 = vmatmul.mubr.f32.gmra.mxu1 %v5736_v46 }
 0x67f   :  { %v7564_v5 = vadd.f32 %v7563_v36, %v15139_v25  ;;  %v7938_v2 = vpop.f32.mrf.mxu0  ;;  %10191 = vmatprep.mubr.f32.mxu1 %v5737_v37 }
 0x680   :  { %v15395_v7 = vadd.f32 %v7938_v2, %v7554_v1  ;;  %v7565_v0 = vpop.f32.mrf.mxu1 }
 0x681   :  { %v7940_v39 = vpop.f32.mrf.mxu0 }
 0x682   :  { %v7568_v4 = vpop.f32.mrf.mxu1  ;;  %10192 = vmatmul.mubr.f32.gmra.mxu1 %v5738_v50 }
 0x683   :  { %v7569_v28 = vadd.f32 %v7568_v4, %v15147_v30  ;;  %v7943_v38 = vpop.f32.mrf.mxu0  ;;  %10194 = vmatprep.mubr.f32.mxu1 %v5739_v42 }
 0x684   :  { %v15398_v49 = vadd.f32 %v7943_v38, %v7559_v6  ;;  %v7570_v10 = vpop.f32.mrf.mxu1 }
 0x685   :  { %v7945_v32 = vpop.f32.mrf.mxu0 }
 0x686   :  { %v7573_v46 = vpop.f32.mrf.mxu1  ;;  %10195 = vmatmul.mubr.f32.gmra.mxu1 %v15217_v44 }
 0x687   :  { %v7574_v25 = vadd.f32 %v7573_v46, %v15150_v51  ;;  %v7948_v1 = vpop.f32.mrf.mxu0  ;;  %10197 = vmatprep.mubr.f32.mxu1 %v15223_v40 }
 0x688   :  { %v15403_v36 = vadd.f32 %v7948_v1, %v7564_v5  ;;  %v7575_v37 = vpop.f32.mrf.mxu1 }
 0x689   :  { %v7950_v2 = vpop.f32.mrf.mxu0 }
 0x68a   :  { %v7578_v0 = vpop.f32.mrf.mxu1  ;;  %10198 = vmatmul.mubr.f32.gmra.mxu1 %v15229_v34 }
 0x68b   :  { %v7579_v30 = vadd.f32 %v7578_v0, %v15153_v43  ;;  %v7953_v6 = vpop.f32.mrf.mxu0  ;;  %10200 = vmatprep.mubr.f32.mxu1 %v15235_v45 }
 0x68c   :  { %v15408_v39 = vadd.f32 %v7953_v6, %v7569_v28  ;;  %v7580_v44 = vpop.f32.mrf.mxu1 }
 0x68d   :  { %v7955_v50 = vpop.f32.mrf.mxu0 }
 0x68e   :  { %v7583_v51 = vpop.f32.mrf.mxu1  ;;  %10201 = vmatmul.mubr.f32.gmra.mxu1 %v15241_v17 }
 0x68f   :  { %v7584_v40 = vadd.f32 %v7583_v51, %v15156_v33  ;;  %v7958_v5 = vpop.f32.mrf.mxu0  ;;  %10203 = vmatprep.mubr.f32.mxu1 %v15248_v15  ;;  %v18441_v15 = vld [vmem:[#allocation22_spill] sm:$0xff] }
 0x690   :  { %v15413_v4 = vadd.f32 %v7958_v5, %v7574_v25  ;;  %v7585_v34 = vpop.f32.mrf.mxu1 }
 0x691   :  { %v7960_v42 = vpop.f32.mrf.mxu0 }
 0x692   :  { %v7588_v43 = vpop.f32.mrf.mxu1  ;;  %10204 = vmatmul.mubr.f32.gmra.mxu1 %v15254_v54 }
 0x693   :  { %v7589_v45 = vadd.f32 %v7588_v43, %v15159_v48  ;;  %v7963_v28 = vpop.f32.mrf.mxu0  ;;  %10206 = vmatprep.mubr.f32.mxu1 %v15260_v23  ;;  %v18442_v23 = vld [vmem:[#allocation25_spill] sm:$0xff] }
 0x694   :  { %v15418_v38 = vadd.f32 %v7963_v28, %v7579_v30  ;;  %v7590_v17 = vpop.f32.mrf.mxu1 }
 0x695   :  { %v7965_v10 = vpop.f32.mrf.mxu0 }
 0x696   :  { %v7593_v33 = vpop.f32.mrf.mxu1  ;;  %10207 = vmatmul.mubr.f32.gmra.mxu1 %v15266_v9 }
 0x697   :  { %v7594_v32 = vadd.f32 %v7593_v33, %v18441_v15  ;;  %v7968_v46 = vpop.f32.mrf.mxu0  ;;  %10209 = vmatprep.mubr.f32.mxu1 %v15272_v61  ;;  %v18443_v61 = vld [vmem:[#allocation24_spill] sm:$0xff] }
 0x698   :  { %v15423_v25 = vadd.f32 %v7968_v46, %v7584_v40  ;;  %v7595_v54 = vpop.f32.mrf.mxu1  ;;  %v5759_v15 = vld [vmem:[#allocation3 + $0x34a] sm:$0xff] }
 0x699   :  { %v7970_v1 = vpop.f32.mrf.mxu0 }
 0x69a   :  { %v7598_v48 = vpop.f32.mrf.mxu1  ;;  %10210 = vmatmul.mubr.f32.gmra.mxu1 %v15278_v52 }
 0x69b   :  { %v7599_v37 = vadd.f32 %v7598_v48, %v18442_v23  ;;  %v7973_v2 = vpop.f32.mrf.mxu0  ;;  %10212 = vmatprep.mubr.f32.mxu1 %v15284_v57  ;;  %v18444_v57 = vld [vmem:[#allocation26_spill] sm:$0xff] }
 0x69c   :  { %v15428_v0 = vadd.f32 %v7973_v2, %v7589_v45  ;;  %v7600_v9 = vpop.f32.mrf.mxu1  ;;  %v5760_v48 = vld [vmem:[#allocation3 + $0x352] sm:$0xff] }
 0x69d   :  { %v7975_v30 = vpop.f32.mrf.mxu0 }
 0x69e   :  { %v7603_v6 = vpop.f32.mrf.mxu1  ;;  %10213 = vmatmul.mubr.f32.gmra.mxu1 %v15290_v26 }
 0x69f   :  { %v7604_v44 = vadd.f32 %v7603_v6, %v18443_v61  ;;  %v7978_v50 = vpop.f32.mrf.mxu0  ;;  %10215 = vmatprep.mubr.f32.mxu1 %v15296_v16  ;;  %v18445_v16 = vld [vmem:[#allocation14_spill] sm:$0xff] }
 0x6a0   :  { %v15433_v51 = vadd.f32 %v7978_v50, %v7594_v32  ;;  %v7605_v52 = vpop.f32.mrf.mxu1 }
 0x6a1   :  { %v7980_v40 = vpop.f32.mrf.mxu0 }
 0x6a2   :  { %v7608_v5 = vpop.f32.mrf.mxu1  ;;  %10216 = vmatmul.mubr.f32.gmra.mxu1 %v15302_v55 }
 0x6a3   :  { %v7609_v34 = vadd.f32 %v7608_v5, %v18444_v57  ;;  %v7983_v42 = vpop.f32.mrf.mxu0  ;;  %10218 = vmatprep.mubr.f32.mxu1 %v15308_v60  ;;  %v18446_v60 = vld [vmem:[#allocation27_spill] sm:$0xff] }
 0x6a4   :  { %v15438_v43 = vadd.f32 %v7983_v42, %v7599_v37  ;;  %v7610_v26 = vpop.f32.mrf.mxu1 }
 0x6a5   :  { %v7985_v45 = vpop.f32.mrf.mxu0  ;;  %v18449_v26 = vld [vmem:[#allocation29_spill] sm:$0xff] }
 0x6a6   :  { %v7613_v28 = vpop.f32.mrf.mxu1  ;;  %10219 = vmatmul.mubr.f32.gmra.mxu1 %v15314_v35 }
 0x6a7   :  { %v7614_v17 = vadd.f32 %v7613_v28, %v18445_v16  ;;  %v7988_v10 = vpop.f32.mrf.mxu0  ;;  %10221 = vmatprep.mubr.f32.mxu1 %v15320_v29  ;;  %v18447_v29 = vld [vmem:[#allocation28_spill] sm:$0xff] }
 0x6a8   :  { %v15443_v33 = vadd.f32 %v7988_v10, %v7604_v44  ;;  %v7615_v55 = vpop.f32.mrf.mxu1 }
 0x6a9   :  { %v7990_v32 = vpop.f32.mrf.mxu0 }
 0x6aa   :  { %v7618_v46 = vpop.f32.mrf.mxu1  ;;  %10222 = vmatmul.mubr.f32.gmra.mxu1 %v15326_v56  ;;  %v18448_v56 = vld [vmem:[#allocation31_spill] sm:$0xff] }
 0x6ab   :  { %v7619_v54 = vadd.f32 %v7618_v46, %v18446_v60  ;;  %v7993_v1 = vpop.f32.mrf.mxu0  ;;  %10224 = vmatprep.mubr.f32.mxu1 %v5759_v15  ;;  %v18450_v15 = vld [vmem:[#allocation33_spill] sm:$0xff] }
 0x6ac   :  { %v15447_v23 = vadd.f32 %v7993_v1, %v7609_v34  ;;  %v7620_v35 = vpop.f32.mrf.mxu1 }
 0x6ad   :  { %v7995_v37 = vpop.f32.mrf.mxu0  ;;  %v18451_v35 = vld [vmem:[#allocation30_spill] sm:$0xff] }
 0x6ae   :  { %v7623_v2 = vpop.f32.mrf.mxu1  ;;  %10225 = vmatmul.mubr.f32.gmra.mxu1 %v5760_v48 }
 0x6af   :  { %v7624_v9 = vadd.f32 %v7623_v2, %v18447_v29  ;;  %v7998_v30 = vpop.f32.mrf.mxu0 }
 0x6b0   :  { %v15450_v6 = vadd.f32 %v7998_v30, %v7614_v17  ;;  %v7625_v61 = vpop.f32.mrf.mxu1 }
 0x6b1   :  { %v8000_v44 = vpop.f32.mrf.mxu0 }
 0x6b2   :  { %v7628_v50 = vpop.f32.mrf.mxu1  ;;  %v18452_v44 = vld [vmem:[#allocation35_spill] sm:$0xff] }
 0x6b3   :  { %v7629_v52 = vadd.f32 %v7628_v50, %v18448_v56  ;;  %v8003_v40 = vpop.f32.mrf.mxu0 }
 0x6b4   :  { %v15453_v5 = vadd.f32 %v8003_v40, %v7619_v54  ;;  %v7630_v57 = vpop.f32.mrf.mxu1 }
 0x6b5   :  { %v8005_v34 = vpop.f32.mrf.mxu0 }
 0x6b6   :  { %v7633_v42 = vpop.f32.mrf.mxu1 }
 0x6b7   :  { %v7634_v45 = vadd.f32 %v7633_v42, %v18449_v26  ;;  %v8008_v28 = vpop.f32.mrf.mxu0  ;;  %v18453_v42 = vld [vmem:[#allocation32_spill] sm:$0xff] }
 0x6b8   :  { %v15456_v16 = vadd.f32 %v8008_v28, %v7624_v9  ;;  %v7635_v10 = vpop.f32.mrf.mxu1 }
 0x6b9   :  { %v8010_v55 = vpop.f32.mrf.mxu0 }
 0x6ba   :  { %v7638_v17 = vpop.f32.mrf.mxu1 }
 0x6bb   :  { %v7639_v32 = vadd.f32 %v7638_v17, %v18450_v15  ;;  %v8013_v46 = vpop.f32.mrf.mxu0  ;;  %v18454_v15 = vld [vmem:[#allocation45_spill] sm:$0xff] }
 0x6bc   :  { %v15459_v60 = vadd.f32 %v8013_v46, %v7629_v52  ;;  %v7640_v1 = vpop.f32.mrf.mxu1 }
 0x6bd   :  { %v8015_v48 = vpop.f32.mrf.mxu0 }
 0x6be   :  { %v7643_v54 = vpop.f32.mrf.mxu1 }
 0x6bf   :  { %v7644_v37 = vadd.f32 %v7643_v54, %v18451_v35  ;;  %v8018_v2 = vpop.f32.mrf.mxu0 }
 0x6c0   :  { %v15462_v29 = vadd.f32 %v8018_v2, %v7634_v45  ;;  %v7645_v30 = vpop.f32.mrf.mxu1  ;;  %v18455_v2 = vld [vmem:[#allocation46_spill] sm:$0xff] }
 0x6c1   :  { %v8020_v61 = vpop.f32.mrf.mxu0 }
 0x6c2   :  { %v7648_v9 = vpop.f32.mrf.mxu1 }
 0x6c3   :  { %v7649_v50 = vadd.f32 %v7648_v9, %v18452_v44  ;;  %v8023_v56 = vpop.f32.mrf.mxu0 }
 0x6c4   :  { %v15465_v40 = vadd.f32 %v8023_v56, %v7639_v32  ;;  %v7650_v57 = vpop.f32.mrf.mxu1 }
 0x6c5   :  { %v8025_v34 = vpop.f32.mrf.mxu0  ;;  %v18456_v57 = vld [vmem:[#allocation47_spill] sm:$0xff] }
 0x6c6   :  { %v7653_v52 = vpop.f32.mrf.mxu1 }
 0x6c7   :  { %v7654_v26 = vadd.f32 %v7653_v52, %v18453_v42  ;;  %v8028_v28 = vpop.f32.mrf.mxu0 }
 0x6c8   :  { %v15468_v10 = vadd.f32 %v8028_v28, %v7644_v37  ;;  %v7655_v55 = vpop.f32.mrf.mxu1 }
 0x6c9   :  { %v8030_v17 = vpop.f32.mrf.mxu0 }
 0x6ca   :  { %v7658_v45 = vpop.f32.mrf.mxu1  ;;  %v18458_v17 = vld [vmem:[#allocation34_spill] sm:$0xff] }
 0x6cb   :  { %v7659_v46 = vadd.f32 %v7658_v45, %v18454_v15  ;;  %v8033_v1 = vpop.f32.mrf.mxu0 }
 0x6cc   :  { %v15471_v48 = vadd.f32 %v8033_v1, %v7649_v50  ;;  %v7660_v54 = vpop.f32.mrf.mxu1 }
 0x6cd   :  { %v8035_v35 = vpop.f32.mrf.mxu0 }
 0x6ce   :  { %v7663_v32 = vpop.f32.mrf.mxu1 }
 0x6cf   :  { %v7664_v30 = vadd.f32 %v7663_v32, %v18455_v2  ;;  %v8038_v61 = vpop.f32.mrf.mxu0  ;;  %v18459_v32 = vld [vmem:[#allocation48_spill] sm:$0xff] }
 0x6d0   :  { %v15474_v9 = vadd.f32 %v8038_v61, %v7654_v26  ;;  %v7665_v44 = vpop.f32.mrf.mxu1 }
 0x6d1   :  { %v8040_v56 = vpop.f32.mrf.mxu0 }
 0x6d2   :  { %v7668_v37 = vpop.f32.mrf.mxu1 }
 0x6d3   :  { %v7669_v34 = vadd.f32 %v7668_v37, %v18456_v57  ;;  %v8043_v52 = vpop.f32.mrf.mxu0  ;;  %v18461_v57 = vld [vmem:[#allocation18_spill] sm:$0xff] }
 0x6d4   :  { %v15477_v42 = vadd.f32 %v8043_v52, %v7659_v46  ;;  %v7670_v28 = vpop.f32.mrf.mxu1 }
 0x6d5   :  { %v8045_v55 = vpop.f32.mrf.mxu0 }
 0x6d6   :  { %18457 = vst [vmem:[#allocation61_spill] sm:$0xff] %v15477_v42  ;;  %v7673_v50 = vpop.f32.mrf.mxu1 }
 0x6d7   :  { %v7674_v45 = vadd.f32 %v7673_v50, %v18458_v17  ;;  %v8048_v15 = vpop.f32.mrf.mxu0 }
 0x6d8   :  { %v15480_v1 = vadd.f32 %v8048_v15, %v7664_v30  ;;  %v7675_v54 = vpop.f32.mrf.mxu1  ;;  %v18462_v15 = vld [vmem:[#allocation49_spill] sm:$0xff] }
 0x6d9   :  { %v8050_v35 = vpop.f32.mrf.mxu0 }
 0x6da   :  { %v7678_v26 = vpop.f32.mrf.mxu1 }
 0x6db   :  { %v7679_v2 = vadd.f32 %v7678_v26, %v18459_v32  ;;  %v8053_v61 = vpop.f32.mrf.mxu0 }
 0x6dc   :  { %v15483_v44 = vadd.f32 %v8053_v61, %v7669_v34  ;;  %v7680_v56 = vpop.f32.mrf.mxu1  ;;  %v18464_v61 = vld [vmem:[#allocation50_spill] sm:$0xff] }
 0x6dd   :  { %v8055_v37 = vpop.f32.mrf.mxu0 }
 0x6de   :  { %18460 = vst [vmem:[#allocation62_spill] sm:$0xff] %v15483_v44  ;;  %v7683_v46 = vpop.f32.mrf.mxu1 }
 0x6df   :  { %v7684_v52 = vadd.f32 %v7683_v46, %v18461_v57  ;;  %v8058_v28 = vpop.f32.mrf.mxu0 }
 0x6e0   :  { %v15486_v55 = vadd.f32 %v8058_v28, %v7674_v45  ;;  %v7685_v50 = vpop.f32.mrf.mxu1 }
 0x6e1   :  { %v8060_v17 = vpop.f32.mrf.mxu0 }
 0x6e2   :  { %v7688_v30 = vpop.f32.mrf.mxu1 }
 0x6e3   :  { %v7689_v54 = vadd.f32 %v7688_v30, %v18462_v15  ;;  %v8063_v35 = vpop.f32.mrf.mxu0 }
 0x6e4   :  { %v15489_v42 = vadd.f32 %v8063_v35, %v7679_v2  ;;  %v7690_v26 = vpop.f32.mrf.mxu1  ;;  %v18467_v35 = vld [vmem:[#allocation20_spill] sm:$0xff] }
 0x6e5   :  { %v8065_v32 = vpop.f32.mrf.mxu0 }
 0x6e6   :  { %18463 = vst [vmem:[#allocation63_spill] sm:$0xff] %v15489_v42  ;;  %v7693_v34 = vpop.f32.mrf.mxu1 }
 0x6e7   :  { %v7694_v56 = vadd.f32 %v7693_v34, %v18464_v61  ;;  %v8068_v37 = vpop.f32.mrf.mxu0 }
 0x6e8   :  { %v15492_v44 = vadd.f32 %v8068_v37, %v7684_v52  ;;  %v7695_v46 = vpop.f32.mrf.mxu1 }
 0x6e9   :  { %v8070_v57 = vpop.f32.mrf.mxu0 }
 0x6ea   :  { %18465 = vst [vmem:[#allocation64_spill] sm:$0xff] %v15492_v44  ;;  %v7698_v45 = vpop.f32.mrf.mxu1  ;;  %v18469_v44 = vld [vmem:[#allocation36_spill] sm:$0xff] }
 0x6eb   :  { %v7699_v28 = vadd.f32 %v7698_v45, %v15245_v47  ;;  %v8073_v50 = vpop.f32.mrf.mxu0  ;;  %v18471_v45 = vld [vmem:[#allocation51_spill] sm:$0xff] }
 0x6ec   :  { %v15495_v17 = vadd.f32 %v8073_v50, %v7689_v54  ;;  %v7700_v30 = vpop.f32.mrf.mxu1 }
 0x6ed   :  { %v8075_v15 = vpop.f32.mrf.mxu0 }
 0x6ee   :  { %18466 = vst [vmem:[#allocation65_spill] sm:$0xff] %v15495_v17  ;;  %v7703_v2 = vpop.f32.mrf.mxu1 }
 0x6ef   :  { %v7704_v26 = vadd.f32 %v7703_v2, %v18467_v35  ;;  %v8078_v32 = vpop.f32.mrf.mxu0 }
 0x6f0   :  { %v15498_v42 = vadd.f32 %v8078_v32, %v7694_v56  ;;  %v7705_v34 = vpop.f32.mrf.mxu1 }
 0x6f1   :  { %v8080_v61 = vpop.f32.mrf.mxu0 }
 0x6f2   :  { %v10133_v52 = vpop.f32.mrf.mxu1  ;;  %v18476_v61 = vld [vmem:[#allocation52_spill] sm:$0xff] }
 0x6f3   :  { %v8083_v37 = vpop.f32.mrf.mxu0  ;;  %v15503_v47 = vadd.f32 %v10133_v52, %v18469_v44  ;;  %v18474_v44 = vld [vmem:[#allocation53_spill] sm:$0xff] }
 0x6f4   :  { %v15500_v46 = vadd.f32 %v8083_v37, %v7699_v28  ;;  %v8158_v57 = vpop.f32.mrf.mxu1 }
 0x6f5   :  { %18470 = vst [vmem:[#allocation66_spill] sm:$0xff] %v15503_v47  ;;  %v8085_v54 = vpop.f32.mrf.mxu0  ;;  %v15506_v50 = vadd.f32 %v8158_v57, %v18471_v45  ;;  %v8547_v28 = vmul.f32 %v15503_v47, %v15503_v47 }
 0x6f6   :  { %18468 = vst [vmem:[#allocation39_spill] sm:$0xff] %v15500_v46  ;;  %v10136_v30 = vpop.f32.mrf.mxu1 }
 0x6f7   :  { %18472 = vst [vmem:[#allocation40_spill] sm:$0xff] %v15506_v50  ;;  %v8546_v15 = vmul.f32 %v15506_v50, %v15506_v50  ;;  %v8088_v56 = vpop.f32.mrf.mxu0  ;;  %v8477_v32 = vadd.f32 %v15503_v47, %v15506_v50  ;;  %v15517_v34 = vadd.f32 %v10136_v30, %v18474_v44  ;;  %v18482_v50 = vld [vmem:[#allocation56_spill] sm:$0xff] }
 0x6f8   :  { %v15510_v2 = vadd.f32 %v8088_v56, %v7704_v26  ;;  %v8168_v35 = vpop.f32.mrf.mxu1  ;;  %v18478_v56 = vld [vmem:[#allocation54_spill] sm:$0xff] }
 0x6f9   :  { %18475 = vst [vmem:[#allocation68_spill] sm:$0xff] %v15517_v34  ;;  %v15520_v52 = vadd.f32 %v8168_v35, %v18476_v61  ;;  %v8090_v37 = vpop.f32.mrf.mxu0  ;;  %v8610_v54 = vadd.f32 %v8547_v28, %v8546_v15  ;;  %v8549_v47 = vmul.f32 %v15517_v34, %v15517_v34  ;;  %v18480_v35 = vld [vmem:[#allocation37_spill] sm:$0xff] }
 0x6fa   :  { %18473 = vst [vmem:[#allocation67_spill] sm:$0xff] %v15510_v2  ;;  %v10139_v57 = vpop.f32.mrf.mxu1 }
 0x6fb   :  { %18477 = vst [vmem:[#allocation41_spill] sm:$0xff] %v15520_v52  ;;  %v8478_v45 = vadd.f32 %v8477_v32, %v15520_v52  ;;  %v8548_v26 = vmul.f32 %v15520_v52, %v15520_v52  ;;  %v15526_v46 = vadd.f32 %v10139_v57, %v18478_v56 }
 0x6fc   :  { %v8178_v2 = vpop.f32.mrf.mxu1 }
 0x6fd   :  { %18479 = vst [vmem:[#allocation42_spill] sm:$0xff] %v15526_v46  ;;  %v8479_v30 = vadd.f32 %v8478_v45, %v15517_v34  ;;  %v8611_v44 = vadd.f32 %v8610_v54, %v8548_v26  ;;  %v15532_v61 = vadd.f32 %v8178_v2, %v18480_v35  ;;  %v8551_v57 = vmul.f32 %v15526_v46, %v15526_v46  ;;  %v18483_v45 = vld [vmem:[#allocation55_spill] sm:$0xff]  ;;  %v18485_v35 = vld [vmem:[#allocation57_spill] sm:$0xff] }
 0x6fe   :  { %v10142_v37 = vpop.f32.mrf.mxu1 }
 0x6ff   :  { %18481 = vst [vmem:[#allocation69_spill] sm:$0xff] %v15532_v61  ;;  %v8612_v15 = vadd.f32 %v8611_v44, %v8549_v47  ;;  %v8480_v28 = vadd.f32 %v8479_v30, %v15532_v61  ;;  %v8550_v32 = vmul.f32 %v15532_v61, %v15532_v61  ;;  %v15540_v17 = vadd.f32 %v10142_v37, %v18482_v50 }
 0x700   :  { %v8188_v56 = vpop.f32.mrf.mxu1 }
 0x701   :  { %v8613_v52 = vadd.f32 %v8612_v15, %v8550_v32  ;;  %v15543_v54 = vadd.f32 %v8188_v56, %v18483_v45  ;;  %v8481_v2 = vadd.f32 %v8480_v28, %v15526_v46  ;;  %v8553_v50 = vmul.f32 %v15540_v17, %v15540_v17  ;;  %v18486_v15 = vld [vmem:[#allocation38_spill] sm:$0xff] }
 0x702   :  { %v10145_v26 = vpop.f32.mrf.mxu1 }
 0x703   :  { %18484 = vst [vmem:[#allocation43_spill] sm:$0xff] %v15543_v54  ;;  %v8482_v47 = vadd.f32 %v8481_v2, %v15543_v54  ;;  %v8552_v30 = vmul.f32 %v15543_v54, %v15543_v54  ;;  %v8614_v44 = vadd.f32 %v8613_v52, %v8551_v57  ;;  %v15550_v61 = vadd.f32 %v10145_v26, %v18485_v35  ;;  %v18488_v54 = vld [vmem:[#allocation59_spill] sm:$0xff] }
 0x704   :  { %v8198_v34 = vpop.f32.mrf.mxu1 }
 0x705   :  { %v8615_v37 = vadd.f32 %v8614_v44, %v8552_v30  ;;  %v15555_v32 = vadd.f32 %v8198_v34, %v18486_v15  ;;  %v8483_v28 = vadd.f32 %v8482_v47, %v15540_v17  ;;  %v8555_v57 = vmul.f32 %v15550_v61, %v15550_v61  ;;  %v18489_v30 = vld [vmem:[#allocation58_spill] sm:$0xff] }
 0x706   :  { %v10148_v56 = vpop.f32.mrf.mxu1 }
 0x707   :  { %18487 = vst [vmem:[#allocation11_spill] sm:$0xff] %v15555_v32  ;;  %v8484_v45 = vadd.f32 %v8483_v28, %v15555_v32  ;;  %v8554_v2 = vmul.f32 %v15555_v32, %v15555_v32  ;;  %v8616_v52 = vadd.f32 %v8615_v37, %v8553_v50  ;;  %v15564_v46 = vadd.f32 %v10148_v56, %v18488_v54 }
 0x708   :  { %v8208_v26 = vpop.f32.mrf.mxu1 }
 0x709   :  { %v8617_v35 = vadd.f32 %v8616_v52, %v8554_v2  ;;  %v15567_v34 = vadd.f32 %v8208_v26, %v18489_v30  ;;  %v8485_v47 = vadd.f32 %v8484_v45, %v15550_v61  ;;  %v8557_v54 = vmul.f32 %v15564_v46, %v15564_v46  ;;  %v18491_v2 = vld [vmem:[#allocation60_spill] sm:$0xff] }
 0x70a   :  { %v10151_v44 = vpop.f32.mrf.mxu1 }
 0x70b   :  { %18490 = vst [vmem:[#allocation70_spill] sm:$0xff] %v15567_v34  ;;  %v8486_v15 = vadd.f32 %v8485_v47, %v15567_v34  ;;  %v8556_v28 = vmul.f32 %v15567_v34, %v15567_v34  ;;  %v8618_v50 = vadd.f32 %v8617_v35, %v8555_v57  ;;  %v15574_v37 = vadd.f32 %v10151_v44, %v15333_v11 }
 0x70c   :  { %v8218_v32 = vpop.f32.mrf.mxu1 }
 0x70d   :  { %v8619_v56 = vadd.f32 %v8618_v50, %v8556_v28  ;;  %v15579_v52 = vadd.f32 %v8218_v32, %v18491_v2  ;;  %v8487_v45 = vadd.f32 %v8486_v15, %v15564_v46  ;;  %v8559_v11 = vmul.f32 %v15574_v37, %v15574_v37 }
 0x70e   :  { %v10154_v26 = vpop.f32.mrf.mxu1 }
 0x70f   :  { %v8488_v30 = vadd.f32 %v8487_v45, %v15579_v52  ;;  %v8558_v47 = vmul.f32 %v15579_v52, %v15579_v52  ;;  %v8620_v57 = vadd.f32 %v8619_v56, %v8557_v54  ;;  %v15588_v34 = vadd.f32 %v10154_v26, %v15341_v62 }
 0x710   :  { %v8228_v35 = vpop.f32.mrf.mxu1 }
 0x711   :  { %v8621_v44 = vadd.f32 %v8620_v57, %v8558_v47  ;;  %v15591_v32 = vadd.f32 %v8228_v35, %v15337_v3  ;;  %v8489_v15 = vadd.f32 %v8488_v30, %v15574_v37  ;;  %v8561_v62 = vmul.f32 %v15588_v34, %v15588_v34 }
 0x712   :  { %v10157_v28 = vpop.f32.mrf.mxu1 }
 0x713   :  { %v8490_v50 = vadd.f32 %v8489_v15, %v15591_v32  ;;  %v8560_v2 = vmul.f32 %v15591_v32, %v15591_v32  ;;  %v8622_v54 = vadd.f32 %v8621_v44, %v8559_v11  ;;  %v15598_v56 = vadd.f32 %v10157_v28, %v15347_v22 }
 0x714   :  { %v8238_v45 = vpop.f32.mrf.mxu1 }
 0x715   :  { %v8623_v26 = vadd.f32 %v8622_v54, %v8560_v2  ;;  %v15603_v3 = vadd.f32 %v8238_v45, %v15344_v59  ;;  %v8491_v30 = vadd.f32 %v8490_v50, %v15588_v34  ;;  %v8563_v22 = vmul.f32 %v15598_v56, %v15598_v56 }
 0x716   :  { %v10160_v47 = vpop.f32.mrf.mxu1 }
 0x717   :  { %v8492_v57 = vadd.f32 %v8491_v30, %v15603_v3  ;;  %v8562_v35 = vmul.f32 %v15603_v3, %v15603_v3  ;;  %v8624_v11 = vadd.f32 %v8623_v26, %v8561_v62  ;;  %v15612_v28 = vadd.f32 %v10160_v47, %v15353_v63 }
 0x718   :  { %v8248_v44 = vpop.f32.mrf.mxu1 }
 0x719   :  { %v8625_v15 = vadd.f32 %v8624_v11, %v8562_v35  ;;  %v15615_v59 = vadd.f32 %v8248_v44, %v15350_v20  ;;  %v8493_v50 = vadd.f32 %v8492_v57, %v15598_v56  ;;  %v8565_v63 = vmul.f32 %v15612_v28, %v15612_v28 }
 0x71a   :  { %v10163_v2 = vpop.f32.mrf.mxu1 }
 0x71b   :  { %v8494_v54 = vadd.f32 %v8493_v50, %v15615_v59  ;;  %v8564_v45 = vmul.f32 %v15615_v59, %v15615_v59  ;;  %v8626_v62 = vadd.f32 %v8625_v15, %v8563_v22  ;;  %v15622_v26 = vadd.f32 %v10163_v2, %v15359_v24 }
 0x71c   :  { %v8258_v30 = vpop.f32.mrf.mxu1 }
 0x71d   :  { %v8627_v47 = vadd.f32 %v8626_v62, %v8564_v45  ;;  %v15627_v20 = vadd.f32 %v8258_v30, %v15356_v41  ;;  %v8495_v57 = vadd.f32 %v8494_v54, %v15612_v28  ;;  %v8567_v24 = vmul.f32 %v15622_v26, %v15622_v26 }
 0x71e   :  { %v10166_v35 = vpop.f32.mrf.mxu1 }
 0x71f   :  { %v8496_v11 = vadd.f32 %v8495_v57, %v15627_v20  ;;  %v8566_v44 = vmul.f32 %v15627_v20, %v15627_v20  ;;  %v8628_v22 = vadd.f32 %v8627_v47, %v8565_v63  ;;  %v15636_v2 = vadd.f32 %v10166_v35, %v15365_v19 }
 0x720   :  { %v8268_v15 = vpop.f32.mrf.mxu1 }
 0x721   :  { %v8629_v50 = vadd.f32 %v8628_v22, %v8566_v44  ;;  %v15639_v41 = vadd.f32 %v8268_v15, %v15362_v27  ;;  %v8497_v54 = vadd.f32 %v8496_v11, %v15622_v26  ;;  %v8569_v19 = vmul.f32 %v15636_v2, %v15636_v2 }
 0x722   :  { %v10169_v45 = vpop.f32.mrf.mxu1 }
 0x723   :  { %v8498_v62 = vadd.f32 %v8497_v54, %v15639_v41  ;;  %v8568_v30 = vmul.f32 %v15639_v41, %v15639_v41  ;;  %v8630_v63 = vadd.f32 %v8629_v50, %v8567_v24  ;;  %v15646_v47 = vadd.f32 %v10169_v45, %v15371_v31 }
 0x724   :  { %v8278_v57 = vpop.f32.mrf.mxu1 }
 0x725   :  { %v8631_v35 = vadd.f32 %v8630_v63, %v8568_v30  ;;  %v15651_v27 = vadd.f32 %v8278_v57, %v15368_v53  ;;  %v8499_v11 = vadd.f32 %v8498_v62, %v15636_v2  ;;  %v8571_v31 = vmul.f32 %v15646_v47, %v15646_v47 }
 0x726   :  { %v10172_v44 = vpop.f32.mrf.mxu1 }
 0x727   :  { %v8500_v22 = vadd.f32 %v8499_v11, %v15651_v27  ;;  %v8570_v15 = vmul.f32 %v15651_v27, %v15651_v27  ;;  %v8632_v24 = vadd.f32 %v8631_v35, %v8569_v19  ;;  %v15660_v45 = vadd.f32 %v10172_v44, %v15377_v58 }
 0x728   :  { %v8288_v50 = vpop.f32.mrf.mxu1 }
 0x729   :  { %v8633_v54 = vadd.f32 %v8632_v24, %v8570_v15  ;;  %v15663_v53 = vadd.f32 %v8288_v50, %v15374_v14  ;;  %v8501_v62 = vadd.f32 %v8500_v22, %v15646_v47  ;;  %v8573_v58 = vmul.f32 %v15660_v45, %v15660_v45 }
 0x72a   :  { %v10175_v30 = vpop.f32.mrf.mxu1 }
 0x72b   :  { %v8502_v63 = vadd.f32 %v8501_v62, %v15663_v53  ;;  %v8572_v57 = vmul.f32 %v15663_v53, %v15663_v53  ;;  %v8634_v19 = vadd.f32 %v8633_v54, %v8571_v31  ;;  %v15670_v35 = vadd.f32 %v10175_v30, %v15383_v18 }
 0x72c   :  { %v8298_v11 = vpop.f32.mrf.mxu1 }
 0x72d   :  { %v8635_v44 = vadd.f32 %v8634_v19, %v8572_v57  ;;  %v15675_v14 = vadd.f32 %v8298_v11, %v15380_v13  ;;  %v8503_v22 = vadd.f32 %v8502_v63, %v15660_v45  ;;  %v8575_v18 = vmul.f32 %v15670_v35, %v15670_v35 }
 0x72e   :  { %v10178_v15 = vpop.f32.mrf.mxu1 }
 0x72f   :  { %v8504_v24 = vadd.f32 %v8503_v22, %v15675_v14  ;;  %v8574_v50 = vmul.f32 %v15675_v14, %v15675_v14  ;;  %v8636_v31 = vadd.f32 %v8635_v44, %v8573_v58  ;;  %v15684_v30 = vadd.f32 %v10178_v15, %v15389_v12 }
 0x730   :  { %v8308_v54 = vpop.f32.mrf.mxu1 }
 0x731   :  { %v8637_v62 = vadd.f32 %v8636_v31, %v8574_v50  ;;  %v15687_v13 = vadd.f32 %v8308_v54, %v15386_v8  ;;  %v8505_v63 = vadd.f32 %v8504_v24, %v15670_v35  ;;  %v8577_v12 = vmul.f32 %v15684_v30, %v15684_v30 }
 0x732   :  { %v10181_v57 = vpop.f32.mrf.mxu1 }
 0x733   :  { %v8506_v19 = vadd.f32 %v8505_v63, %v15687_v13  ;;  %v8576_v11 = vmul.f32 %v15687_v13, %v15687_v13  ;;  %v8638_v58 = vadd.f32 %v8637_v62, %v8575_v18  ;;  %v15694_v44 = vadd.f32 %v10181_v57, %v15395_v7 }
 0x734   :  { %v8318_v22 = vpop.f32.mrf.mxu1 }
 0x735   :  { %v8639_v15 = vadd.f32 %v8638_v58, %v8576_v11  ;;  %v15699_v8 = vadd.f32 %v8318_v22, %v15392_v21  ;;  %v8507_v24 = vadd.f32 %v8506_v19, %v15684_v30  ;;  %v8579_v7 = vmul.f32 %v15694_v44, %v15694_v44 }
 0x736   :  { %v10184_v50 = vpop.f32.mrf.mxu1 }
 0x737   :  { %v8508_v31 = vadd.f32 %v8507_v24, %v15699_v8  ;;  %v8578_v54 = vmul.f32 %v15699_v8, %v15699_v8  ;;  %v8640_v18 = vadd.f32 %v8639_v15, %v8577_v12  ;;  %v15708_v57 = vadd.f32 %v10184_v50, %v15403_v36 }
 0x738   :  { %v8328_v62 = vpop.f32.mrf.mxu1 }
 0x739   :  { %v8641_v63 = vadd.f32 %v8640_v18, %v8578_v54  ;;  %18492 = vst [vmem:[#allocation71_spill] sm:$0xff] %v15708_v57  ;;  %v15711_v21 = vadd.f32 %v8328_v62, %v15398_v49  ;;  %v8509_v19 = vadd.f32 %v8508_v31, %v15694_v44  ;;  %v8581_v36 = vmul.f32 %v15708_v57, %v15708_v57 }
 0x73a   :  { %v10187_v11 = vpop.f32.mrf.mxu1 }
 0x73b   :  { %v8510_v58 = vadd.f32 %v8509_v19, %v15711_v21  ;;  %v8580_v22 = vmul.f32 %v15711_v21, %v15711_v21  ;;  %v8642_v12 = vadd.f32 %v8641_v63, %v8579_v7  ;;  %v15718_v15 = vadd.f32 %v10187_v11, %v15413_v4 }
 0x73c   :  { %v8338_v24 = vpop.f32.mrf.mxu1 }
 0x73d   :  { %18493 = vst [vmem:[#allocation44_spill] sm:$0xff] %v15718_v15  ;;  %v8643_v50 = vadd.f32 %v8642_v12, %v8580_v22  ;;  %v15723_v49 = vadd.f32 %v8338_v24, %v15408_v39  ;;  %v8511_v31 = vadd.f32 %v8510_v58, %v15708_v57  ;;  %v8583_v4 = vmul.f32 %v15718_v15, %v15718_v15 }
 0x73e   :  { %v10190_v54 = vpop.f32.mrf.mxu1 }
 0x73f   :  { %18494 = vst [vmem:[#allocation72_spill] sm:$0xff] %v15723_v49  ;;  %v8512_v18 = vadd.f32 %v8511_v31, %v15723_v49  ;;  %v8582_v62 = vmul.f32 %v15723_v49, %v15723_v49  ;;  %v8644_v7 = vadd.f32 %v8643_v50, %v8581_v36  ;;  %v15732_v11 = vadd.f32 %v10190_v54, %v15423_v25 }
 0x740   :  { %v8348_v63 = vpop.f32.mrf.mxu1 }
 0x741   :  { %v8645_v19 = vadd.f32 %v8644_v7, %v8582_v62  ;;  %18495 = vst [vmem:[#allocation73_spill] sm:$0xff] %v15732_v11  ;;  %v15735_v39 = vadd.f32 %v8348_v63, %v15418_v38  ;;  %v8513_v58 = vadd.f32 %v8512_v18, %v15718_v15  ;;  %v8585_v25 = vmul.f32 %v15732_v11, %v15732_v11 }
 0x742   :  { %v10193_v22 = vpop.f32.mrf.mxu1 }
 0x743   :  { %18496 = vst [vmem:[#allocation74_spill] sm:$0xff] %v15735_v39  ;;  %v8514_v12 = vadd.f32 %v8513_v58, %v15735_v39  ;;  %v8584_v24 = vmul.f32 %v15735_v39, %v15735_v39  ;;  %v8646_v36 = vadd.f32 %v8645_v19, %v8583_v4  ;;  %v15742_v50 = vadd.f32 %v10193_v22, %v15433_v51 }
 0x744   :  { %v8358_v31 = vpop.f32.mrf.mxu1 }
 0x745   :  { %18497 = vst [vmem:[#allocation75_spill] sm:$0xff] %v15742_v50  ;;  %v8647_v54 = vadd.f32 %v8646_v36, %v8584_v24  ;;  %v15747_v38 = vadd.f32 %v8358_v31, %v15428_v0  ;;  %v8515_v18 = vadd.f32 %v8514_v12, %v15732_v11  ;;  %v8587_v51 = vmul.f32 %v15742_v50, %v15742_v50 }
 0x746   :  { %v10196_v62 = vpop.f32.mrf.mxu1 }
 0x747   :  { %18498 = vst [vmem:[#allocation76_spill] sm:$0xff] %v15747_v38  ;;  %v8516_v7 = vadd.f32 %v8515_v18, %v15747_v38  ;;  %v8586_v63 = vmul.f32 %v15747_v38, %v15747_v38  ;;  %v8648_v4 = vadd.f32 %v8647_v54, %v8585_v25  ;;  %v15756_v22 = vadd.f32 %v10196_v62, %v15443_v33 }
 0x748   :  { %v8368_v19 = vpop.f32.mrf.mxu1 }
 0x749   :  { %v8649_v58 = vadd.f32 %v8648_v4, %v8586_v63  ;;  %18499 = vst [vmem:[#allocation77_spill] sm:$0xff] %v15756_v22  ;;  %v15759_v0 = vadd.f32 %v8368_v19, %v15438_v43  ;;  %v8517_v12 = vadd.f32 %v8516_v7, %v15742_v50  ;;  %v8589_v33 = vmul.f32 %v15756_v22, %v15756_v22 }
 0x74a   :  { %v10199_v24 = vpop.f32.mrf.mxu1 }
 0x74b   :  { %18500 = vst [vmem:[#allocation13_spill] sm:$0xff] %v15759_v0  ;;  %v8518_v36 = vadd.f32 %v8517_v12, %v15759_v0  ;;  %v8588_v31 = vmul.f32 %v15759_v0, %v15759_v0  ;;  %v8650_v25 = vadd.f32 %v8649_v58, %v8587_v51  ;;  %v15766_v54 = vadd.f32 %v10199_v24, %v15450_v6  ;;  %v18519_v0 = vld [vmem:[#allocation67_spill] sm:$0xff] }
 0x74c   :  { %v8378_v18 = vpop.f32.mrf.mxu1 }
 0x74d   :  { %18501 = vst [vmem:[#allocation78_spill] sm:$0xff] %v15766_v54  ;;  %v8651_v62 = vadd.f32 %v8650_v25, %v8588_v31  ;;  %v15771_v43 = vadd.f32 %v8378_v18, %v15447_v23  ;;  %v8519_v7 = vadd.f32 %v8518_v36, %v15756_v22  ;;  %v8591_v6 = vmul.f32 %v15766_v54, %v15766_v54 }
 0x74e   :  { %v10202_v63 = vpop.f32.mrf.mxu1 }
 0x74f   :  { %18502 = vst [vmem:[#allocation79_spill] sm:$0xff] %v15771_v43  ;;  %v8520_v4 = vadd.f32 %v8519_v7, %v15771_v43  ;;  %v8590_v19 = vmul.f32 %v15771_v43, %v15771_v43  ;;  %v8652_v51 = vadd.f32 %v8651_v62, %v8589_v33  ;;  %v15780_v24 = vadd.f32 %v10202_v63, %v15456_v16 }
 0x750   :  { %v8388_v58 = vpop.f32.mrf.mxu1 }
 0x751   :  { %v8653_v12 = vadd.f32 %v8652_v51, %v8590_v19  ;;  %18503 = vst [vmem:[#allocation80_spill] sm:$0xff] %v15780_v24  ;;  %v15783_v23 = vadd.f32 %v8388_v58, %v15453_v5  ;;  %v8521_v36 = vadd.f32 %v8520_v4, %v15766_v54  ;;  %v8593_v16 = vmul.f32 %v15780_v24, %v15780_v24  ;;  %v18512_v54 = vld [vmem:[#allocation64_spill] sm:$0xff] }
 0x752   :  { %v10205_v31 = vpop.f32.mrf.mxu1 }
 0x753   :  { %v8522_v25 = vadd.f32 %v8521_v36, %v15783_v23  ;;  %v8592_v18 = vmul.f32 %v15783_v23, %v15783_v23  ;;  %v8654_v33 = vadd.f32 %v8653_v12, %v8591_v6  ;;  %v15790_v62 = vadd.f32 %v10205_v31, %v15462_v29 }
 0x754   :  { %v8398_v7 = vpop.f32.mrf.mxu1 }
 0x755   :  { %v8655_v63 = vadd.f32 %v8654_v33, %v8592_v18  ;;  %v15795_v5 = vadd.f32 %v8398_v7, %v15459_v60  ;;  %v8523_v4 = vadd.f32 %v8522_v25, %v15780_v24  ;;  %v8595_v29 = vmul.f32 %v15790_v62, %v15790_v62 }
 0x756   :  { %v10208_v19 = vpop.f32.mrf.mxu1 }
 0x757   :  { %v8524_v51 = vadd.f32 %v8523_v4, %v15795_v5  ;;  %v8594_v58 = vmul.f32 %v15795_v5, %v15795_v5  ;;  %v8656_v6 = vadd.f32 %v8655_v63, %v8593_v16  ;;  %v15804_v31 = vadd.f32 %v10208_v19, %v15468_v10 }
 0x758   :  { %v8408_v12 = vpop.f32.mrf.mxu1 }
 0x759   :  { %v8657_v36 = vadd.f32 %v8656_v6, %v8594_v58  ;;  %v15807_v60 = vadd.f32 %v8408_v12, %v15465_v40  ;;  %v8525_v25 = vadd.f32 %v8524_v51, %v15790_v62  ;;  %v8597_v10 = vmul.f32 %v15804_v31, %v15804_v31 }
 0x75a   :  { %v10211_v18 = vpop.f32.mrf.mxu1 }
 0x75b   :  { %v8526_v33 = vadd.f32 %v8525_v25, %v15807_v60  ;;  %v8596_v7 = vmul.f32 %v15807_v60, %v15807_v60  ;;  %v8658_v16 = vadd.f32 %v8657_v36, %v8595_v29  ;;  %v15814_v63 = vadd.f32 %v10211_v18, %v15474_v9 }
 0x75c   :  { %v8418_v4 = vpop.f32.mrf.mxu1 }
 0x75d   :  { %18504 = vst [vmem:[#allocation81_spill] sm:$0xff] %v15814_v63  ;;  %v8659_v19 = vadd.f32 %v8658_v16, %v8596_v7  ;;  %v15819_v40 = vadd.f32 %v8418_v4, %v15471_v48  ;;  %v8527_v51 = vadd.f32 %v8526_v33, %v15804_v31  ;;  %v8599_v9 = vmul.f32 %v15814_v63, %v15814_v63  ;;  %v18507_v7 = vld [vmem:[#allocation61_spill] sm:$0xff] }
 0x75e   :  { %v10214_v58 = vpop.f32.mrf.mxu1 }
 0x75f   :  { %18505 = vst [vmem:[#allocation82_spill] sm:$0xff] %v15819_v40  ;;  %v8528_v6 = vadd.f32 %v8527_v51, %v15819_v40  ;;  %v8598_v12 = vmul.f32 %v15819_v40, %v15819_v40  ;;  %v8660_v29 = vadd.f32 %v8659_v19, %v8597_v10  ;;  %v15828_v18 = vadd.f32 %v10214_v58, %v15480_v1 }
 0x760   :  { %v8428_v36 = vpop.f32.mrf.mxu1 }
 0x761   :  { %v8661_v25 = vadd.f32 %v8660_v29, %v8598_v12  ;;  %18506 = vst [vmem:[#allocation15_spill] sm:$0xff] %v15828_v18  ;;  %v15831_v48 = vadd.f32 %v8428_v36, %v18507_v7  ;;  %v8529_v33 = vadd.f32 %v8528_v6, %v15814_v63  ;;  %v8601_v1 = vmul.f32 %v15828_v18, %v15828_v18  ;;  %v18510_v12 = vld [vmem:[#allocation62_spill] sm:$0xff] }
 0x762   :  { %v10217_v16 = vpop.f32.mrf.mxu1 }
 0x763   :  { %18508 = vst [vmem:[#allocation17_spill] sm:$0xff] %v15831_v48  ;;  %v8530_v4 = vadd.f32 %v8529_v33, %v15831_v48  ;;  %v8600_v51 = vmul.f32 %v15831_v48, %v15831_v48  ;;  %v8662_v10 = vadd.f32 %v8661_v25, %v8599_v9  ;;  %v15838_v19 = vadd.f32 %v10217_v16, %v15486_v55 }
 0x764   :  { %v8438_v24 = vpop.f32.mrf.mxu1 }
 0x765   :  { %18509 = vst [vmem:[#allocation16_spill] sm:$0xff] %v15838_v19  ;;  %v8663_v58 = vadd.f32 %v8662_v10, %v8600_v51  ;;  %v15843_v29 = vadd.f32 %v8438_v24, %v18510_v12  ;;  %v8531_v6 = vadd.f32 %v8530_v4, %v15828_v18  ;;  %v8603_v55 = vmul.f32 %v15838_v19, %v15838_v19  ;;  %v18514_v51 = vld [vmem:[#allocation63_spill] sm:$0xff] }
 0x766   :  { %v10220_v36 = vpop.f32.mrf.mxu1 }
 0x767   :  { %18511 = vst [vmem:[#allocation19_spill] sm:$0xff] %v15843_v29  ;;  %v8532_v7 = vadd.f32 %v8531_v6, %v15843_v29  ;;  %v8602_v33 = vmul.f32 %v15843_v29, %v15843_v29  ;;  %v8664_v9 = vadd.f32 %v8663_v58, %v8601_v1  ;;  %v15852_v43 = vadd.f32 %v10220_v36, %v18512_v54 }
 0x768   :  { %v8448_v25 = vpop.f32.mrf.mxu1 }
 0x769   :  { %v8665_v16 = vadd.f32 %v8664_v9, %v8602_v33  ;;  %18513 = vst [vmem:[#allocation21_spill] sm:$0xff] %v15852_v43  ;;  %v15855_v24 = vadd.f32 %v8448_v25, %v18514_v51  ;;  %v8533_v4 = vadd.f32 %v8532_v7, %v15838_v19  ;;  %v8605_v54 = vmul.f32 %v15852_v43, %v15852_v43  ;;  %v18517_v33 = vld [vmem:[#allocation65_spill] sm:$0xff] }
 0x76a   :  { %v10223_v10 = vpop.f32.mrf.mxu1 }
 0x76b   :  { %18515 = vst [vmem:[#allocation23_spill] sm:$0xff] %v15855_v24  ;;  %v8534_v12 = vadd.f32 %v8533_v4, %v15855_v24  ;;  %v8604_v6 = vmul.f32 %v15855_v24, %v15855_v24  ;;  %v8666_v1 = vadd.f32 %v8665_v16, %v8603_v55  ;;  %v15862_v58 = vadd.f32 %v10223_v10, %v15498_v42 }
 0x76c   :  { %v8458_v22 = vpop.f32.mrf.mxu1 }
 0x76d   :  { %18516 = vst [vmem:[#allocation22_spill] sm:$0xff] %v15862_v58  ;;  %v8667_v36 = vadd.f32 %v8666_v1, %v8604_v6  ;;  %v15867_v9 = vadd.f32 %v8458_v22, %v18517_v33  ;;  %v8535_v7 = vadd.f32 %v8534_v12, %v15852_v43  ;;  %v8607_v42 = vmul.f32 %v15862_v58, %v15862_v58  ;;  %v18521_v6 = vld [vmem:[#allocation39_spill] sm:$0xff] }
 0x76e   :  { %v10226_v25 = vpop.f32.mrf.mxu1 }
 0x76f   :  { %18518 = vst [vmem:[#allocation25_spill] sm:$0xff] %v15867_v9  ;;  %v8536_v51 = vadd.f32 %v8535_v7, %v15867_v9  ;;  %v8606_v4 = vmul.f32 %v15867_v9, %v15867_v9  ;;  %v8668_v55 = vadd.f32 %v8667_v36, %v8605_v54  ;;  %v15876_v50 = vadd.f32 %v10226_v25, %v18519_v0 }
 0x770   :  { %v8468_v16 = vpop.f32.mrf.mxu1 }
 0x771   :  { %v8669_v10 = vadd.f32 %v8668_v55, %v8606_v4  ;;  %18520 = vst [vmem:[#allocation24_spill] sm:$0xff] %v15876_v50  ;;  %v15879_v22 = vadd.f32 %v8468_v16, %v18521_v6  ;;  %v8537_v12 = vadd.f32 %v8536_v51, %v15862_v58  ;;  %v8609_v54 = vmul.f32 %v15876_v50, %v15876_v50 }
 0x773   :  { %v8538_v1 = vadd.f32 %v8537_v12, %v15879_v22  ;;  %v8608_v33 = vmul.f32 %v15879_v22, %v15879_v22  ;;  %v8670_v7 = vadd.f32 %v8669_v10, %v8607_v42 }
 0x775   :  { %v8539_v36 = vadd.f32 %v8538_v1, %v15876_v50  ;;  %v8671_v4 = vadd.f32 %v8670_v7, %v8608_v33 }
 0x777   :  { %v8540_v55 = vrot.slane %v8539_v36, 4  ;;  %v8672_v0 = vadd.f32 %v8671_v4, %v8609_v54 }
 0x779   :  { %v8541_v25 = vadd.f32 %v8540_v55, %v8539_v36  ;;  %v8673_v38 = vrot.slane %v8672_v0, 4  ;;  %v18523_v55 = vld [vmem:[#allocation66_spill] sm:$0xff] }
 0x77b   :  { %v8542_v16 = vrot.slane %v8541_v25, 2  ;;  %v8674_v6 = vadd.f32 %v8673_v38, %v8672_v0  ;;  %v18522_v38 = vld [vmem:[#allocation40_spill] sm:$0xff]  ;;  %v18526_v0 = vld [vmem:[#allocation69_spill] sm:$0xff] }
 0x77d   :  { %v8543_v11 = vadd.f32 %v8542_v16, %v8541_v25  ;;  %v8675_v51 = vrot.slane %v8674_v6, 2  ;;  %v18527_v16 = vld [vmem:[#allocation42_spill] sm:$0xff]  ;;  %v18533_v25 = vld [vmem:[#allocation44_spill] sm:$0xff] }
 0x77f   :  { %v8544_v39 = vrot.slane %v8543_v11, 1  ;;  %v8676_v12 = vadd.f32 %v8675_v51, %v8674_v6  ;;  %v18528_v51 = vld [vmem:[#allocation43_spill] sm:$0xff] }
 0x781   :  { %v8545_v15 = vadd.f32 %v8544_v39, %v8543_v11  ;;  %v8677_v49 = vrot.slane %v8676_v12, 1  ;;  %v18530_v39 = vld [vmem:[#allocation70_spill] sm:$0xff] }
 0x783   :  { %v8678_v57 = vadd.f32 %v8677_v49, %v8676_v12  ;;  %v15888_v42 = vmul.f32 0.001953125, %v8545_v15  ;;  %v18524_v49 = vld [vmem:[#allocation41_spill] sm:$0xff]  ;;  %v18532_v15 = vld [vmem:[#allocation72_spill] sm:$0xff] }
 0x785   :  { %v8680_v10 = vmul.f32 0.001953125, %v8678_v57  ;;  %v8681_v1 = vmul.f32 %v15888_v42, %v15888_v42  ;;  %v18525_v57 = vld [vmem:[#allocation68_spill] sm:$0xff]  ;;  %v8715_v6 = vsub.f32 %v15684_v30, %v15888_v42  ;;  %v8716_v12 = vsub.f32 %v15699_v8, %v15888_v42  ;;  %v18534_v30 = vld [vmem:[#allocation74_spill] sm:$0xff]  ;;  %v18535_v8 = vld [vmem:[#allocation73_spill] sm:$0xff] }
 0x786   :  { %v8720_v11 = vsub.f32 %v18532_v15, %v15888_v42  ;;  %v8721_v36 = vsub.f32 %v18533_v25, %v15888_v42  ;;  %v8722_v33 = vsub.f32 %v18534_v30, %v15888_v42  ;;  %v8723_v50 = vsub.f32 %v18535_v8, %v15888_v42  ;;  %v16017_v15 = vld [vmem:[%s17828_s7] ss:$0 sm:$0xff]  ;;  %v18539_v25 = vld [vmem:[#allocation77_spill] sm:$0xff] }
 0x787   :  { %v8682_v7 = vsub.f32 %v8680_v10, %v8681_v1  ;;  %v18529_v1 = vld [vmem:[#allocation11_spill] sm:$0xff]  ;;  %v8727_v30 = vsub.f32 %v18539_v25, %v15888_v42  ;;  %v18544_v63 = vsub.f32 %v18522_v38, %v15888_v42  ;;  %v18545_v25 = vsub.f32 %v18523_v55, %v15888_v42 }
 0x788   :  { %v18540_v8 = vld [vmem:[#allocation79_spill] sm:$0xff]  ;;  %v18549_v55 = vsub.f32 %v18526_v0, %v15888_v42  ;;  %v18552_v0 = vsub.f32 %v15540_v17, %v15888_v42 }
 0x789   :  { %v8683_v54 = vmax.f32 %v8682_v7, 0.0  ;;  %v8713_v7 = vsub.f32 %v15670_v35, %v15888_v42  ;;  %v8718_v35 = vsub.f32 %v15711_v21, %v15888_v42  ;;  %v18537_v21 = vld [vmem:[#allocation75_spill] sm:$0xff]  ;;  %v8728_v19 = vsub.f32 %v18540_v8, %v15888_v42 }
 0x78a   :  { %v8725_v9 = vsub.f32 %v18537_v21, %v15888_v42  ;;  %v18542_v21 = vld [vmem:[#allocation80_spill] sm:$0xff] }
 0x78b   :  { %v8748_v4 = vadd.f32 1e-05, %v8683_v54  ;;  %v8714_v54 = vsub.f32 %v15687_v13, %v15888_v42  ;;  %v18531_v13 = vld [vmem:[#allocation71_spill] sm:$0xff]  ;;  %v8731_v18 = vsub.f32 %v18542_v21, %v15888_v42 }
 0x78c   :  { %v8719_v10 = vsub.f32 %v18531_v13, %v15888_v42  ;;  %v18538_v13 = vld [vmem:[#allocation13_spill] sm:$0xff] }
 0x78d   :  { %10234 = vrsqrt.f32 %v8748_v4  ;;  %v8717_v4 = vsub.f32 %v15694_v44, %v15888_v42  ;;  %v18536_v44 = vld [vmem:[#allocation76_spill] sm:$0xff]  ;;  %v8726_v43 = vsub.f32 %v18538_v13, %v15888_v42  ;;  %v18543_v13 = vsub.f32 %v15879_v22, %v15888_v42  ;;  %v16052_v22 = vld [vmem:[%s17829_s8] ss:$0 sm:$0xff] }
 0x78e   :  { %v8724_v58 = vsub.f32 %v18536_v44, %v15888_v42  ;;  %v18541_v44 = vld [vmem:[#allocation78_spill] sm:$0xff]  ;;  %18547 = vst [vmem:[#allocation26_spill] sm:$0xff] %v16052_v22 }
 0x78f   :  { %v8729_v29 = vsub.f32 %v18541_v44, %v15888_v42  ;;  %v18546_v44 = vsub.f32 %v18524_v49, %v15888_v42  ;;  %v18550_v49 = vsub.f32 %v18527_v16, %v15888_v42  ;;  %v18553_v16 = vsub.f32 %v18529_v1, %v15888_v42 }
 0x79a   :  { %v16012_v24 = vpop.eup %10234 }
 0x79b   :  { %v8812_v48 = vmul.f32 %v16012_v24, %v18543_v13  ;;  %v16035_v40 = vmul.f32 %v16012_v24, %v18544_v63  ;;  %v16041_v8 = vmul.f32 %v16012_v24, %v18545_v25  ;;  %v16047_v21 = vmul.f32 %v16012_v24, %v18546_v44 }
 0x79c   :  { %v18548_v63 = vsub.f32 %v18525_v57, %v15888_v42  ;;  %v16064_v13 = vmul.f32 %v16012_v24, %v18549_v55  ;;  %v16070_v25 = vmul.f32 %v16012_v24, %v18550_v49  ;;  %v18551_v44 = vsub.f32 %v18528_v51, %v15888_v42 }
 0x79d   :  { %v16083_v55 = vmul.f32 %v16012_v24, %v18552_v0  ;;  %v16089_v49 = vmul.f32 %v16012_v24, %v18553_v16  ;;  %v18554_v51 = vsub.f32 %v15550_v61, %v15888_v42  ;;  %v18556_v0 = vsub.f32 %v15564_v46, %v15888_v42 }
 0x79e   :  { %v16058_v38 = vmul.f32 %v16012_v24, %v18548_v63  ;;  %v16076_v57 = vmul.f32 %v16012_v24, %v18551_v44  ;;  %v8883_v63 = vmul.f32 %v16017_v15, %v8812_v48  ;;  %v18555_v48 = vsub.f32 %v18530_v39, %v15888_v42 }
 0x79f   :  { %v16095_v44 = vmul.f32 %v16012_v24, %v18554_v51  ;;  %v16107_v1 = vmul.f32 %v16012_v24, %v18556_v0  ;;  %v18557_v16 = vsub.f32 %v15579_v52, %v15888_v42  ;;  %v18558_v51 = vsub.f32 %v15574_v37, %v15888_v42 }
 0x7a0   :  { %v16101_v17 = vmul.f32 %v16012_v24, %v18555_v48  ;;  %v8954_v48 = vadd.f32 %v16052_v22, %v8883_v63  ;;  %v18559_v46 = vsub.f32 %v15591_v32, %v15888_v42  ;;  %v18560_v52 = vsub.f32 %v15588_v34, %v15888_v42 }
 0x7a1   :  { %v16113_v61 = vmul.f32 %v16012_v24, %v18557_v16  ;;  %v16119_v39 = vmul.f32 %v16012_v24, %v18558_v51  ;;  %v18561_v37 = vsub.f32 %v15603_v3, %v15888_v42  ;;  %v18562_v63 = vsub.f32 %v15598_v56, %v15888_v42 }
 0x7a2   :  { %v16126_v0 = vmul.f32 %v16012_v24, %v18559_v46  ;;  %v16132_v16 = vmul.f32 %v16012_v24, %v18560_v52  ;;  %v18563_v46 = vsub.f32 %v15615_v59, %v15888_v42  ;;  %v18564_v52 = vsub.f32 %v15612_v28, %v15888_v42  ;;  %v9809_v59 = vld [vmem:[%s17821_s0 + $0x331] sm:$0xff] }
 0x7a3   :  { %v16138_v51 = vmul.f32 %v16012_v24, %v18561_v37  ;;  %v16144_v32 = vmul.f32 %v16012_v24, %v18562_v63  ;;  %v18565_v37 = vsub.f32 %v15627_v20, %v15888_v42  ;;  %vm9018_vm2 = vcmp.ge.f32.partialorder %v8954_v48, 0.0  ;;  %v18567_v63 = vld [vmem:[#allocation12_spill] sm:$0xff] }
 0x7a4   :  { %v16150_v34 = vmul.f32 %v16012_v24, %v18563_v46  ;;  %v16156_v3 = vmul.f32 %v16012_v24, %v18564_v52  ;;  %v9082_v22 = vmul.f32 %v8954_v48, %v18567_v63  ;;  %v18568_v46 = vsub.f32 %v15622_v26, %v15888_v42 }
 0x7a5   :  { %v16162_v56 = vmul.f32 %v16012_v24, %v18565_v37  ;;  %v18569_v52 = vsub.f32 %v15639_v41, %v15888_v42  ;;  %v18570_v37 = vsub.f32 %v15636_v2, %v15888_v42 }
 0x7a6   :  { %v16172_v28 = vmul.f32 %v16012_v24, %v18568_v46  ;;  %v18573_v46 = vsub.f32 %v15646_v47, %v15888_v42 }
 0x7a7   :  { %18566 = vst [vmem:[#allocation14_spill] sm:$0xff] %v16162_v56  ;;  %v16178_v20 = vmul.f32 %v16012_v24, %v18569_v52  ;;  %v16184_v63 = vmul.f32 %v16012_v24, %v18570_v37  ;;  %v18572_v56 = vsub.f32 %v15651_v27, %v15888_v42  ;;  %v18574_v52 = vsub.f32 %v15663_v53, %v15888_v42 }
 0x7a8   :  { %v16196_v41 = vmul.f32 %v16012_v24, %v18573_v46  ;;  %v9146_v37 = vsel %vm9018_vm2, %v8954_v48, %v9082_v22  ;;  %v16217_v46 = vmul.f32 %v16012_v24, %v8713_v7  ;;  %v16223_v22 = vmul.f32 %v16012_v24, %v8715_v6 }
 0x7a9   :  { %18571 = vst [vmem:[#allocation27_spill] sm:$0xff] %v16184_v63  ;;  %v16190_v26 = vmul.f32 %v16012_v24, %v18572_v56  ;;  %v16202_v2 = vmul.f32 %v16012_v24, %v18574_v52  ;;  %v18575_v63 = vsub.f32 %v15660_v45, %v15888_v42  ;;  %v18576_v56 = vsub.f32 %v15675_v14, %v15888_v42 }
 0x7aa   :  { %v9274_v53 = vadd.f32 %v9809_v59, %v9146_v37  ;;  %v16220_v52 = vmul.f32 %v16012_v24, %v8714_v54  ;;  %v16226_v45 = vmul.f32 %v16012_v24, %v8716_v12  ;;  %v16229_v48 = vmul.f32 %v16012_v24, %v8717_v4  ;;  %v18582_v37 = vld [vmem:[#allocation82_spill] sm:$0xff] }
 0x7ab   :  { %v16208_v27 = vmul.f32 %v16012_v24, %v18575_v63  ;;  %v16214_v47 = vmul.f32 %v16012_v24, %v18576_v56  ;;  %v16232_v14 = vmul.f32 %v16012_v24, %v8718_v35  ;;  %v16235_v63 = vmul.f32 %v16012_v24, %v8719_v10 }
 0x7ac   :  { %v16238_v7 = vmul.f32 %v16012_v24, %v8720_v11  ;;  %9338 = vst [vmem:[#allocation8 + $0x1f0] sm:$0xff] %v9274_v53  ;;  %v16241_v54 = vmul.f32 %v16012_v24, %v8721_v36  ;;  %v16244_v6 = vmul.f32 %v16012_v24, %v8722_v33  ;;  %v16247_v12 = vmul.f32 %v16012_v24, %v8723_v50  ;;  %v18585_v53 = vld [vmem:[#allocation81_spill] sm:$0xff] }
 0x7ad   :  { %v16250_v4 = vmul.f32 %v16012_v24, %v8724_v58  ;;  %v16253_v35 = vmul.f32 %v16012_v24, %v8725_v9  ;;  %v16256_v10 = vmul.f32 %v16012_v24, %v8726_v43  ;;  %v16259_v11 = vmul.f32 %v16012_v24, %v8727_v30 }
 0x7ae   :  { %v16262_v36 = vmul.f32 %v16012_v24, %v8728_v19  ;;  %v16265_v33 = vmul.f32 %v16012_v24, %v8729_v29  ;;  %v18577_v50 = vsub.f32 %v15783_v23, %v15888_v42  ;;  %v16274_v9 = vmul.f32 %v16012_v24, %v8731_v18 }
 0x7af   :  { %v18578_v43 = vsub.f32 %v15795_v5, %v15888_v42  ;;  %v18579_v19 = vsub.f32 %v15790_v62, %v15888_v42  ;;  %v18580_v23 = vsub.f32 %v15807_v60, %v15888_v42  ;;  %v18581_v18 = vsub.f32 %v15804_v31, %v15888_v42 }
 0x7b0   :  { %v16271_v58 = vmul.f32 %v16012_v24, %v18577_v50  ;;  %v18583_v56 = vsub.f32 %v18582_v37, %v15888_v42  ;;  %v18586_v50 = vsub.f32 %v18585_v53, %v15888_v42 }
 0x7b1   :  { %v16280_v30 = vmul.f32 %v16012_v24, %v18578_v43  ;;  %v16286_v29 = vmul.f32 %v16012_v24, %v18579_v19  ;;  %v16292_v59 = vmul.f32 %v16012_v24, %v18580_v23  ;;  %v16298_v5 = vmul.f32 %v16012_v24, %v18581_v18  ;;  %v18588_v43 = vld [vmem:[#allocation17_spill] sm:$0xff]  ;;  %v18591_v23 = vld [vmem:[#allocation15_spill] sm:$0xff] }
 0x7b2   :  { %v16304_v62 = vmul.f32 %v16012_v24, %v18583_v56  ;;  %v16310_v60 = vmul.f32 %v16012_v24, %v18586_v50  ;;  %v18589_v19 = vsub.f32 %v18588_v43, %v15888_v42  ;;  %v18592_v18 = vsub.f32 %v18591_v23, %v15888_v42  ;;  %v18594_v56 = vld [vmem:[#allocation19_spill] sm:$0xff]  ;;  %v18597_v50 = vld [vmem:[#allocation16_spill] sm:$0xff] }
 0x7b4   :  { %18584 = vst [vmem:[#allocation28_spill] sm:$0xff] %v16304_v62  ;;  %18587 = vst [vmem:[#allocation31_spill] sm:$0xff] %v16310_v60  ;;  %v16316_v31 = vmul.f32 %v16012_v24, %v18589_v19  ;;  %v16322_v37 = vmul.f32 %v16012_v24, %v18592_v18  ;;  %v18595_v62 = vsub.f32 %v18594_v56, %v15888_v42  ;;  %v18600_v19 = vld [vmem:[#allocation23_spill] sm:$0xff]  ;;  %v18603_v18 = vld [vmem:[#allocation21_spill] sm:$0xff] }
 0x7b5   :  { %v18598_v60 = vsub.f32 %v18597_v50, %v15888_v42 }
 0x7b6   :  { %18590 = vst [vmem:[#allocation29_spill] sm:$0xff] %v16316_v31  ;;  %18593 = vst [vmem:[#allocation33_spill] sm:$0xff] %v16322_v37  ;;  %v16328_v53 = vmul.f32 %v16012_v24, %v18595_v62  ;;  %v18601_v31 = vsub.f32 %v18600_v19, %v15888_v42  ;;  %v18604_v37 = vsub.f32 %v18603_v18, %v15888_v42  ;;  %v18605_v62 = vld [vmem:[#allocation25_spill] sm:$0xff] }
 0x7b7   :  { %v16334_v43 = vmul.f32 %v16012_v24, %v18598_v60  ;;  %v18607_v60 = vld [vmem:[#allocation22_spill] sm:$0xff] }
 0x7b8   :  { %18596 = vst [vmem:[#allocation30_spill] sm:$0xff] %v16328_v53  ;;  %v16340_v23 = vmul.f32 %v16012_v24, %v18601_v31  ;;  %v16346_v56 = vmul.f32 %v16012_v24, %v18604_v37  ;;  %v18606_v53 = vsub.f32 %v18605_v62, %v15888_v42  ;;  %v18609_v31 = vld [vmem:[#allocation24_spill] sm:$0xff]  ;;  %v16368_v37 = vmul.f32 %v16017_v15, %v16035_v40 }
 0x7b9   :  { %18599 = vst [vmem:[#allocation35_spill] sm:$0xff] %v16334_v43  ;;  %v18608_v43 = vsub.f32 %v18607_v60, %v15888_v42  ;;  %v16376_v62 = vmul.f32 %v16017_v15, %v16047_v21  ;;  %v16388_v40 = vmul.f32 %v16017_v15, %v16070_v25  ;;  %v16400_v21 = vmul.f32 %v16017_v15, %v16089_v49 }
 0x7ba   :  { %18602 = vst [vmem:[#allocation32_spill] sm:$0xff] %v16340_v23  ;;  %v16352_v50 = vmul.f32 %v16012_v24, %v18606_v53  ;;  %v18610_v23 = vsub.f32 %v18609_v31, %v15888_v42  ;;  %v16372_v53 = vmul.f32 %v16017_v15, %v16041_v8  ;;  %v16392_v42 = vmul.f32 %v16017_v15, %v16076_v57 }
 0x7bb   :  { %v16358_v19 = vmul.f32 %v16012_v24, %v18608_v43  ;;  %v16380_v43 = vmul.f32 %v16017_v15, %v16058_v38  ;;  %v16396_v8 = vmul.f32 %v16017_v15, %v16083_v55  ;;  %v16404_v38 = vmul.f32 %v16017_v15, %v16095_v44 }
 0x7bc   :  { %v16364_v18 = vmul.f32 %v16012_v24, %v18610_v23  ;;  %v16384_v24 = vmul.f32 %v16017_v15, %v16064_v13  ;;  %v16408_v13 = vmul.f32 %v16017_v15, %v16101_v17  ;;  %v16412_v25 = vmul.f32 %v16017_v15, %v16107_v1  ;;  %v18612_v23 = vld [vmem:[#allocation27_spill] sm:$0xff] }
 0x7bd   :  { %v16416_v57 = vmul.f32 %v16017_v15, %v16113_v61  ;;  %v16420_v55 = vmul.f32 %v16017_v15, %v16119_v39  ;;  %v16424_v49 = vmul.f32 %v16017_v15, %v16126_v0  ;;  %v16428_v44 = vmul.f32 %v16017_v15, %v16132_v16  ;;  %v18611_v0 = vld [vmem:[#allocation14_spill] sm:$0xff] }
 0x7be   :  { %v16432_v17 = vmul.f32 %v16017_v15, %v16138_v51  ;;  %v16436_v1 = vmul.f32 %v16017_v15, %v16144_v32  ;;  %v16440_v61 = vmul.f32 %v16017_v15, %v16150_v34  ;;  %v16444_v39 = vmul.f32 %v16017_v15, %v16156_v3 }
 0x7bf   :  { %v16448_v16 = vmul.f32 %v16017_v15, %v18611_v0  ;;  %v16452_v51 = vmul.f32 %v16017_v15, %v16172_v28  ;;  %v16456_v32 = vmul.f32 %v16017_v15, %v16178_v20  ;;  %v16460_v34 = vmul.f32 %v16017_v15, %v18612_v23  ;;  %v18617_v0 = vld [vmem:[#allocation28_spill] sm:$0xff]  ;;  %v18619_v23 = vld [vmem:[#allocation31_spill] sm:$0xff] }
 0x7c0   :  { %v16464_v3 = vmul.f32 %v16017_v15, %v16190_v26  ;;  %v16468_v60 = vmul.f32 %v16017_v15, %v16196_v41  ;;  %v16472_v28 = vmul.f32 %v16017_v15, %v16202_v2  ;;  %v16476_v20 = vmul.f32 %v16017_v15, %v16208_v27 }
 0x7c1   :  { %v16480_v31 = vmul.f32 %v16017_v15, %v16214_v47  ;;  %v16484_v26 = vmul.f32 %v16017_v15, %v16217_v46  ;;  %v16488_v41 = vmul.f32 %v16017_v15, %v16220_v52  ;;  %v16492_v2 = vmul.f32 %v16017_v15, %v16223_v22 }
 0x7c2   :  { %v16496_v27 = vmul.f32 %v16017_v15, %v16226_v45  ;;  %v16500_v47 = vmul.f32 %v16017_v15, %v16229_v48  ;;  %v16504_v46 = vmul.f32 %v16017_v15, %v16232_v14  ;;  %v16508_v52 = vmul.f32 %v16017_v15, %v16235_v63 }
 0x7c3   :  { %v16512_v22 = vmul.f32 %v16017_v15, %v16238_v7  ;;  %v16516_v45 = vmul.f32 %v16017_v15, %v16241_v54  ;;  %v16520_v48 = vmul.f32 %v16017_v15, %v16244_v6  ;;  %v16524_v14 = vmul.f32 %v16017_v15, %v16247_v12 }
 0x7c4   :  { %v16528_v63 = vmul.f32 %v16017_v15, %v16250_v4  ;;  %v16532_v7 = vmul.f32 %v16017_v15, %v16253_v35  ;;  %v16536_v54 = vmul.f32 %v16017_v15, %v16256_v10  ;;  %v16540_v6 = vmul.f32 %v16017_v15, %v16259_v11 }
 0x7c5   :  { %v16544_v12 = vmul.f32 %v16017_v15, %v16262_v36  ;;  %v16548_v4 = vmul.f32 %v16017_v15, %v16265_v33  ;;  %v16552_v35 = vmul.f32 %v16017_v15, %v16271_v58  ;;  %v16556_v10 = vmul.f32 %v16017_v15, %v16274_v9 }
 0x7c6   :  { %v16560_v11 = vmul.f32 %v16017_v15, %v16280_v30  ;;  %v16564_v36 = vmul.f32 %v16017_v15, %v16286_v29  ;;  %v16568_v33 = vmul.f32 %v16017_v15, %v16292_v59  ;;  %v16572_v58 = vmul.f32 %v16017_v15, %v16298_v5 }
 0x7c7   :  { %v16576_v9 = vmul.f32 %v16017_v15, %v18617_v0  ;;  %v16580_v30 = vmul.f32 %v16017_v15, %v18619_v23 }
 0x7c8   :  { %18613 = vst [vmem:[#allocation45_spill] sm:$0xff] %v16560_v11  ;;  %18614 = vst [vmem:[#allocation46_spill] sm:$0xff] %v16564_v36  ;;  %v18620_v11 = vld [vmem:[#allocation29_spill] sm:$0xff] }
 0x7c9   :  { %18615 = vst [vmem:[#allocation47_spill] sm:$0xff] %v16568_v33  ;;  %18616 = vst [vmem:[#allocation34_spill] sm:$0xff] %v16572_v58  ;;  %v16584_v29 = vmul.f32 %v16017_v15, %v18620_v11  ;;  %v18621_v36 = vld [vmem:[#allocation33_spill] sm:$0xff]  ;;  %v18622_v33 = vld [vmem:[#allocation30_spill] sm:$0xff]  ;;  %v16604_v11 = vmul.f32 %v16017_v15, %v16346_v56 }
 0x7ca   :  { %18618 = vst [vmem:[#allocation48_spill] sm:$0xff] %v16576_v9  ;;  %v16588_v59 = vmul.f32 %v16017_v15, %v18621_v36  ;;  %v16592_v5 = vmul.f32 %v16017_v15, %v18622_v33  ;;  %v18623_v58 = vld [vmem:[#allocation35_spill] sm:$0xff]  ;;  %v18625_v9 = vld [vmem:[#allocation32_spill] sm:$0xff]  ;;  %v16608_v36 = vmul.f32 %v16017_v15, %v16352_v50  ;;  %v16612_v33 = vmul.f32 %v16017_v15, %v16358_v19 }
 0x7cb   :  { %v16596_v0 = vmul.f32 %v16017_v15, %v18623_v58  ;;  %v16600_v23 = vmul.f32 %v16017_v15, %v18625_v9  ;;  %v16616_v58 = vmul.f32 %v16017_v15, %v16364_v18 }
 0x7cd   :  { %18624 = vst [vmem:[#allocation18_spill] sm:$0xff] %v16596_v0  ;;  %v18626_v0 = vld [vmem:[#allocation26_spill] sm:$0xff] }
 0x7ce   :  { %v16620_v9 = vadd.f32 %v18626_v0, %v16368_v37  ;;  %v16624_v56 = vadd.f32 %v18626_v0, %v16372_v53  ;;  %v16628_v50 = vadd.f32 %v18626_v0, %v16376_v62  ;;  %v16632_v19 = vadd.f32 %v18626_v0, %v16380_v43 }
 0x7cf   :  { %v16636_v15 = vadd.f32 %v18626_v0, %v16384_v24  ;;  %v16640_v18 = vadd.f32 %v18626_v0, %v16388_v40  ;;  %v16644_v37 = vadd.f32 %v18626_v0, %v16392_v42  ;;  %v16648_v53 = vadd.f32 %v18626_v0, %v16396_v8 }
 0x7d0   :  { %v16652_v62 = vadd.f32 %v18626_v0, %v16400_v21  ;;  %v16656_v43 = vadd.f32 %v18626_v0, %v16404_v38  ;;  %v16660_v24 = vadd.f32 %v18626_v0, %v16408_v13  ;;  %v16664_v40 = vadd.f32 %v18626_v0, %v16412_v25 }
 0x7d1   :  { %v16668_v42 = vadd.f32 %v18626_v0, %v16416_v57  ;;  %v16672_v8 = vadd.f32 %v18626_v0, %v16420_v55  ;;  %v16676_v21 = vadd.f32 %v18626_v0, %v16424_v49  ;;  %v16680_v38 = vadd.f32 %v18626_v0, %v16428_v44 }
 0x7d2   :  { %v16684_v13 = vadd.f32 %v18626_v0, %v16432_v17  ;;  %v16688_v25 = vadd.f32 %v18626_v0, %v16436_v1  ;;  %v16692_v57 = vadd.f32 %v18626_v0, %v16440_v61  ;;  %v16696_v55 = vadd.f32 %v18626_v0, %v16444_v39 }
 0x7d3   :  { %v16700_v49 = vadd.f32 %v18626_v0, %v16448_v16  ;;  %v16704_v44 = vadd.f32 %v18626_v0, %v16452_v51  ;;  %v16708_v17 = vadd.f32 %v18626_v0, %v16456_v32  ;;  %v16712_v1 = vadd.f32 %v18626_v0, %v16460_v34 }
 0x7d4   :  { %v16716_v61 = vadd.f32 %v18626_v0, %v16464_v3  ;;  %v16720_v39 = vadd.f32 %v18626_v0, %v16468_v60  ;;  %v16724_v16 = vadd.f32 %v18626_v0, %v16472_v28  ;;  %v16728_v51 = vadd.f32 %v18626_v0, %v16476_v20 }
 0x7d5   :  { %18627 = vst [vmem:[#allocation49_spill] sm:$0xff] %v16704_v44  ;;  %18628 = vst [vmem:[#allocation50_spill] sm:$0xff] %v16708_v17  ;;  %v16732_v32 = vadd.f32 %v18626_v0, %v16480_v31  ;;  %v16736_v34 = vadd.f32 %v18626_v0, %v16484_v26  ;;  %v16740_v3 = vadd.f32 %v18626_v0, %v16488_v41  ;;  %vm8956_vm3 = vcmp.ge.f32.partialorder %v16620_v9, 0.0 }
 0x7d6   :  { %18629 = vst [vmem:[#allocation20_spill] sm:$0xff] %v16716_v61  ;;  %18630 = vst [vmem:[#allocation36_spill] sm:$0xff] %v16720_v39  ;;  %v16744_v60 = vadd.f32 %v18626_v0, %v16492_v2  ;;  %v16748_v28 = vadd.f32 %v18626_v0, %v16496_v27  ;;  %v16752_v20 = vadd.f32 %v18626_v0, %v16500_v47  ;;  %vm8957_vm4 = vcmp.ge.f32.partialorder %v16624_v56, 0.0 }
 0x7d7   :  { %18631 = vst [vmem:[#allocation51_spill] sm:$0xff] %v16736_v34  ;;  %v16756_v31 = vadd.f32 %v18626_v0, %v16504_v46  ;;  %v16760_v26 = vadd.f32 %v18626_v0, %v16508_v52  ;;  %v16764_v41 = vadd.f32 %v18626_v0, %v16512_v22  ;;  %v16768_v2 = vadd.f32 %v18626_v0, %v16516_v45 }
 0x7d8   :  { %v16772_v27 = vadd.f32 %v18626_v0, %v16520_v48  ;;  %v16776_v47 = vadd.f32 %v18626_v0, %v16524_v14  ;;  %v16780_v46 = vadd.f32 %v18626_v0, %v16528_v63  ;;  %v16784_v52 = vadd.f32 %v18626_v0, %v16532_v7 }
 0x7d9   :  { %18632 = vst [vmem:[#allocation53_spill] sm:$0xff] %v16768_v2  ;;  %v16788_v22 = vadd.f32 %v18626_v0, %v16536_v54  ;;  %v16792_v45 = vadd.f32 %v18626_v0, %v16540_v6  ;;  %v16796_v48 = vadd.f32 %v18626_v0, %v16544_v12  ;;  %v16800_v14 = vadd.f32 %v18626_v0, %v16548_v4  ;;  %v18638_v54 = vld [vmem:[#allocation45_spill] sm:$0xff] }
 0x7da   :  { %v16804_v63 = vadd.f32 %v18626_v0, %v16552_v35  ;;  %v16808_v7 = vadd.f32 %v18626_v0, %v16556_v10  ;;  %v16812_v6 = vadd.f32 %v18626_v0, %v18638_v54  ;;  %v16832_v54 = vadd.f32 %v18626_v0, %v16580_v30 }
 0x7db   :  { %18633 = vst [vmem:[#allocation52_spill] sm:$0xff] %v16788_v22  ;;  %18634 = vst [vmem:[#allocation54_spill] sm:$0xff] %v16792_v45  ;;  %v18639_v45 = vld [vmem:[#allocation46_spill] sm:$0xff]  ;;  %v16852_v30 = vadd.f32 %v18626_v0, %v16600_v23  ;;  %vm8958_vm5 = vcmp.ge.f32.partialorder %v16628_v50, 0.0  ;;  %vm8959_vm6 = vcmp.ge.f32.partialorder %v16632_v19, 0.0  ;;  %vm8960_vm12 = vcmp.ge.f32.partialorder %v16636_v15, 0.0 }
 0x7dc   :  { %18635 = vst [vmem:[#allocation37_spill] sm:$0xff] %v16796_v48  ;;  %18636 = vst [vmem:[#allocation56_spill] sm:$0xff] %v16800_v14  ;;  %v16816_v12 = vadd.f32 %v18626_v0, %v18639_v45  ;;  %v18640_v48 = vld [vmem:[#allocation47_spill] sm:$0xff]  ;;  %v18641_v14 = vld [vmem:[#allocation34_spill] sm:$0xff]  ;;  %v16836_v45 = vadd.f32 %v18626_v0, %v16584_v29  ;;  %v16856_v29 = vadd.f32 %v18626_v0, %v16604_v11  ;;  %vm8961_vm11 = vcmp.ge.f32.partialorder %v16640_v18, 0.0 }
 0x7dd   :  { %18637 = vst [vmem:[#allocation55_spill] sm:$0xff] %v16804_v63  ;;  %v16820_v4 = vadd.f32 %v18626_v0, %v18640_v48  ;;  %v16824_v35 = vadd.f32 %v18626_v0, %v18641_v14  ;;  %v18643_v63 = vld [vmem:[#allocation48_spill] sm:$0xff]  ;;  %v16840_v48 = vadd.f32 %v18626_v0, %v16588_v59  ;;  %v16844_v14 = vadd.f32 %v18626_v0, %v16592_v5 }
 0x7de   :  { %v16828_v10 = vadd.f32 %v18626_v0, %v18643_v63  ;;  %v16860_v59 = vadd.f32 %v18626_v0, %v16608_v36  ;;  %v16864_v5 = vadd.f32 %v18626_v0, %v16612_v33  ;;  %vm8962_vm9 = vcmp.ge.f32.partialorder %v16644_v37, 0.0 }
 0x7df   :  { %18642 = vst [vmem:[#allocation57_spill] sm:$0xff] %v16824_v35  ;;  %v18644_v35 = vld [vmem:[#allocation18_spill] sm:$0xff]  ;;  %vm8963_vm7 = vcmp.ge.f32.partialorder %v16648_v53, 0.0  ;;  %vm8964_vm8 = vcmp.ge.f32.partialorder %v16652_v62, 0.0  ;;  %vm8965_vm10 = vcmp.ge.f32.partialorder %v16656_v43, 0.0  ;;  %vm8966_vm13 = vcmp.ge.f32.partialorder %v16660_v24, 0.0 }
 0x7e0   :  { %v16848_v63 = vadd.f32 %v18626_v0, %v18644_v35  ;;  %v16868_v35 = vadd.f32 %v18626_v0, %v16616_v58  ;;  %vm8967_vm14 = vcmp.ge.f32.partialorder %v16664_v40, 0.0  ;;  %vm9003_vm1 = vcmp.ge.f32.partialorder %v16808_v7, 0.0 }
 0x7e1   :  { %vm9004_vm0 = vcmp.ge.f32.partialorder %v16812_v6, 0.0  ;;  %vm9005_vm15 = vcmp.ge.f32.partialorder %v16816_v12, 0.0 }
 0x7e2   :  { %18645 = vst [vmem:[#allocation38_spill] sm:$0xff] %v16848_v63  ;;  %v18646_v63 = vld [vmem:[#allocation12_spill] sm:$0xff] }
 0x7e3   :  { %v16872_v23 = vmul.f32 %v16620_v9, %v18646_v63  ;;  %v16876_v11 = vmul.f32 %v16624_v56, %v18646_v63  ;;  %v16880_v36 = vmul.f32 %v16628_v50, %v18646_v63  ;;  %v16884_v33 = vmul.f32 %v16632_v19, %v18646_v63 }
 0x7e4   :  { %v16888_v0 = vmul.f32 %v16636_v15, %v18646_v63  ;;  %v16892_v58 = vmul.f32 %v16640_v18, %v18646_v63 }
 0x7e5   :  { %18647 = vst [vmem:[#allocation59_spill] sm:$0xff] %v16872_v23  ;;  %18648 = vst [vmem:[#allocation58_spill] sm:$0xff] %v16876_v11  ;;  %v16896_v23 = vmul.f32 %v16644_v37, %v18646_v63  ;;  %v16900_v11 = vmul.f32 %v16648_v53, %v18646_v63 }
 0x7e6   :  { %18649 = vst [vmem:[#allocation60_spill] sm:$0xff] %v16880_v36  ;;  %18650 = vst [vmem:[#allocation61_spill] sm:$0xff] %v16884_v33  ;;  %v16904_v36 = vmul.f32 %v16652_v62, %v18646_v63  ;;  %v16908_v33 = vmul.f32 %v16656_v43, %v18646_v63 }
 0x7e7   :  { %18651 = vst [vmem:[#allocation62_spill] sm:$0xff] %v16888_v0  ;;  %18652 = vst [vmem:[#allocation64_spill] sm:$0xff] %v16892_v58  ;;  %v16912_v0 = vmul.f32 %v16660_v24, %v18646_v63  ;;  %v16916_v58 = vmul.f32 %v16664_v40, %v18646_v63 }
 0x7e8   :  { %18653 = vst [vmem:[#allocation63_spill] sm:$0xff] %v16896_v23  ;;  %18654 = vst [vmem:[#allocation65_spill] sm:$0xff] %v16900_v11  ;;  %v16920_v23 = vmul.f32 %v16668_v42, %v18646_v63  ;;  %v16924_v11 = vmul.f32 %v16672_v8, %v18646_v63 }
 0x7e9   :  { %18655 = vst [vmem:[#allocation67_spill] sm:$0xff] %v16904_v36  ;;  %18656 = vst [vmem:[#allocation39_spill] sm:$0xff] %v16908_v33  ;;  %v16928_v36 = vmul.f32 %v16676_v21, %v18646_v63  ;;  %v16932_v33 = vmul.f32 %v16680_v38, %v18646_v63 }
 0x7ea   :  { %18657 = vst [vmem:[#allocation40_spill] sm:$0xff] %v16912_v0  ;;  %18658 = vst [vmem:[#allocation66_spill] sm:$0xff] %v16920_v23  ;;  %v16936_v0 = vmul.f32 %v16684_v13, %v18646_v63  ;;  %v16942_v23 = vmul.f32 %v16688_v25, %v18646_v63 }
 0x7eb   :  { %18659 = vst [vmem:[#allocation41_spill] sm:$0xff] %v16924_v11  ;;  %18660 = vst [vmem:[#allocation68_spill] sm:$0xff] %v16928_v36  ;;  %v16946_v11 = vmul.f32 %v16692_v57, %v18646_v63  ;;  %v16950_v36 = vmul.f32 %v16696_v55, %v18646_v63 }
 0x7ec   :  { %18661 = vst [vmem:[#allocation69_spill] sm:$0xff] %v16932_v33  ;;  %18662 = vst [vmem:[#allocation42_spill] sm:$0xff] %v16942_v23  ;;  %v16954_v33 = vmul.f32 %v16700_v49, %v18646_v63  ;;  %v16962_v23 = vmul.f32 %v16704_v44, %v18646_v63 }
 0x7ed   :  { %18663 = vst [vmem:[#allocation43_spill] sm:$0xff] %v16946_v11  ;;  %18664 = vst [vmem:[#allocation11_spill] sm:$0xff] %v16950_v36  ;;  %v16966_v11 = vmul.f32 %v16708_v17, %v18646_v63  ;;  %v16970_v36 = vmul.f32 %v16712_v1, %v18646_v63 }
 0x7ee   :  { %18665 = vst [vmem:[#allocation70_spill] sm:$0xff] %v16954_v33  ;;  %18666 = vst [vmem:[#allocation71_spill] sm:$0xff] %v16962_v23  ;;  %v16974_v33 = vmul.f32 %v16716_v61, %v18646_v63  ;;  %v16982_v23 = vmul.f32 %v16720_v39, %v18646_v63 }
 0x7ef   :  { %18667 = vst [vmem:[#allocation72_spill] sm:$0xff] %v16966_v11  ;;  %18668 = vst [vmem:[#allocation44_spill] sm:$0xff] %v16970_v36  ;;  %v16986_v11 = vmul.f32 %v16724_v16, %v18646_v63  ;;  %v16990_v36 = vmul.f32 %v16728_v51, %v18646_v63 }
 0x7f0   :  { %18669 = vst [vmem:[#allocation74_spill] sm:$0xff] %v16974_v33  ;;  %18670 = vst [vmem:[#allocation73_spill] sm:$0xff] %v16982_v23  ;;  %v16994_v33 = vmul.f32 %v16732_v32, %v18646_v63  ;;  %v17002_v23 = vmul.f32 %v16736_v34, %v18646_v63 }
 0x7f1   :  { %18671 = vst [vmem:[#allocation76_spill] sm:$0xff] %v16986_v11  ;;  %18672 = vst [vmem:[#allocation75_spill] sm:$0xff] %v16990_v36  ;;  %v17006_v11 = vmul.f32 %v16740_v3, %v18646_v63  ;;  %v17010_v36 = vmul.f32 %v16744_v60, %v18646_v63 }
 0x7f2   :  { %18673 = vst [vmem:[#allocation13_spill] sm:$0xff] %v16994_v33  ;;  %18674 = vst [vmem:[#allocation77_spill] sm:$0xff] %v17002_v23  ;;  %v17014_v33 = vmul.f32 %v16748_v28, %v18646_v63  ;;  %v17022_v23 = vmul.f32 %v16752_v20, %v18646_v63 }
 0x7f3   :  { %18675 = vst [vmem:[#allocation79_spill] sm:$0xff] %v17006_v11  ;;  %18676 = vst [vmem:[#allocation78_spill] sm:$0xff] %v17010_v36  ;;  %v17026_v11 = vmul.f32 %v16756_v31, %v18646_v63  ;;  %v17030_v36 = vmul.f32 %v16760_v26, %v18646_v63 }
 0x7f4   :  { %18677 = vst [vmem:[#allocation80_spill] sm:$0xff] %v17014_v33  ;;  %18678 = vst [vmem:[#allocation82_spill] sm:$0xff] %v17022_v23  ;;  %v17034_v33 = vmul.f32 %v16764_v41, %v18646_v63  ;;  %v17042_v23 = vmul.f32 %v16768_v2, %v18646_v63 }
 0x7f5   :  { %18679 = vst [vmem:[#allocation81_spill] sm:$0xff] %v17026_v11  ;;  %18680 = vst [vmem:[#allocation17_spill] sm:$0xff] %v17030_v36  ;;  %v17046_v11 = vmul.f32 %v16772_v27, %v18646_v63  ;;  %v17050_v36 = vmul.f32 %v16776_v47, %v18646_v63 }
 0x7f6   :  { %18681 = vst [vmem:[#allocation15_spill] sm:$0xff] %v17034_v33  ;;  %18682 = vst [vmem:[#allocation19_spill] sm:$0xff] %v17042_v23  ;;  %v17054_v33 = vmul.f32 %v16780_v46, %v18646_v63  ;;  %v17062_v23 = vmul.f32 %v16784_v52, %v18646_v63 }
 0x7f7   :  { %18683 = vst [vmem:[#allocation16_spill] sm:$0xff] %v17046_v11  ;;  %18684 = vst [vmem:[#allocation23_spill] sm:$0xff] %v17050_v36  ;;  %v17066_v11 = vmul.f32 %v16788_v22, %v18646_v63  ;;  %v18688_v36 = vld [vmem:[#allocation54_spill] sm:$0xff] }
 0x7f8   :  { %18685 = vst [vmem:[#allocation21_spill] sm:$0xff] %v17054_v33  ;;  %18686 = vst [vmem:[#allocation25_spill] sm:$0xff] %v17062_v23  ;;  %v17070_v44 = vmul.f32 %v18688_v36, %v18646_v63  ;;  %v18690_v33 = vld [vmem:[#allocation37_spill] sm:$0xff]  ;;  %v18692_v23 = vld [vmem:[#allocation56_spill] sm:$0xff] }
 0x7f9   :  { %18687 = vst [vmem:[#allocation22_spill] sm:$0xff] %v17066_v11  ;;  %v17074_v17 = vmul.f32 %v18690_v33, %v18646_v63  ;;  %v17082_v39 = vmul.f32 %v18692_v23, %v18646_v63  ;;  %v18694_v11 = vld [vmem:[#allocation55_spill] sm:$0xff]  ;;  %v18715_v22 = vld [vmem:[#allocation58_spill] sm:$0xff] }
 0x7fa   :  { %18689 = vst [vmem:[#allocation24_spill] sm:$0xff] %v17070_v44  ;;  %v17086_v61 = vmul.f32 %v18694_v11, %v18646_v63  ;;  %v17090_v44 = vmul.f32 %v16808_v7, %v18646_v63  ;;  %v17178_v33 = vsel %vm8957_vm4, %v16624_v56, %v18715_v22  ;;  %vm9002_vm2 = vcmp.ge.f32.partialorder %v18694_v11, 0.0  ;;  %v18719_v22 = vld [vmem:[#allocation62_spill] sm:$0xff] }
 0x7fb   :  { %18691 = vst [vmem:[#allocation14_spill] sm:$0xff] %v17074_v17  ;;  %18693 = vst [vmem:[#allocation27_spill] sm:$0xff] %v17082_v39  ;;  %v17094_v17 = vmul.f32 %v16812_v6, %v18646_v63  ;;  %v17102_v39 = vmul.f32 %v16816_v12, %v18646_v63 }
 0x7fc   :  { %18695 = vst [vmem:[#allocation28_spill] sm:$0xff] %v17086_v61  ;;  %18696 = vst [vmem:[#allocation31_spill] sm:$0xff] %v17090_v44  ;;  %v17106_v61 = vmul.f32 %v16820_v4, %v18646_v63  ;;  %v18700_v44 = vld [vmem:[#allocation57_spill] sm:$0xff] }
 0x7fd   :  { %18697 = vst [vmem:[#allocation29_spill] sm:$0xff] %v17094_v17  ;;  %18698 = vst [vmem:[#allocation33_spill] sm:$0xff] %v17102_v39  ;;  %v17110_v34 = vmul.f32 %v18700_v44, %v18646_v63  ;;  %v17114_v17 = vmul.f32 %v16828_v10, %v18646_v63  ;;  %v17122_v39 = vmul.f32 %v16832_v54, %v18646_v63  ;;  %vm9007_vm4 = vcmp.ge.f32.partialorder %v18700_v44, 0.0 }
 0x7fe   :  { %18699 = vst [vmem:[#allocation30_spill] sm:$0xff] %v17106_v61  ;;  %v17126_v61 = vmul.f32 %v16836_v45, %v18646_v63  ;;  %18716 = vst [vmem:[#allocation55_spill] sm:$0xff] %v17178_v33  ;;  %v17200_v33 = vsel %vm8960_vm12, %v16636_v15, %v18719_v22  ;;  %v18722_v15 = vld [vmem:[#allocation65_spill] sm:$0xff]  ;;  %vm9010_vm12 = vcmp.ge.f32.partialorder %v16836_v45, 0.0 }
 0x7ff   :  { %18701 = vst [vmem:[#allocation35_spill] sm:$0xff] %v17110_v34  ;;  %18702 = vst [vmem:[#allocation32_spill] sm:$0xff] %v17114_v17  ;;  %v17130_v34 = vmul.f32 %v16840_v48, %v18646_v63  ;;  %v17134_v17 = vmul.f32 %v16844_v14, %v18646_v63 }
 0x800   :  { %18703 = vst [vmem:[#allocation26_spill] sm:$0xff] %v17122_v39  ;;  %18704 = vst [vmem:[#allocation45_spill] sm:$0xff] %v17126_v61  ;;  %v18707_v39 = vld [vmem:[#allocation38_spill] sm:$0xff]  ;;  %v17146_v61 = vmul.f32 %v16852_v30, %v18646_v63 }
 0x801   :  { %18705 = vst [vmem:[#allocation46_spill] sm:$0xff] %v17130_v34  ;;  %18706 = vst [vmem:[#allocation47_spill] sm:$0xff] %v17134_v17  ;;  %v17142_v2 = vmul.f32 %v18707_v39, %v18646_v63  ;;  %v17150_v34 = vmul.f32 %v16856_v29, %v18646_v63  ;;  %v17154_v17 = vmul.f32 %v16860_v59, %v18646_v63 }
 0x802   :  { %18709 = vst [vmem:[#allocation48_spill] sm:$0xff] %v17146_v61  ;;  %v17166_v61 = vmul.f32 %v16868_v35, %v18646_v63 }
 0x803   :  { %18708 = vst [vmem:[#allocation34_spill] sm:$0xff] %v17142_v2  ;;  %18710 = vst [vmem:[#allocation18_spill] sm:$0xff] %v17150_v34  ;;  %v17162_v2 = vmul.f32 %v16864_v5, %v18646_v63  ;;  %v18713_v34 = vld [vmem:[#allocation59_spill] sm:$0xff]  ;;  %v18717_v63 = vld [vmem:[#allocation60_spill] sm:$0xff] }
 0x804   :  { %18711 = vst [vmem:[#allocation12_spill] sm:$0xff] %v17154_v17  ;;  %18712 = vst [vmem:[#allocation54_spill] sm:$0xff] %v17166_v61  ;;  %v17172_v17 = vsel %vm8956_vm3, %v16620_v9, %v18713_v34  ;;  %v17188_v9 = vsel %vm8958_vm5, %v16628_v50, %v18717_v63  ;;  %v18718_v34 = vld [vmem:[#allocation61_spill] sm:$0xff]  ;;  %vm9006_vm3 = vcmp.ge.f32.partialorder %v16820_v4, 0.0  ;;  %vm9008_vm5 = vcmp.ge.f32.partialorder %v16828_v10, 0.0  ;;  %v18721_v50 = vld [vmem:[#allocation63_spill] sm:$0xff] }
 0x805   :  { %18714 = vst [vmem:[#allocation56_spill] sm:$0xff] %v17172_v17  ;;  %v17194_v56 = vsel %vm8959_vm6, %v16632_v19, %v18718_v34  ;;  %v18720_v17 = vld [vmem:[#allocation64_spill] sm:$0xff]  ;;  %vm9009_vm6 = vcmp.ge.f32.partialorder %v16832_v54, 0.0  ;;  %v17216_v19 = vsel %vm8962_vm9, %v16644_v37, %v18721_v50  ;;  %v18724_v34 = vld [vmem:[#allocation39_spill] sm:$0xff]  ;;  %vm18738_vm9 = vcmp.ge.f32.partialorder %v16692_v57, 0.0 }
 0x806   :  { %v17206_v61 = vsel %vm8961_vm11, %v16640_v18, %v18720_v17  ;;  %v17222_v18 = vsel %vm8963_vm7, %v16648_v53, %v18722_v15  ;;  %v18723_v17 = vld [vmem:[#allocation67_spill] sm:$0xff]  ;;  %v17234_v22 = vsel %vm8965_vm10, %v16656_v43, %v18724_v34  ;;  %v18725_v37 = vld [vmem:[#allocation40_spill] sm:$0xff]  ;;  %v18726_v43 = vld [vmem:[#allocation66_spill] sm:$0xff]  ;;  %vm18729_vm10 = vcmp.ge.f32.partialorder %v16672_v8, 0.0 }
 0x807   :  { %v17228_v63 = vsel %vm8964_vm8, %v16652_v62, %v18723_v17  ;;  %v17244_v53 = vsel %vm8966_vm13, %v16660_v24, %v18725_v37  ;;  %v17250_v62 = vsel %vm8967_vm14, %v16664_v40, %v16916_v58  ;;  %vm18727_vm8 = vcmp.ge.f32.partialorder %v16668_v42, 0.0  ;;  %v18728_v15 = vld [vmem:[#allocation41_spill] sm:$0xff]  ;;  %v18730_v24 = vld [vmem:[#allocation68_spill] sm:$0xff]  ;;  %v18735_v34 = vld [vmem:[#allocation42_spill] sm:$0xff] }
 0x808   :  { %v17256_v50 = vsel %vm18727_vm8, %v16668_v42, %v18726_v43  ;;  %v17262_v17 = vsel %vm18729_vm10, %v16672_v8, %v18728_v15  ;;  %vm9014_vm13 = vcmp.ge.f32.partialorder %v16852_v30, 0.0  ;;  %vm9015_vm7 = vcmp.ge.f32.partialorder %v16856_v29, 0.0  ;;  %v18732_v42 = vld [vmem:[#allocation69_spill] sm:$0xff]  ;;  %v18739_v43 = vld [vmem:[#allocation11_spill] sm:$0xff] }
 0x809   :  { %vm18731_vm11 = vcmp.ge.f32.partialorder %v16676_v21, 0.0  ;;  %vm18733_vm8 = vcmp.ge.f32.partialorder %v16680_v38, 0.0  ;;  %vm18734_vm10 = vcmp.ge.f32.partialorder %v16684_v13, 0.0  ;;  %vm18736_vm14 = vcmp.ge.f32.partialorder %v16688_v25, 0.0  ;;  %v18744_v15 = vld [vmem:[#allocation71_spill] sm:$0xff] }
 0x80a   :  { %v17272_v40 = vsel %vm18731_vm11, %v16676_v21, %v18730_v24  ;;  %v17278_v8 = vsel %vm18733_vm8, %v16680_v38, %v18732_v42  ;;  %v17284_v58 = vsel %vm18734_vm10, %v16684_v13, %v16936_v0  ;;  %v17290_v37 = vsel %vm18736_vm14, %v16688_v25, %v18735_v34  ;;  %v18737_v21 = vld [vmem:[#allocation43_spill] sm:$0xff]  ;;  %v18741_v0 = vld [vmem:[#allocation70_spill] sm:$0xff]  ;;  %v18745_v24 = vld [vmem:[#allocation49_spill] sm:$0xff] }
 0x80b   :  { %vm9019_vm11 = vcmp.ge.f32.partialorder %v16868_v35, 0.0  ;;  %v17297_v38 = vsel %vm18738_vm9, %v16692_v57, %v18737_v21  ;;  %vm18740_vm8 = vcmp.ge.f32.partialorder %v16696_v55, 0.0  ;;  %vm18742_vm10 = vcmp.ge.f32.partialorder %v16700_v49, 0.0  ;;  %v18748_v57 = vld [vmem:[#allocation72_spill] sm:$0xff]  ;;  %v18749_v34 = vld [vmem:[#allocation50_spill] sm:$0xff] }
 0x80c   :  { %v17303_v13 = vsel %vm18740_vm8, %v16696_v55, %v18739_v43  ;;  %v17309_v25 = vsel %vm18742_vm10, %v16700_v49, %v18741_v0  ;;  %vm18746_vm14 = vcmp.ge.f32.partialorder %v18745_v24, 0.0  ;;  %vm18750_vm9 = vcmp.ge.f32.partialorder %v18749_v34, 0.0  ;;  %v18751_v55 = vld [vmem:[#allocation44_spill] sm:$0xff]  ;;  %v18753_v49 = vld [vmem:[#allocation74_spill] sm:$0xff] }
 0x80d   :  { %18743 = vst [vmem:[#allocation57_spill] sm:$0xff] %v17309_v25  ;;  %v17315_v42 = vsel %vm18746_vm14, %v18745_v24, %v18744_v15  ;;  %v17321_v21 = vsel %vm18750_vm9, %v18749_v34, %v18748_v57  ;;  %vm18752_vm8 = vcmp.ge.f32.partialorder %v16712_v1, 0.0  ;;  %v18754_v0 = vld [vmem:[#allocation20_spill] sm:$0xff]  ;;  %v18756_v15 = vld [vmem:[#allocation73_spill] sm:$0xff]  ;;  %vm18761_vm9 = vcmp.ge.f32.partialorder %v16724_v16, 0.0 }
 0x80e   :  { %18747 = vst [vmem:[#allocation38_spill] sm:$0xff] %v17315_v42  ;;  %v17327_v43 = vsel %vm18752_vm8, %v16712_v1, %v18751_v55  ;;  %vm18755_vm10 = vcmp.ge.f32.partialorder %v18754_v0, 0.0  ;;  %v18757_v24 = vld [vmem:[#allocation36_spill] sm:$0xff]  ;;  %v18762_v1 = vld [vmem:[#allocation75_spill] sm:$0xff]  ;;  %vm18763_vm8 = vcmp.ge.f32.partialorder %v16728_v51, 0.0 }
 0x80f   :  { %v17333_v25 = vsel %vm18755_vm10, %v18754_v0, %v18753_v49  ;;  %vm18758_vm14 = vcmp.ge.f32.partialorder %v18757_v24, 0.0  ;;  %v18760_v57 = vld [vmem:[#allocation76_spill] sm:$0xff]  ;;  %v17351_v55 = vsel %vm18763_vm8, %v16728_v51, %v18762_v1  ;;  %v18764_v49 = vld [vmem:[#allocation13_spill] sm:$0xff]  ;;  %vm18765_vm10 = vcmp.ge.f32.partialorder %v16732_v32, 0.0  ;;  %v18771_v51 = vld [vmem:[#allocation78_spill] sm:$0xff] }
 0x810   :  { %v17339_v42 = vsel %vm18758_vm14, %v18757_v24, %v18756_v15  ;;  %v17345_v34 = vsel %vm18761_vm9, %v16724_v16, %v18760_v57  ;;  %v17357_v0 = vsel %vm18765_vm10, %v16732_v32, %v18764_v49  ;;  %v18766_v15 = vld [vmem:[#allocation77_spill] sm:$0xff]  ;;  %v18767_v24 = vld [vmem:[#allocation51_spill] sm:$0xff]  ;;  %vm18770_vm9 = vcmp.ge.f32.partialorder %v16740_v3, 0.0  ;;  %v18773_v32 = vld [vmem:[#allocation80_spill] sm:$0xff] }
 0x811   :  { %18759 = vst [vmem:[#allocation59_spill] sm:$0xff] %v17339_v42  ;;  %vm18768_vm14 = vcmp.ge.f32.partialorder %v18767_v24, 0.0  ;;  %v18769_v16 = vld [vmem:[#allocation79_spill] sm:$0xff]  ;;  %vm18772_vm8 = vcmp.ge.f32.partialorder %v16744_v60, 0.0  ;;  %vm18774_vm10 = vcmp.ge.f32.partialorder %v16748_v28, 0.0 }
 0x812   :  { %v17363_v42 = vsel %vm18768_vm14, %v18767_v24, %v18766_v15  ;;  %v17369_v57 = vsel %vm18770_vm9, %v16740_v3, %v18769_v16  ;;  %v17375_v1 = vsel %vm18772_vm8, %v16744_v60, %v18771_v51  ;;  %v17381_v49 = vsel %vm18774_vm10, %v16748_v28, %v18773_v32  ;;  %v18775_v15 = vld [vmem:[#allocation82_spill] sm:$0xff]  ;;  %v18778_v3 = vld [vmem:[#allocation81_spill] sm:$0xff]  ;;  %v18782_v28 = vld [vmem:[#allocation15_spill] sm:$0xff] }
 0x813   :  { %vm18776_vm14 = vcmp.ge.f32.partialorder %v16752_v20, 0.0  ;;  %vm18779_vm9 = vcmp.ge.f32.partialorder %v16756_v31, 0.0  ;;  %v18780_v60 = vld [vmem:[#allocation17_spill] sm:$0xff]  ;;  %vm18781_vm8 = vcmp.ge.f32.partialorder %v16760_v26, 0.0  ;;  %vm18783_vm10 = vcmp.ge.f32.partialorder %v16764_v41, 0.0 }
 0x814   :  { %v17387_v24 = vsel %vm18776_vm14, %v16752_v20, %v18775_v15  ;;  %v17393_v16 = vsel %vm18779_vm9, %v16756_v31, %v18778_v3  ;;  %v17399_v51 = vsel %vm18781_vm8, %v16760_v26, %v18780_v60  ;;  %v17405_v32 = vsel %vm18783_vm10, %v16764_v41, %v18782_v28  ;;  %v18784_v20 = vld [vmem:[#allocation19_spill] sm:$0xff]  ;;  %v18785_v15 = vld [vmem:[#allocation53_spill] sm:$0xff]  ;;  %v18788_v31 = vld [vmem:[#allocation16_spill] sm:$0xff] }
 0x815   :  { %18777 = vst [vmem:[#allocation58_spill] sm:$0xff] %v17387_v24  ;;  %vm18786_vm14 = vcmp.ge.f32.partialorder %v18785_v15, 0.0  ;;  %vm18789_vm9 = vcmp.ge.f32.partialorder %v16772_v27, 0.0  ;;  %v18791_v26 = vld [vmem:[#allocation23_spill] sm:$0xff]  ;;  %vm18792_vm8 = vcmp.ge.f32.partialorder %v16776_v47, 0.0  ;;  %v18794_v41 = vld [vmem:[#allocation21_spill] sm:$0xff] }
 0x816   :  { %v17411_v24 = vsel %vm18786_vm14, %v18785_v15, %v18784_v20  ;;  %v17417_v3 = vsel %vm18789_vm9, %v16772_v27, %v18788_v31  ;;  %v17423_v60 = vsel %vm18792_vm8, %v16776_v47, %v18791_v26  ;;  %vm18795_vm10 = vcmp.ge.f32.partialorder %v16780_v46, 0.0  ;;  %v18797_v20 = vld [vmem:[#allocation25_spill] sm:$0xff]  ;;  %v9748_v27 = vld [vmem:[%s17821_s0 + $0x21] sm:$0xff]  ;;  %v9747_v47 = vld [vmem:[%s17821_s0 + $0x19] sm:$0xff] }
 0x817   :  { %18787 = vst [vmem:[#allocation60_spill] sm:$0xff] %v17411_v24  ;;  %18790 = vst [vmem:[#allocation61_spill] sm:$0xff] %v17417_v3  ;;  %v17429_v28 = vsel %vm18795_vm10, %v16780_v46, %v18794_v41  ;;  %vm18798_vm14 = vcmp.ge.f32.partialorder %v16784_v52, 0.0  ;;  %v18800_v31 = vld [vmem:[#allocation22_spill] sm:$0xff]  ;;  %v18801_v26 = vld [vmem:[#allocation52_spill] sm:$0xff]  ;;  %vm18805_vm8 = vcmp.ge.f32.partialorder %v18688_v36, 0.0 }
 0x818   :  { %18793 = vst [vmem:[#allocation62_spill] sm:$0xff] %v17423_v60  ;;  %18796 = vst [vmem:[#allocation64_spill] sm:$0xff] %v17429_v28  ;;  %v17435_v15 = vsel %vm18798_vm14, %v16784_v52, %v18797_v20  ;;  %vm18802_vm9 = vcmp.ge.f32.partialorder %v18801_v26, 0.0  ;;  %v18804_v41 = vld [vmem:[#allocation24_spill] sm:$0xff]  ;;  %v18807_v20 = vld [vmem:[#allocation14_spill] sm:$0xff]  ;;  %vm18812_vm14 = vcmp.ge.f32.partialorder %v18692_v23, 0.0 }
 0x819   :  { %18799 = vst [vmem:[#allocation63_spill] sm:$0xff] %v17435_v15  ;;  %v17447_v46 = vsel %vm18802_vm9, %v18801_v26, %v18800_v31  ;;  %v17453_v52 = vsel %vm18805_vm8, %v18688_v36, %v18804_v41  ;;  %v18808_v15 = vld [vmem:[#allocation37_spill] sm:$0xff]  ;;  %v18811_v60 = vld [vmem:[#allocation27_spill] sm:$0xff]  ;;  %v18814_v41 = vld [vmem:[#allocation28_spill] sm:$0xff] }
 0x81a   :  { %18803 = vst [vmem:[#allocation65_spill] sm:$0xff] %v17447_v46  ;;  %18806 = vst [vmem:[#allocation67_spill] sm:$0xff] %v17453_v52  ;;  %vm18809_vm10 = vcmp.ge.f32.partialorder %v18808_v15, 0.0  ;;  %v17465_v3 = vsel %vm18812_vm14, %v18692_v23, %v18811_v60  ;;  %v9750_v31 = vld [vmem:[%s17821_s0 + $0x39] sm:$0xff]  ;;  %v9749_v36 = vld [vmem:[%s17821_s0 + $0x31] sm:$0xff]  ;;  %v17483_v23 = vsel %vm9002_vm2, %v18694_v11, %v18814_v41  ;;  %vm18846_vm2 = vcmp.ge.f32.partialorder %v16860_v59, 0.0 }
 0x81b   :  { %v17459_v28 = vsel %vm18809_vm10, %v18808_v15, %v18807_v20  ;;  %18813 = vst [vmem:[#allocation40_spill] sm:$0xff] %v17465_v3  ;;  %v9752_v26 = vld [vmem:[%s17821_s0 + $0x51] sm:$0xff]  ;;  %v9751_v15 = vld [vmem:[%s17821_s0 + $0x49] sm:$0xff]  ;;  %18815 = vst [vmem:[#allocation66_spill] sm:$0xff] %v17483_v23 }
 0x81c   :  { %18810 = vst [vmem:[#allocation39_spill] sm:$0xff] %v17459_v28  ;;  %v18816_v60 = vld [vmem:[#allocation31_spill] sm:$0xff]  ;;  %v18818_v3 = vld [vmem:[#allocation29_spill] sm:$0xff] }
 0x81d   :  { %v17489_v20 = vsel %vm9003_vm1, %v16808_v7, %v18816_v60  ;;  %v17495_v28 = vsel %vm9004_vm0, %v16812_v6, %v18818_v3  ;;  %v18820_v52 = vld [vmem:[#allocation33_spill] sm:$0xff]  ;;  %v9753_v7 = vld [vmem:[%s17821_s0 + $0x61] sm:$0xff]  ;;  %v9755_v6 = vld [vmem:[%s17821_s0 + $0x79] sm:$0xff]  ;;  %vm18836_vm0 = vcmp.ge.f32.partialorder %v16844_v14, 0.0  ;;  %vm18839_vm1 = vcmp.ge.f32.partialorder %v18707_v39, 0.0 }
 0x81e   :  { %18817 = vst [vmem:[#allocation41_spill] sm:$0xff] %v17489_v20  ;;  %18819 = vst [vmem:[#allocation68_spill] sm:$0xff] %v17495_v28  ;;  %v17501_v46 = vsel %vm9005_vm15, %v16816_v12, %v18820_v52  ;;  %v9754_v11 = vld [vmem:[%s17821_s0 + $0x69] sm:$0xff]  ;;  %v9756_v41 = vld [vmem:[%s17821_s0 + $0x81] sm:$0xff]  ;;  %vm18833_vm15 = vcmp.ge.f32.partialorder %v16840_v48, 0.0 }
 0x81f   :  { %18821 = vst [vmem:[#allocation69_spill] sm:$0xff] %v17501_v46  ;;  %v18822_v3 = vld [vmem:[#allocation30_spill] sm:$0xff]  ;;  %v18824_v52 = vld [vmem:[#allocation35_spill] sm:$0xff]  ;;  %v18826_v46 = vld [vmem:[#allocation32_spill] sm:$0xff] }
 0x820   :  { %v17519_v12 = vsel %vm9006_vm3, %v16820_v4, %v18822_v3  ;;  %v17525_v60 = vsel %vm9007_vm4, %v18700_v44, %v18824_v52  ;;  %v17531_v28 = vsel %vm9008_vm5, %v16828_v10, %v18826_v46  ;;  %v18828_v20 = vld [vmem:[#allocation26_spill] sm:$0xff]  ;;  %v9759_v10 = vld [vmem:[%s17821_s0 + $0xa9] sm:$0xff]  ;;  %vm18848_vm3 = vcmp.ge.f32.partialorder %v16864_v5, 0.0  ;;  %v9772_v24 = vld [vmem:[%s17821_s0 + $0x141] sm:$0xff] }
 0x821   :  { %18823 = vst [vmem:[#allocation42_spill] sm:$0xff] %v17519_v12  ;;  %18825 = vst [vmem:[#allocation43_spill] sm:$0xff] %v17525_v60  ;;  %v17537_v23 = vsel %vm9009_vm6, %v16832_v54, %v18828_v20  ;;  %v9758_v4 = vld [vmem:[%s17821_s0 + $0x99] sm:$0xff]  ;;  %v9757_v44 = vld [vmem:[%s17821_s0 + $0x91] sm:$0xff] }
 0x822   :  { %18827 = vst [vmem:[#allocation11_spill] sm:$0xff] %v17531_v28  ;;  %18829 = vst [vmem:[#allocation70_spill] sm:$0xff] %v17537_v23  ;;  %v9760_v3 = vld [vmem:[%s17821_s0 + $0xb1] sm:$0xff]  ;;  %v18835_v23 = vld [vmem:[#allocation47_spill] sm:$0xff] }
 0x823   :  { %v18830_v46 = vld [vmem:[#allocation45_spill] sm:$0xff]  ;;  %v18832_v20 = vld [vmem:[#allocation46_spill] sm:$0xff]  ;;  %v17567_v28 = vsel %vm18836_vm0, %v16844_v14, %v18835_v23  ;;  %v18841_v23 = vld [vmem:[#allocation48_spill] sm:$0xff] }
 0x824   :  { %v17555_v54 = vsel %vm9010_vm12, %v16836_v45, %v18830_v46  ;;  %v17561_v52 = vsel %vm18833_vm15, %v16840_v48, %v18832_v20  ;;  %18837 = vst [vmem:[#allocation72_spill] sm:$0xff] %v17567_v28  ;;  %v18838_v60 = vld [vmem:[#allocation34_spill] sm:$0xff]  ;;  %v9762_v45 = vld [vmem:[%s17821_s0 + $0xc9] sm:$0xff]  ;;  %v9761_v48 = vld [vmem:[%s17821_s0 + $0xc1] sm:$0xff] }
 0x825   :  { %18831 = vst [vmem:[#allocation71_spill] sm:$0xff] %v17555_v54  ;;  %18834 = vst [vmem:[#allocation49_spill] sm:$0xff] %v17561_v52  ;;  %v17573_v12 = vsel %vm18839_vm1, %v18707_v39, %v18838_v60  ;;  %v9764_v46 = vld [vmem:[%s17821_s0 + $0xe1] sm:$0xff]  ;;  %v9763_v14 = vld [vmem:[%s17821_s0 + $0xd9] sm:$0xff]  ;;  %v17591_v39 = vsel %vm9014_vm13, %v16852_v30, %v18841_v23  ;;  %v17609_v52 = vsel %vm18848_vm3, %v16864_v5, %v17162_v2 }
 0x826   :  { %18840 = vst [vmem:[#allocation50_spill] sm:$0xff] %v17573_v12  ;;  %18842 = vst [vmem:[#allocation44_spill] sm:$0xff] %v17591_v39  ;;  %v18843_v60 = vld [vmem:[#allocation18_spill] sm:$0xff]  ;;  %v18845_v12 = vld [vmem:[#allocation12_spill] sm:$0xff] }
 0x827   :  { %v17597_v20 = vsel %vm9015_vm7, %v16856_v29, %v18843_v60  ;;  %v17603_v28 = vsel %vm18846_vm2, %v16860_v59, %v18845_v12  ;;  %18849 = vst [vmem:[#allocation73_spill] sm:$0xff] %v17609_v52  ;;  %v9766_v30 = vld [vmem:[%s17821_s0 + $0xf9] sm:$0xff]  ;;  %v9765_v29 = vld [vmem:[%s17821_s0 + $0xf1] sm:$0xff]  ;;  %v9767_v59 = vld [vmem:[%s17821_s0 + $0x109] sm:$0xff] }
 0x828   :  { %18844 = vst [vmem:[#allocation74_spill] sm:$0xff] %v17597_v20  ;;  %18847 = vst [vmem:[#allocation20_spill] sm:$0xff] %v17603_v28  ;;  %v9768_v23 = vld [vmem:[%s17821_s0 + $0x111] sm:$0xff]  ;;  %v18851_v5 = vld [vmem:[#allocation56_spill] sm:$0xff]  ;;  %v9214_v20 = vadd.f32 %v9749_v36, %v17188_v9  ;;  %v9216_v9 = vadd.f32 %v9751_v15, %v17200_v33  ;;  %v9218_v36 = vadd.f32 %v9753_v7, %v17216_v19 }
 0x829   :  { %v18850_v12 = vld [vmem:[#allocation54_spill] sm:$0xff]  ;;  %v9212_v60 = vadd.f32 %v9747_v47, %v18851_v5  ;;  %v18852_v52 = vld [vmem:[#allocation55_spill] sm:$0xff]  ;;  %v9770_v39 = vld [vmem:[%s17821_s0 + $0x129] sm:$0xff]  ;;  %v9217_v47 = vadd.f32 %v9752_v26, %v17206_v61  ;;  %v9219_v61 = vadd.f32 %v9754_v11, %v17222_v18  ;;  %v9221_v19 = vadd.f32 %v9756_v41, %v17234_v22 }
 0x82a   :  { %v17627_v2 = vsel %vm9019_vm11, %v16868_v35, %v18850_v12  ;;  %v9213_v28 = vadd.f32 %v9748_v27, %v18852_v52  ;;  %v9769_v54 = vld [vmem:[%s17821_s0 + $0x121] sm:$0xff]  ;;  %v9771_v35 = vld [vmem:[%s17821_s0 + $0x139] sm:$0xff]  ;;  %v9215_v27 = vadd.f32 %v9750_v31, %v17194_v56  ;;  %v9773_v12 = vld [vmem:[%s17821_s0 + $0x151] sm:$0xff]  ;;  %v9220_v56 = vadd.f32 %v9755_v6, %v17228_v63  ;;  %9278 = vst [vmem:[#allocation8 + $0x10] sm:$0xff] %v9214_v20 }
 0x82b   :  { %v9774_v52 = vld [vmem:[%s17821_s0 + $0x159] sm:$0xff]  ;;  %v9776_v5 = vld [vmem:[%s17821_s0 + $0x171] sm:$0xff]  ;;  %v9775_v33 = vld [vmem:[%s17821_s0 + $0x169] sm:$0xff]  ;;  %v9222_v31 = vadd.f32 %v9757_v44, %v17244_v53  ;;  %9276 = vst [vmem:[#allocation8] sm:$0xff] %v9212_v60  ;;  %v9223_v22 = vadd.f32 %v9758_v4, %v17250_v62  ;;  %v9224_v53 = vadd.f32 %v9759_v10, %v17256_v50  ;;  %v9226_v11 = vadd.f32 %v9761_v48, %v17272_v40 }
 0x82c   :  { %9277 = vst [vmem:[#allocation8 + $0x8] sm:$0xff] %v9213_v28  ;;  %v9778_v26 = vld [vmem:[%s17821_s0 + $0x189] sm:$0xff]  ;;  %v9777_v15 = vld [vmem:[%s17821_s0 + $0x181] sm:$0xff]  ;;  %v9780_v18 = vld [vmem:[%s17821_s0 + $0x1d1] sm:$0xff]  ;;  %v9225_v28 = vadd.f32 %v9760_v3, %v17262_v17  ;;  %v9227_v17 = vadd.f32 %v9762_v45, %v17278_v8  ;;  %v9228_v40 = vadd.f32 %v9763_v14, %v17284_v58  ;;  %v9229_v6 = vadd.f32 %v9764_v46, %v17290_v37 }
 0x82d   :  { %v9779_v63 = vld [vmem:[%s17821_s0 + $0x1c9] sm:$0xff]  ;;  %9279 = vst [vmem:[#allocation8 + $0x18] sm:$0xff] %v9215_v27  ;;  %9280 = vst [vmem:[#allocation8 + $0x20] sm:$0xff] %v9216_v9  ;;  %v9781_v41 = vld [vmem:[%s17821_s0 + $0x1e1] sm:$0xff]  ;;  %v9230_v4 = vadd.f32 %v9765_v29, %v17297_v38  ;;  %v9231_v37 = vadd.f32 %v9766_v30, %v17303_v13  ;;  %v9234_v46 = vadd.f32 %v9769_v54, %v17321_v21 }
 0x82e   :  { %9281 = vst [vmem:[#allocation8 + $0x28] sm:$0xff] %v9217_v47  ;;  %9282 = vst [vmem:[#allocation8 + $0x30] sm:$0xff] %v9218_v36  ;;  %v9782_v7 = vld [vmem:[%s17821_s0 + $0x1e9] sm:$0xff]  ;;  %v9784_v62 = vld [vmem:[%s17821_s0 + $0x201] sm:$0xff]  ;;  %v9235_v30 = vadd.f32 %v9770_v39, %v17327_v43  ;;  %v9236_v21 = vadd.f32 %v9771_v35, %v17333_v25  ;;  %v9239_v43 = vadd.f32 %v9774_v52, %v17351_v55 }
 0x82f   :  { %v9783_v50 = vld [vmem:[%s17821_s0 + $0x1f9] sm:$0xff]  ;;  %9283 = vst [vmem:[#allocation8 + $0x38] sm:$0xff] %v9219_v61  ;;  %9284 = vst [vmem:[#allocation8 + $0x40] sm:$0xff] %v9220_v56  ;;  %v9785_v3 = vld [vmem:[%s17821_s0 + $0x211] sm:$0xff]  ;;  %v9242_v39 = vadd.f32 %v9777_v15, %v17369_v57  ;;  %v9246_v47 = vadd.f32 %v9781_v41, %v17393_v16 }
 0x830   :  { %9285 = vst [vmem:[#allocation8 + $0x48] sm:$0xff] %v9221_v19  ;;  %9286 = vst [vmem:[#allocation8 + $0x50] sm:$0xff] %v9222_v31  ;;  %v9786_v44 = vld [vmem:[%s17821_s0 + $0x219] sm:$0xff]  ;;  %v9788_v8 = vld [vmem:[%s17821_s0 + $0x231] sm:$0xff]  ;;  %v9248_v16 = vadd.f32 %v9783_v50, %v17405_v32 }
 0x831   :  { %v9787_v58 = vld [vmem:[%s17821_s0 + $0x229] sm:$0xff]  ;;  %v18854_v45 = vld [vmem:[#allocation38_spill] sm:$0xff]  ;;  %9287 = vst [vmem:[#allocation8 + $0x58] sm:$0xff] %v9223_v22  ;;  %9288 = vst [vmem:[#allocation8 + $0x60] sm:$0xff] %v9224_v53 }
 0x832   :  { %v18853_v38 = vld [vmem:[#allocation57_spill] sm:$0xff]  ;;  %v9233_v48 = vadd.f32 %v9768_v23, %v18854_v45  ;;  %9289 = vst [vmem:[#allocation8 + $0x68] sm:$0xff] %v9225_v28  ;;  %9290 = vst [vmem:[#allocation8 + $0x70] sm:$0xff] %v9226_v11  ;;  %v9789_v20 = vld [vmem:[%s17821_s0 + $0x241] sm:$0xff]  ;;  %v9238_v23 = vadd.f32 %v9773_v12, %v17345_v34  ;;  %v9240_v34 = vadd.f32 %v9775_v33, %v17357_v0 }
 0x833   :  { %v9232_v10 = vadd.f32 %v9767_v59, %v18853_v38  ;;  %v9790_v14 = vld [vmem:[%s17821_s0 + $0x249] sm:$0xff]  ;;  %v9792_v13 = vld [vmem:[%s17821_s0 + $0x261] sm:$0xff]  ;;  %9291 = vst [vmem:[#allocation8 + $0x78] sm:$0xff] %v9227_v17  ;;  %9292 = vst [vmem:[#allocation8 + $0x80] sm:$0xff] %v9228_v40  ;;  %v9244_v0 = vadd.f32 %v9779_v63, %v17381_v49  ;;  %v9247_v49 = vadd.f32 %v9782_v7, %v17399_v51 }
 0x834   :  { %v18855_v54 = vld [vmem:[#allocation59_spill] sm:$0xff]  ;;  %9293 = vst [vmem:[#allocation8 + $0x88] sm:$0xff] %v9229_v6  ;;  %9294 = vst [vmem:[#allocation8 + $0x90] sm:$0xff] %v9230_v4  ;;  %v9793_v25 = vld [vmem:[%s17821_s0 + $0x271] sm:$0xff] }
 0x835   :  { %v9237_v29 = vadd.f32 %v9772_v24, %v18855_v54  ;;  %v9791_v59 = vld [vmem:[%s17821_s0 + $0x259] sm:$0xff]  ;;  %v9241_v24 = vadd.f32 %v9776_v5, %v17363_v42  ;;  %9295 = vst [vmem:[#allocation8 + $0x98] sm:$0xff] %v9231_v37  ;;  %9296 = vst [vmem:[#allocation8 + $0xa0] sm:$0xff] %v9232_v10  ;;  %v9796_v35 = vld [vmem:[%s17821_s0 + $0x291] sm:$0xff]  ;;  %v9243_v42 = vadd.f32 %v9778_v26, %v17375_v1 }
 0x836   :  { %v9794_v60 = vld [vmem:[%s17821_s0 + $0x279] sm:$0xff]  ;;  %9297 = vst [vmem:[#allocation8 + $0xa8] sm:$0xff] %v9233_v48  ;;  %9298 = vst [vmem:[#allocation8 + $0xb0] sm:$0xff] %v9234_v46  ;;  %v9795_v27 = vld [vmem:[%s17821_s0 + $0x289] sm:$0xff] }
 0x837   :  { %v9798_v55 = vld [vmem:[%s17821_s0 + $0x2a9] sm:$0xff]  ;;  %v18856_v57 = vld [vmem:[#allocation58_spill] sm:$0xff]  ;;  %9299 = vst [vmem:[#allocation8 + $0xb8] sm:$0xff] %v9235_v30  ;;  %9300 = vst [vmem:[#allocation8 + $0xc0] sm:$0xff] %v9236_v21 }
 0x838   :  { %v9245_v9 = vadd.f32 %v9780_v18, %v18856_v57  ;;  %9301 = vst [vmem:[#allocation8 + $0xc8] sm:$0xff] %v9237_v29  ;;  %9302 = vst [vmem:[#allocation8 + $0xd0] sm:$0xff] %v9238_v23  ;;  %v9797_v36 = vld [vmem:[%s17821_s0 + $0x2a1] sm:$0xff]  ;;  %v9799_v1 = vld [vmem:[%s17821_s0 + $0x2b9] sm:$0xff] }
 0x839   :  { %v9800_v52 = vld [vmem:[%s17821_s0 + $0x2c1] sm:$0xff]  ;;  %v18858_v33 = vld [vmem:[#allocation61_spill] sm:$0xff]  ;;  %9303 = vst [vmem:[#allocation8 + $0xd8] sm:$0xff] %v9239_v43  ;;  %9304 = vst [vmem:[#allocation8 + $0xe0] sm:$0xff] %v9240_v34 }
 0x83a   :  { %v18857_v12 = vld [vmem:[#allocation60_spill] sm:$0xff]  ;;  %v9250_v61 = vadd.f32 %v9785_v3, %v18858_v33  ;;  %9305 = vst [vmem:[#allocation8 + $0xe8] sm:$0xff] %v9241_v24  ;;  %9306 = vst [vmem:[#allocation8 + $0xf0] sm:$0xff] %v9242_v39  ;;  %v9802_v56 = vld [vmem:[%s17821_s0 + $0x2d9] sm:$0xff] }
 0x83b   :  { %v9249_v5 = vadd.f32 %v9784_v62, %v18857_v12  ;;  %v9801_v19 = vld [vmem:[%s17821_s0 + $0x2d1] sm:$0xff]  ;;  %v18860_v26 = vld [vmem:[#allocation64_spill] sm:$0xff]  ;;  %v18861_v18 = vld [vmem:[#allocation63_spill] sm:$0xff]  ;;  %9307 = vst [vmem:[#allocation8 + $0xf8] sm:$0xff] %v9243_v42 }
 0x83c   :  { %v9804_v51 = vld [vmem:[%s17821_s0 + $0x2f1] sm:$0xff]  ;;  %v9252_v15 = vadd.f32 %v9787_v58, %v18860_v26  ;;  %v9253_v63 = vadd.f32 %v9788_v8, %v18861_v18  ;;  %9308 = vst [vmem:[#allocation8 + $0x100] sm:$0xff] %v9244_v0  ;;  %9309 = vst [vmem:[#allocation8 + $0x108] sm:$0xff] %v9245_v9  ;;  %v9803_v28 = vld [vmem:[%s17821_s0 + $0x2e9] sm:$0xff] }
 0x83d   :  { %v18859_v32 = vld [vmem:[#allocation62_spill] sm:$0xff]  ;;  %v18862_v22 = vld [vmem:[#allocation65_spill] sm:$0xff]  ;;  %9310 = vst [vmem:[#allocation8 + $0x110] sm:$0xff] %v9246_v47  ;;  %v9805_v7 = vld [vmem:[%s17821_s0 + $0x301] sm:$0xff] }
 0x83e   :  { %v9251_v31 = vadd.f32 %v9786_v44, %v18859_v32  ;;  %v9254_v53 = vadd.f32 %v9789_v20, %v18862_v22  ;;  %v9806_v11 = vld [vmem:[%s17821_s0 + $0x309] sm:$0xff]  ;;  %v18863_v41 = vld [vmem:[#allocation67_spill] sm:$0xff]  ;;  %v18866_v4 = vld [vmem:[#allocation66_spill] sm:$0xff]  ;;  %9311 = vst [vmem:[#allocation8 + $0x118] sm:$0xff] %v9247_v49 }
 0x83f   :  { %v9255_v62 = vadd.f32 %v9790_v14, %v18863_v41  ;;  %v18864_v50 = vld [vmem:[#allocation39_spill] sm:$0xff]  ;;  %v18865_v40 = vld [vmem:[#allocation40_spill] sm:$0xff]  ;;  %v9258_v44 = vadd.f32 %v9793_v25, %v18866_v4  ;;  %9312 = vst [vmem:[#allocation8 + $0x120] sm:$0xff] %v9248_v16  ;;  %9313 = vst [vmem:[#allocation8 + $0x128] sm:$0xff] %v9249_v5 }
 0x840   :  { %v9256_v17 = vadd.f32 %v9791_v59, %v18864_v50  ;;  %v9257_v6 = vadd.f32 %v9792_v13, %v18865_v40  ;;  %9314 = vst [vmem:[#allocation8 + $0x130] sm:$0xff] %v9250_v61  ;;  %v9808_v3 = vld [vmem:[%s17821_s0 + $0x321] sm:$0xff]  ;;  %v9807_v8 = vld [vmem:[%s17821_s0 + $0x319] sm:$0xff]  ;;  %v18867_v37 = vld [vmem:[#allocation41_spill] sm:$0xff] }
 0x841   :  { %v9810_v58 = vld [vmem:[%s17821_s0 + $0x339] sm:$0xff]  ;;  %v9259_v38 = vadd.f32 %v9794_v60, %v18867_v37  ;;  %v18868_v10 = vld [vmem:[#allocation68_spill] sm:$0xff]  ;;  %v18869_v48 = vld [vmem:[#allocation69_spill] sm:$0xff]  ;;  %9315 = vst [vmem:[#allocation8 + $0x138] sm:$0xff] %v9251_v31  ;;  %s10266_s0 = scalar_lea.vmem %s9346_s2, 8192 }
 0x842   :  { %v9260_v45 = vadd.f32 %v9795_v27, %v18868_v10  ;;  %v9261_v46 = vadd.f32 %v9796_v35, %v18869_v48  ;;  %v18870_v14 = vld [vmem:[#allocation42_spill] sm:$0xff]  ;;  %9316 = vst [vmem:[#allocation8 + $0x140] sm:$0xff] %v9252_v15  ;;  %9317 = vst [vmem:[#allocation8 + $0x148] sm:$0xff] %v9253_v63  ;;  %v18871_v13 = vld [vmem:[#allocation43_spill] sm:$0xff]  ;;  %p10267_p5 = scmp.ne.s32.totalorder %s9346_s2, %s10266_s0  ;;  %p10272_p7 = scmp.lt.s32.totalorder %s10266_s0, %s10266_s0 }
 0x843   :  { %v9262_v20 = vadd.f32 %v9797_v36, %v18870_v14  ;;  %9318 = vst [vmem:[#allocation8 + $0x150] sm:$0xff] %v9254_v53  ;;  %v9263_v30 = vadd.f32 %v9798_v55, %v18871_v13  ;;  %v18872_v21 = vld [vmem:[#allocation11_spill] sm:$0xff]  ;;  %v18873_v29 = vld [vmem:[#allocation70_spill] sm:$0xff]  ;;  %9319 = vst [vmem:[#allocation8 + $0x158] sm:$0xff] %v9255_v62 }
 0x844   :  { %v9264_v54 = vadd.f32 %v9799_v1, %v18872_v21  ;;  %v9265_v23 = vadd.f32 %v9800_v52, %v18873_v29  ;;  %v18874_v59 = vld [vmem:[#allocation71_spill] sm:$0xff]  ;;  %9320 = vst [vmem:[#allocation8 + $0x160] sm:$0xff] %v9256_v17  ;;  %9321 = vst [vmem:[#allocation8 + $0x168] sm:$0xff] %v9257_v6  ;;  %v18875_v25 = vld [vmem:[#allocation49_spill] sm:$0xff]  ;;  %v9275_v52 = vadd.f32 %v9810_v58, %v17627_v2  ;;  %p10273_p8 = por %p10272_p7, %p10271_p6 }
 0x845   :  { %v9266_v60 = vadd.f32 %v9801_v19, %v18874_v59  ;;  %9322 = vst [vmem:[#allocation8 + $0x170] sm:$0xff] %v9258_v44  ;;  %v9267_v43 = vadd.f32 %v9802_v56, %v18875_v25  ;;  %v18876_v34 = vld [vmem:[#allocation72_spill] sm:$0xff]  ;;  %v18877_v39 = vld [vmem:[#allocation50_spill] sm:$0xff]  ;;  %9323 = vst [vmem:[#allocation8 + $0x178] sm:$0xff] %v9259_v38 }
 0x846   :  { %v9268_v24 = vadd.f32 %v9803_v28, %v18876_v34  ;;  %v9269_v35 = vadd.f32 %v9804_v51, %v18877_v39  ;;  %v18878_v27 = vld [vmem:[#allocation44_spill] sm:$0xff]  ;;  %9324 = vst [vmem:[#allocation8 + $0x180] sm:$0xff] %v9260_v45  ;;  %9325 = vst [vmem:[#allocation8 + $0x188] sm:$0xff] %v9261_v46  ;;  %v18879_v55 = vld [vmem:[#allocation74_spill] sm:$0xff]  ;;  %p10274_p9 = pnand %p10273_p8, %p10267_p5 }
 0x847   :  { %v9270_v42 = vadd.f32 %v9805_v7, %v18878_v27  ;;  %9326 = vst [vmem:[#allocation8 + $0x190] sm:$0xff] %v9262_v20  ;;  %v9271_v0 = vadd.f32 %v9806_v11, %v18879_v55  ;;  %v18880_v57 = vld [vmem:[#allocation20_spill] sm:$0xff]  ;;  %v18881_v47 = vld [vmem:[#allocation73_spill] sm:$0xff]  ;;  %9327 = vst [vmem:[#allocation8 + $0x198] sm:$0xff] %v9263_v30 }
 0x848   :  { %v9272_v9 = vadd.f32 %v9807_v8, %v18880_v57  ;;  %v9273_v36 = vadd.f32 %v9808_v3, %v18881_v47  ;;  %9328 = vst [vmem:[#allocation8 + $0x1a0] sm:$0xff] %v9264_v54  ;;  %9329 = vst [vmem:[#allocation8 + $0x1a8] sm:$0xff] %v9265_v23 }
 0x849   :  { %9330 = vst [vmem:[#allocation8 + $0x1b0] sm:$0xff] %v9266_v60  ;;  %9331 = vst [vmem:[#allocation8 + $0x1b8] sm:$0xff] %v9267_v43 }
 0x84a   :  { %9332 = vst [vmem:[#allocation8 + $0x1c0] sm:$0xff] %v9268_v24  ;;  %9333 = vst [vmem:[#allocation8 + $0x1c8] sm:$0xff] %v9269_v35 }
 0x84b   :  { %9334 = vst [vmem:[#allocation8 + $0x1d0] sm:$0xff] %v9270_v42  ;;  %9335 = vst [vmem:[#allocation8 + $0x1d8] sm:$0xff] %v9271_v0 }
 0x84c   :  { %9336 = vst [vmem:[#allocation8 + $0x1e0] sm:$0xff] %v9272_v9  ;;  %9337 = vst [vmem:[#allocation8 + $0x1e8] sm:$0xff] %v9273_v36 }
 0x84d   :  { %9339 = vst [vmem:[#allocation8 + $0x1f8] sm:$0xff] %v9275_v52 }
 0x84e   :  { %10277 = shalt.err (!%p10274_p9)
}
 0x84f   :  { %9351 = dma.vmem_to_hbm [thread:$0]  %s9346_s2, 8192, %s17831_s10, [#allocation7], %s10291_s16, %s10291_s16, %s10292_s17  }
 0x850   :  { %10288 = dma.done.wait [#allocation7], 8192  }
 0x851   :  { %10289 = vsyncadd [#allocation7], 4294959104 }
 0x852   :  { %9355 = vsyncpa [#allocation6], 1 }
 0x853   :  { %9356 = vsyncpa [#allocation7], 1 }

</bundles_post_ra>
